<compile_context>
chip_gen: v5e
topology: v5e:2x2
jax: 0.10.0
libtpu: 0.0.40
codegen_flags: <defaults>
</compile_context>

<pallas_src>
import functools
import math

import jax
import jax.numpy as jnp
from jax.experimental import pallas as pl
from jax.experimental.pallas import tpu as pltpu


# --------------------------------------------------------------------------
# Hardware-aware knobs
# --------------------------------------------------------------------------

def _vmem_limit_bytes():
    """~75% of physical VMEM (v7x: 48 MiB, v5e/v6e: 96 MiB), with a safe floor."""
    default = 48 * 1024 * 1024
    try:
        cap = int(getattr(pltpu.get_tpu_info(), "vmem_capacity_bytes", 0))
        if cap > 0:
            return max(default, min(cap * 3 // 4, 100 * 1024 * 1024))
    except Exception:
        pass
    return default


_VMEM_LIMIT = _vmem_limit_bytes()


def _cparams(sems):
    return pltpu.CompilerParams(dimension_semantics=sems,
                                vmem_limit_bytes=_VMEM_LIMIT)


def _round_up(x, m):
    return ((x + m - 1) // m) * m


def _row_tile(m, cap=512):
    """Row-block size: >=2 grid steps when possible (both v7x TCs get work),
    capped so blocks stay comfortably inside VMEM."""
    if m <= 8:
        return m
    bm = _round_up(-(-m // 2), 8)          # ceil(m/2) rounded to sublane multiple
    return min(bm, cap, _round_up(m, 8))


def _probe_buffered_one():
    """Return pl.Buffered(1) if this runtime supports single-buffered blocks."""
    try:
        buf = pl.Buffered(1)

        def _k(x_ref, c_ref, o_ref):
            o_ref[...] = x_ref[...] + c_ref[...]

        f = pl.pallas_call(
            _k,
            out_shape=jax.ShapeDtypeStruct((16, 128), jnp.float32),
            grid=(2,),
            in_specs=[
                pl.BlockSpec((8, 128), lambda i: (i, 0)),
                pl.BlockSpec((8, 128), lambda i: (0, 0), pipeline_mode=buf),
            ],
            out_specs=pl.BlockSpec((8, 128), lambda i: (i, 0)),
        )
        jax.block_until_ready(
            f(jnp.zeros((16, 128), jnp.float32), jnp.ones((8, 128), jnp.float32)))
        return buf
    except Exception:
        return None


_BUFFERED_ONE = _probe_buffered_one()


def _const_spec(shape):
    """BlockSpec for a block whose index never changes across the grid.
    Single-buffered when supported (double-buffering it only burns VMEM)."""
    index_map = lambda *_: (0,) * len(shape)
    if _BUFFERED_ONE is not None:
        return pl.BlockSpec(shape, index_map, pipeline_mode=_BUFFERED_ONE)
    return pl.BlockSpec(shape, index_map)


# --------------------------------------------------------------------------
# Fused linear: (M, Din) @ (Din, Dout) + b  [+ GELU]   (bf16 MXU, f32 acc)
# --------------------------------------------------------------------------

def _matmul_bias_kernel(x_ref, w_ref, b_ref, o_ref, *, activation):
    x = x_ref[...].astype(jnp.bfloat16)
    y = jnp.dot(x, w_ref[...], preferred_element_type=jnp.float32)
    y = y + b_ref[...]
    if activation == "gelu":
        # tanh-approx GELU (lowering-safe on Mosaic; BERT reference is erf-GELU)
        y = jax.nn.gelu(y, approximate=True)
    o_ref[...] = y.astype(o_ref.dtype)


def matmul_bias(x, w, b, activation=None, out_dtype=None):
    """2-D tiled matmul + bias (+ optional GELU). x:(M,Din), w:(Din,Dout) bf16."""
    M, Din = x.shape
    Dout = w.shape[1]
    out_dtype = out_dtype if out_dtype is not None else x.dtype
    bm = _row_tile(M)
    bn = Dout if Dout <= 512 else 512
    grid = (pl.cdiv(M, bm), pl.cdiv(Dout, bn))
    return pl.pallas_call(
        functools.partial(_matmul_bias_kernel, activation=activation),
        out_shape=jax.ShapeDtypeStruct((M, Dout), out_dtype),
        grid=grid,
        in_specs=[
            pl.BlockSpec((bm, Din), lambda i, j: (i, 0)),
            pl.BlockSpec((Din, bn), lambda i, j: (0, j)),
            pl.BlockSpec((1, bn), lambda i, j: (0, j)),
        ],
        out_specs=pl.BlockSpec((bm, bn), lambda i, j: (i, j)),
        compiler_params=_cparams(("parallel", "parallel")),
    )(x, w, b.reshape(1, Dout))


# --------------------------------------------------------------------------
# Multi-head attention.
#   * packed QKV / packed KV arrive untouched (column-sliced inside the kernel)
#   * several batch samples per grid step
#   * per-head results written into an f32 VMEM accumulator (no concat),
#     single dense HBM store at the end
# --------------------------------------------------------------------------

def _mha_core(q, k, v, o_ref, acc_ref, *, num_heads, scale):
    H = q.shape[-1]
    hd = H // num_heads
    q = (q.astype(jnp.float32) * scale).astype(jnp.bfloat16)   # fold scale into q
    k = k.astype(jnp.bfloat16)
    v = v.astype(jnp.bfloat16)
    for h in range(num_heads):                                  # static head unroll
        sl = slice(h * hd, (h + 1) * hd)
        # batched over the samples in this block; contract head_dim (no k.T)
        s = jnp.einsum("bqd,bkd->bqk", q[..., sl], k[..., sl],
                       preferred_element_type=jnp.float32)
        s = s - jnp.max(s, axis=-1, keepdims=True)
        p = jnp.exp(s)
        # divide -> EUP reciprocal (free slot when VALU/XLU bound)
        p = p * pl.reciprocal(jnp.sum(p, axis=-1, keepdims=True), approx=True)
        acc_ref[:, :, sl] = jnp.einsum("bqk,bkd->bqd", p.astype(jnp.bfloat16),
                                       v[..., sl],
                                       preferred_element_type=jnp.float32)
    o_ref[...] = acc_ref[...].astype(o_ref.dtype)


def _mha_self_kernel(qkv_ref, o_ref, acc_ref, *, num_heads, scale, hidden):
    H = hidden
    q = qkv_ref[:, :, 0 * H:1 * H]
    k = qkv_ref[:, :, 1 * H:2 * H]
    v = qkv_ref[:, :, 2 * H:3 * H]
    _mha_core(q, k, v, o_ref, acc_ref, num_heads=num_heads, scale=scale)


def _mha_cross_kernel(q_ref, kv_ref, o_ref, acc_ref, *, num_heads, scale, hidden):
    H = hidden
    q = q_ref[...]
    k = kv_ref[:, :, 0 * H:1 * H]
    v = kv_ref[:, :, 1 * H:2 * H]
    _mha_core(q, k, v, o_ref, acc_ref, num_heads=num_heads, scale=scale)


def mha_self(qkv, num_heads, hidden, out_dtype=jnp.bfloat16):
    """Self-attention over packed qkv:(B,Lq,3H); all-ones mask => no masking."""
    B, Lq, _ = qkv.shape
    H = hidden
    scale = 1.0 / math.sqrt(H // num_heads)
    bb = min(B, 4)                       # several samples per grid step
    return pl.pallas_call(
        functools.partial(_mha_self_kernel, num_heads=num_heads, scale=scale,
                          hidden=H),
        out_shape=jax.ShapeDtypeStruct((B, Lq, H), out_dtype),
        grid=(pl.cdiv(B, bb),),
        in_specs=[pl.BlockSpec((bb, Lq, 3 * H), lambda i: (i, 0, 0))],
        out_specs=pl.BlockSpec((bb, Lq, H), lambda i: (i, 0, 0)),
        scratch_shapes=[pltpu.VMEM((bb, Lq, H), jnp.float32)],
        compiler_params=_cparams(("parallel",)),
    )(qkv)


def mha_cross(q, kv, num_heads, hidden, out_dtype=jnp.bfloat16):
    """Cross-attention: q:(B,Lq,H), packed kv:(B,Lk,2H)."""
    B, Lq, H = q.shape
    Lk = kv.shape[1]
    scale = 1.0 / math.sqrt(H // num_heads)
    bb = min(B, 4)
    return pl.pallas_call(
        functools.partial(_mha_cross_kernel, num_heads=num_heads, scale=scale,
                          hidden=H),
        out_shape=jax.ShapeDtypeStruct((B, Lq, H), out_dtype),
        grid=(pl.cdiv(B, bb),),
        in_specs=[
            pl.BlockSpec((bb, Lq, H), lambda i: (i, 0, 0)),
            pl.BlockSpec((bb, Lk, 2 * H), lambda i: (i, 0, 0)),
        ],
        out_specs=pl.BlockSpec((bb, Lq, H), lambda i: (i, 0, 0)),
        scratch_shapes=[pltpu.VMEM((bb, Lq, H), jnp.float32)],
        compiler_params=_cparams(("parallel",)),
    )(q, kv)


# --------------------------------------------------------------------------
# LayerNorm (no residual) -- embedding LN
# --------------------------------------------------------------------------

def _layernorm_kernel(x_ref, g_ref, b_ref, o_ref, *, eps):
    h = x_ref[...].astype(jnp.float32)
    mean = jnp.mean(h, axis=-1, keepdims=True)
    var = jnp.mean(jnp.square(h - mean), axis=-1, keepdims=True)
    y = (h - mean) * jax.lax.rsqrt(var + eps)
    o_ref[...] = (y * g_ref[...] + b_ref[...]).astype(o_ref.dtype)


def layernorm(x2d, gamma, beta, eps=1e-12):
    M, H = x2d.shape
    bm = _row_tile(M)
    return pl.pallas_call(
        functools.partial(_layernorm_kernel, eps=eps),
        out_shape=jax.ShapeDtypeStruct((M, H), x2d.dtype),
        grid=(pl.cdiv(M, bm),),
        in_specs=[
            pl.BlockSpec((bm, H), lambda i: (i, 0)),
            _const_spec((1, H)),
            _const_spec((1, H)),
        ],
        out_specs=pl.BlockSpec((bm, H), lambda i: (i, 0)),
        compiler_params=_cparams(("parallel",)),
    )(x2d, gamma.reshape(1, H), beta.reshape(1, H))


# --------------------------------------------------------------------------
# Fused: attention-output projection + residual add + LayerNorm
# --------------------------------------------------------------------------

def _proj_res_ln_kernel(x_ref, w_ref, b_ref, r_ref, g_ref, bb_ref, o_ref, *, eps):
    x = x_ref[...].astype(jnp.bfloat16)
    y = jnp.dot(x, w_ref[...], preferred_element_type=jnp.float32)
    h = y + b_ref[...] + r_ref[...].astype(jnp.float32)
    mean = jnp.mean(h, axis=-1, keepdims=True)
    var = jnp.mean(jnp.square(h - mean), axis=-1, keepdims=True)
    yn = (h - mean) * jax.lax.rsqrt(var + eps)
    o_ref[...] = (yn * g_ref[...] + bb_ref[...]).astype(o_ref.dtype)


def proj_residual_ln(x, w, b, res, gamma, beta, eps=1e-12):
    """LayerNorm(x @ w + b + res). x:(M,Din) (bf16 or f32), res:(M,H) f32."""
    M, Din = x.shape
    H = w.shape[1]
    bm = _row_tile(M)
    return pl.pallas_call(
        functools.partial(_proj_res_ln_kernel, eps=eps),
        out_shape=jax.ShapeDtypeStruct((M, H), res.dtype),
        grid=(pl.cdiv(M, bm),),
        in_specs=[
            pl.BlockSpec((bm, Din), lambda i: (i, 0)),
            _const_spec((Din, H)),
            _const_spec((1, H)),
            pl.BlockSpec((bm, H), lambda i: (i, 0)),
            _const_spec((1, H)),
            _const_spec((1, H)),
        ],
        out_specs=pl.BlockSpec((bm, H), lambda i: (i, 0)),
        compiler_params=_cparams(("parallel",)),
    )(x, w, b.reshape(1, H), res, gamma.reshape(1, H), beta.reshape(1, H))


# --------------------------------------------------------------------------
# Fused FFN: GELU(x @ Wi + bi) @ Wo + bo + x -> LayerNorm
# (intermediate activation never leaves VMEM; weights bf16, single-buffered)
# --------------------------------------------------------------------------

def _ffn_ln_kernel(x_ref, wi_ref, bi_ref, wo_ref, bo_ref, g_ref, b_ref, o_ref,
                   *, eps):
    x = x_ref[...].astype(jnp.float32)
    inter = jnp.dot(x.astype(jnp.bfloat16), wi_ref[...],
                    preferred_element_type=jnp.float32)
    inter = jax.nn.gelu(inter + bi_ref[...], approximate=True)
    y = jnp.dot(inter.astype(jnp.bfloat16), wo_ref[...],
                preferred_element_type=jnp.float32)
    h = y + bo_ref[...] + x
    mean = jnp.mean(h, axis=-1, keepdims=True)
    var = jnp.mean(jnp.square(h - mean), axis=-1, keepdims=True)
    yn = (h - mean) * jax.lax.rsqrt(var + eps)
    o_ref[...] = (yn * g_ref[...] + b_ref[...]).astype(o_ref.dtype)


def ffn_ln(x, wi, bi, wo, bo, gamma, beta, eps=1e-12):
    M, H = x.shape
    I = wi.shape[1]
    bm = _row_tile(M)
    return pl.pallas_call(
        functools.partial(_ffn_ln_kernel, eps=eps),
        out_shape=jax.ShapeDtypeStruct((M, H), x.dtype),
        grid=(pl.cdiv(M, bm),),
        in_specs=[
            pl.BlockSpec((bm, H), lambda i: (i, 0)),
            _const_spec((H, I)),
            _const_spec((1, I)),
            _const_spec((I, H)),
            _const_spec((1, H)),
            _const_spec((1, H)),
            _const_spec((1, H)),
        ],
        out_specs=pl.BlockSpec((bm, H), lambda i: (i, 0)),
        compiler_params=_cparams(("parallel",)),
    )(x, wi, bi.reshape(1, I), wo, bo.reshape(1, H),
      gamma.reshape(1, H), beta.reshape(1, H))


# --------------------------------------------------------------------------
# Q-Former (BLIP-2 style BertLayer with cross-attention + query FFN)
# --------------------------------------------------------------------------

def qformer_layer(hidden2d, enc2d, p, num_heads, B, Lq, Lk):
    H = hidden2d.shape[-1]

    # self-attention: fused QKV projection; packed tensor sliced inside MHA kernel
    qkv = matmul_bias(hidden2d, p["sa_qkv_w"], p["sa_qkv_b"],
                      out_dtype=jnp.bfloat16)                       # (B*Lq, 3H)
    attn = mha_self(qkv.reshape(B, Lq, 3 * H), num_heads, H)        # (B, Lq, H) bf16
    hidden2d = proj_residual_ln(attn.reshape(B * Lq, H), p["sa_o_w"], p["sa_o_b"],
                                hidden2d, p["sa_ln_g"], p["sa_ln_b"])

    # cross-attention: queries attend to encoder states (all-ones mask)
    q = matmul_bias(hidden2d, p["ca_q_w"], p["ca_q_b"],
                    out_dtype=jnp.bfloat16)                         # (B*Lq, H)
    kv = matmul_bias(enc2d, p["ca_kv_w"], p["ca_kv_b"],
                     out_dtype=jnp.bfloat16)                        # (B*Lk, 2H)
    attn = mha_cross(q.reshape(B, Lq, H), kv.reshape(B, Lk, 2 * H), num_heads, H)
    hidden2d = proj_residual_ln(attn.reshape(B * Lq, H), p["ca_o_w"], p["ca_o_b"],
                                hidden2d, p["ca_ln_g"], p["ca_ln_b"])

    # query FFN (intermediate_query / output_query path) fused with its LN
    hidden2d = ffn_ln(hidden2d, p["ffn_i_w"], p["ffn_i_b"],
                      p["ffn_o_w"], p["ffn_o_b"],
                      p["ffn_ln_g"], p["ffn_ln_b"])
    return hidden2d


def qformer_bert(query_embeds, enc_states, params, num_heads):
    # BertEmbeddings with word/position embeddings removed: only LayerNorm
    # (dropout is a no-op in eval mode).
    B, Lq, H = query_embeds.shape
    Lk = enc_states.shape[1]
    h2d = layernorm(query_embeds.reshape(B * Lq, H),
                    params["emb_ln_g"], params["emb_ln_b"])
    enc2d = enc_states.reshape(B * Lk, enc_states.shape[-1])
    for lp in params["layers"]:
        h2d = qformer_layer(h2d, enc2d, lp, num_heads, B, Lq, Lk)
    return h2d.reshape(B, Lq, H)


# --------------------------------------------------------------------------
# Full forward (mirrors VideoLlamaVideoQformer.forward)
# --------------------------------------------------------------------------

def videollama_forward(x, params, *, batch_size, time_length, num_heads):
    BT, N, Vw = x.shape
    # image-level Q-Former over each frame
    q_tok = params["query_tokens"]
    q_tok = jnp.broadcast_to(q_tok, (BT, q_tok.shape[1], q_tok.shape[2]))
    q_hidden = qformer_bert(q_tok, x, params["qformer"], num_heads)     # (BT, Q1, H)

    Q1, H = q_hidden.shape[1], q_hidden.shape[2]
    # frame position embedding add (cheap broadcast add -> plain JAX glue)
    pos_ids = jnp.arange(time_length)
    frame_pos = params["frame_pos_emb"][pos_ids]                        # (T, H)
    frame_hidden = q_hidden.reshape(batch_size, time_length, Q1, H)
    frame_hidden = frame_hidden + frame_pos[None, :, None, :]
    frame_hidden = frame_hidden.reshape(batch_size, time_length * Q1, H)

    # video-level Q-Former
    vq_tok = params["video_query_tokens"]
    vq_tok = jnp.broadcast_to(vq_tok, (batch_size, vq_tok.shape[1], vq_tok.shape[2]))
    video_hidden = qformer_bert(vq_tok, frame_hidden,
                                params["video_qformer"], num_heads)     # (B, Q2, H)

    # llama projection (2-D tiled matmul)
    Q2 = video_hidden.shape[1]
    out2d = matmul_bias(video_hidden.reshape(batch_size * Q2, H),
                        params["llama_proj_w"], params["llama_proj_b"])
    return out2d.reshape(batch_size, Q2, -1)


# --------------------------------------------------------------------------
# Deterministic parameter initialization (synthetic, not a checkpoint)
# --------------------------------------------------------------------------

def _linear_params(key, din, dout, std=0.02):
    # weights stored in bf16 (MXU path); biases stay f32 (added post-accumulate)
    w = (jax.random.normal(key, (din, dout), jnp.float32) * std).astype(jnp.bfloat16)
    b = jnp.zeros((dout,), jnp.float32)
    return w, b


def init_qformer_params(key, num_layers, hidden, enc_width, intermediate):
    params = {
        "emb_ln_g": jnp.ones((hidden,), jnp.float32),
        "emb_ln_b": jnp.zeros((hidden,), jnp.float32),
        "layers": [],
    }
    for _ in range(num_layers):
        key, *ks = jax.random.split(key, 8)
        lp = {}
        # fused Q/K/V weights == concat of separate q/k/v weights along out dim
        lp["sa_qkv_w"], lp["sa_qkv_b"] = _linear_params(ks[0], hidden, 3 * hidden)
        lp["sa_o_w"], lp["sa_o_b"] = _linear_params(ks[1], hidden, hidden)
        lp["sa_ln_g"] = jnp.ones((hidden,), jnp.float32)
        lp["sa_ln_b"] = jnp.zeros((hidden,), jnp.float32)
        lp["ca_q_w"], lp["ca_q_b"] = _linear_params(ks[2], hidden, hidden)
        lp["ca_kv_w"], lp["ca_kv_b"] = _linear_params(ks[3], enc_width, 2 * hidden)
        lp["ca_o_w"], lp["ca_o_b"] = _linear_params(ks[4], hidden, hidden)
        lp["ca_ln_g"] = jnp.ones((hidden,), jnp.float32)
        lp["ca_ln_b"] = jnp.zeros((hidden,), jnp.float32)
        lp["ffn_i_w"], lp["ffn_i_b"] = _linear_params(ks[5], hidden, intermediate)
        lp["ffn_o_w"], lp["ffn_o_b"] = _linear_params(ks[6], intermediate, hidden)
        lp["ffn_ln_g"] = jnp.ones((hidden,), jnp.float32)
        lp["ffn_ln_b"] = jnp.zeros((hidden,), jnp.float32)
        params["layers"].append(lp)
    return params, key


def init_all_params(key, *, hidden, vision_width, num_query_tok, num_video_query_tok,
                    num_layers, intermediate, max_frames, llama_dim):
    key, k1, k2, k3, k4, k5 = jax.random.split(key, 6)
    params = {}
    params["query_tokens"] = jax.random.normal(k1, (1, num_query_tok, hidden),
                                               jnp.float32) * 0.02
    params["video_query_tokens"] = jax.random.normal(k2, (1, num_video_query_tok, hidden),
                                                     jnp.float32) * 0.02
    params["frame_pos_emb"] = jax.random.normal(k3, (max_frames, hidden),
                                                jnp.float32) * 0.02
    params["qformer"], key = init_qformer_params(k4, num_layers, hidden,
                                                 vision_width, intermediate)
    params["video_qformer"], key = init_qformer_params(k5, num_layers, hidden,
                                                       hidden, intermediate)
    key, kl = jax.random.split(key)
    params["llama_proj_w"], params["llama_proj_b"] = _linear_params(kl, hidden, llama_dim)
    return params


# --------------------------------------------------------------------------
# Main
# --------------------------------------------------------------------------

if __name__ == "__main__":
    # Small, self-consistent shapes
    B = 2          # batch_size
    T = 4          # time_length (num frames)
    N = 16         # patches per frame
    VW = 64        # vision_width (encoder width of the image Q-Former)
    H = 32         # Q-Former hidden size
    NH = 4         # attention heads (head_dim = 8)
    Q1 = 8         # image Q-Former query tokens
    Q2 = 8         # video Q-Former query tokens (32 in the original module)
    INTER = 4 * H  # FFN intermediate size
    LLAMA = 64     # llama_proj output dim (4096 in the original module)
    LAYERS = 2

    key = jax.random.PRNGKey(0)
    key, kx = jax.random.split(key)
    x = jax.random.normal(kx, (B * T, N, VW), jnp.float32)

    params = init_all_params(
        key, hidden=H, vision_width=VW, num_query_tok=Q1, num_video_query_tok=Q2,
        num_layers=LAYERS, intermediate=INTER, max_frames=8, llama_dim=LLAMA)

    fwd = jax.jit(functools.partial(videollama_forward,
                                    batch_size=B, time_length=T, num_heads=NH))
    out = fwd(x, params)
    out = jax.block_until_ready(out)

    assert out.shape == (B, Q2, LLAMA), out.shape
    assert jnp.all(jnp.isfinite(out))
    print("KERNEL_OK")
</pallas_src>

<mosaic_0001>
module attributes {stable_mosaic.version = 11 : i64} {
  func.func @_k(%arg0: i32, %arg1: memref<8x128xf32, #tpu.memory_space<vmem>>, %arg2: memref<8x128xf32, #tpu.memory_space<vmem>>, %arg3: memref<8x128xf32, #tpu.memory_space<vmem>>) attributes {dimension_semantics = [#tpu.dimension_semantics<arbitrary>], iteration_bounds = array<i64: 2>, scalar_prefetch = 0 : i64, scratch_operands = 0 : i64, tpu.core_type = #tpu.core_type<tc>, window_params = [{transform_indices = @transform_0, window_bounds = array<i64: 8, 128>}, {pipeline_mode = #tpu.pipeline_mode<synchronous>, transform_indices = @transform_1, window_bounds = array<i64: 8, 128>}, {transform_indices = @transform_2, window_bounds = array<i64: 8, 128>}]} {
    %c0 = arith.constant 0 : index
    %c0_0 = arith.constant 0 : index
    %0 = vector.load %arg1[%c0, %c0_0] : memref<8x128xf32, #tpu.memory_space<vmem>>, vector<8x128xf32>
    %c0_1 = arith.constant 0 : index
    %c0_2 = arith.constant 0 : index
    %1 = vector.load %arg2[%c0_1, %c0_2] : memref<8x128xf32, #tpu.memory_space<vmem>>, vector<8x128xf32>
    %2 = arith.addf %0, %1 : vector<8x128xf32>
    %c0_3 = arith.constant 0 : index
    %c0_4 = arith.constant 0 : index
    %3 = vector.load %arg3[%c0_3, %c0_4] : memref<8x128xf32, #tpu.memory_space<vmem>>, vector<8x128xf32>
    tpu.vector_store %arg3[%c0_3, %c0_4], %2 {strides = array<i32>} : memref<8x128xf32, #tpu.memory_space<vmem>>, vector<8x128xf32>,
    return
  }
  func.func @transform_0(%arg0: i32) -> (i32, i32) {
    %c0_i32 = arith.constant 0 : i32
    %c0_i32_0 = arith.constant 0 : i32
    return %arg0, %c0_i32 : i32, i32
  }
  func.func @transform_1(%arg0: i32) -> (i32, i32) {
    %c0_i32 = arith.constant 0 : i32
    %c0_i32_0 = arith.constant 0 : i32
    %c0_i32_1 = arith.constant 0 : i32
    return %c0_i32, %c0_i32_0 : i32, i32
  }
  func.func @transform_2(%arg0: i32) -> (i32, i32) {
    %c0_i32 = arith.constant 0 : i32
    %c0_i32_0 = arith.constant 0 : i32
    return %arg0, %c0_i32 : i32, i32
  }
}

module attributes {stable_mosaic.version = 11 : i64} {
  func.func @_mha_self_kernel(%arg0: i32, %arg1: memref<4x8x96xbf16, #tpu.memory_space<vmem>>, %arg2: memref<4x8x32xbf16, #tpu.memory_space<vmem>>, %arg3: memref<4x8x32xf32, #tpu.memory_space<vmem>>) attributes {dimension_semantics = [#tpu.dimension_semantics<parallel>], iteration_bounds = array<i64: 2>, scalar_prefetch = 0 : i64, scratch_operands = 1 : i64, tpu.core_type = #tpu.core_type<tc>, window_params = [{transform_indices = @transform_0, window_bounds = array<i64: 4, 8, 96>}, {transform_indices = @transform_1, window_bounds = array<i64: 4, 8, 32>}]} {
    %c0 = arith.constant 0 : index
    %c0_0 = arith.constant 0 : index
    %c0_1 = arith.constant 0 : index
    %0 = vector.load %arg1[%c0, %c0_0, %c0_1] : memref<4x8x96xbf16, #tpu.memory_space<vmem>>, vector<4x8x32xbf16>
    %c0_2 = arith.constant 0 : index
    %c0_3 = arith.constant 0 : index
    %c32 = arith.constant 32 : index
    %1 = vector.load %arg1[%c0_2, %c0_3, %c32] : memref<4x8x96xbf16, #tpu.memory_space<vmem>>, vector<4x8x32xbf16>
    %c0_4 = arith.constant 0 : index
    %c0_5 = arith.constant 0 : index
    %c64 = arith.constant 64 : index
    %2 = vector.load %arg1[%c0_4, %c0_5, %c64] : memref<4x8x96xbf16, #tpu.memory_space<vmem>>, vector<4x8x32xbf16>
    %3 = arith.extf %0 : vector<4x8x32xbf16> to vector<4x8x32xf32>
    %cst = arith.constant 0.353553385 : f32
    %4 = vector.broadcast %cst : f32 to vector<4x8x32xf32>
    %5 = arith.mulf %3, %4 : vector<4x8x32xf32>
    %6 = arith.truncf %5 : vector<4x8x32xf32> to vector<4x8x32xbf16>
    %7 = vector.extract_strided_slice %6 {offsets = [0, 0, 0], sizes = [4, 8, 8], strides = [1, 1, 1]} : vector<4x8x32xbf16> to vector<4x8x8xbf16>
    %8 = vector.extract_strided_slice %1 {offsets = [0, 0, 0], sizes = [4, 8, 8], strides = [1, 1, 1]} : vector<4x8x32xbf16> to vector<4x8x8xbf16>
    "tpu.trace_start"() <{level = 10 : i32, message = "bqd,bkd->bqk"}> : () -> ()
    %cst_6 = arith.constant dense<0.000000e+00> : vector<4x8x8xf32>
    %9 = tpu.matmul %7, %8, %cst_6 {dimension_numbers = #tpu.dot_dimension_numbers<[2], [2], [1], [1], [0, 0, 0, 1, 1, 1], [0], [0]>} : vector<4x8x8xbf16>, vector<4x8x8xbf16>, vector<4x8x8xf32> -> vector<4x8x8xf32>
    "tpu.trace_stop"() : () -> ()
    %cst_7 = arith.constant dense<0xFF800000> : vector<4x8xf32>
    %10 = vector.multi_reduction <maximumf>, %9, %cst_7 [2] : vector<4x8x8xf32> to vector<4x8xf32>
    %11 = vector.shape_cast %10 : vector<4x8xf32> to vector<4x8x1xf32>
    %12 = vector.broadcast %11 : vector<4x8x1xf32> to vector<4x8x8xf32>
    %13 = arith.subf %9, %12 : vector<4x8x8xf32>
    %14 = math.exp %13 : vector<4x8x8xf32>
    %cst_8 = arith.constant dense<0.000000e+00> : vector<4x8xf32>
    %15 = vector.multi_reduction <add>, %14, %cst_8 [2] : vector<4x8x8xf32> to vector<4x8xf32>
    %16 = vector.shape_cast %15 : vector<4x8xf32> to vector<4x8x1xf32>
    %17 = tpu.reciprocal %16 {approx = true} : vector<4x8x1xf32> -> vector<4x8x1xf32>
    %18 = vector.broadcast %17 : vector<4x8x1xf32> to vector<4x8x8xf32>
    %19 = arith.mulf %14, %18 : vector<4x8x8xf32>
    %20 = arith.truncf %19 : vector<4x8x8xf32> to vector<4x8x8xbf16>
    %21 = vector.extract_strided_slice %2 {offsets = [0, 0, 0], sizes = [4, 8, 8], strides = [1, 1, 1]} : vector<4x8x32xbf16> to vector<4x8x8xbf16>
    "tpu.trace_start"() <{level = 10 : i32, message = "bqk,bkd->bqd"}> : () -> ()
    %cst_9 = arith.constant dense<0.000000e+00> : vector<4x8x8xf32>
    %22 = tpu.matmul %20, %21, %cst_9 {dimension_numbers = #tpu.dot_dimension_numbers<[2], [1], [1], [2], [0, 0, 0, 1, 1, 2], [0], [0]>} : vector<4x8x8xbf16>, vector<4x8x8xbf16>, vector<4x8x8xf32> -> vector<4x8x8xf32>
    "tpu.trace_stop"() : () -> ()
    %c0_10 = arith.constant 0 : index
    %c0_11 = arith.constant 0 : index
    %c0_12 = arith.constant 0 : index
    %23 = vector.load %arg3[%c0_10, %c0_11, %c0_12] : memref<4x8x32xf32, #tpu.memory_space<vmem>>, vector<4x8x8xf32>
    tpu.vector_store %arg3[%c0_10, %c0_11, %c0_12], %22 {strides = array<i32>} : memref<4x8x32xf32, #tpu.memory_space<vmem>>, vector<4x8x8xf32>,
    %24 = vector.extract_strided_slice %6 {offsets = [0, 0, 8], sizes = [4, 8, 8], strides = [1, 1, 1]} : vector<4x8x32xbf16> to vector<4x8x8xbf16>
    %25 = vector.extract_strided_slice %1 {offsets = [0, 0, 8], sizes = [4, 8, 8], strides = [1, 1, 1]} : vector<4x8x32xbf16> to vector<4x8x8xbf16>
    "tpu.trace_start"() <{level = 10 : i32, message = "bqd,bkd->bqk"}> : () -> ()
    %cst_13 = arith.constant dense<0.000000e+00> : vector<4x8x8xf32>
    %26 = tpu.matmul %24, %25, %cst_13 {dimension_numbers = #tpu.dot_dimension_numbers<[2], [2], [1], [1], [0, 0, 0, 1, 1, 1], [0], [0]>} : vector<4x8x8xbf16>, vector<4x8x8xbf16>, vector<4x8x8xf32> -> vector<4x8x8xf32>
    "tpu.trace_stop"() : () -> ()
    %cst_14 = arith.constant dense<0xFF800000> : vector<4x8xf32>
    %27 = vector.multi_reduction <maximumf>, %26, %cst_14 [2] : vector<4x8x8xf32> to vector<4x8xf32>
    %28 = vector.shape_cast %27 : vector<4x8xf32> to vector<4x8x1xf32>
    %29 = vector.broadcast %28 : vector<4x8x1xf32> to vector<4x8x8xf32>
    %30 = arith.subf %26, %29 : vector<4x8x8xf32>
    %31 = math.exp %30 : vector<4x8x8xf32>
    %cst_15 = arith.constant dense<0.000000e+00> : vector<4x8xf32>
    %32 = vector.multi_reduction <add>, %31, %cst_15 [2] : vector<4x8x8xf32> to vector<4x8xf32>
    %33 = vector.shape_cast %32 : vector<4x8xf32> to vector<4x8x1xf32>
    %34 = tpu.reciprocal %33 {approx = true} : vector<4x8x1xf32> -> vector<4x8x1xf32>
    %35 = vector.broadcast %34 : vector<4x8x1xf32> to vector<4x8x8xf32>
    %36 = arith.mulf %31, %35 : vector<4x8x8xf32>
    %37 = arith.truncf %36 : vector<4x8x8xf32> to vector<4x8x8xbf16>
    %38 = vector.extract_strided_slice %2 {offsets = [0, 0, 8], sizes = [4, 8, 8], strides = [1, 1, 1]} : vector<4x8x32xbf16> to vector<4x8x8xbf16>
    "tpu.trace_start"() <{level = 10 : i32, message = "bqk,bkd->bqd"}> : () -> ()
    %cst_16 = arith.constant dense<0.000000e+00> : vector<4x8x8xf32>
    %39 = tpu.matmul %37, %38, %cst_16 {dimension_numbers = #tpu.dot_dimension_numbers<[2], [1], [1], [2], [0, 0, 0, 1, 1, 2], [0], [0]>} : vector<4x8x8xbf16>, vector<4x8x8xbf16>, vector<4x8x8xf32> -> vector<4x8x8xf32>
    "tpu.trace_stop"() : () -> ()
    %c0_17 = arith.constant 0 : index
    %c0_18 = arith.constant 0 : index
    %c8 = arith.constant 8 : index
    %40 = vector.load %arg3[%c0_17, %c0_18, %c8] : memref<4x8x32xf32, #tpu.memory_space<vmem>>, vector<4x8x8xf32>
    tpu.vector_store %arg3[%c0_17, %c0_18, %c8], %39 {strides = array<i32>} : memref<4x8x32xf32, #tpu.memory_space<vmem>>, vector<4x8x8xf32>,
    %41 = vector.extract_strided_slice %6 {offsets = [0, 0, 16], sizes = [4, 8, 8], strides = [1, 1, 1]} : vector<4x8x32xbf16> to vector<4x8x8xbf16>
    %42 = vector.extract_strided_slice %1 {offsets = [0, 0, 16], sizes = [4, 8, 8], strides = [1, 1, 1]} : vector<4x8x32xbf16> to vector<4x8x8xbf16>
    "tpu.trace_start"() <{level = 10 : i32, message = "bqd,bkd->bqk"}> : () -> ()
    %cst_19 = arith.constant dense<0.000000e+00> : vector<4x8x8xf32>
    %43 = tpu.matmul %41, %42, %cst_19 {dimension_numbers = #tpu.dot_dimension_numbers<[2], [2], [1], [1], [0, 0, 0, 1, 1, 1], [0], [0]>} : vector<4x8x8xbf16>, vector<4x8x8xbf16>, vector<4x8x8xf32> -> vector<4x8x8xf32>
    "tpu.trace_stop"() : () -> ()
    %cst_20 = arith.constant dense<0xFF800000> : vector<4x8xf32>
    %44 = vector.multi_reduction <maximumf>, %43, %cst_20 [2] : vector<4x8x8xf32> to vector<4x8xf32>
    %45 = vector.shape_cast %44 : vector<4x8xf32> to vector<4x8x1xf32>
    %46 = vector.broadcast %45 : vector<4x8x1xf32> to vector<4x8x8xf32>
    %47 = arith.subf %43, %46 : vector<4x8x8xf32>
    %48 = math.exp %47 : vector<4x8x8xf32>
    %cst_21 = arith.constant dense<0.000000e+00> : vector<4x8xf32>
    %49 = vector.multi_reduction <add>, %48, %cst_21 [2] : vector<4x8x8xf32> to vector<4x8xf32>
    %50 = vector.shape_cast %49 : vector<4x8xf32> to vector<4x8x1xf32>
    %51 = tpu.reciprocal %50 {approx = true} : vector<4x8x1xf32> -> vector<4x8x1xf32>
    %52 = vector.broadcast %51 : vector<4x8x1xf32> to vector<4x8x8xf32>
    %53 = arith.mulf %48, %52 : vector<4x8x8xf32>
    %54 = arith.truncf %53 : vector<4x8x8xf32> to vector<4x8x8xbf16>
    %55 = vector.extract_strided_slice %2 {offsets = [0, 0, 16], sizes = [4, 8, 8], strides = [1, 1, 1]} : vector<4x8x32xbf16> to vector<4x8x8xbf16>
    "tpu.trace_start"() <{level = 10 : i32, message = "bqk,bkd->bqd"}> : () -> ()
    %cst_22 = arith.constant dense<0.000000e+00> : vector<4x8x8xf32>
    %56 = tpu.matmul %54, %55, %cst_22 {dimension_numbers = #tpu.dot_dimension_numbers<[2], [1], [1], [2], [0, 0, 0, 1, 1, 2], [0], [0]>} : vector<4x8x8xbf16>, vector<4x8x8xbf16>, vector<4x8x8xf32> -> vector<4x8x8xf32>
    "tpu.trace_stop"() : () -> ()
    %c0_23 = arith.constant 0 : index
    %c0_24 = arith.constant 0 : index
    %c16 = arith.constant 16 : index
    %57 = vector.load %arg3[%c0_23, %c0_24, %c16] : memref<4x8x32xf32, #tpu.memory_space<vmem>>, vector<4x8x8xf32>
    tpu.vector_store %arg3[%c0_23, %c0_24, %c16], %56 {strides = array<i32>} : memref<4x8x32xf32, #tpu.memory_space<vmem>>, vector<4x8x8xf32>,
    %58 = vector.extract_strided_slice %6 {offsets = [0, 0, 24], sizes = [4, 8, 8], strides = [1, 1, 1]} : vector<4x8x32xbf16> to vector<4x8x8xbf16>
    %59 = vector.extract_strided_slice %1 {offsets = [0, 0, 24], sizes = [4, 8, 8], strides = [1, 1, 1]} : vector<4x8x32xbf16> to vector<4x8x8xbf16>
    "tpu.trace_start"() <{level = 10 : i32, message = "bqd,bkd->bqk"}> : () -> ()
    %cst_25 = arith.constant dense<0.000000e+00> : vector<4x8x8xf32>
    %60 = tpu.matmul %58, %59, %cst_25 {dimension_numbers = #tpu.dot_dimension_numbers<[2], [2], [1], [1], [0, 0, 0, 1, 1, 1], [0], [0]>} : vector<4x8x8xbf16>, vector<4x8x8xbf16>, vector<4x8x8xf32> -> vector<4x8x8xf32>
    "tpu.trace_stop"() : () -> ()
    %cst_26 = arith.constant dense<0xFF800000> : vector<4x8xf32>
    %61 = vector.multi_reduction <maximumf>, %60, %cst_26 [2] : vector<4x8x8xf32> to vector<4x8xf32>
    %62 = vector.shape_cast %61 : vector<4x8xf32> to vector<4x8x1xf32>
    %63 = vector.broadcast %62 : vector<4x8x1xf32> to vector<4x8x8xf32>
    %64 = arith.subf %60, %63 : vector<4x8x8xf32>
    %65 = math.exp %64 : vector<4x8x8xf32>
    %cst_27 = arith.constant dense<0.000000e+00> : vector<4x8xf32>
    %66 = vector.multi_reduction <add>, %65, %cst_27 [2] : vector<4x8x8xf32> to vector<4x8xf32>
    %67 = vector.shape_cast %66 : vector<4x8xf32> to vector<4x8x1xf32>
    %68 = tpu.reciprocal %67 {approx = true} : vector<4x8x1xf32> -> vector<4x8x1xf32>
    %69 = vector.broadcast %68 : vector<4x8x1xf32> to vector<4x8x8xf32>
    %70 = arith.mulf %65, %69 : vector<4x8x8xf32>
    %71 = arith.truncf %70 : vector<4x8x8xf32> to vector<4x8x8xbf16>
    %72 = vector.extract_strided_slice %2 {offsets = [0, 0, 24], sizes = [4, 8, 8], strides = [1, 1, 1]} : vector<4x8x32xbf16> to vector<4x8x8xbf16>
    "tpu.trace_start"() <{level = 10 : i32, message = "bqk,bkd->bqd"}> : () -> ()
    %cst_28 = arith.constant dense<0.000000e+00> : vector<4x8x8xf32>
    %73 = tpu.matmul %71, %72, %cst_28 {dimension_numbers = #tpu.dot_dimension_numbers<[2], [1], [1], [2], [0, 0, 0, 1, 1, 2], [0], [0]>} : vector<4x8x8xbf16>, vector<4x8x8xbf16>, vector<4x8x8xf32> -> vector<4x8x8xf32>
    "tpu.trace_stop"() : () -> ()
    %c0_29 = arith.constant 0 : index
    %c0_30 = arith.constant 0 : index
    %c24 = arith.constant 24 : index
    %74 = vector.load %arg3[%c0_29, %c0_30, %c24] : memref<4x8x32xf32, #tpu.memory_space<vmem>>, vector<4x8x8xf32>
    tpu.vector_store %arg3[%c0_29, %c0_30, %c24], %73 {strides = array<i32>} : memref<4x8x32xf32, #tpu.memory_space<vmem>>, vector<4x8x8xf32>,
    %c0_31 = arith.constant 0 : index
    %c0_32 = arith.constant 0 : index
    %c0_33 = arith.constant 0 : index
    %75 = vector.load %arg3[%c0_31, %c0_32, %c0_33] : memref<4x8x32xf32, #tpu.memory_space<vmem>>, vector<4x8x32xf32>
    %76 = arith.truncf %75 : vector<4x8x32xf32> to vector<4x8x32xbf16>
    %c0_34 = arith.constant 0 : index
    %c0_35 = arith.constant 0 : index
    %c0_36 = arith.constant 0 : index
    %77 = vector.load %arg2[%c0_34, %c0_35, %c0_36] : memref<4x8x32xbf16, #tpu.memory_space<vmem>>, vector<4x8x32xbf16>
    tpu.vector_store %arg2[%c0_34, %c0_35, %c0_36], %76 {strides = array<i32>} : memref<4x8x32xbf16, #tpu.memory_space<vmem>>, vector<4x8x32xbf16>,
    return
  }
  func.func @transform_0(%arg0: i32) -> (i32, i32, i32) {
    %c0_i32 = arith.constant 0 : i32
    %c0_i32_0 = arith.constant 0 : i32
    %c0_i32_1 = arith.constant 0 : i32
    return %arg0, %c0_i32, %c0_i32_0 : i32, i32, i32
  }
  func.func @transform_1(%arg0: i32) -> (i32, i32, i32) {
    %c0_i32 = arith.constant 0 : i32
    %c0_i32_0 = arith.constant 0 : i32
    %c0_i32_1 = arith.constant 0 : i32
    return %arg0, %c0_i32, %c0_i32_0 : i32, i32, i32
  }
}

module attributes {stable_mosaic.version = 11 : i64} {
  func.func @_layernorm_kernel(%arg0: i32, %arg1: memref<32x32xf32, #tpu.memory_space<vmem>>, %arg2: memref<1x32xf32, #tpu.memory_space<vmem>>, %arg3: memref<1x32xf32, #tpu.memory_space<vmem>>, %arg4: memref<32x32xf32, #tpu.memory_space<vmem>>) attributes {dimension_semantics = [#tpu.dimension_semantics<parallel>], iteration_bounds = array<i64: 2>, scalar_prefetch = 0 : i64, scratch_operands = 0 : i64, tpu.core_type = #tpu.core_type<tc>, window_params = [{transform_indices = @transform_0, window_bounds = array<i64: 32, 32>}, {pipeline_mode = #tpu.pipeline_mode<synchronous>, transform_indices = @transform_1, window_bounds = array<i64: 1, 32>}, {pipeline_mode = #tpu.pipeline_mode<synchronous>, transform_indices = @transform_2, window_bounds = array<i64: 1, 32>}, {transform_indices = @transform_3, window_bounds = array<i64: 32, 32>}]} {
    %c0 = arith.constant 0 : index
    %c0_0 = arith.constant 0 : index
    %0 = vector.load %arg1[%c0, %c0_0] : memref<32x32xf32, #tpu.memory_space<vmem>>, vector<32x32xf32>
    %cst = arith.constant dense<0.000000e+00> : vector<32xf32>
    %1 = vector.multi_reduction <add>, %0, %cst [1] : vector<32x32xf32> to vector<32xf32>
    %2 = vector.shape_cast %1 : vector<32xf32> to vector<32x1xf32>
    %cst_1 = arith.constant 3.200000e+01 : f32
    %3 = vector.broadcast %cst_1 : f32 to vector<32x1xf32>
    %4 = arith.divf %2, %3 : vector<32x1xf32>
    %5 = vector.broadcast %4 : vector<32x1xf32> to vector<32x32xf32>
    %6 = arith.subf %0, %5 : vector<32x32xf32>
    %7 = arith.mulf %6, %6 : vector<32x32xf32>
    %cst_2 = arith.constant dense<0.000000e+00> : vector<32xf32>
    %8 = vector.multi_reduction <add>, %7, %cst_2 [1] : vector<32x32xf32> to vector<32xf32>
    %9 = vector.shape_cast %8 : vector<32xf32> to vector<32x1xf32>
    %cst_3 = arith.constant 3.200000e+01 : f32
    %10 = vector.broadcast %cst_3 : f32 to vector<32x1xf32>
    %11 = arith.divf %9, %10 : vector<32x1xf32>
    %12 = vector.broadcast %4 : vector<32x1xf32> to vector<32x32xf32>
    %13 = arith.subf %0, %12 : vector<32x32xf32>
    %cst_4 = arith.constant 9.99999996E-13 : f32
    %14 = vector.broadcast %cst_4 : f32 to vector<32x1xf32>
    %15 = arith.addf %11, %14 : vector<32x1xf32>
    %16 = math.rsqrt %15 : vector<32x1xf32>
    %17 = vector.broadcast %16 : vector<32x1xf32> to vector<32x32xf32>
    %18 = arith.mulf %13, %17 : vector<32x32xf32>
    %c0_5 = arith.constant 0 : index
    %c0_6 = arith.constant 0 : index
    %19 = vector.load %arg2[%c0_5, %c0_6] : memref<1x32xf32, #tpu.memory_space<vmem>>, vector<1x32xf32>
    %20 = vector.broadcast %19 : vector<1x32xf32> to vector<32x32xf32>
    %21 = arith.mulf %18, %20 : vector<32x32xf32>
    %c0_7 = arith.constant 0 : index
    %c0_8 = arith.constant 0 : index
    %22 = vector.load %arg3[%c0_7, %c0_8] : memref<1x32xf32, #tpu.memory_space<vmem>>, vector<1x32xf32>
    %23 = vector.broadcast %22 : vector<1x32xf32> to vector<32x32xf32>
    %24 = arith.addf %21, %23 : vector<32x32xf32>
    %c0_9 = arith.constant 0 : index
    %c0_10 = arith.constant 0 : index
    %25 = vector.load %arg4[%c0_9, %c0_10] : memref<32x32xf32, #tpu.memory_space<vmem>>, vector<32x32xf32>
    tpu.vector_store %arg4[%c0_9, %c0_10], %24 {strides = array<i32>} : memref<32x32xf32, #tpu.memory_space<vmem>>, vector<32x32xf32>,
    return
  }
  func.func @transform_0(%arg0: i32) -> (i32, i32) {
    %c0_i32 = arith.constant 0 : i32
    %c0_i32_0 = arith.constant 0 : i32
    return %arg0, %c0_i32 : i32, i32
  }
  func.func @transform_1(%arg0: i32) -> (i32, i32) {
    %c0_i32 = arith.constant 0 : i32
    %c0_i32_0 = arith.constant 0 : i32
    %c0_i32_1 = arith.constant 0 : i32
    return %c0_i32, %c0_i32_0 : i32, i32
  }
  func.func @transform_2(%arg0: i32) -> (i32, i32) {
    %c0_i32 = arith.constant 0 : i32
    %c0_i32_0 = arith.constant 0 : i32
    %c0_i32_1 = arith.constant 0 : i32
    return %c0_i32, %c0_i32_0 : i32, i32
  }
  func.func @transform_3(%arg0: i32) -> (i32, i32) {
    %c0_i32 = arith.constant 0 : i32
    %c0_i32_0 = arith.constant 0 : i32
    return %arg0, %c0_i32 : i32, i32
  }
}

module attributes {stable_mosaic.version = 11 : i64} {
  func.func @_matmul_bias_kernel(%arg0: i32, %arg1: i32, %arg2: memref<32x32xf32, #tpu.memory_space<vmem>>, %arg3: memref<32x96xbf16, #tpu.memory_space<vmem>>, %arg4: memref<1x96xf32, #tpu.memory_space<vmem>>, %arg5: memref<32x96xbf16, #tpu.memory_space<vmem>>) attributes {dimension_semantics = [#tpu.dimension_semantics<parallel>, #tpu.dimension_semantics<parallel>], iteration_bounds = array<i64: 2, 1>, scalar_prefetch = 0 : i64, scratch_operands = 0 : i64, tpu.core_type = #tpu.core_type<tc>, window_params = [{transform_indices = @transform_0, window_bounds = array<i64: 32, 32>}, {transform_indices = @transform_1, window_bounds = array<i64: 32, 96>}, {transform_indices = @transform_2, window_bounds = array<i64: 1, 96>}, {transform_indices = @transform_3, window_bounds = array<i64: 32, 96>}]} {
    %c0 = arith.constant 0 : index
    %c0_0 = arith.constant 0 : index
    %0 = vector.load %arg2[%c0, %c0_0] : memref<32x32xf32, #tpu.memory_space<vmem>>, vector<32x32xf32>
    %1 = arith.truncf %0 : vector<32x32xf32> to vector<32x32xbf16>
    %c0_1 = arith.constant 0 : index
    %c0_2 = arith.constant 0 : index
    %2 = vector.load %arg3[%c0_1, %c0_2] : memref<32x96xbf16, #tpu.memory_space<vmem>>, vector<32x96xbf16>
    %cst = arith.constant dense<0.000000e+00> : vector<32x96xf32>
    %3 = tpu.matmul %1, %2, %cst {dimension_numbers = #tpu.dot_dimension_numbers<[1], [0], [0], [1], [0, 0, 1, 1], [], []>} : vector<32x32xbf16>, vector<32x96xbf16>, vector<32x96xf32> -> vector<32x96xf32>
    %c0_3 = arith.constant 0 : index
    %c0_4 = arith.constant 0 : index
    %4 = vector.load %arg4[%c0_3, %c0_4] : memref<1x96xf32, #tpu.memory_space<vmem>>, vector<1x96xf32>
    %5 = vector.broadcast %4 : vector<1x96xf32> to vector<32x96xf32>
    %6 = arith.addf %3, %5 : vector<32x96xf32>
    %7 = arith.truncf %6 : vector<32x96xf32> to vector<32x96xbf16>
    %c0_5 = arith.constant 0 : index
    %c0_6 = arith.constant 0 : index
    %8 = vector.load %arg5[%c0_5, %c0_6] : memref<32x96xbf16, #tpu.memory_space<vmem>>, vector<32x96xbf16>
    tpu.vector_store %arg5[%c0_5, %c0_6], %7 {strides = array<i32>} : memref<32x96xbf16, #tpu.memory_space<vmem>>, vector<32x96xbf16>,
    return
  }
  func.func @transform_0(%arg0: i32, %arg1: i32) -> (i32, i32) {
    %c0_i32 = arith.constant 0 : i32
    %c0_i32_0 = arith.constant 0 : i32
    return %arg0, %c0_i32 : i32, i32
  }
  func.func @transform_1(%arg0: i32, %arg1: i32) -> (i32, i32) {
    %c0_i32 = arith.constant 0 : i32
    %c0_i32_0 = arith.constant 0 : i32
    return %c0_i32, %arg1 : i32, i32
  }
  func.func @transform_2(%arg0: i32, %arg1: i32) -> (i32, i32) {
    %c0_i32 = arith.constant 0 : i32
    %c0_i32_0 = arith.constant 0 : i32
    return %c0_i32, %arg1 : i32, i32
  }
  func.func @transform_3(%arg0: i32, %arg1: i32) -> (i32, i32) {
    %c0_i32 = arith.constant 0 : i32
    return %arg0, %arg1 : i32, i32
  }
}

module attributes {stable_mosaic.version = 11 : i64} {
  func.func @_proj_res_ln_kernel(%arg0: i32, %arg1: memref<32x32xbf16, #tpu.memory_space<vmem>>, %arg2: memref<32x32xbf16, #tpu.memory_space<vmem>>, %arg3: memref<1x32xf32, #tpu.memory_space<vmem>>, %arg4: memref<32x32xf32, #tpu.memory_space<vmem>>, %arg5: memref<1x32xf32, #tpu.memory_space<vmem>>, %arg6: memref<1x32xf32, #tpu.memory_space<vmem>>, %arg7: memref<32x32xf32, #tpu.memory_space<vmem>>) attributes {dimension_semantics = [#tpu.dimension_semantics<parallel>], iteration_bounds = array<i64: 2>, scalar_prefetch = 0 : i64, scratch_operands = 0 : i64, tpu.core_type = #tpu.core_type<tc>, window_params = [{transform_indices = @transform_0, window_bounds = array<i64: 32, 32>}, {pipeline_mode = #tpu.pipeline_mode<synchronous>, transform_indices = @transform_1, window_bounds = array<i64: 32, 32>}, {pipeline_mode = #tpu.pipeline_mode<synchronous>, transform_indices = @transform_2, window_bounds = array<i64: 1, 32>}, {transform_indices = @transform_3, window_bounds = array<i64: 32, 32>}, {pipeline_mode = #tpu.pipeline_mode<synchronous>, transform_indices = @transform_4, window_bounds = array<i64: 1, 32>}, {pipeline_mode = #tpu.pipeline_mode<synchronous>, transform_indices = @transform_5, window_bounds = array<i64: 1, 32>}, {transform_indices = @transform_6, window_bounds = array<i64: 32, 32>}]} {
    %c0 = arith.constant 0 : index
    %c0_0 = arith.constant 0 : index
    %0 = vector.load %arg1[%c0, %c0_0] : memref<32x32xbf16, #tpu.memory_space<vmem>>, vector<32x32xbf16>
    %c0_1 = arith.constant 0 : index
    %c0_2 = arith.constant 0 : index
    %1 = vector.load %arg2[%c0_1, %c0_2] : memref<32x32xbf16, #tpu.memory_space<vmem>>, vector<32x32xbf16>
    %cst = arith.constant dense<0.000000e+00> : vector<32x32xf32>
    %2 = tpu.matmul %0, %1, %cst {dimension_numbers = #tpu.dot_dimension_numbers<[1], [0], [0], [1], [0, 0, 1, 1], [], []>} : vector<32x32xbf16>, vector<32x32xbf16>, vector<32x32xf32> -> vector<32x32xf32>
    %c0_3 = arith.constant 0 : index
    %c0_4 = arith.constant 0 : index
    %3 = vector.load %arg3[%c0_3, %c0_4] : memref<1x32xf32, #tpu.memory_space<vmem>>, vector<1x32xf32>
    %4 = vector.broadcast %3 : vector<1x32xf32> to vector<32x32xf32>
    %5 = arith.addf %2, %4 : vector<32x32xf32>
    %c0_5 = arith.constant 0 : index
    %c0_6 = arith.constant 0 : index
    %6 = vector.load %arg4[%c0_5, %c0_6] : memref<32x32xf32, #tpu.memory_space<vmem>>, vector<32x32xf32>
    %7 = arith.addf %5, %6 : vector<32x32xf32>
    %cst_7 = arith.constant dense<0.000000e+00> : vector<32xf32>
    %8 = vector.multi_reduction <add>, %7, %cst_7 [1] : vector<32x32xf32> to vector<32xf32>
    %9 = vector.shape_cast %8 : vector<32xf32> to vector<32x1xf32>
    %cst_8 = arith.constant 3.200000e+01 : f32
    %10 = vector.broadcast %cst_8 : f32 to vector<32x1xf32>
    %11 = arith.divf %9, %10 : vector<32x1xf32>
    %12 = vector.broadcast %11 : vector<32x1xf32> to vector<32x32xf32>
    %13 = arith.subf %7, %12 : vector<32x32xf32>
    %14 = arith.mulf %13, %13 : vector<32x32xf32>
    %cst_9 = arith.constant dense<0.000000e+00> : vector<32xf32>
    %15 = vector.multi_reduction <add>, %14, %cst_9 [1] : vector<32x32xf32> to vector<32xf32>
    %16 = vector.shape_cast %15 : vector<32xf32> to vector<32x1xf32>
    %cst_10 = arith.constant 3.200000e+01 : f32
    %17 = vector.broadcast %cst_10 : f32 to vector<32x1xf32>
    %18 = arith.divf %16, %17 : vector<32x1xf32>
    %19 = vector.broadcast %11 : vector<32x1xf32> to vector<32x32xf32>
    %20 = arith.subf %7, %19 : vector<32x32xf32>
    %cst_11 = arith.constant 9.99999996E-13 : f32
    %21 = vector.broadcast %cst_11 : f32 to vector<32x1xf32>
    %22 = arith.addf %18, %21 : vector<32x1xf32>
    %23 = math.rsqrt %22 : vector<32x1xf32>
    %24 = vector.broadcast %23 : vector<32x1xf32> to vector<32x32xf32>
    %25 = arith.mulf %20, %24 : vector<32x32xf32>
    %c0_12 = arith.constant 0 : index
    %c0_13 = arith.constant 0 : index
    %26 = vector.load %arg5[%c0_12, %c0_13] : memref<1x32xf32, #tpu.memory_space<vmem>>, vector<1x32xf32>
    %27 = vector.broadcast %26 : vector<1x32xf32> to vector<32x32xf32>
    %28 = arith.mulf %25, %27 : vector<32x32xf32>
    %c0_14 = arith.constant 0 : index
    %c0_15 = arith.constant 0 : index
    %29 = vector.load %arg6[%c0_14, %c0_15] : memref<1x32xf32, #tpu.memory_space<vmem>>, vector<1x32xf32>
    %30 = vector.broadcast %29 : vector<1x32xf32> to vector<32x32xf32>
    %31 = arith.addf %28, %30 : vector<32x32xf32>
    %c0_16 = arith.constant 0 : index
    %c0_17 = arith.constant 0 : index
    %32 = vector.load %arg7[%c0_16, %c0_17] : memref<32x32xf32, #tpu.memory_space<vmem>>, vector<32x32xf32>
    tpu.vector_store %arg7[%c0_16, %c0_17], %31 {strides = array<i32>} : memref<32x32xf32, #tpu.memory_space<vmem>>, vector<32x32xf32>,
    return
  }
  func.func @transform_0(%arg0: i32) -> (i32, i32) {
    %c0_i32 = arith.constant 0 : i32
    %c0_i32_0 = arith.constant 0 : i32
    return %arg0, %c0_i32 : i32, i32
  }
  func.func @transform_1(%arg0: i32) -> (i32, i32) {
    %c0_i32 = arith.constant 0 : i32
    %c0_i32_0 = arith.constant 0 : i32
    %c0_i32_1 = arith.constant 0 : i32
    return %c0_i32, %c0_i32_0 : i32, i32
  }
  func.func @transform_2(%arg0: i32) -> (i32, i32) {
    %c0_i32 = arith.constant 0 : i32
    %c0_i32_0 = arith.constant 0 : i32
    %c0_i32_1 = arith.constant 0 : i32
    return %c0_i32, %c0_i32_0 : i32, i32
  }
  func.func @transform_3(%arg0: i32) -> (i32, i32) {
    %c0_i32 = arith.constant 0 : i32
    %c0_i32_0 = arith.constant 0 : i32
    return %arg0, %c0_i32 : i32, i32
  }
  func.func @transform_4(%arg0: i32) -> (i32, i32) {
    %c0_i32 = arith.constant 0 : i32
    %c0_i32_0 = arith.constant 0 : i32
    %c0_i32_1 = arith.constant 0 : i32
    return %c0_i32, %c0_i32_0 : i32, i32
  }
  func.func @transform_5(%arg0: i32) -> (i32, i32) {
    %c0_i32 = arith.constant 0 : i32
    %c0_i32_0 = arith.constant 0 : i32
    %c0_i32_1 = arith.constant 0 : i32
    return %c0_i32, %c0_i32_0 : i32, i32
  }
  func.func @transform_6(%arg0: i32) -> (i32, i32) {
    %c0_i32 = arith.constant 0 : i32
    %c0_i32_0 = arith.constant 0 : i32
    return %arg0, %c0_i32 : i32, i32
  }
}

module attributes {stable_mosaic.version = 11 : i64} {
  func.func @_matmul_bias_kernel(%arg0: i32, %arg1: i32, %arg2: memref<32x32xf32, #tpu.memory_space<vmem>>, %arg3: memref<32x32xbf16, #tpu.memory_space<vmem>>, %arg4: memref<1x32xf32, #tpu.memory_space<vmem>>, %arg5: memref<32x32xbf16, #tpu.memory_space<vmem>>) attributes {dimension_semantics = [#tpu.dimension_semantics<parallel>, #tpu.dimension_semantics<parallel>], iteration_bounds = array<i64: 2, 1>, scalar_prefetch = 0 : i64, scratch_operands = 0 : i64, tpu.core_type = #tpu.core_type<tc>, window_params = [{transform_indices = @transform_0, window_bounds = array<i64: 32, 32>}, {transform_indices = @transform_1, window_bounds = array<i64: 32, 32>}, {transform_indices = @transform_2, window_bounds = array<i64: 1, 32>}, {transform_indices = @transform_3, window_bounds = array<i64: 32, 32>}]} {
    %c0 = arith.constant 0 : index
    %c0_0 = arith.constant 0 : index
    %0 = vector.load %arg2[%c0, %c0_0] : memref<32x32xf32, #tpu.memory_space<vmem>>, vector<32x32xf32>
    %1 = arith.truncf %0 : vector<32x32xf32> to vector<32x32xbf16>
    %c0_1 = arith.constant 0 : index
    %c0_2 = arith.constant 0 : index
    %2 = vector.load %arg3[%c0_1, %c0_2] : memref<32x32xbf16, #tpu.memory_space<vmem>>, vector<32x32xbf16>
    %cst = arith.constant dense<0.000000e+00> : vector<32x32xf32>
    %3 = tpu.matmul %1, %2, %cst {dimension_numbers = #tpu.dot_dimension_numbers<[1], [0], [0], [1], [0, 0, 1, 1], [], []>} : vector<32x32xbf16>, vector<32x32xbf16>, vector<32x32xf32> -> vector<32x32xf32>
    %c0_3 = arith.constant 0 : index
    %c0_4 = arith.constant 0 : index
    %4 = vector.load %arg4[%c0_3, %c0_4] : memref<1x32xf32, #tpu.memory_space<vmem>>, vector<1x32xf32>
    %5 = vector.broadcast %4 : vector<1x32xf32> to vector<32x32xf32>
    %6 = arith.addf %3, %5 : vector<32x32xf32>
    %7 = arith.truncf %6 : vector<32x32xf32> to vector<32x32xbf16>
    %c0_5 = arith.constant 0 : index
    %c0_6 = arith.constant 0 : index
    %8 = vector.load %arg5[%c0_5, %c0_6] : memref<32x32xbf16, #tpu.memory_space<vmem>>, vector<32x32xbf16>
    tpu.vector_store %arg5[%c0_5, %c0_6], %7 {strides = array<i32>} : memref<32x32xbf16, #tpu.memory_space<vmem>>, vector<32x32xbf16>,
    return
  }
  func.func @transform_0(%arg0: i32, %arg1: i32) -> (i32, i32) {
    %c0_i32 = arith.constant 0 : i32
    %c0_i32_0 = arith.constant 0 : i32
    return %arg0, %c0_i32 : i32, i32
  }
  func.func @transform_1(%arg0: i32, %arg1: i32) -> (i32, i32) {
    %c0_i32 = arith.constant 0 : i32
    %c0_i32_0 = arith.constant 0 : i32
    return %c0_i32, %arg1 : i32, i32
  }
  func.func @transform_2(%arg0: i32, %arg1: i32) -> (i32, i32) {
    %c0_i32 = arith.constant 0 : i32
    %c0_i32_0 = arith.constant 0 : i32
    return %c0_i32, %arg1 : i32, i32
  }
  func.func @transform_3(%arg0: i32, %arg1: i32) -> (i32, i32) {
    %c0_i32 = arith.constant 0 : i32
    return %arg0, %arg1 : i32, i32
  }
}

module attributes {stable_mosaic.version = 11 : i64} {
  func.func @_matmul_bias_kernel(%arg0: i32, %arg1: i32, %arg2: memref<64x64xf32, #tpu.memory_space<vmem>>, %arg3: memref<64x64xbf16, #tpu.memory_space<vmem>>, %arg4: memref<1x64xf32, #tpu.memory_space<vmem>>, %arg5: memref<64x64xbf16, #tpu.memory_space<vmem>>) attributes {dimension_semantics = [#tpu.dimension_semantics<parallel>, #tpu.dimension_semantics<parallel>], iteration_bounds = array<i64: 2, 1>, scalar_prefetch = 0 : i64, scratch_operands = 0 : i64, tpu.core_type = #tpu.core_type<tc>, window_params = [{transform_indices = @transform_0, window_bounds = array<i64: 64, 64>}, {transform_indices = @transform_1, window_bounds = array<i64: 64, 64>}, {transform_indices = @transform_2, window_bounds = array<i64: 1, 64>}, {transform_indices = @transform_3, window_bounds = array<i64: 64, 64>}]} {
    %c0 = arith.constant 0 : index
    %c0_0 = arith.constant 0 : index
    %0 = vector.load %arg2[%c0, %c0_0] : memref<64x64xf32, #tpu.memory_space<vmem>>, vector<64x64xf32>
    %1 = arith.truncf %0 : vector<64x64xf32> to vector<64x64xbf16>
    %c0_1 = arith.constant 0 : index
    %c0_2 = arith.constant 0 : index
    %2 = vector.load %arg3[%c0_1, %c0_2] : memref<64x64xbf16, #tpu.memory_space<vmem>>, vector<64x64xbf16>
    %cst = arith.constant dense<0.000000e+00> : vector<64x64xf32>
    %3 = tpu.matmul %1, %2, %cst {dimension_numbers = #tpu.dot_dimension_numbers<[1], [0], [0], [1], [0, 0, 1, 1], [], []>} : vector<64x64xbf16>, vector<64x64xbf16>, vector<64x64xf32> -> vector<64x64xf32>
    %c0_3 = arith.constant 0 : index
    %c0_4 = arith.constant 0 : index
    %4 = vector.load %arg4[%c0_3, %c0_4] : memref<1x64xf32, #tpu.memory_space<vmem>>, vector<1x64xf32>
    %5 = vector.broadcast %4 : vector<1x64xf32> to vector<64x64xf32>
    %6 = arith.addf %3, %5 : vector<64x64xf32>
    %7 = arith.truncf %6 : vector<64x64xf32> to vector<64x64xbf16>
    %c0_5 = arith.constant 0 : index
    %c0_6 = arith.constant 0 : index
    %8 = vector.load %arg5[%c0_5, %c0_6] : memref<64x64xbf16, #tpu.memory_space<vmem>>, vector<64x64xbf16>
    tpu.vector_store %arg5[%c0_5, %c0_6], %7 {strides = array<i32>} : memref<64x64xbf16, #tpu.memory_space<vmem>>, vector<64x64xbf16>,
    return
  }
  func.func @transform_0(%arg0: i32, %arg1: i32) -> (i32, i32) {
    %c0_i32 = arith.constant 0 : i32
    %c0_i32_0 = arith.constant 0 : i32
    return %arg0, %c0_i32 : i32, i32
  }
  func.func @transform_1(%arg0: i32, %arg1: i32) -> (i32, i32) {
    %c0_i32 = arith.constant 0 : i32
    %c0_i32_0 = arith.constant 0 : i32
    return %c0_i32, %arg1 : i32, i32
  }
  func.func @transform_2(%arg0: i32, %arg1: i32) -> (i32, i32) {
    %c0_i32 = arith.constant 0 : i32
    %c0_i32_0 = arith.constant 0 : i32
    return %c0_i32, %arg1 : i32, i32
  }
  func.func @transform_3(%arg0: i32, %arg1: i32) -> (i32, i32) {
    %c0_i32 = arith.constant 0 : i32
    return %arg0, %arg1 : i32, i32
  }
}

module attributes {stable_mosaic.version = 11 : i64} {
  func.func @_proj_res_ln_kernel(%arg0: i32, %arg1: memref<32x32xbf16, #tpu.memory_space<vmem>>, %arg2: memref<32x32xbf16, #tpu.memory_space<vmem>>, %arg3: memref<1x32xf32, #tpu.memory_space<vmem>>, %arg4: memref<32x32xf32, #tpu.memory_space<vmem>>, %arg5: memref<1x32xf32, #tpu.memory_space<vmem>>, %arg6: memref<1x32xf32, #tpu.memory_space<vmem>>, %arg7: memref<32x32xf32, #tpu.memory_space<vmem>>) attributes {dimension_semantics = [#tpu.dimension_semantics<parallel>], iteration_bounds = array<i64: 2>, scalar_prefetch = 0 : i64, scratch_operands = 0 : i64, tpu.core_type = #tpu.core_type<tc>, window_params = [{transform_indices = @transform_0, window_bounds = array<i64: 32, 32>}, {pipeline_mode = #tpu.pipeline_mode<synchronous>, transform_indices = @transform_1, window_bounds = array<i64: 32, 32>}, {pipeline_mode = #tpu.pipeline_mode<synchronous>, transform_indices = @transform_2, window_bounds = array<i64: 1, 32>}, {transform_indices = @transform_3, window_bounds = array<i64: 32, 32>}, {pipeline_mode = #tpu.pipeline_mode<synchronous>, transform_indices = @transform_4, window_bounds = array<i64: 1, 32>}, {pipeline_mode = #tpu.pipeline_mode<synchronous>, transform_indices = @transform_5, window_bounds = array<i64: 1, 32>}, {transform_indices = @transform_6, window_bounds = array<i64: 32, 32>}]} {
    %c0 = arith.constant 0 : index
    %c0_0 = arith.constant 0 : index
    %0 = vector.load %arg1[%c0, %c0_0] : memref<32x32xbf16, #tpu.memory_space<vmem>>, vector<32x32xbf16>
    %c0_1 = arith.constant 0 : index
    %c0_2 = arith.constant 0 : index
    %1 = vector.load %arg2[%c0_1, %c0_2] : memref<32x32xbf16, #tpu.memory_space<vmem>>, vector<32x32xbf16>
    %cst = arith.constant dense<0.000000e+00> : vector<32x32xf32>
    %2 = tpu.matmul %0, %1, %cst {dimension_numbers = #tpu.dot_dimension_numbers<[1], [0], [0], [1], [0, 0, 1, 1], [], []>} : vector<32x32xbf16>, vector<32x32xbf16>, vector<32x32xf32> -> vector<32x32xf32>
    %c0_3 = arith.constant 0 : index
    %c0_4 = arith.constant 0 : index
    %3 = vector.load %arg3[%c0_3, %c0_4] : memref<1x32xf32, #tpu.memory_space<vmem>>, vector<1x32xf32>
    %4 = vector.broadcast %3 : vector<1x32xf32> to vector<32x32xf32>
    %5 = arith.addf %2, %4 : vector<32x32xf32>
    %c0_5 = arith.constant 0 : index
    %c0_6 = arith.constant 0 : index
    %6 = vector.load %arg4[%c0_5, %c0_6] : memref<32x32xf32, #tpu.memory_space<vmem>>, vector<32x32xf32>
    %7 = arith.addf %5, %6 : vector<32x32xf32>
    %cst_7 = arith.constant dense<0.000000e+00> : vector<32xf32>
    %8 = vector.multi_reduction <add>, %7, %cst_7 [1] : vector<32x32xf32> to vector<32xf32>
    %9 = vector.shape_cast %8 : vector<32xf32> to vector<32x1xf32>
    %cst_8 = arith.constant 3.200000e+01 : f32
    %10 = vector.broadcast %cst_8 : f32 to vector<32x1xf32>
    %11 = arith.divf %9, %10 : vector<32x1xf32>
    %12 = vector.broadcast %11 : vector<32x1xf32> to vector<32x32xf32>
    %13 = arith.subf %7, %12 : vector<32x32xf32>
    %14 = arith.mulf %13, %13 : vector<32x32xf32>
    %cst_9 = arith.constant dense<0.000000e+00> : vector<32xf32>
    %15 = vector.multi_reduction <add>, %14, %cst_9 [1] : vector<32x32xf32> to vector<32xf32>
    %16 = vector.shape_cast %15 : vector<32xf32> to vector<32x1xf32>
    %cst_10 = arith.constant 3.200000e+01 : f32
    %17 = vector.broadcast %cst_10 : f32 to vector<32x1xf32>
    %18 = arith.divf %16, %17 : vector<32x1xf32>
    %19 = vector.broadcast %11 : vector<32x1xf32> to vector<32x32xf32>
    %20 = arith.subf %7, %19 : vector<32x32xf32>
    %cst_11 = arith.constant 9.99999996E-13 : f32
    %21 = vector.broadcast %cst_11 : f32 to vector<32x1xf32>
    %22 = arith.addf %18, %21 : vector<32x1xf32>
    %23 = math.rsqrt %22 : vector<32x1xf32>
    %24 = vector.broadcast %23 : vector<32x1xf32> to vector<32x32xf32>
    %25 = arith.mulf %20, %24 : vector<32x32xf32>
    %c0_12 = arith.constant 0 : index
    %c0_13 = arith.constant 0 : index
    %26 = vector.load %arg5[%c0_12, %c0_13] : memref<1x32xf32, #tpu.memory_space<vmem>>, vector<1x32xf32>
    %27 = vector.broadcast %26 : vector<1x32xf32> to vector<32x32xf32>
    %28 = arith.mulf %25, %27 : vector<32x32xf32>
    %c0_14 = arith.constant 0 : index
    %c0_15 = arith.constant 0 : index
    %29 = vector.load %arg6[%c0_14, %c0_15] : memref<1x32xf32, #tpu.memory_space<vmem>>, vector<1x32xf32>
    %30 = vector.broadcast %29 : vector<1x32xf32> to vector<32x32xf32>
    %31 = arith.addf %28, %30 : vector<32x32xf32>
    %c0_16 = arith.constant 0 : index
    %c0_17 = arith.constant 0 : index
    %32 = vector.load %arg7[%c0_16, %c0_17] : memref<32x32xf32, #tpu.memory_space<vmem>>, vector<32x32xf32>
    tpu.vector_store %arg7[%c0_16, %c0_17], %31 {strides = array<i32>} : memref<32x32xf32, #tpu.memory_space<vmem>>, vector<32x32xf32>,
    return
  }
  func.func @transform_0(%arg0: i32) -> (i32, i32) {
    %c0_i32 = arith.constant 0 : i32
    %c0_i32_0 = arith.constant 0 : i32
    return %arg0, %c0_i32 : i32, i32
  }
  func.func @transform_1(%arg0: i32) -> (i32, i32) {
    %c0_i32 = arith.constant 0 : i32
    %c0_i32_0 = arith.constant 0 : i32
    %c0_i32_1 = arith.constant 0 : i32
    return %c0_i32, %c0_i32_0 : i32, i32
  }
  func.func @transform_2(%arg0: i32) -> (i32, i32) {
    %c0_i32 = arith.constant 0 : i32
    %c0_i32_0 = arith.constant 0 : i32
    %c0_i32_1 = arith.constant 0 : i32
    return %c0_i32, %c0_i32_0 : i32, i32
  }
  func.func @transform_3(%arg0: i32) -> (i32, i32) {
    %c0_i32 = arith.constant 0 : i32
    %c0_i32_0 = arith.constant 0 : i32
    return %arg0, %c0_i32 : i32, i32
  }
  func.func @transform_4(%arg0: i32) -> (i32, i32) {
    %c0_i32 = arith.constant 0 : i32
    %c0_i32_0 = arith.constant 0 : i32
    %c0_i32_1 = arith.constant 0 : i32
    return %c0_i32, %c0_i32_0 : i32, i32
  }
  func.func @transform_5(%arg0: i32) -> (i32, i32) {
    %c0_i32 = arith.constant 0 : i32
    %c0_i32_0 = arith.constant 0 : i32
    %c0_i32_1 = arith.constant 0 : i32
    return %c0_i32, %c0_i32_0 : i32, i32
  }
  func.func @transform_6(%arg0: i32) -> (i32, i32) {
    %c0_i32 = arith.constant 0 : i32
    %c0_i32_0 = arith.constant 0 : i32
    return %arg0, %c0_i32 : i32, i32
  }
}

module attributes {stable_mosaic.version = 11 : i64} {
  func.func @_mha_cross_kernel(%arg0: i32, %arg1: memref<4x8x32xbf16, #tpu.memory_space<vmem>>, %arg2: memref<4x16x64xbf16, #tpu.memory_space<vmem>>, %arg3: memref<4x8x32xbf16, #tpu.memory_space<vmem>>, %arg4: memref<4x8x32xf32, #tpu.memory_space<vmem>>) attributes {dimension_semantics = [#tpu.dimension_semantics<parallel>], iteration_bounds = array<i64: 2>, scalar_prefetch = 0 : i64, scratch_operands = 1 : i64, tpu.core_type = #tpu.core_type<tc>, window_params = [{transform_indices = @transform_0, window_bounds = array<i64: 4, 8, 32>}, {transform_indices = @transform_1, window_bounds = array<i64: 4, 16, 64>}, {transform_indices = @transform_2, window_bounds = array<i64: 4, 8, 32>}]} {
    %c0 = arith.constant 0 : index
    %c0_0 = arith.constant 0 : index
    %c0_1 = arith.constant 0 : index
    %0 = vector.load %arg1[%c0, %c0_0, %c0_1] : memref<4x8x32xbf16, #tpu.memory_space<vmem>>, vector<4x8x32xbf16>
    %c0_2 = arith.constant 0 : index
    %c0_3 = arith.constant 0 : index
    %c0_4 = arith.constant 0 : index
    %1 = vector.load %arg2[%c0_2, %c0_3, %c0_4] : memref<4x16x64xbf16, #tpu.memory_space<vmem>>, vector<4x16x32xbf16>
    %c0_5 = arith.constant 0 : index
    %c0_6 = arith.constant 0 : index
    %c32 = arith.constant 32 : index
    %2 = vector.load %arg2[%c0_5, %c0_6, %c32] : memref<4x16x64xbf16, #tpu.memory_space<vmem>>, vector<4x16x32xbf16>
    %3 = arith.extf %0 : vector<4x8x32xbf16> to vector<4x8x32xf32>
    %cst = arith.constant 0.353553385 : f32
    %4 = vector.broadcast %cst : f32 to vector<4x8x32xf32>
    %5 = arith.mulf %3, %4 : vector<4x8x32xf32>
    %6 = arith.truncf %5 : vector<4x8x32xf32> to vector<4x8x32xbf16>
    %7 = vector.extract_strided_slice %6 {offsets = [0, 0, 0], sizes = [4, 8, 8], strides = [1, 1, 1]} : vector<4x8x32xbf16> to vector<4x8x8xbf16>
    %8 = vector.extract_strided_slice %1 {offsets = [0, 0, 0], sizes = [4, 16, 8], strides = [1, 1, 1]} : vector<4x16x32xbf16> to vector<4x16x8xbf16>
    "tpu.trace_start"() <{level = 10 : i32, message = "bqd,bkd->bqk"}> : () -> ()
    %cst_7 = arith.constant dense<0.000000e+00> : vector<4x8x16xf32>
    %9 = tpu.matmul %7, %8, %cst_7 {dimension_numbers = #tpu.dot_dimension_numbers<[2], [2], [1], [1], [0, 0, 0, 1, 1, 1], [0], [0]>} : vector<4x8x8xbf16>, vector<4x16x8xbf16>, vector<4x8x16xf32> -> vector<4x8x16xf32>
    "tpu.trace_stop"() : () -> ()
    %cst_8 = arith.constant dense<0xFF800000> : vector<4x8xf32>
    %10 = vector.multi_reduction <maximumf>, %9, %cst_8 [2] : vector<4x8x16xf32> to vector<4x8xf32>
    %11 = vector.shape_cast %10 : vector<4x8xf32> to vector<4x8x1xf32>
    %12 = vector.broadcast %11 : vector<4x8x1xf32> to vector<4x8x16xf32>
    %13 = arith.subf %9, %12 : vector<4x8x16xf32>
    %14 = math.exp %13 : vector<4x8x16xf32>
    %cst_9 = arith.constant dense<0.000000e+00> : vector<4x8xf32>
    %15 = vector.multi_reduction <add>, %14, %cst_9 [2] : vector<4x8x16xf32> to vector<4x8xf32>
    %16 = vector.shape_cast %15 : vector<4x8xf32> to vector<4x8x1xf32>
    %17 = tpu.reciprocal %16 {approx = true} : vector<4x8x1xf32> -> vector<4x8x1xf32>
    %18 = vector.broadcast %17 : vector<4x8x1xf32> to vector<4x8x16xf32>
    %19 = arith.mulf %14, %18 : vector<4x8x16xf32>
    %20 = arith.truncf %19 : vector<4x8x16xf32> to vector<4x8x16xbf16>
    %21 = vector.extract_strided_slice %2 {offsets = [0, 0, 0], sizes = [4, 16, 8], strides = [1, 1, 1]} : vector<4x16x32xbf16> to vector<4x16x8xbf16>
    "tpu.trace_start"() <{level = 10 : i32, message = "bqk,bkd->bqd"}> : () -> ()
    %cst_10 = arith.constant dense<0.000000e+00> : vector<4x8x8xf32>
    %22 = tpu.matmul %20, %21, %cst_10 {dimension_numbers = #tpu.dot_dimension_numbers<[2], [1], [1], [2], [0, 0, 0, 1, 1, 2], [0], [0]>} : vector<4x8x16xbf16>, vector<4x16x8xbf16>, vector<4x8x8xf32> -> vector<4x8x8xf32>
    "tpu.trace_stop"() : () -> ()
    %c0_11 = arith.constant 0 : index
    %c0_12 = arith.constant 0 : index
    %c0_13 = arith.constant 0 : index
    %23 = vector.load %arg4[%c0_11, %c0_12, %c0_13] : memref<4x8x32xf32, #tpu.memory_space<vmem>>, vector<4x8x8xf32>
    tpu.vector_store %arg4[%c0_11, %c0_12, %c0_13], %22 {strides = array<i32>} : memref<4x8x32xf32, #tpu.memory_space<vmem>>, vector<4x8x8xf32>,
    %24 = vector.extract_strided_slice %6 {offsets = [0, 0, 8], sizes = [4, 8, 8], strides = [1, 1, 1]} : vector<4x8x32xbf16> to vector<4x8x8xbf16>
    %25 = vector.extract_strided_slice %1 {offsets = [0, 0, 8], sizes = [4, 16, 8], strides = [1, 1, 1]} : vector<4x16x32xbf16> to vector<4x16x8xbf16>
    "tpu.trace_start"() <{level = 10 : i32, message = "bqd,bkd->bqk"}> : () -> ()
    %cst_14 = arith.constant dense<0.000000e+00> : vector<4x8x16xf32>
    %26 = tpu.matmul %24, %25, %cst_14 {dimension_numbers = #tpu.dot_dimension_numbers<[2], [2], [1], [1], [0, 0, 0, 1, 1, 1], [0], [0]>} : vector<4x8x8xbf16>, vector<4x16x8xbf16>, vector<4x8x16xf32> -> vector<4x8x16xf32>
    "tpu.trace_stop"() : () -> ()
    %cst_15 = arith.constant dense<0xFF800000> : vector<4x8xf32>
    %27 = vector.multi_reduction <maximumf>, %26, %cst_15 [2] : vector<4x8x16xf32> to vector<4x8xf32>
    %28 = vector.shape_cast %27 : vector<4x8xf32> to vector<4x8x1xf32>
    %29 = vector.broadcast %28 : vector<4x8x1xf32> to vector<4x8x16xf32>
    %30 = arith.subf %26, %29 : vector<4x8x16xf32>
    %31 = math.exp %30 : vector<4x8x16xf32>
    %cst_16 = arith.constant dense<0.000000e+00> : vector<4x8xf32>
    %32 = vector.multi_reduction <add>, %31, %cst_16 [2] : vector<4x8x16xf32> to vector<4x8xf32>
    %33 = vector.shape_cast %32 : vector<4x8xf32> to vector<4x8x1xf32>
    %34 = tpu.reciprocal %33 {approx = true} : vector<4x8x1xf32> -> vector<4x8x1xf32>
    %35 = vector.broadcast %34 : vector<4x8x1xf32> to vector<4x8x16xf32>
    %36 = arith.mulf %31, %35 : vector<4x8x16xf32>
    %37 = arith.truncf %36 : vector<4x8x16xf32> to vector<4x8x16xbf16>
    %38 = vector.extract_strided_slice %2 {offsets = [0, 0, 8], sizes = [4, 16, 8], strides = [1, 1, 1]} : vector<4x16x32xbf16> to vector<4x16x8xbf16>
    "tpu.trace_start"() <{level = 10 : i32, message = "bqk,bkd->bqd"}> : () -> ()
    %cst_17 = arith.constant dense<0.000000e+00> : vector<4x8x8xf32>
    %39 = tpu.matmul %37, %38, %cst_17 {dimension_numbers = #tpu.dot_dimension_numbers<[2], [1], [1], [2], [0, 0, 0, 1, 1, 2], [0], [0]>} : vector<4x8x16xbf16>, vector<4x16x8xbf16>, vector<4x8x8xf32> -> vector<4x8x8xf32>
    "tpu.trace_stop"() : () -> ()
    %c0_18 = arith.constant 0 : index
    %c0_19 = arith.constant 0 : index
    %c8 = arith.constant 8 : index
    %40 = vector.load %arg4[%c0_18, %c0_19, %c8] : memref<4x8x32xf32, #tpu.memory_space<vmem>>, vector<4x8x8xf32>
    tpu.vector_store %arg4[%c0_18, %c0_19, %c8], %39 {strides = array<i32>} : memref<4x8x32xf32, #tpu.memory_space<vmem>>, vector<4x8x8xf32>,
    %41 = vector.extract_strided_slice %6 {offsets = [0, 0, 16], sizes = [4, 8, 8], strides = [1, 1, 1]} : vector<4x8x32xbf16> to vector<4x8x8xbf16>
    %42 = vector.extract_strided_slice %1 {offsets = [0, 0, 16], sizes = [4, 16, 8], strides = [1, 1, 1]} : vector<4x16x32xbf16> to vector<4x16x8xbf16>
    "tpu.trace_start"() <{level = 10 : i32, message = "bqd,bkd->bqk"}> : () -> ()
    %cst_20 = arith.constant dense<0.000000e+00> : vector<4x8x16xf32>
    %43 = tpu.matmul %41, %42, %cst_20 {dimension_numbers = #tpu.dot_dimension_numbers<[2], [2], [1], [1], [0, 0, 0, 1, 1, 1], [0], [0]>} : vector<4x8x8xbf16>, vector<4x16x8xbf16>, vector<4x8x16xf32> -> vector<4x8x16xf32>
    "tpu.trace_stop"() : () -> ()
    %cst_21 = arith.constant dense<0xFF800000> : vector<4x8xf32>
    %44 = vector.multi_reduction <maximumf>, %43, %cst_21 [2] : vector<4x8x16xf32> to vector<4x8xf32>
    %45 = vector.shape_cast %44 : vector<4x8xf32> to vector<4x8x1xf32>
    %46 = vector.broadcast %45 : vector<4x8x1xf32> to vector<4x8x16xf32>
    %47 = arith.subf %43, %46 : vector<4x8x16xf32>
    %48 = math.exp %47 : vector<4x8x16xf32>
    %cst_22 = arith.constant dense<0.000000e+00> : vector<4x8xf32>
    %49 = vector.multi_reduction <add>, %48, %cst_22 [2] : vector<4x8x16xf32> to vector<4x8xf32>
    %50 = vector.shape_cast %49 : vector<4x8xf32> to vector<4x8x1xf32>
    %51 = tpu.reciprocal %50 {approx = true} : vector<4x8x1xf32> -> vector<4x8x1xf32>
    %52 = vector.broadcast %51 : vector<4x8x1xf32> to vector<4x8x16xf32>
    %53 = arith.mulf %48, %52 : vector<4x8x16xf32>
    %54 = arith.truncf %53 : vector<4x8x16xf32> to vector<4x8x16xbf16>
    %55 = vector.extract_strided_slice %2 {offsets = [0, 0, 16], sizes = [4, 16, 8], strides = [1, 1, 1]} : vector<4x16x32xbf16> to vector<4x16x8xbf16>
    "tpu.trace_start"() <{level = 10 : i32, message = "bqk,bkd->bqd"}> : () -> ()
    %cst_23 = arith.constant dense<0.000000e+00> : vector<4x8x8xf32>
    %56 = tpu.matmul %54, %55, %cst_23 {dimension_numbers = #tpu.dot_dimension_numbers<[2], [1], [1], [2], [0, 0, 0, 1, 1, 2], [0], [0]>} : vector<4x8x16xbf16>, vector<4x16x8xbf16>, vector<4x8x8xf32> -> vector<4x8x8xf32>
    "tpu.trace_stop"() : () -> ()
    %c0_24 = arith.constant 0 : index
    %c0_25 = arith.constant 0 : index
    %c16 = arith.constant 16 : index
    %57 = vector.load %arg4[%c0_24, %c0_25, %c16] : memref<4x8x32xf32, #tpu.memory_space<vmem>>, vector<4x8x8xf32>
    tpu.vector_store %arg4[%c0_24, %c0_25, %c16], %56 {strides = array<i32>} : memref<4x8x32xf32, #tpu.memory_space<vmem>>, vector<4x8x8xf32>,
    %58 = vector.extract_strided_slice %6 {offsets = [0, 0, 24], sizes = [4, 8, 8], strides = [1, 1, 1]} : vector<4x8x32xbf16> to vector<4x8x8xbf16>
    %59 = vector.extract_strided_slice %1 {offsets = [0, 0, 24], sizes = [4, 16, 8], strides = [1, 1, 1]} : vector<4x16x32xbf16> to vector<4x16x8xbf16>
    "tpu.trace_start"() <{level = 10 : i32, message = "bqd,bkd->bqk"}> : () -> ()
    %cst_26 = arith.constant dense<0.000000e+00> : vector<4x8x16xf32>
    %60 = tpu.matmul %58, %59, %cst_26 {dimension_numbers = #tpu.dot_dimension_numbers<[2], [2], [1], [1], [0, 0, 0, 1, 1, 1], [0], [0]>} : vector<4x8x8xbf16>, vector<4x16x8xbf16>, vector<4x8x16xf32> -> vector<4x8x16xf32>
    "tpu.trace_stop"() : () -> ()
    %cst_27 = arith.constant dense<0xFF800000> : vector<4x8xf32>
    %61 = vector.multi_reduction <maximumf>, %60, %cst_27 [2] : vector<4x8x16xf32> to vector<4x8xf32>
    %62 = vector.shape_cast %61 : vector<4x8xf32> to vector<4x8x1xf32>
    %63 = vector.broadcast %62 : vector<4x8x1xf32> to vector<4x8x16xf32>
    %64 = arith.subf %60, %63 : vector<4x8x16xf32>
    %65 = math.exp %64 : vector<4x8x16xf32>
    %cst_28 = arith.constant dense<0.000000e+00> : vector<4x8xf32>
    %66 = vector.multi_reduction <add>, %65, %cst_28 [2] : vector<4x8x16xf32> to vector<4x8xf32>
    %67 = vector.shape_cast %66 : vector<4x8xf32> to vector<4x8x1xf32>
    %68 = tpu.reciprocal %67 {approx = true} : vector<4x8x1xf32> -> vector<4x8x1xf32>
    %69 = vector.broadcast %68 : vector<4x8x1xf32> to vector<4x8x16xf32>
    %70 = arith.mulf %65, %69 : vector<4x8x16xf32>
    %71 = arith.truncf %70 : vector<4x8x16xf32> to vector<4x8x16xbf16>
    %72 = vector.extract_strided_slice %2 {offsets = [0, 0, 24], sizes = [4, 16, 8], strides = [1, 1, 1]} : vector<4x16x32xbf16> to vector<4x16x8xbf16>
    "tpu.trace_start"() <{level = 10 : i32, message = "bqk,bkd->bqd"}> : () -> ()
    %cst_29 = arith.constant dense<0.000000e+00> : vector<4x8x8xf32>
    %73 = tpu.matmul %71, %72, %cst_29 {dimension_numbers = #tpu.dot_dimension_numbers<[2], [1], [1], [2], [0, 0, 0, 1, 1, 2], [0], [0]>} : vector<4x8x16xbf16>, vector<4x16x8xbf16>, vector<4x8x8xf32> -> vector<4x8x8xf32>
    "tpu.trace_stop"() : () -> ()
    %c0_30 = arith.constant 0 : index
    %c0_31 = arith.constant 0 : index
    %c24 = arith.constant 24 : index
    %74 = vector.load %arg4[%c0_30, %c0_31, %c24] : memref<4x8x32xf32, #tpu.memory_space<vmem>>, vector<4x8x8xf32>
    tpu.vector_store %arg4[%c0_30, %c0_31, %c24], %73 {strides = array<i32>} : memref<4x8x32xf32, #tpu.memory_space<vmem>>, vector<4x8x8xf32>,
    %c0_32 = arith.constant 0 : index
    %c0_33 = arith.constant 0 : index
    %c0_34 = arith.constant 0 : index
    %75 = vector.load %arg4[%c0_32, %c0_33, %c0_34] : memref<4x8x32xf32, #tpu.memory_space<vmem>>, vector<4x8x32xf32>
    %76 = arith.truncf %75 : vector<4x8x32xf32> to vector<4x8x32xbf16>
    %c0_35 = arith.constant 0 : index
    %c0_36 = arith.constant 0 : index
    %c0_37 = arith.constant 0 : index
    %77 = vector.load %arg3[%c0_35, %c0_36, %c0_37] : memref<4x8x32xbf16, #tpu.memory_space<vmem>>, vector<4x8x32xbf16>
    tpu.vector_store %arg3[%c0_35, %c0_36, %c0_37], %76 {strides = array<i32>} : memref<4x8x32xbf16, #tpu.memory_space<vmem>>, vector<4x8x32xbf16>,
    return
  }
  func.func @transform_0(%arg0: i32) -> (i32, i32, i32) {
    %c0_i32 = arith.constant 0 : i32
    %c0_i32_0 = arith.constant 0 : i32
    %c0_i32_1 = arith.constant 0 : i32
    return %arg0, %c0_i32, %c0_i32_0 : i32, i32, i32
  }
  func.func @transform_1(%arg0: i32) -> (i32, i32, i32) {
    %c0_i32 = arith.constant 0 : i32
    %c0_i32_0 = arith.constant 0 : i32
    %c0_i32_1 = arith.constant 0 : i32
    return %arg0, %c0_i32, %c0_i32_0 : i32, i32, i32
  }
  func.func @transform_2(%arg0: i32) -> (i32, i32, i32) {
    %c0_i32 = arith.constant 0 : i32
    %c0_i32_0 = arith.constant 0 : i32
    %c0_i32_1 = arith.constant 0 : i32
    return %arg0, %c0_i32, %c0_i32_0 : i32, i32, i32
  }
}

module attributes {stable_mosaic.version = 11 : i64} {
  func.func @_ffn_ln_kernel(%arg0: i32, %arg1: memref<32x32xf32, #tpu.memory_space<vmem>>, %arg2: memref<32x128xbf16, #tpu.memory_space<vmem>>, %arg3: memref<1x128xf32, #tpu.memory_space<vmem>>, %arg4: memref<128x32xbf16, #tpu.memory_space<vmem>>, %arg5: memref<1x32xf32, #tpu.memory_space<vmem>>, %arg6: memref<1x32xf32, #tpu.memory_space<vmem>>, %arg7: memref<1x32xf32, #tpu.memory_space<vmem>>, %arg8: memref<32x32xf32, #tpu.memory_space<vmem>>) attributes {dimension_semantics = [#tpu.dimension_semantics<parallel>], iteration_bounds = array<i64: 2>, scalar_prefetch = 0 : i64, scratch_operands = 0 : i64, tpu.core_type = #tpu.core_type<tc>, window_params = [{transform_indices = @transform_0, window_bounds = array<i64: 32, 32>}, {pipeline_mode = #tpu.pipeline_mode<synchronous>, transform_indices = @transform_1, window_bounds = array<i64: 32, 128>}, {pipeline_mode = #tpu.pipeline_mode<synchronous>, transform_indices = @transform_2, window_bounds = array<i64: 1, 128>}, {pipeline_mode = #tpu.pipeline_mode<synchronous>, transform_indices = @transform_3, window_bounds = array<i64: 128, 32>}, {pipeline_mode = #tpu.pipeline_mode<synchronous>, transform_indices = @transform_4, window_bounds = array<i64: 1, 32>}, {pipeline_mode = #tpu.pipeline_mode<synchronous>, transform_indices = @transform_5, window_bounds = array<i64: 1, 32>}, {pipeline_mode = #tpu.pipeline_mode<synchronous>, transform_indices = @transform_6, window_bounds = array<i64: 1, 32>}, {transform_indices = @transform_7, window_bounds = array<i64: 32, 32>}]} {
    %c0 = arith.constant 0 : index
    %c0_0 = arith.constant 0 : index
    %0 = vector.load %arg1[%c0, %c0_0] : memref<32x32xf32, #tpu.memory_space<vmem>>, vector<32x32xf32>
    %1 = arith.truncf %0 : vector<32x32xf32> to vector<32x32xbf16>
    %c0_1 = arith.constant 0 : index
    %c0_2 = arith.constant 0 : index
    %2 = vector.load %arg2[%c0_1, %c0_2] : memref<32x128xbf16, #tpu.memory_space<vmem>>, vector<32x128xbf16>
    %cst = arith.constant dense<0.000000e+00> : vector<32x128xf32>
    %3 = tpu.matmul %1, %2, %cst {dimension_numbers = #tpu.dot_dimension_numbers<[1], [0], [0], [1], [0, 0, 1, 1], [], []>} : vector<32x32xbf16>, vector<32x128xbf16>, vector<32x128xf32> -> vector<32x128xf32>
    %c0_3 = arith.constant 0 : index
    %c0_4 = arith.constant 0 : index
    %4 = vector.load %arg3[%c0_3, %c0_4] : memref<1x128xf32, #tpu.memory_space<vmem>>, vector<1x128xf32>
    %5 = vector.broadcast %4 : vector<1x128xf32> to vector<32x128xf32>
    %6 = arith.addf %3, %5 : vector<32x128xf32>
    %7 = arith.mulf %6, %6 : vector<32x128xf32>
    %8 = arith.mulf %6, %7 : vector<32x128xf32>
    %cst_5 = arith.constant 4.471500e-02 : f32
    %9 = vector.broadcast %cst_5 : f32 to vector<32x128xf32>
    %10 = arith.mulf %9, %8 : vector<32x128xf32>
    %11 = arith.addf %6, %10 : vector<32x128xf32>
    %cst_6 = arith.constant 0.797884583 : f32
    %12 = vector.broadcast %cst_6 : f32 to vector<32x128xf32>
    %13 = arith.mulf %12, %11 : vector<32x128xf32>
    %14 = math.tanh %13 : vector<32x128xf32>
    %cst_7 = arith.constant 1.000000e+00 : f32
    %15 = vector.broadcast %cst_7 : f32 to vector<32x128xf32>
    %16 = arith.addf %15, %14 : vector<32x128xf32>
    %cst_8 = arith.constant 5.000000e-01 : f32
    %17 = vector.broadcast %cst_8 : f32 to vector<32x128xf32>
    %18 = arith.mulf %17, %16 : vector<32x128xf32>
    %19 = arith.mulf %6, %18 : vector<32x128xf32>
    %20 = arith.truncf %19 : vector<32x128xf32> to vector<32x128xbf16>
    %c0_9 = arith.constant 0 : index
    %c0_10 = arith.constant 0 : index
    %21 = vector.load %arg4[%c0_9, %c0_10] : memref<128x32xbf16, #tpu.memory_space<vmem>>, vector<128x32xbf16>
    %cst_11 = arith.constant dense<0.000000e+00> : vector<32x32xf32>
    %22 = tpu.matmul %20, %21, %cst_11 {dimension_numbers = #tpu.dot_dimension_numbers<[1], [0], [0], [1], [0, 0, 1, 1], [], []>} : vector<32x128xbf16>, vector<128x32xbf16>, vector<32x32xf32> -> vector<32x32xf32>
    %c0_12 = arith.constant 0 : index
    %c0_13 = arith.constant 0 : index
    %23 = vector.load %arg5[%c0_12, %c0_13] : memref<1x32xf32, #tpu.memory_space<vmem>>, vector<1x32xf32>
    %24 = vector.broadcast %23 : vector<1x32xf32> to vector<32x32xf32>
    %25 = arith.addf %22, %24 : vector<32x32xf32>
    %26 = arith.addf %25, %0 : vector<32x32xf32>
    %cst_14 = arith.constant dense<0.000000e+00> : vector<32xf32>
    %27 = vector.multi_reduction <add>, %26, %cst_14 [1] : vector<32x32xf32> to vector<32xf32>
    %28 = vector.shape_cast %27 : vector<32xf32> to vector<32x1xf32>
    %cst_15 = arith.constant 3.200000e+01 : f32
    %29 = vector.broadcast %cst_15 : f32 to vector<32x1xf32>
    %30 = arith.divf %28, %29 : vector<32x1xf32>
    %31 = vector.broadcast %30 : vector<32x1xf32> to vector<32x32xf32>
    %32 = arith.subf %26, %31 : vector<32x32xf32>
    %33 = arith.mulf %32, %32 : vector<32x32xf32>
    %cst_16 = arith.constant dense<0.000000e+00> : vector<32xf32>
    %34 = vector.multi_reduction <add>, %33, %cst_16 [1] : vector<32x32xf32> to vector<32xf32>
    %35 = vector.shape_cast %34 : vector<32xf32> to vector<32x1xf32>
    %cst_17 = arith.constant 3.200000e+01 : f32
    %36 = vector.broadcast %cst_17 : f32 to vector<32x1xf32>
    %37 = arith.divf %35, %36 : vector<32x1xf32>
    %38 = vector.broadcast %30 : vector<32x1xf32> to vector<32x32xf32>
    %39 = arith.subf %26, %38 : vector<32x32xf32>
    %cst_18 = arith.constant 9.99999996E-13 : f32
    %40 = vector.broadcast %cst_18 : f32 to vector<32x1xf32>
    %41 = arith.addf %37, %40 : vector<32x1xf32>
    %42 = math.rsqrt %41 : vector<32x1xf32>
    %43 = vector.broadcast %42 : vector<32x1xf32> to vector<32x32xf32>
    %44 = arith.mulf %39, %43 : vector<32x32xf32>
    %c0_19 = arith.constant 0 : index
    %c0_20 = arith.constant 0 : index
    %45 = vector.load %arg6[%c0_19, %c0_20] : memref<1x32xf32, #tpu.memory_space<vmem>>, vector<1x32xf32>
    %46 = vector.broadcast %45 : vector<1x32xf32> to vector<32x32xf32>
    %47 = arith.mulf %44, %46 : vector<32x32xf32>
    %c0_21 = arith.constant 0 : index
    %c0_22 = arith.constant 0 : index
    %48 = vector.load %arg7[%c0_21, %c0_22] : memref<1x32xf32, #tpu.memory_space<vmem>>, vector<1x32xf32>
    %49 = vector.broadcast %48 : vector<1x32xf32> to vector<32x32xf32>
    %50 = arith.addf %47, %49 : vector<32x32xf32>
    %c0_23 = arith.constant 0 : index
    %c0_24 = arith.constant 0 : index
    %51 = vector.load %arg8[%c0_23, %c0_24] : memref<32x32xf32, #tpu.memory_space<vmem>>, vector<32x32xf32>
    tpu.vector_store %arg8[%c0_23, %c0_24], %50 {strides = array<i32>} : memref<32x32xf32, #tpu.memory_space<vmem>>, vector<32x32xf32>,
    return
  }
  func.func @transform_0(%arg0: i32) -> (i32, i32) {
    %c0_i32 = arith.constant 0 : i32
    %c0_i32_0 = arith.constant 0 : i32
    return %arg0, %c0_i32 : i32, i32
  }
  func.func @transform_1(%arg0: i32) -> (i32, i32) {
    %c0_i32 = arith.constant 0 : i32
    %c0_i32_0 = arith.constant 0 : i32
    %c0_i32_1 = arith.constant 0 : i32
    return %c0_i32, %c0_i32_0 : i32, i32
  }
  func.func @transform_2(%arg0: i32) -> (i32, i32) {
    %c0_i32 = arith.constant 0 : i32
    %c0_i32_0 = arith.constant 0 : i32
    %c0_i32_1 = arith.constant 0 : i32
    return %c0_i32, %c0_i32_0 : i32, i32
  }
  func.func @transform_3(%arg0: i32) -> (i32, i32) {
    %c0_i32 = arith.constant 0 : i32
    %c0_i32_0 = arith.constant 0 : i32
    %c0_i32_1 = arith.constant 0 : i32
    return %c0_i32, %c0_i32_0 : i32, i32
  }
  func.func @transform_4(%arg0: i32) -> (i32, i32) {
    %c0_i32 = arith.constant 0 : i32
    %c0_i32_0 = arith.constant 0 : i32
    %c0_i32_1 = arith.constant 0 : i32
    return %c0_i32, %c0_i32_0 : i32, i32
  }
  func.func @transform_5(%arg0: i32) -> (i32, i32) {
    %c0_i32 = arith.constant 0 : i32
    %c0_i32_0 = arith.constant 0 : i32
    %c0_i32_1 = arith.constant 0 : i32
    return %c0_i32, %c0_i32_0 : i32, i32
  }
  func.func @transform_6(%arg0: i32) -> (i32, i32) {
    %c0_i32 = arith.constant 0 : i32
    %c0_i32_0 = arith.constant 0 : i32
    %c0_i32_1 = arith.constant 0 : i32
    return %c0_i32, %c0_i32_0 : i32, i32
  }
  func.func @transform_7(%arg0: i32) -> (i32, i32) {
    %c0_i32 = arith.constant 0 : i32
    %c0_i32_0 = arith.constant 0 : i32
    return %arg0, %c0_i32 : i32, i32
  }
}

module attributes {stable_mosaic.version = 11 : i64} {
  func.func @_matmul_bias_kernel(%arg0: i32, %arg1: i32, %arg2: memref<32x32xf32, #tpu.memory_space<vmem>>, %arg3: memref<32x96xbf16, #tpu.memory_space<vmem>>, %arg4: memref<1x96xf32, #tpu.memory_space<vmem>>, %arg5: memref<32x96xbf16, #tpu.memory_space<vmem>>) attributes {dimension_semantics = [#tpu.dimension_semantics<parallel>, #tpu.dimension_semantics<parallel>], iteration_bounds = array<i64: 2, 1>, scalar_prefetch = 0 : i64, scratch_operands = 0 : i64, tpu.core_type = #tpu.core_type<tc>, window_params = [{transform_indices = @transform_0, window_bounds = array<i64: 32, 32>}, {transform_indices = @transform_1, window_bounds = array<i64: 32, 96>}, {transform_indices = @transform_2, window_bounds = array<i64: 1, 96>}, {transform_indices = @transform_3, window_bounds = array<i64: 32, 96>}]} {
    %c0 = arith.constant 0 : index
    %c0_0 = arith.constant 0 : index
    %0 = vector.load %arg2[%c0, %c0_0] : memref<32x32xf32, #tpu.memory_space<vmem>>, vector<32x32xf32>
    %1 = arith.truncf %0 : vector<32x32xf32> to vector<32x32xbf16>
    %c0_1 = arith.constant 0 : index
    %c0_2 = arith.constant 0 : index
    %2 = vector.load %arg3[%c0_1, %c0_2] : memref<32x96xbf16, #tpu.memory_space<vmem>>, vector<32x96xbf16>
    %cst = arith.constant dense<0.000000e+00> : vector<32x96xf32>
    %3 = tpu.matmul %1, %2, %cst {dimension_numbers = #tpu.dot_dimension_numbers<[1], [0], [0], [1], [0, 0, 1, 1], [], []>} : vector<32x32xbf16>, vector<32x96xbf16>, vector<32x96xf32> -> vector<32x96xf32>
    %c0_3 = arith.constant 0 : index
    %c0_4 = arith.constant 0 : index
    %4 = vector.load %arg4[%c0_3, %c0_4] : memref<1x96xf32, #tpu.memory_space<vmem>>, vector<1x96xf32>
    %5 = vector.broadcast %4 : vector<1x96xf32> to vector<32x96xf32>
    %6 = arith.addf %3, %5 : vector<32x96xf32>
    %7 = arith.truncf %6 : vector<32x96xf32> to vector<32x96xbf16>
    %c0_5 = arith.constant 0 : index
    %c0_6 = arith.constant 0 : index
    %8 = vector.load %arg5[%c0_5, %c0_6] : memref<32x96xbf16, #tpu.memory_space<vmem>>, vector<32x96xbf16>
    tpu.vector_store %arg5[%c0_5, %c0_6], %7 {strides = array<i32>} : memref<32x96xbf16, #tpu.memory_space<vmem>>, vector<32x96xbf16>,
    return
  }
  func.func @transform_0(%arg0: i32, %arg1: i32) -> (i32, i32) {
    %c0_i32 = arith.constant 0 : i32
    %c0_i32_0 = arith.constant 0 : i32
    return %arg0, %c0_i32 : i32, i32
  }
  func.func @transform_1(%arg0: i32, %arg1: i32) -> (i32, i32) {
    %c0_i32 = arith.constant 0 : i32
    %c0_i32_0 = arith.constant 0 : i32
    return %c0_i32, %arg1 : i32, i32
  }
  func.func @transform_2(%arg0: i32, %arg1: i32) -> (i32, i32) {
    %c0_i32 = arith.constant 0 : i32
    %c0_i32_0 = arith.constant 0 : i32
    return %c0_i32, %arg1 : i32, i32
  }
  func.func @transform_3(%arg0: i32, %arg1: i32) -> (i32, i32) {
    %c0_i32 = arith.constant 0 : i32
    return %arg0, %arg1 : i32, i32
  }
}

module attributes {stable_mosaic.version = 11 : i64} {
  func.func @_proj_res_ln_kernel(%arg0: i32, %arg1: memref<32x32xbf16, #tpu.memory_space<vmem>>, %arg2: memref<32x32xbf16, #tpu.memory_space<vmem>>, %arg3: memref<1x32xf32, #tpu.memory_space<vmem>>, %arg4: memref<32x32xf32, #tpu.memory_space<vmem>>, %arg5: memref<1x32xf32, #tpu.memory_space<vmem>>, %arg6: memref<1x32xf32, #tpu.memory_space<vmem>>, %arg7: memref<32x32xf32, #tpu.memory_space<vmem>>) attributes {dimension_semantics = [#tpu.dimension_semantics<parallel>], iteration_bounds = array<i64: 2>, scalar_prefetch = 0 : i64, scratch_operands = 0 : i64, tpu.core_type = #tpu.core_type<tc>, window_params = [{transform_indices = @transform_0, window_bounds = array<i64: 32, 32>}, {pipeline_mode = #tpu.pipeline_mode<synchronous>, transform_indices = @transform_1, window_bounds = array<i64: 32, 32>}, {pipeline_mode = #tpu.pipeline_mode<synchronous>, transform_indices = @transform_2, window_bounds = array<i64: 1, 32>}, {transform_indices = @transform_3, window_bounds = array<i64: 32, 32>}, {pipeline_mode = #tpu.pipeline_mode<synchronous>, transform_indices = @transform_4, window_bounds = array<i64: 1, 32>}, {pipeline_mode = #tpu.pipeline_mode<synchronous>, transform_indices = @transform_5, window_bounds = array<i64: 1, 32>}, {transform_indices = @transform_6, window_bounds = array<i64: 32, 32>}]} {
    %c0 = arith.constant 0 : index
    %c0_0 = arith.constant 0 : index
    %0 = vector.load %arg1[%c0, %c0_0] : memref<32x32xbf16, #tpu.memory_space<vmem>>, vector<32x32xbf16>
    %c0_1 = arith.constant 0 : index
    %c0_2 = arith.constant 0 : index
    %1 = vector.load %arg2[%c0_1, %c0_2] : memref<32x32xbf16, #tpu.memory_space<vmem>>, vector<32x32xbf16>
    %cst = arith.constant dense<0.000000e+00> : vector<32x32xf32>
    %2 = tpu.matmul %0, %1, %cst {dimension_numbers = #tpu.dot_dimension_numbers<[1], [0], [0], [1], [0, 0, 1, 1], [], []>} : vector<32x32xbf16>, vector<32x32xbf16>, vector<32x32xf32> -> vector<32x32xf32>
    %c0_3 = arith.constant 0 : index
    %c0_4 = arith.constant 0 : index
    %3 = vector.load %arg3[%c0_3, %c0_4] : memref<1x32xf32, #tpu.memory_space<vmem>>, vector<1x32xf32>
    %4 = vector.broadcast %3 : vector<1x32xf32> to vector<32x32xf32>
    %5 = arith.addf %2, %4 : vector<32x32xf32>
    %c0_5 = arith.constant 0 : index
    %c0_6 = arith.constant 0 : index
    %6 = vector.load %arg4[%c0_5, %c0_6] : memref<32x32xf32, #tpu.memory_space<vmem>>, vector<32x32xf32>
    %7 = arith.addf %5, %6 : vector<32x32xf32>
    %cst_7 = arith.constant dense<0.000000e+00> : vector<32xf32>
    %8 = vector.multi_reduction <add>, %7, %cst_7 [1] : vector<32x32xf32> to vector<32xf32>
    %9 = vector.shape_cast %8 : vector<32xf32> to vector<32x1xf32>
    %cst_8 = arith.constant 3.200000e+01 : f32
    %10 = vector.broadcast %cst_8 : f32 to vector<32x1xf32>
    %11 = arith.divf %9, %10 : vector<32x1xf32>
    %12 = vector.broadcast %11 : vector<32x1xf32> to vector<32x32xf32>
    %13 = arith.subf %7, %12 : vector<32x32xf32>
    %14 = arith.mulf %13, %13 : vector<32x32xf32>
    %cst_9 = arith.constant dense<0.000000e+00> : vector<32xf32>
    %15 = vector.multi_reduction <add>, %14, %cst_9 [1] : vector<32x32xf32> to vector<32xf32>
    %16 = vector.shape_cast %15 : vector<32xf32> to vector<32x1xf32>
    %cst_10 = arith.constant 3.200000e+01 : f32
    %17 = vector.broadcast %cst_10 : f32 to vector<32x1xf32>
    %18 = arith.divf %16, %17 : vector<32x1xf32>
    %19 = vector.broadcast %11 : vector<32x1xf32> to vector<32x32xf32>
    %20 = arith.subf %7, %19 : vector<32x32xf32>
    %cst_11 = arith.constant 9.99999996E-13 : f32
    %21 = vector.broadcast %cst_11 : f32 to vector<32x1xf32>
    %22 = arith.addf %18, %21 : vector<32x1xf32>
    %23 = math.rsqrt %22 : vector<32x1xf32>
    %24 = vector.broadcast %23 : vector<32x1xf32> to vector<32x32xf32>
    %25 = arith.mulf %20, %24 : vector<32x32xf32>
    %c0_12 = arith.constant 0 : index
    %c0_13 = arith.constant 0 : index
    %26 = vector.load %arg5[%c0_12, %c0_13] : memref<1x32xf32, #tpu.memory_space<vmem>>, vector<1x32xf32>
    %27 = vector.broadcast %26 : vector<1x32xf32> to vector<32x32xf32>
    %28 = arith.mulf %25, %27 : vector<32x32xf32>
    %c0_14 = arith.constant 0 : index
    %c0_15 = arith.constant 0 : index
    %29 = vector.load %arg6[%c0_14, %c0_15] : memref<1x32xf32, #tpu.memory_space<vmem>>, vector<1x32xf32>
    %30 = vector.broadcast %29 : vector<1x32xf32> to vector<32x32xf32>
    %31 = arith.addf %28, %30 : vector<32x32xf32>
    %c0_16 = arith.constant 0 : index
    %c0_17 = arith.constant 0 : index
    %32 = vector.load %arg7[%c0_16, %c0_17] : memref<32x32xf32, #tpu.memory_space<vmem>>, vector<32x32xf32>
    tpu.vector_store %arg7[%c0_16, %c0_17], %31 {strides = array<i32>} : memref<32x32xf32, #tpu.memory_space<vmem>>, vector<32x32xf32>,
    return
  }
  func.func @transform_0(%arg0: i32) -> (i32, i32) {
    %c0_i32 = arith.constant 0 : i32
    %c0_i32_0 = arith.constant 0 : i32
    return %arg0, %c0_i32 : i32, i32
  }
  func.func @transform_1(%arg0: i32) -> (i32, i32) {
    %c0_i32 = arith.constant 0 : i32
    %c0_i32_0 = arith.constant 0 : i32
    %c0_i32_1 = arith.constant 0 : i32
    return %c0_i32, %c0_i32_0 : i32, i32
  }
  func.func @transform_2(%arg0: i32) -> (i32, i32) {
    %c0_i32 = arith.constant 0 : i32
    %c0_i32_0 = arith.constant 0 : i32
    %c0_i32_1 = arith.constant 0 : i32
    return %c0_i32, %c0_i32_0 : i32, i32
  }
  func.func @transform_3(%arg0: i32) -> (i32, i32) {
    %c0_i32 = arith.constant 0 : i32
    %c0_i32_0 = arith.constant 0 : i32
    return %arg0, %c0_i32 : i32, i32
  }
  func.func @transform_4(%arg0: i32) -> (i32, i32) {
    %c0_i32 = arith.constant 0 : i32
    %c0_i32_0 = arith.constant 0 : i32
    %c0_i32_1 = arith.constant 0 : i32
    return %c0_i32, %c0_i32_0 : i32, i32
  }
  func.func @transform_5(%arg0: i32) -> (i32, i32) {
    %c0_i32 = arith.constant 0 : i32
    %c0_i32_0 = arith.constant 0 : i32
    %c0_i32_1 = arith.constant 0 : i32
    return %c0_i32, %c0_i32_0 : i32, i32
  }
  func.func @transform_6(%arg0: i32) -> (i32, i32) {
    %c0_i32 = arith.constant 0 : i32
    %c0_i32_0 = arith.constant 0 : i32
    return %arg0, %c0_i32 : i32, i32
  }
}

module attributes {stable_mosaic.version = 11 : i64} {
  func.func @_matmul_bias_kernel(%arg0: i32, %arg1: i32, %arg2: memref<32x32xf32, #tpu.memory_space<vmem>>, %arg3: memref<32x32xbf16, #tpu.memory_space<vmem>>, %arg4: memref<1x32xf32, #tpu.memory_space<vmem>>, %arg5: memref<32x32xbf16, #tpu.memory_space<vmem>>) attributes {dimension_semantics = [#tpu.dimension_semantics<parallel>, #tpu.dimension_semantics<parallel>], iteration_bounds = array<i64: 2, 1>, scalar_prefetch = 0 : i64, scratch_operands = 0 : i64, tpu.core_type = #tpu.core_type<tc>, window_params = [{transform_indices = @transform_0, window_bounds = array<i64: 32, 32>}, {transform_indices = @transform_1, window_bounds = array<i64: 32, 32>}, {transform_indices = @transform_2, window_bounds = array<i64: 1, 32>}, {transform_indices = @transform_3, window_bounds = array<i64: 32, 32>}]} {
    %c0 = arith.constant 0 : index
    %c0_0 = arith.constant 0 : index
    %0 = vector.load %arg2[%c0, %c0_0] : memref<32x32xf32, #tpu.memory_space<vmem>>, vector<32x32xf32>
    %1 = arith.truncf %0 : vector<32x32xf32> to vector<32x32xbf16>
    %c0_1 = arith.constant 0 : index
    %c0_2 = arith.constant 0 : index
    %2 = vector.load %arg3[%c0_1, %c0_2] : memref<32x32xbf16, #tpu.memory_space<vmem>>, vector<32x32xbf16>
    %cst = arith.constant dense<0.000000e+00> : vector<32x32xf32>
    %3 = tpu.matmul %1, %2, %cst {dimension_numbers = #tpu.dot_dimension_numbers<[1], [0], [0], [1], [0, 0, 1, 1], [], []>} : vector<32x32xbf16>, vector<32x32xbf16>, vector<32x32xf32> -> vector<32x32xf32>
    %c0_3 = arith.constant 0 : index
    %c0_4 = arith.constant 0 : index
    %4 = vector.load %arg4[%c0_3, %c0_4] : memref<1x32xf32, #tpu.memory_space<vmem>>, vector<1x32xf32>
    %5 = vector.broadcast %4 : vector<1x32xf32> to vector<32x32xf32>
    %6 = arith.addf %3, %5 : vector<32x32xf32>
    %7 = arith.truncf %6 : vector<32x32xf32> to vector<32x32xbf16>
    %c0_5 = arith.constant 0 : index
    %c0_6 = arith.constant 0 : index
    %8 = vector.load %arg5[%c0_5, %c0_6] : memref<32x32xbf16, #tpu.memory_space<vmem>>, vector<32x32xbf16>
    tpu.vector_store %arg5[%c0_5, %c0_6], %7 {strides = array<i32>} : memref<32x32xbf16, #tpu.memory_space<vmem>>, vector<32x32xbf16>,
    return
  }
  func.func @transform_0(%arg0: i32, %arg1: i32) -> (i32, i32) {
    %c0_i32 = arith.constant 0 : i32
    %c0_i32_0 = arith.constant 0 : i32
    return %arg0, %c0_i32 : i32, i32
  }
  func.func @transform_1(%arg0: i32, %arg1: i32) -> (i32, i32) {
    %c0_i32 = arith.constant 0 : i32
    %c0_i32_0 = arith.constant 0 : i32
    return %c0_i32, %arg1 : i32, i32
  }
  func.func @transform_2(%arg0: i32, %arg1: i32) -> (i32, i32) {
    %c0_i32 = arith.constant 0 : i32
    %c0_i32_0 = arith.constant 0 : i32
    return %c0_i32, %arg1 : i32, i32
  }
  func.func @transform_3(%arg0: i32, %arg1: i32) -> (i32, i32) {
    %c0_i32 = arith.constant 0 : i32
    return %arg0, %arg1 : i32, i32
  }
}

module attributes {stable_mosaic.version = 11 : i64} {
  func.func @_ffn_ln_kernel(%arg0: i32, %arg1: memref<32x32xf32, #tpu.memory_space<vmem>>, %arg2: memref<32x128xbf16, #tpu.memory_space<vmem>>, %arg3: memref<1x128xf32, #tpu.memory_space<vmem>>, %arg4: memref<128x32xbf16, #tpu.memory_space<vmem>>, %arg5: memref<1x32xf32, #tpu.memory_space<vmem>>, %arg6: memref<1x32xf32, #tpu.memory_space<vmem>>, %arg7: memref<1x32xf32, #tpu.memory_space<vmem>>, %arg8: memref<32x32xf32, #tpu.memory_space<vmem>>) attributes {dimension_semantics = [#tpu.dimension_semantics<parallel>], iteration_bounds = array<i64: 2>, scalar_prefetch = 0 : i64, scratch_operands = 0 : i64, tpu.core_type = #tpu.core_type<tc>, window_params = [{transform_indices = @transform_0, window_bounds = array<i64: 32, 32>}, {pipeline_mode = #tpu.pipeline_mode<synchronous>, transform_indices = @transform_1, window_bounds = array<i64: 32, 128>}, {pipeline_mode = #tpu.pipeline_mode<synchronous>, transform_indices = @transform_2, window_bounds = array<i64: 1, 128>}, {pipeline_mode = #tpu.pipeline_mode<synchronous>, transform_indices = @transform_3, window_bounds = array<i64: 128, 32>}, {pipeline_mode = #tpu.pipeline_mode<synchronous>, transform_indices = @transform_4, window_bounds = array<i64: 1, 32>}, {pipeline_mode = #tpu.pipeline_mode<synchronous>, transform_indices = @transform_5, window_bounds = array<i64: 1, 32>}, {pipeline_mode = #tpu.pipeline_mode<synchronous>, transform_indices = @transform_6, window_bounds = array<i64: 1, 32>}, {transform_indices = @transform_7, window_bounds = array<i64: 32, 32>}]} {
    %c0 = arith.constant 0 : index
    %c0_0 = arith.constant 0 : index
    %0 = vector.load %arg1[%c0, %c0_0] : memref<32x32xf32, #tpu.memory_space<vmem>>, vector<32x32xf32>
    %1 = arith.truncf %0 : vector<32x32xf32> to vector<32x32xbf16>
    %c0_1 = arith.constant 0 : index
    %c0_2 = arith.constant 0 : index
    %2 = vector.load %arg2[%c0_1, %c0_2] : memref<32x128xbf16, #tpu.memory_space<vmem>>, vector<32x128xbf16>
    %cst = arith.constant dense<0.000000e+00> : vector<32x128xf32>
    %3 = tpu.matmul %1, %2, %cst {dimension_numbers = #tpu.dot_dimension_numbers<[1], [0], [0], [1], [0, 0, 1, 1], [], []>} : vector<32x32xbf16>, vector<32x128xbf16>, vector<32x128xf32> -> vector<32x128xf32>
    %c0_3 = arith.constant 0 : index
    %c0_4 = arith.constant 0 : index
    %4 = vector.load %arg3[%c0_3, %c0_4] : memref<1x128xf32, #tpu.memory_space<vmem>>, vector<1x128xf32>
    %5 = vector.broadcast %4 : vector<1x128xf32> to vector<32x128xf32>
    %6 = arith.addf %3, %5 : vector<32x128xf32>
    %7 = arith.mulf %6, %6 : vector<32x128xf32>
    %8 = arith.mulf %6, %7 : vector<32x128xf32>
    %cst_5 = arith.constant 4.471500e-02 : f32
    %9 = vector.broadcast %cst_5 : f32 to vector<32x128xf32>
    %10 = arith.mulf %9, %8 : vector<32x128xf32>
    %11 = arith.addf %6, %10 : vector<32x128xf32>
    %cst_6 = arith.constant 0.797884583 : f32
    %12 = vector.broadcast %cst_6 : f32 to vector<32x128xf32>
    %13 = arith.mulf %12, %11 : vector<32x128xf32>
    %14 = math.tanh %13 : vector<32x128xf32>
    %cst_7 = arith.constant 1.000000e+00 : f32
    %15 = vector.broadcast %cst_7 : f32 to vector<32x128xf32>
    %16 = arith.addf %15, %14 : vector<32x128xf32>
    %cst_8 = arith.constant 5.000000e-01 : f32
    %17 = vector.broadcast %cst_8 : f32 to vector<32x128xf32>
    %18 = arith.mulf %17, %16 : vector<32x128xf32>
    %19 = arith.mulf %6, %18 : vector<32x128xf32>
    %20 = arith.truncf %19 : vector<32x128xf32> to vector<32x128xbf16>
    %c0_9 = arith.constant 0 : index
    %c0_10 = arith.constant 0 : index
    %21 = vector.load %arg4[%c0_9, %c0_10] : memref<128x32xbf16, #tpu.memory_space<vmem>>, vector<128x32xbf16>
    %cst_11 = arith.constant dense<0.000000e+00> : vector<32x32xf32>
    %22 = tpu.matmul %20, %21, %cst_11 {dimension_numbers = #tpu.dot_dimension_numbers<[1], [0], [0], [1], [0, 0, 1, 1], [], []>} : vector<32x128xbf16>, vector<128x32xbf16>, vector<32x32xf32> -> vector<32x32xf32>
    %c0_12 = arith.constant 0 : index
    %c0_13 = arith.constant 0 : index
    %23 = vector.load %arg5[%c0_12, %c0_13] : memref<1x32xf32, #tpu.memory_space<vmem>>, vector<1x32xf32>
    %24 = vector.broadcast %23 : vector<1x32xf32> to vector<32x32xf32>
    %25 = arith.addf %22, %24 : vector<32x32xf32>
    %26 = arith.addf %25, %0 : vector<32x32xf32>
    %cst_14 = arith.constant dense<0.000000e+00> : vector<32xf32>
    %27 = vector.multi_reduction <add>, %26, %cst_14 [1] : vector<32x32xf32> to vector<32xf32>
    %28 = vector.shape_cast %27 : vector<32xf32> to vector<32x1xf32>
    %cst_15 = arith.constant 3.200000e+01 : f32
    %29 = vector.broadcast %cst_15 : f32 to vector<32x1xf32>
    %30 = arith.divf %28, %29 : vector<32x1xf32>
    %31 = vector.broadcast %30 : vector<32x1xf32> to vector<32x32xf32>
    %32 = arith.subf %26, %31 : vector<32x32xf32>
    %33 = arith.mulf %32, %32 : vector<32x32xf32>
    %cst_16 = arith.constant dense<0.000000e+00> : vector<32xf32>
    %34 = vector.multi_reduction <add>, %33, %cst_16 [1] : vector<32x32xf32> to vector<32xf32>
    %35 = vector.shape_cast %34 : vector<32xf32> to vector<32x1xf32>
    %cst_17 = arith.constant 3.200000e+01 : f32
    %36 = vector.broadcast %cst_17 : f32 to vector<32x1xf32>
    %37 = arith.divf %35, %36 : vector<32x1xf32>
    %38 = vector.broadcast %30 : vector<32x1xf32> to vector<32x32xf32>
    %39 = arith.subf %26, %38 : vector<32x32xf32>
    %cst_18 = arith.constant 9.99999996E-13 : f32
    %40 = vector.broadcast %cst_18 : f32 to vector<32x1xf32>
    %41 = arith.addf %37, %40 : vector<32x1xf32>
    %42 = math.rsqrt %41 : vector<32x1xf32>
    %43 = vector.broadcast %42 : vector<32x1xf32> to vector<32x32xf32>
    %44 = arith.mulf %39, %43 : vector<32x32xf32>
    %c0_19 = arith.constant 0 : index
    %c0_20 = arith.constant 0 : index
    %45 = vector.load %arg6[%c0_19, %c0_20] : memref<1x32xf32, #tpu.memory_space<vmem>>, vector<1x32xf32>
    %46 = vector.broadcast %45 : vector<1x32xf32> to vector<32x32xf32>
    %47 = arith.mulf %44, %46 : vector<32x32xf32>
    %c0_21 = arith.constant 0 : index
    %c0_22 = arith.constant 0 : index
    %48 = vector.load %arg7[%c0_21, %c0_22] : memref<1x32xf32, #tpu.memory_space<vmem>>, vector<1x32xf32>
    %49 = vector.broadcast %48 : vector<1x32xf32> to vector<32x32xf32>
    %50 = arith.addf %47, %49 : vector<32x32xf32>
    %c0_23 = arith.constant 0 : index
    %c0_24 = arith.constant 0 : index
    %51 = vector.load %arg8[%c0_23, %c0_24] : memref<32x32xf32, #tpu.memory_space<vmem>>, vector<32x32xf32>
    tpu.vector_store %arg8[%c0_23, %c0_24], %50 {strides = array<i32>} : memref<32x32xf32, #tpu.memory_space<vmem>>, vector<32x32xf32>,
    return
  }
  func.func @transform_0(%arg0: i32) -> (i32, i32) {
    %c0_i32 = arith.constant 0 : i32
    %c0_i32_0 = arith.constant 0 : i32
    return %arg0, %c0_i32 : i32, i32
  }
  func.func @transform_1(%arg0: i32) -> (i32, i32) {
    %c0_i32 = arith.constant 0 : i32
    %c0_i32_0 = arith.constant 0 : i32
    %c0_i32_1 = arith.constant 0 : i32
    return %c0_i32, %c0_i32_0 : i32, i32
  }
  func.func @transform_2(%arg0: i32) -> (i32, i32) {
    %c0_i32 = arith.constant 0 : i32
    %c0_i32_0 = arith.constant 0 : i32
    %c0_i32_1 = arith.constant 0 : i32
    return %c0_i32, %c0_i32_0 : i32, i32
  }
  func.func @transform_3(%arg0: i32) -> (i32, i32) {
    %c0_i32 = arith.constant 0 : i32
    %c0_i32_0 = arith.constant 0 : i32
    %c0_i32_1 = arith.constant 0 : i32
    return %c0_i32, %c0_i32_0 : i32, i32
  }
  func.func @transform_4(%arg0: i32) -> (i32, i32) {
    %c0_i32 = arith.constant 0 : i32
    %c0_i32_0 = arith.constant 0 : i32
    %c0_i32_1 = arith.constant 0 : i32
    return %c0_i32, %c0_i32_0 : i32, i32
  }
  func.func @transform_5(%arg0: i32) -> (i32, i32) {
    %c0_i32 = arith.constant 0 : i32
    %c0_i32_0 = arith.constant 0 : i32
    %c0_i32_1 = arith.constant 0 : i32
    return %c0_i32, %c0_i32_0 : i32, i32
  }
  func.func @transform_6(%arg0: i32) -> (i32, i32) {
    %c0_i32 = arith.constant 0 : i32
    %c0_i32_0 = arith.constant 0 : i32
    %c0_i32_1 = arith.constant 0 : i32
    return %c0_i32, %c0_i32_0 : i32, i32
  }
  func.func @transform_7(%arg0: i32) -> (i32, i32) {
    %c0_i32 = arith.constant 0 : i32
    %c0_i32_0 = arith.constant 0 : i32
    return %arg0, %c0_i32 : i32, i32
  }
}

module attributes {stable_mosaic.version = 11 : i64} {
  func.func @_matmul_bias_kernel(%arg0: i32, %arg1: i32, %arg2: memref<64x64xf32, #tpu.memory_space<vmem>>, %arg3: memref<64x64xbf16, #tpu.memory_space<vmem>>, %arg4: memref<1x64xf32, #tpu.memory_space<vmem>>, %arg5: memref<64x64xbf16, #tpu.memory_space<vmem>>) attributes {dimension_semantics = [#tpu.dimension_semantics<parallel>, #tpu.dimension_semantics<parallel>], iteration_bounds = array<i64: 2, 1>, scalar_prefetch = 0 : i64, scratch_operands = 0 : i64, tpu.core_type = #tpu.core_type<tc>, window_params = [{transform_indices = @transform_0, window_bounds = array<i64: 64, 64>}, {transform_indices = @transform_1, window_bounds = array<i64: 64, 64>}, {transform_indices = @transform_2, window_bounds = array<i64: 1, 64>}, {transform_indices = @transform_3, window_bounds = array<i64: 64, 64>}]} {
    %c0 = arith.constant 0 : index
    %c0_0 = arith.constant 0 : index
    %0 = vector.load %arg2[%c0, %c0_0] : memref<64x64xf32, #tpu.memory_space<vmem>>, vector<64x64xf32>
    %1 = arith.truncf %0 : vector<64x64xf32> to vector<64x64xbf16>
    %c0_1 = arith.constant 0 : index
    %c0_2 = arith.constant 0 : index
    %2 = vector.load %arg3[%c0_1, %c0_2] : memref<64x64xbf16, #tpu.memory_space<vmem>>, vector<64x64xbf16>
    %cst = arith.constant dense<0.000000e+00> : vector<64x64xf32>
    %3 = tpu.matmul %1, %2, %cst {dimension_numbers = #tpu.dot_dimension_numbers<[1], [0], [0], [1], [0, 0, 1, 1], [], []>} : vector<64x64xbf16>, vector<64x64xbf16>, vector<64x64xf32> -> vector<64x64xf32>
    %c0_3 = arith.constant 0 : index
    %c0_4 = arith.constant 0 : index
    %4 = vector.load %arg4[%c0_3, %c0_4] : memref<1x64xf32, #tpu.memory_space<vmem>>, vector<1x64xf32>
    %5 = vector.broadcast %4 : vector<1x64xf32> to vector<64x64xf32>
    %6 = arith.addf %3, %5 : vector<64x64xf32>
    %7 = arith.truncf %6 : vector<64x64xf32> to vector<64x64xbf16>
    %c0_5 = arith.constant 0 : index
    %c0_6 = arith.constant 0 : index
    %8 = vector.load %arg5[%c0_5, %c0_6] : memref<64x64xbf16, #tpu.memory_space<vmem>>, vector<64x64xbf16>
    tpu.vector_store %arg5[%c0_5, %c0_6], %7 {strides = array<i32>} : memref<64x64xbf16, #tpu.memory_space<vmem>>, vector<64x64xbf16>,
    return
  }
  func.func @transform_0(%arg0: i32, %arg1: i32) -> (i32, i32) {
    %c0_i32 = arith.constant 0 : i32
    %c0_i32_0 = arith.constant 0 : i32
    return %arg0, %c0_i32 : i32, i32
  }
  func.func @transform_1(%arg0: i32, %arg1: i32) -> (i32, i32) {
    %c0_i32 = arith.constant 0 : i32
    %c0_i32_0 = arith.constant 0 : i32
    return %c0_i32, %arg1 : i32, i32
  }
  func.func @transform_2(%arg0: i32, %arg1: i32) -> (i32, i32) {
    %c0_i32 = arith.constant 0 : i32
    %c0_i32_0 = arith.constant 0 : i32
    return %c0_i32, %arg1 : i32, i32
  }
  func.func @transform_3(%arg0: i32, %arg1: i32) -> (i32, i32) {
    %c0_i32 = arith.constant 0 : i32
    return %arg0, %arg1 : i32, i32
  }
}

module attributes {stable_mosaic.version = 11 : i64} {
  func.func @_matmul_bias_kernel(%arg0: i32, %arg1: i32, %arg2: memref<32x32xf32, #tpu.memory_space<vmem>>, %arg3: memref<32x64xbf16, #tpu.memory_space<vmem>>, %arg4: memref<1x64xf32, #tpu.memory_space<vmem>>, %arg5: memref<32x64xbf16, #tpu.memory_space<vmem>>) attributes {dimension_semantics = [#tpu.dimension_semantics<parallel>, #tpu.dimension_semantics<parallel>], iteration_bounds = array<i64: 2, 1>, scalar_prefetch = 0 : i64, scratch_operands = 0 : i64, tpu.core_type = #tpu.core_type<tc>, window_params = [{transform_indices = @transform_0, window_bounds = array<i64: 32, 32>}, {transform_indices = @transform_1, window_bounds = array<i64: 32, 64>}, {transform_indices = @transform_2, window_bounds = array<i64: 1, 64>}, {transform_indices = @transform_3, window_bounds = array<i64: 32, 64>}]} {
    %c0 = arith.constant 0 : index
    %c0_0 = arith.constant 0 : index
    %0 = vector.load %arg2[%c0, %c0_0] : memref<32x32xf32, #tpu.memory_space<vmem>>, vector<32x32xf32>
    %1 = arith.truncf %0 : vector<32x32xf32> to vector<32x32xbf16>
    %c0_1 = arith.constant 0 : index
    %c0_2 = arith.constant 0 : index
    %2 = vector.load %arg3[%c0_1, %c0_2] : memref<32x64xbf16, #tpu.memory_space<vmem>>, vector<32x64xbf16>
    %cst = arith.constant dense<0.000000e+00> : vector<32x64xf32>
    %3 = tpu.matmul %1, %2, %cst {dimension_numbers = #tpu.dot_dimension_numbers<[1], [0], [0], [1], [0, 0, 1, 1], [], []>} : vector<32x32xbf16>, vector<32x64xbf16>, vector<32x64xf32> -> vector<32x64xf32>
    %c0_3 = arith.constant 0 : index
    %c0_4 = arith.constant 0 : index
    %4 = vector.load %arg4[%c0_3, %c0_4] : memref<1x64xf32, #tpu.memory_space<vmem>>, vector<1x64xf32>
    %5 = vector.broadcast %4 : vector<1x64xf32> to vector<32x64xf32>
    %6 = arith.addf %3, %5 : vector<32x64xf32>
    %7 = arith.truncf %6 : vector<32x64xf32> to vector<32x64xbf16>
    %c0_5 = arith.constant 0 : index
    %c0_6 = arith.constant 0 : index
    %8 = vector.load %arg5[%c0_5, %c0_6] : memref<32x64xbf16, #tpu.memory_space<vmem>>, vector<32x64xbf16>
    tpu.vector_store %arg5[%c0_5, %c0_6], %7 {strides = array<i32>} : memref<32x64xbf16, #tpu.memory_space<vmem>>, vector<32x64xbf16>,
    return
  }
  func.func @transform_0(%arg0: i32, %arg1: i32) -> (i32, i32) {
    %c0_i32 = arith.constant 0 : i32
    %c0_i32_0 = arith.constant 0 : i32
    return %arg0, %c0_i32 : i32, i32
  }
  func.func @transform_1(%arg0: i32, %arg1: i32) -> (i32, i32) {
    %c0_i32 = arith.constant 0 : i32
    %c0_i32_0 = arith.constant 0 : i32
    return %c0_i32, %arg1 : i32, i32
  }
  func.func @transform_2(%arg0: i32, %arg1: i32) -> (i32, i32) {
    %c0_i32 = arith.constant 0 : i32
    %c0_i32_0 = arith.constant 0 : i32
    return %c0_i32, %arg1 : i32, i32
  }
  func.func @transform_3(%arg0: i32, %arg1: i32) -> (i32, i32) {
    %c0_i32 = arith.constant 0 : i32
    return %arg0, %arg1 : i32, i32
  }
}

module attributes {stable_mosaic.version = 11 : i64} {
  func.func @_layernorm_kernel(%arg0: i32, %arg1: memref<8x32xf32, #tpu.memory_space<vmem>>, %arg2: memref<1x32xf32, #tpu.memory_space<vmem>>, %arg3: memref<1x32xf32, #tpu.memory_space<vmem>>, %arg4: memref<8x32xf32, #tpu.memory_space<vmem>>) attributes {dimension_semantics = [#tpu.dimension_semantics<parallel>], iteration_bounds = array<i64: 2>, scalar_prefetch = 0 : i64, scratch_operands = 0 : i64, tpu.core_type = #tpu.core_type<tc>, window_params = [{transform_indices = @transform_0, window_bounds = array<i64: 8, 32>}, {pipeline_mode = #tpu.pipeline_mode<synchronous>, transform_indices = @transform_1, window_bounds = array<i64: 1, 32>}, {pipeline_mode = #tpu.pipeline_mode<synchronous>, transform_indices = @transform_2, window_bounds = array<i64: 1, 32>}, {transform_indices = @transform_3, window_bounds = array<i64: 8, 32>}]} {
    %c0 = arith.constant 0 : index
    %c0_0 = arith.constant 0 : index
    %0 = vector.load %arg1[%c0, %c0_0] : memref<8x32xf32, #tpu.memory_space<vmem>>, vector<8x32xf32>
    %cst = arith.constant dense<0.000000e+00> : vector<8xf32>
    %1 = vector.multi_reduction <add>, %0, %cst [1] : vector<8x32xf32> to vector<8xf32>
    %2 = vector.shape_cast %1 : vector<8xf32> to vector<8x1xf32>
    %cst_1 = arith.constant 3.200000e+01 : f32
    %3 = vector.broadcast %cst_1 : f32 to vector<8x1xf32>
    %4 = arith.divf %2, %3 : vector<8x1xf32>
    %5 = vector.broadcast %4 : vector<8x1xf32> to vector<8x32xf32>
    %6 = arith.subf %0, %5 : vector<8x32xf32>
    %7 = arith.mulf %6, %6 : vector<8x32xf32>
    %cst_2 = arith.constant dense<0.000000e+00> : vector<8xf32>
    %8 = vector.multi_reduction <add>, %7, %cst_2 [1] : vector<8x32xf32> to vector<8xf32>
    %9 = vector.shape_cast %8 : vector<8xf32> to vector<8x1xf32>
    %cst_3 = arith.constant 3.200000e+01 : f32
    %10 = vector.broadcast %cst_3 : f32 to vector<8x1xf32>
    %11 = arith.divf %9, %10 : vector<8x1xf32>
    %12 = vector.broadcast %4 : vector<8x1xf32> to vector<8x32xf32>
    %13 = arith.subf %0, %12 : vector<8x32xf32>
    %cst_4 = arith.constant 9.99999996E-13 : f32
    %14 = vector.broadcast %cst_4 : f32 to vector<8x1xf32>
    %15 = arith.addf %11, %14 : vector<8x1xf32>
    %16 = math.rsqrt %15 : vector<8x1xf32>
    %17 = vector.broadcast %16 : vector<8x1xf32> to vector<8x32xf32>
    %18 = arith.mulf %13, %17 : vector<8x32xf32>
    %c0_5 = arith.constant 0 : index
    %c0_6 = arith.constant 0 : index
    %19 = vector.load %arg2[%c0_5, %c0_6] : memref<1x32xf32, #tpu.memory_space<vmem>>, vector<1x32xf32>
    %20 = vector.broadcast %19 : vector<1x32xf32> to vector<8x32xf32>
    %21 = arith.mulf %18, %20 : vector<8x32xf32>
    %c0_7 = arith.constant 0 : index
    %c0_8 = arith.constant 0 : index
    %22 = vector.load %arg3[%c0_7, %c0_8] : memref<1x32xf32, #tpu.memory_space<vmem>>, vector<1x32xf32>
    %23 = vector.broadcast %22 : vector<1x32xf32> to vector<8x32xf32>
    %24 = arith.addf %21, %23 : vector<8x32xf32>
    %c0_9 = arith.constant 0 : index
    %c0_10 = arith.constant 0 : index
    %25 = vector.load %arg4[%c0_9, %c0_10] : memref<8x32xf32, #tpu.memory_space<vmem>>, vector<8x32xf32>
    tpu.vector_store %arg4[%c0_9, %c0_10], %24 {strides = array<i32>} : memref<8x32xf32, #tpu.memory_space<vmem>>, vector<8x32xf32>,
    return
  }
  func.func @transform_0(%arg0: i32) -> (i32, i32) {
    %c0_i32 = arith.constant 0 : i32
    %c0_i32_0 = arith.constant 0 : i32
    return %arg0, %c0_i32 : i32, i32
  }
  func.func @transform_1(%arg0: i32) -> (i32, i32) {
    %c0_i32 = arith.constant 0 : i32
    %c0_i32_0 = arith.constant 0 : i32
    %c0_i32_1 = arith.constant 0 : i32
    return %c0_i32, %c0_i32_0 : i32, i32
  }
  func.func @transform_2(%arg0: i32) -> (i32, i32) {
    %c0_i32 = arith.constant 0 : i32
    %c0_i32_0 = arith.constant 0 : i32
    %c0_i32_1 = arith.constant 0 : i32
    return %c0_i32, %c0_i32_0 : i32, i32
  }
  func.func @transform_3(%arg0: i32) -> (i32, i32) {
    %c0_i32 = arith.constant 0 : i32
    %c0_i32_0 = arith.constant 0 : i32
    return %arg0, %c0_i32 : i32, i32
  }
}

module attributes {stable_mosaic.version = 11 : i64} {
  func.func @_matmul_bias_kernel(%arg0: i32, %arg1: i32, %arg2: memref<8x32xf32, #tpu.memory_space<vmem>>, %arg3: memref<32x96xbf16, #tpu.memory_space<vmem>>, %arg4: memref<1x96xf32, #tpu.memory_space<vmem>>, %arg5: memref<8x96xbf16, #tpu.memory_space<vmem>>) attributes {dimension_semantics = [#tpu.dimension_semantics<parallel>, #tpu.dimension_semantics<parallel>], iteration_bounds = array<i64: 2, 1>, scalar_prefetch = 0 : i64, scratch_operands = 0 : i64, tpu.core_type = #tpu.core_type<tc>, window_params = [{transform_indices = @transform_0, window_bounds = array<i64: 8, 32>}, {transform_indices = @transform_1, window_bounds = array<i64: 32, 96>}, {transform_indices = @transform_2, window_bounds = array<i64: 1, 96>}, {transform_indices = @transform_3, window_bounds = array<i64: 8, 96>}]} {
    %c0 = arith.constant 0 : index
    %c0_0 = arith.constant 0 : index
    %0 = vector.load %arg2[%c0, %c0_0] : memref<8x32xf32, #tpu.memory_space<vmem>>, vector<8x32xf32>
    %1 = arith.truncf %0 : vector<8x32xf32> to vector<8x32xbf16>
    %c0_1 = arith.constant 0 : index
    %c0_2 = arith.constant 0 : index
    %2 = vector.load %arg3[%c0_1, %c0_2] : memref<32x96xbf16, #tpu.memory_space<vmem>>, vector<32x96xbf16>
    %cst = arith.constant dense<0.000000e+00> : vector<8x96xf32>
    %3 = tpu.matmul %1, %2, %cst {dimension_numbers = #tpu.dot_dimension_numbers<[1], [0], [0], [1], [0, 0, 1, 1], [], []>} : vector<8x32xbf16>, vector<32x96xbf16>, vector<8x96xf32> -> vector<8x96xf32>
    %c0_3 = arith.constant 0 : index
    %c0_4 = arith.constant 0 : index
    %4 = vector.load %arg4[%c0_3, %c0_4] : memref<1x96xf32, #tpu.memory_space<vmem>>, vector<1x96xf32>
    %5 = vector.broadcast %4 : vector<1x96xf32> to vector<8x96xf32>
    %6 = arith.addf %3, %5 : vector<8x96xf32>
    %7 = arith.truncf %6 : vector<8x96xf32> to vector<8x96xbf16>
    %c0_5 = arith.constant 0 : index
    %c0_6 = arith.constant 0 : index
    %8 = vector.load %arg5[%c0_5, %c0_6] : memref<8x96xbf16, #tpu.memory_space<vmem>>, vector<8x96xbf16>
    tpu.vector_store %arg5[%c0_5, %c0_6], %7 {strides = array<i32>} : memref<8x96xbf16, #tpu.memory_space<vmem>>, vector<8x96xbf16>,
    return
  }
  func.func @transform_0(%arg0: i32, %arg1: i32) -> (i32, i32) {
    %c0_i32 = arith.constant 0 : i32
    %c0_i32_0 = arith.constant 0 : i32
    return %arg0, %c0_i32 : i32, i32
  }
  func.func @transform_1(%arg0: i32, %arg1: i32) -> (i32, i32) {
    %c0_i32 = arith.constant 0 : i32
    %c0_i32_0 = arith.constant 0 : i32
    return %c0_i32, %arg1 : i32, i32
  }
  func.func @transform_2(%arg0: i32, %arg1: i32) -> (i32, i32) {
    %c0_i32 = arith.constant 0 : i32
    %c0_i32_0 = arith.constant 0 : i32
    return %c0_i32, %arg1 : i32, i32
  }
  func.func @transform_3(%arg0: i32, %arg1: i32) -> (i32, i32) {
    %c0_i32 = arith.constant 0 : i32
    return %arg0, %arg1 : i32, i32
  }
}

module attributes {stable_mosaic.version = 11 : i64} {
  func.func @_proj_res_ln_kernel(%arg0: i32, %arg1: memref<8x32xbf16, #tpu.memory_space<vmem>>, %arg2: memref<32x32xbf16, #tpu.memory_space<vmem>>, %arg3: memref<1x32xf32, #tpu.memory_space<vmem>>, %arg4: memref<8x32xf32, #tpu.memory_space<vmem>>, %arg5: memref<1x32xf32, #tpu.memory_space<vmem>>, %arg6: memref<1x32xf32, #tpu.memory_space<vmem>>, %arg7: memref<8x32xf32, #tpu.memory_space<vmem>>) attributes {dimension_semantics = [#tpu.dimension_semantics<parallel>], iteration_bounds = array<i64: 2>, scalar_prefetch = 0 : i64, scratch_operands = 0 : i64, tpu.core_type = #tpu.core_type<tc>, window_params = [{transform_indices = @transform_0, window_bounds = array<i64: 8, 32>}, {pipeline_mode = #tpu.pipeline_mode<synchronous>, transform_indices = @transform_1, window_bounds = array<i64: 32, 32>}, {pipeline_mode = #tpu.pipeline_mode<synchronous>, transform_indices = @transform_2, window_bounds = array<i64: 1, 32>}, {transform_indices = @transform_3, window_bounds = array<i64: 8, 32>}, {pipeline_mode = #tpu.pipeline_mode<synchronous>, transform_indices = @transform_4, window_bounds = array<i64: 1, 32>}, {pipeline_mode = #tpu.pipeline_mode<synchronous>, transform_indices = @transform_5, window_bounds = array<i64: 1, 32>}, {transform_indices = @transform_6, window_bounds = array<i64: 8, 32>}]} {
    %c0 = arith.constant 0 : index
    %c0_0 = arith.constant 0 : index
    %0 = vector.load %arg1[%c0, %c0_0] : memref<8x32xbf16, #tpu.memory_space<vmem>>, vector<8x32xbf16>
    %c0_1 = arith.constant 0 : index
    %c0_2 = arith.constant 0 : index
    %1 = vector.load %arg2[%c0_1, %c0_2] : memref<32x32xbf16, #tpu.memory_space<vmem>>, vector<32x32xbf16>
    %cst = arith.constant dense<0.000000e+00> : vector<8x32xf32>
    %2 = tpu.matmul %0, %1, %cst {dimension_numbers = #tpu.dot_dimension_numbers<[1], [0], [0], [1], [0, 0, 1, 1], [], []>} : vector<8x32xbf16>, vector<32x32xbf16>, vector<8x32xf32> -> vector<8x32xf32>
    %c0_3 = arith.constant 0 : index
    %c0_4 = arith.constant 0 : index
    %3 = vector.load %arg3[%c0_3, %c0_4] : memref<1x32xf32, #tpu.memory_space<vmem>>, vector<1x32xf32>
    %4 = vector.broadcast %3 : vector<1x32xf32> to vector<8x32xf32>
    %5 = arith.addf %2, %4 : vector<8x32xf32>
    %c0_5 = arith.constant 0 : index
    %c0_6 = arith.constant 0 : index
    %6 = vector.load %arg4[%c0_5, %c0_6] : memref<8x32xf32, #tpu.memory_space<vmem>>, vector<8x32xf32>
    %7 = arith.addf %5, %6 : vector<8x32xf32>
    %cst_7 = arith.constant dense<0.000000e+00> : vector<8xf32>
    %8 = vector.multi_reduction <add>, %7, %cst_7 [1] : vector<8x32xf32> to vector<8xf32>
    %9 = vector.shape_cast %8 : vector<8xf32> to vector<8x1xf32>
    %cst_8 = arith.constant 3.200000e+01 : f32
    %10 = vector.broadcast %cst_8 : f32 to vector<8x1xf32>
    %11 = arith.divf %9, %10 : vector<8x1xf32>
    %12 = vector.broadcast %11 : vector<8x1xf32> to vector<8x32xf32>
    %13 = arith.subf %7, %12 : vector<8x32xf32>
    %14 = arith.mulf %13, %13 : vector<8x32xf32>
    %cst_9 = arith.constant dense<0.000000e+00> : vector<8xf32>
    %15 = vector.multi_reduction <add>, %14, %cst_9 [1] : vector<8x32xf32> to vector<8xf32>
    %16 = vector.shape_cast %15 : vector<8xf32> to vector<8x1xf32>
    %cst_10 = arith.constant 3.200000e+01 : f32
    %17 = vector.broadcast %cst_10 : f32 to vector<8x1xf32>
    %18 = arith.divf %16, %17 : vector<8x1xf32>
    %19 = vector.broadcast %11 : vector<8x1xf32> to vector<8x32xf32>
    %20 = arith.subf %7, %19 : vector<8x32xf32>
    %cst_11 = arith.constant 9.99999996E-13 : f32
    %21 = vector.broadcast %cst_11 : f32 to vector<8x1xf32>
    %22 = arith.addf %18, %21 : vector<8x1xf32>
    %23 = math.rsqrt %22 : vector<8x1xf32>
    %24 = vector.broadcast %23 : vector<8x1xf32> to vector<8x32xf32>
    %25 = arith.mulf %20, %24 : vector<8x32xf32>
    %c0_12 = arith.constant 0 : index
    %c0_13 = arith.constant 0 : index
    %26 = vector.load %arg5[%c0_12, %c0_13] : memref<1x32xf32, #tpu.memory_space<vmem>>, vector<1x32xf32>
    %27 = vector.broadcast %26 : vector<1x32xf32> to vector<8x32xf32>
    %28 = arith.mulf %25, %27 : vector<8x32xf32>
    %c0_14 = arith.constant 0 : index
    %c0_15 = arith.constant 0 : index
    %29 = vector.load %arg6[%c0_14, %c0_15] : memref<1x32xf32, #tpu.memory_space<vmem>>, vector<1x32xf32>
    %30 = vector.broadcast %29 : vector<1x32xf32> to vector<8x32xf32>
    %31 = arith.addf %28, %30 : vector<8x32xf32>
    %c0_16 = arith.constant 0 : index
    %c0_17 = arith.constant 0 : index
    %32 = vector.load %arg7[%c0_16, %c0_17] : memref<8x32xf32, #tpu.memory_space<vmem>>, vector<8x32xf32>
    tpu.vector_store %arg7[%c0_16, %c0_17], %31 {strides = array<i32>} : memref<8x32xf32, #tpu.memory_space<vmem>>, vector<8x32xf32>,
    return
  }
  func.func @transform_0(%arg0: i32) -> (i32, i32) {
    %c0_i32 = arith.constant 0 : i32
    %c0_i32_0 = arith.constant 0 : i32
    return %arg0, %c0_i32 : i32, i32
  }
  func.func @transform_1(%arg0: i32) -> (i32, i32) {
    %c0_i32 = arith.constant 0 : i32
    %c0_i32_0 = arith.constant 0 : i32
    %c0_i32_1 = arith.constant 0 : i32
    return %c0_i32, %c0_i32_0 : i32, i32
  }
  func.func @transform_2(%arg0: i32) -> (i32, i32) {
    %c0_i32 = arith.constant 0 : i32
    %c0_i32_0 = arith.constant 0 : i32
    %c0_i32_1 = arith.constant 0 : i32
    return %c0_i32, %c0_i32_0 : i32, i32
  }
  func.func @transform_3(%arg0: i32) -> (i32, i32) {
    %c0_i32 = arith.constant 0 : i32
    %c0_i32_0 = arith.constant 0 : i32
    return %arg0, %c0_i32 : i32, i32
  }
  func.func @transform_4(%arg0: i32) -> (i32, i32) {
    %c0_i32 = arith.constant 0 : i32
    %c0_i32_0 = arith.constant 0 : i32
    %c0_i32_1 = arith.constant 0 : i32
    return %c0_i32, %c0_i32_0 : i32, i32
  }
  func.func @transform_5(%arg0: i32) -> (i32, i32) {
    %c0_i32 = arith.constant 0 : i32
    %c0_i32_0 = arith.constant 0 : i32
    %c0_i32_1 = arith.constant 0 : i32
    return %c0_i32, %c0_i32_0 : i32, i32
  }
  func.func @transform_6(%arg0: i32) -> (i32, i32) {
    %c0_i32 = arith.constant 0 : i32
    %c0_i32_0 = arith.constant 0 : i32
    return %arg0, %c0_i32 : i32, i32
  }
}

module attributes {stable_mosaic.version = 11 : i64} {
  func.func @_mha_self_kernel(%arg0: i32, %arg1: memref<2x8x96xbf16, #tpu.memory_space<vmem>>, %arg2: memref<2x8x32xbf16, #tpu.memory_space<vmem>>, %arg3: memref<2x8x32xf32, #tpu.memory_space<vmem>>) attributes {dimension_semantics = [#tpu.dimension_semantics<parallel>], iteration_bounds = array<i64: 1>, scalar_prefetch = 0 : i64, scratch_operands = 1 : i64, tpu.core_type = #tpu.core_type<tc>, window_params = [{transform_indices = @transform_0, window_bounds = array<i64: 2, 8, 96>}, {transform_indices = @transform_1, window_bounds = array<i64: 2, 8, 32>}]} {
    %c0 = arith.constant 0 : index
    %c0_0 = arith.constant 0 : index
    %c0_1 = arith.constant 0 : index
    %0 = vector.load %arg1[%c0, %c0_0, %c0_1] : memref<2x8x96xbf16, #tpu.memory_space<vmem>>, vector<2x8x32xbf16>
    %c0_2 = arith.constant 0 : index
    %c0_3 = arith.constant 0 : index
    %c32 = arith.constant 32 : index
    %1 = vector.load %arg1[%c0_2, %c0_3, %c32] : memref<2x8x96xbf16, #tpu.memory_space<vmem>>, vector<2x8x32xbf16>
    %c0_4 = arith.constant 0 : index
    %c0_5 = arith.constant 0 : index
    %c64 = arith.constant 64 : index
    %2 = vector.load %arg1[%c0_4, %c0_5, %c64] : memref<2x8x96xbf16, #tpu.memory_space<vmem>>, vector<2x8x32xbf16>
    %3 = arith.extf %0 : vector<2x8x32xbf16> to vector<2x8x32xf32>
    %cst = arith.constant 0.353553385 : f32
    %4 = vector.broadcast %cst : f32 to vector<2x8x32xf32>
    %5 = arith.mulf %3, %4 : vector<2x8x32xf32>
    %6 = arith.truncf %5 : vector<2x8x32xf32> to vector<2x8x32xbf16>
    %7 = vector.extract_strided_slice %6 {offsets = [0, 0, 0], sizes = [2, 8, 8], strides = [1, 1, 1]} : vector<2x8x32xbf16> to vector<2x8x8xbf16>
    %8 = vector.extract_strided_slice %1 {offsets = [0, 0, 0], sizes = [2, 8, 8], strides = [1, 1, 1]} : vector<2x8x32xbf16> to vector<2x8x8xbf16>
    "tpu.trace_start"() <{level = 10 : i32, message = "bqd,bkd->bqk"}> : () -> ()
    %cst_6 = arith.constant dense<0.000000e+00> : vector<2x8x8xf32>
    %9 = tpu.matmul %7, %8, %cst_6 {dimension_numbers = #tpu.dot_dimension_numbers<[2], [2], [1], [1], [0, 0, 0, 1, 1, 1], [0], [0]>} : vector<2x8x8xbf16>, vector<2x8x8xbf16>, vector<2x8x8xf32> -> vector<2x8x8xf32>
    "tpu.trace_stop"() : () -> ()
    %cst_7 = arith.constant dense<0xFF800000> : vector<2x8xf32>
    %10 = vector.multi_reduction <maximumf>, %9, %cst_7 [2] : vector<2x8x8xf32> to vector<2x8xf32>
    %11 = vector.shape_cast %10 : vector<2x8xf32> to vector<2x8x1xf32>
    %12 = vector.broadcast %11 : vector<2x8x1xf32> to vector<2x8x8xf32>
    %13 = arith.subf %9, %12 : vector<2x8x8xf32>
    %14 = math.exp %13 : vector<2x8x8xf32>
    %cst_8 = arith.constant dense<0.000000e+00> : vector<2x8xf32>
    %15 = vector.multi_reduction <add>, %14, %cst_8 [2] : vector<2x8x8xf32> to vector<2x8xf32>
    %16 = vector.shape_cast %15 : vector<2x8xf32> to vector<2x8x1xf32>
    %17 = tpu.reciprocal %16 {approx = true} : vector<2x8x1xf32> -> vector<2x8x1xf32>
    %18 = vector.broadcast %17 : vector<2x8x1xf32> to vector<2x8x8xf32>
    %19 = arith.mulf %14, %18 : vector<2x8x8xf32>
    %20 = arith.truncf %19 : vector<2x8x8xf32> to vector<2x8x8xbf16>
    %21 = vector.extract_strided_slice %2 {offsets = [0, 0, 0], sizes = [2, 8, 8], strides = [1, 1, 1]} : vector<2x8x32xbf16> to vector<2x8x8xbf16>
    "tpu.trace_start"() <{level = 10 : i32, message = "bqk,bkd->bqd"}> : () -> ()
    %cst_9 = arith.constant dense<0.000000e+00> : vector<2x8x8xf32>
    %22 = tpu.matmul %20, %21, %cst_9 {dimension_numbers = #tpu.dot_dimension_numbers<[2], [1], [1], [2], [0, 0, 0, 1, 1, 2], [0], [0]>} : vector<2x8x8xbf16>, vector<2x8x8xbf16>, vector<2x8x8xf32> -> vector<2x8x8xf32>
    "tpu.trace_stop"() : () -> ()
    %c0_10 = arith.constant 0 : index
    %c0_11 = arith.constant 0 : index
    %c0_12 = arith.constant 0 : index
    %23 = vector.load %arg3[%c0_10, %c0_11, %c0_12] : memref<2x8x32xf32, #tpu.memory_space<vmem>>, vector<2x8x8xf32>
    tpu.vector_store %arg3[%c0_10, %c0_11, %c0_12], %22 {strides = array<i32>} : memref<2x8x32xf32, #tpu.memory_space<vmem>>, vector<2x8x8xf32>,
    %24 = vector.extract_strided_slice %6 {offsets = [0, 0, 8], sizes = [2, 8, 8], strides = [1, 1, 1]} : vector<2x8x32xbf16> to vector<2x8x8xbf16>
    %25 = vector.extract_strided_slice %1 {offsets = [0, 0, 8], sizes = [2, 8, 8], strides = [1, 1, 1]} : vector<2x8x32xbf16> to vector<2x8x8xbf16>
    "tpu.trace_start"() <{level = 10 : i32, message = "bqd,bkd->bqk"}> : () -> ()
    %cst_13 = arith.constant dense<0.000000e+00> : vector<2x8x8xf32>
    %26 = tpu.matmul %24, %25, %cst_13 {dimension_numbers = #tpu.dot_dimension_numbers<[2], [2], [1], [1], [0, 0, 0, 1, 1, 1], [0], [0]>} : vector<2x8x8xbf16>, vector<2x8x8xbf16>, vector<2x8x8xf32> -> vector<2x8x8xf32>
    "tpu.trace_stop"() : () -> ()
    %cst_14 = arith.constant dense<0xFF800000> : vector<2x8xf32>
    %27 = vector.multi_reduction <maximumf>, %26, %cst_14 [2] : vector<2x8x8xf32> to vector<2x8xf32>
    %28 = vector.shape_cast %27 : vector<2x8xf32> to vector<2x8x1xf32>
    %29 = vector.broadcast %28 : vector<2x8x1xf32> to vector<2x8x8xf32>
    %30 = arith.subf %26, %29 : vector<2x8x8xf32>
    %31 = math.exp %30 : vector<2x8x8xf32>
    %cst_15 = arith.constant dense<0.000000e+00> : vector<2x8xf32>
    %32 = vector.multi_reduction <add>, %31, %cst_15 [2] : vector<2x8x8xf32> to vector<2x8xf32>
    %33 = vector.shape_cast %32 : vector<2x8xf32> to vector<2x8x1xf32>
    %34 = tpu.reciprocal %33 {approx = true} : vector<2x8x1xf32> -> vector<2x8x1xf32>
    %35 = vector.broadcast %34 : vector<2x8x1xf32> to vector<2x8x8xf32>
    %36 = arith.mulf %31, %35 : vector<2x8x8xf32>
    %37 = arith.truncf %36 : vector<2x8x8xf32> to vector<2x8x8xbf16>
    %38 = vector.extract_strided_slice %2 {offsets = [0, 0, 8], sizes = [2, 8, 8], strides = [1, 1, 1]} : vector<2x8x32xbf16> to vector<2x8x8xbf16>
    "tpu.trace_start"() <{level = 10 : i32, message = "bqk,bkd->bqd"}> : () -> ()
    %cst_16 = arith.constant dense<0.000000e+00> : vector<2x8x8xf32>
    %39 = tpu.matmul %37, %38, %cst_16 {dimension_numbers = #tpu.dot_dimension_numbers<[2], [1], [1], [2], [0, 0, 0, 1, 1, 2], [0], [0]>} : vector<2x8x8xbf16>, vector<2x8x8xbf16>, vector<2x8x8xf32> -> vector<2x8x8xf32>
    "tpu.trace_stop"() : () -> ()
    %c0_17 = arith.constant 0 : index
    %c0_18 = arith.constant 0 : index
    %c8 = arith.constant 8 : index
    %40 = vector.load %arg3[%c0_17, %c0_18, %c8] : memref<2x8x32xf32, #tpu.memory_space<vmem>>, vector<2x8x8xf32>
    tpu.vector_store %arg3[%c0_17, %c0_18, %c8], %39 {strides = array<i32>} : memref<2x8x32xf32, #tpu.memory_space<vmem>>, vector<2x8x8xf32>,
    %41 = vector.extract_strided_slice %6 {offsets = [0, 0, 16], sizes = [2, 8, 8], strides = [1, 1, 1]} : vector<2x8x32xbf16> to vector<2x8x8xbf16>
    %42 = vector.extract_strided_slice %1 {offsets = [0, 0, 16], sizes = [2, 8, 8], strides = [1, 1, 1]} : vector<2x8x32xbf16> to vector<2x8x8xbf16>
    "tpu.trace_start"() <{level = 10 : i32, message = "bqd,bkd->bqk"}> : () -> ()
    %cst_19 = arith.constant dense<0.000000e+00> : vector<2x8x8xf32>
    %43 = tpu.matmul %41, %42, %cst_19 {dimension_numbers = #tpu.dot_dimension_numbers<[2], [2], [1], [1], [0, 0, 0, 1, 1, 1], [0], [0]>} : vector<2x8x8xbf16>, vector<2x8x8xbf16>, vector<2x8x8xf32> -> vector<2x8x8xf32>
    "tpu.trace_stop"() : () -> ()
    %cst_20 = arith.constant dense<0xFF800000> : vector<2x8xf32>
    %44 = vector.multi_reduction <maximumf>, %43, %cst_20 [2] : vector<2x8x8xf32> to vector<2x8xf32>
    %45 = vector.shape_cast %44 : vector<2x8xf32> to vector<2x8x1xf32>
    %46 = vector.broadcast %45 : vector<2x8x1xf32> to vector<2x8x8xf32>
    %47 = arith.subf %43, %46 : vector<2x8x8xf32>
    %48 = math.exp %47 : vector<2x8x8xf32>
    %cst_21 = arith.constant dense<0.000000e+00> : vector<2x8xf32>
    %49 = vector.multi_reduction <add>, %48, %cst_21 [2] : vector<2x8x8xf32> to vector<2x8xf32>
    %50 = vector.shape_cast %49 : vector<2x8xf32> to vector<2x8x1xf32>
    %51 = tpu.reciprocal %50 {approx = true} : vector<2x8x1xf32> -> vector<2x8x1xf32>
    %52 = vector.broadcast %51 : vector<2x8x1xf32> to vector<2x8x8xf32>
    %53 = arith.mulf %48, %52 : vector<2x8x8xf32>
    %54 = arith.truncf %53 : vector<2x8x8xf32> to vector<2x8x8xbf16>
    %55 = vector.extract_strided_slice %2 {offsets = [0, 0, 16], sizes = [2, 8, 8], strides = [1, 1, 1]} : vector<2x8x32xbf16> to vector<2x8x8xbf16>
    "tpu.trace_start"() <{level = 10 : i32, message = "bqk,bkd->bqd"}> : () -> ()
    %cst_22 = arith.constant dense<0.000000e+00> : vector<2x8x8xf32>
    %56 = tpu.matmul %54, %55, %cst_22 {dimension_numbers = #tpu.dot_dimension_numbers<[2], [1], [1], [2], [0, 0, 0, 1, 1, 2], [0], [0]>} : vector<2x8x8xbf16>, vector<2x8x8xbf16>, vector<2x8x8xf32> -> vector<2x8x8xf32>
    "tpu.trace_stop"() : () -> ()
    %c0_23 = arith.constant 0 : index
    %c0_24 = arith.constant 0 : index
    %c16 = arith.constant 16 : index
    %57 = vector.load %arg3[%c0_23, %c0_24, %c16] : memref<2x8x32xf32, #tpu.memory_space<vmem>>, vector<2x8x8xf32>
    tpu.vector_store %arg3[%c0_23, %c0_24, %c16], %56 {strides = array<i32>} : memref<2x8x32xf32, #tpu.memory_space<vmem>>, vector<2x8x8xf32>,
    %58 = vector.extract_strided_slice %6 {offsets = [0, 0, 24], sizes = [2, 8, 8], strides = [1, 1, 1]} : vector<2x8x32xbf16> to vector<2x8x8xbf16>
    %59 = vector.extract_strided_slice %1 {offsets = [0, 0, 24], sizes = [2, 8, 8], strides = [1, 1, 1]} : vector<2x8x32xbf16> to vector<2x8x8xbf16>
    "tpu.trace_start"() <{level = 10 : i32, message = "bqd,bkd->bqk"}> : () -> ()
    %cst_25 = arith.constant dense<0.000000e+00> : vector<2x8x8xf32>
    %60 = tpu.matmul %58, %59, %cst_25 {dimension_numbers = #tpu.dot_dimension_numbers<[2], [2], [1], [1], [0, 0, 0, 1, 1, 1], [0], [0]>} : vector<2x8x8xbf16>, vector<2x8x8xbf16>, vector<2x8x8xf32> -> vector<2x8x8xf32>
    "tpu.trace_stop"() : () -> ()
    %cst_26 = arith.constant dense<0xFF800000> : vector<2x8xf32>
    %61 = vector.multi_reduction <maximumf>, %60, %cst_26 [2] : vector<2x8x8xf32> to vector<2x8xf32>
    %62 = vector.shape_cast %61 : vector<2x8xf32> to vector<2x8x1xf32>
    %63 = vector.broadcast %62 : vector<2x8x1xf32> to vector<2x8x8xf32>
    %64 = arith.subf %60, %63 : vector<2x8x8xf32>
    %65 = math.exp %64 : vector<2x8x8xf32>
    %cst_27 = arith.constant dense<0.000000e+00> : vector<2x8xf32>
    %66 = vector.multi_reduction <add>, %65, %cst_27 [2] : vector<2x8x8xf32> to vector<2x8xf32>
    %67 = vector.shape_cast %66 : vector<2x8xf32> to vector<2x8x1xf32>
    %68 = tpu.reciprocal %67 {approx = true} : vector<2x8x1xf32> -> vector<2x8x1xf32>
    %69 = vector.broadcast %68 : vector<2x8x1xf32> to vector<2x8x8xf32>
    %70 = arith.mulf %65, %69 : vector<2x8x8xf32>
    %71 = arith.truncf %70 : vector<2x8x8xf32> to vector<2x8x8xbf16>
    %72 = vector.extract_strided_slice %2 {offsets = [0, 0, 24], sizes = [2, 8, 8], strides = [1, 1, 1]} : vector<2x8x32xbf16> to vector<2x8x8xbf16>
    "tpu.trace_start"() <{level = 10 : i32, message = "bqk,bkd->bqd"}> : () -> ()
    %cst_28 = arith.constant dense<0.000000e+00> : vector<2x8x8xf32>
    %73 = tpu.matmul %71, %72, %cst_28 {dimension_numbers = #tpu.dot_dimension_numbers<[2], [1], [1], [2], [0, 0, 0, 1, 1, 2], [0], [0]>} : vector<2x8x8xbf16>, vector<2x8x8xbf16>, vector<2x8x8xf32> -> vector<2x8x8xf32>
    "tpu.trace_stop"() : () -> ()
    %c0_29 = arith.constant 0 : index
    %c0_30 = arith.constant 0 : index
    %c24 = arith.constant 24 : index
    %74 = vector.load %arg3[%c0_29, %c0_30, %c24] : memref<2x8x32xf32, #tpu.memory_space<vmem>>, vector<2x8x8xf32>
    tpu.vector_store %arg3[%c0_29, %c0_30, %c24], %73 {strides = array<i32>} : memref<2x8x32xf32, #tpu.memory_space<vmem>>, vector<2x8x8xf32>,
    %c0_31 = arith.constant 0 : index
    %c0_32 = arith.constant 0 : index
    %c0_33 = arith.constant 0 : index
    %75 = vector.load %arg3[%c0_31, %c0_32, %c0_33] : memref<2x8x32xf32, #tpu.memory_space<vmem>>, vector<2x8x32xf32>
    %76 = arith.truncf %75 : vector<2x8x32xf32> to vector<2x8x32xbf16>
    %c0_34 = arith.constant 0 : index
    %c0_35 = arith.constant 0 : index
    %c0_36 = arith.constant 0 : index
    %77 = vector.load %arg2[%c0_34, %c0_35, %c0_36] : memref<2x8x32xbf16, #tpu.memory_space<vmem>>, vector<2x8x32xbf16>
    tpu.vector_store %arg2[%c0_34, %c0_35, %c0_36], %76 {strides = array<i32>} : memref<2x8x32xbf16, #tpu.memory_space<vmem>>, vector<2x8x32xbf16>,
    return
  }
  func.func @transform_0(%arg0: i32) -> (i32, i32, i32) {
    %c0_i32 = arith.constant 0 : i32
    %c0_i32_0 = arith.constant 0 : i32
    %c0_i32_1 = arith.constant 0 : i32
    return %arg0, %c0_i32, %c0_i32_0 : i32, i32, i32
  }
  func.func @transform_1(%arg0: i32) -> (i32, i32, i32) {
    %c0_i32 = arith.constant 0 : i32
    %c0_i32_0 = arith.constant 0 : i32
    %c0_i32_1 = arith.constant 0 : i32
    return %arg0, %c0_i32, %c0_i32_0 : i32, i32, i32
  }
}

module attributes {stable_mosaic.version = 11 : i64} {
  func.func @_matmul_bias_kernel(%arg0: i32, %arg1: i32, %arg2: memref<8x32xf32, #tpu.memory_space<vmem>>, %arg3: memref<32x32xbf16, #tpu.memory_space<vmem>>, %arg4: memref<1x32xf32, #tpu.memory_space<vmem>>, %arg5: memref<8x32xbf16, #tpu.memory_space<vmem>>) attributes {dimension_semantics = [#tpu.dimension_semantics<parallel>, #tpu.dimension_semantics<parallel>], iteration_bounds = array<i64: 2, 1>, scalar_prefetch = 0 : i64, scratch_operands = 0 : i64, tpu.core_type = #tpu.core_type<tc>, window_params = [{transform_indices = @transform_0, window_bounds = array<i64: 8, 32>}, {transform_indices = @transform_1, window_bounds = array<i64: 32, 32>}, {transform_indices = @transform_2, window_bounds = array<i64: 1, 32>}, {transform_indices = @transform_3, window_bounds = array<i64: 8, 32>}]} {
    %c0 = arith.constant 0 : index
    %c0_0 = arith.constant 0 : index
    %0 = vector.load %arg2[%c0, %c0_0] : memref<8x32xf32, #tpu.memory_space<vmem>>, vector<8x32xf32>
    %1 = arith.truncf %0 : vector<8x32xf32> to vector<8x32xbf16>
    %c0_1 = arith.constant 0 : index
    %c0_2 = arith.constant 0 : index
    %2 = vector.load %arg3[%c0_1, %c0_2] : memref<32x32xbf16, #tpu.memory_space<vmem>>, vector<32x32xbf16>
    %cst = arith.constant dense<0.000000e+00> : vector<8x32xf32>
    %3 = tpu.matmul %1, %2, %cst {dimension_numbers = #tpu.dot_dimension_numbers<[1], [0], [0], [1], [0, 0, 1, 1], [], []>} : vector<8x32xbf16>, vector<32x32xbf16>, vector<8x32xf32> -> vector<8x32xf32>
    %c0_3 = arith.constant 0 : index
    %c0_4 = arith.constant 0 : index
    %4 = vector.load %arg4[%c0_3, %c0_4] : memref<1x32xf32, #tpu.memory_space<vmem>>, vector<1x32xf32>
    %5 = vector.broadcast %4 : vector<1x32xf32> to vector<8x32xf32>
    %6 = arith.addf %3, %5 : vector<8x32xf32>
    %7 = arith.truncf %6 : vector<8x32xf32> to vector<8x32xbf16>
    %c0_5 = arith.constant 0 : index
    %c0_6 = arith.constant 0 : index
    %8 = vector.load %arg5[%c0_5, %c0_6] : memref<8x32xbf16, #tpu.memory_space<vmem>>, vector<8x32xbf16>
    tpu.vector_store %arg5[%c0_5, %c0_6], %7 {strides = array<i32>} : memref<8x32xbf16, #tpu.memory_space<vmem>>, vector<8x32xbf16>,
    return
  }
  func.func @transform_0(%arg0: i32, %arg1: i32) -> (i32, i32) {
    %c0_i32 = arith.constant 0 : i32
    %c0_i32_0 = arith.constant 0 : i32
    return %arg0, %c0_i32 : i32, i32
  }
  func.func @transform_1(%arg0: i32, %arg1: i32) -> (i32, i32) {
    %c0_i32 = arith.constant 0 : i32
    %c0_i32_0 = arith.constant 0 : i32
    return %c0_i32, %arg1 : i32, i32
  }
  func.func @transform_2(%arg0: i32, %arg1: i32) -> (i32, i32) {
    %c0_i32 = arith.constant 0 : i32
    %c0_i32_0 = arith.constant 0 : i32
    return %c0_i32, %arg1 : i32, i32
  }
  func.func @transform_3(%arg0: i32, %arg1: i32) -> (i32, i32) {
    %c0_i32 = arith.constant 0 : i32
    return %arg0, %arg1 : i32, i32
  }
}

module attributes {stable_mosaic.version = 11 : i64} {
  func.func @_mha_cross_kernel(%arg0: i32, %arg1: memref<2x8x32xbf16, #tpu.memory_space<vmem>>, %arg2: memref<2x32x64xbf16, #tpu.memory_space<vmem>>, %arg3: memref<2x8x32xbf16, #tpu.memory_space<vmem>>, %arg4: memref<2x8x32xf32, #tpu.memory_space<vmem>>) attributes {dimension_semantics = [#tpu.dimension_semantics<parallel>], iteration_bounds = array<i64: 1>, scalar_prefetch = 0 : i64, scratch_operands = 1 : i64, tpu.core_type = #tpu.core_type<tc>, window_params = [{transform_indices = @transform_0, window_bounds = array<i64: 2, 8, 32>}, {transform_indices = @transform_1, window_bounds = array<i64: 2, 32, 64>}, {transform_indices = @transform_2, window_bounds = array<i64: 2, 8, 32>}]} {
    %c0 = arith.constant 0 : index
    %c0_0 = arith.constant 0 : index
    %c0_1 = arith.constant 0 : index
    %0 = vector.load %arg1[%c0, %c0_0, %c0_1] : memref<2x8x32xbf16, #tpu.memory_space<vmem>>, vector<2x8x32xbf16>
    %c0_2 = arith.constant 0 : index
    %c0_3 = arith.constant 0 : index
    %c0_4 = arith.constant 0 : index
    %1 = vector.load %arg2[%c0_2, %c0_3, %c0_4] : memref<2x32x64xbf16, #tpu.memory_space<vmem>>, vector<2x32x32xbf16>
    %c0_5 = arith.constant 0 : index
    %c0_6 = arith.constant 0 : index
    %c32 = arith.constant 32 : index
    %2 = vector.load %arg2[%c0_5, %c0_6, %c32] : memref<2x32x64xbf16, #tpu.memory_space<vmem>>, vector<2x32x32xbf16>
    %3 = arith.extf %0 : vector<2x8x32xbf16> to vector<2x8x32xf32>
    %cst = arith.constant 0.353553385 : f32
    %4 = vector.broadcast %cst : f32 to vector<2x8x32xf32>
    %5 = arith.mulf %3, %4 : vector<2x8x32xf32>
    %6 = arith.truncf %5 : vector<2x8x32xf32> to vector<2x8x32xbf16>
    %7 = vector.extract_strided_slice %6 {offsets = [0, 0, 0], sizes = [2, 8, 8], strides = [1, 1, 1]} : vector<2x8x32xbf16> to vector<2x8x8xbf16>
    %8 = vector.extract_strided_slice %1 {offsets = [0, 0, 0], sizes = [2, 32, 8], strides = [1, 1, 1]} : vector<2x32x32xbf16> to vector<2x32x8xbf16>
    "tpu.trace_start"() <{level = 10 : i32, message = "bqd,bkd->bqk"}> : () -> ()
    %cst_7 = arith.constant dense<0.000000e+00> : vector<2x8x32xf32>
    %9 = tpu.matmul %7, %8, %cst_7 {dimension_numbers = #tpu.dot_dimension_numbers<[2], [2], [1], [1], [0, 0, 0, 1, 1, 1], [0], [0]>} : vector<2x8x8xbf16>, vector<2x32x8xbf16>, vector<2x8x32xf32> -> vector<2x8x32xf32>
    "tpu.trace_stop"() : () -> ()
    %cst_8 = arith.constant dense<0xFF800000> : vector<2x8xf32>
    %10 = vector.multi_reduction <maximumf>, %9, %cst_8 [2] : vector<2x8x32xf32> to vector<2x8xf32>
    %11 = vector.shape_cast %10 : vector<2x8xf32> to vector<2x8x1xf32>
    %12 = vector.broadcast %11 : vector<2x8x1xf32> to vector<2x8x32xf32>
    %13 = arith.subf %9, %12 : vector<2x8x32xf32>
    %14 = math.exp %13 : vector<2x8x32xf32>
    %cst_9 = arith.constant dense<0.000000e+00> : vector<2x8xf32>
    %15 = vector.multi_reduction <add>, %14, %cst_9 [2] : vector<2x8x32xf32> to vector<2x8xf32>
    %16 = vector.shape_cast %15 : vector<2x8xf32> to vector<2x8x1xf32>
    %17 = tpu.reciprocal %16 {approx = true} : vector<2x8x1xf32> -> vector<2x8x1xf32>
    %18 = vector.broadcast %17 : vector<2x8x1xf32> to vector<2x8x32xf32>
    %19 = arith.mulf %14, %18 : vector<2x8x32xf32>
    %20 = arith.truncf %19 : vector<2x8x32xf32> to vector<2x8x32xbf16>
    %21 = vector.extract_strided_slice %2 {offsets = [0, 0, 0], sizes = [2, 32, 8], strides = [1, 1, 1]} : vector<2x32x32xbf16> to vector<2x32x8xbf16>
    "tpu.trace_start"() <{level = 10 : i32, message = "bqk,bkd->bqd"}> : () -> ()
    %cst_10 = arith.constant dense<0.000000e+00> : vector<2x8x8xf32>
    %22 = tpu.matmul %20, %21, %cst_10 {dimension_numbers = #tpu.dot_dimension_numbers<[2], [1], [1], [2], [0, 0, 0, 1, 1, 2], [0], [0]>} : vector<2x8x32xbf16>, vector<2x32x8xbf16>, vector<2x8x8xf32> -> vector<2x8x8xf32>
    "tpu.trace_stop"() : () -> ()
    %c0_11 = arith.constant 0 : index
    %c0_12 = arith.constant 0 : index
    %c0_13 = arith.constant 0 : index
    %23 = vector.load %arg4[%c0_11, %c0_12, %c0_13] : memref<2x8x32xf32, #tpu.memory_space<vmem>>, vector<2x8x8xf32>
    tpu.vector_store %arg4[%c0_11, %c0_12, %c0_13], %22 {strides = array<i32>} : memref<2x8x32xf32, #tpu.memory_space<vmem>>, vector<2x8x8xf32>,
    %24 = vector.extract_strided_slice %6 {offsets = [0, 0, 8], sizes = [2, 8, 8], strides = [1, 1, 1]} : vector<2x8x32xbf16> to vector<2x8x8xbf16>
    %25 = vector.extract_strided_slice %1 {offsets = [0, 0, 8], sizes = [2, 32, 8], strides = [1, 1, 1]} : vector<2x32x32xbf16> to vector<2x32x8xbf16>
    "tpu.trace_start"() <{level = 10 : i32, message = "bqd,bkd->bqk"}> : () -> ()
    %cst_14 = arith.constant dense<0.000000e+00> : vector<2x8x32xf32>
    %26 = tpu.matmul %24, %25, %cst_14 {dimension_numbers = #tpu.dot_dimension_numbers<[2], [2], [1], [1], [0, 0, 0, 1, 1, 1], [0], [0]>} : vector<2x8x8xbf16>, vector<2x32x8xbf16>, vector<2x8x32xf32> -> vector<2x8x32xf32>
    "tpu.trace_stop"() : () -> ()
    %cst_15 = arith.constant dense<0xFF800000> : vector<2x8xf32>
    %27 = vector.multi_reduction <maximumf>, %26, %cst_15 [2] : vector<2x8x32xf32> to vector<2x8xf32>
    %28 = vector.shape_cast %27 : vector<2x8xf32> to vector<2x8x1xf32>
    %29 = vector.broadcast %28 : vector<2x8x1xf32> to vector<2x8x32xf32>
    %30 = arith.subf %26, %29 : vector<2x8x32xf32>
    %31 = math.exp %30 : vector<2x8x32xf32>
    %cst_16 = arith.constant dense<0.000000e+00> : vector<2x8xf32>
    %32 = vector.multi_reduction <add>, %31, %cst_16 [2] : vector<2x8x32xf32> to vector<2x8xf32>
    %33 = vector.shape_cast %32 : vector<2x8xf32> to vector<2x8x1xf32>
    %34 = tpu.reciprocal %33 {approx = true} : vector<2x8x1xf32> -> vector<2x8x1xf32>
    %35 = vector.broadcast %34 : vector<2x8x1xf32> to vector<2x8x32xf32>
    %36 = arith.mulf %31, %35 : vector<2x8x32xf32>
    %37 = arith.truncf %36 : vector<2x8x32xf32> to vector<2x8x32xbf16>
    %38 = vector.extract_strided_slice %2 {offsets = [0, 0, 8], sizes = [2, 32, 8], strides = [1, 1, 1]} : vector<2x32x32xbf16> to vector<2x32x8xbf16>
    "tpu.trace_start"() <{level = 10 : i32, message = "bqk,bkd->bqd"}> : () -> ()
    %cst_17 = arith.constant dense<0.000000e+00> : vector<2x8x8xf32>
    %39 = tpu.matmul %37, %38, %cst_17 {dimension_numbers = #tpu.dot_dimension_numbers<[2], [1], [1], [2], [0, 0, 0, 1, 1, 2], [0], [0]>} : vector<2x8x32xbf16>, vector<2x32x8xbf16>, vector<2x8x8xf32> -> vector<2x8x8xf32>
    "tpu.trace_stop"() : () -> ()
    %c0_18 = arith.constant 0 : index
    %c0_19 = arith.constant 0 : index
    %c8 = arith.constant 8 : index
    %40 = vector.load %arg4[%c0_18, %c0_19, %c8] : memref<2x8x32xf32, #tpu.memory_space<vmem>>, vector<2x8x8xf32>
    tpu.vector_store %arg4[%c0_18, %c0_19, %c8], %39 {strides = array<i32>} : memref<2x8x32xf32, #tpu.memory_space<vmem>>, vector<2x8x8xf32>,
    %41 = vector.extract_strided_slice %6 {offsets = [0, 0, 16], sizes = [2, 8, 8], strides = [1, 1, 1]} : vector<2x8x32xbf16> to vector<2x8x8xbf16>
    %42 = vector.extract_strided_slice %1 {offsets = [0, 0, 16], sizes = [2, 32, 8], strides = [1, 1, 1]} : vector<2x32x32xbf16> to vector<2x32x8xbf16>
    "tpu.trace_start"() <{level = 10 : i32, message = "bqd,bkd->bqk"}> : () -> ()
    %cst_20 = arith.constant dense<0.000000e+00> : vector<2x8x32xf32>
    %43 = tpu.matmul %41, %42, %cst_20 {dimension_numbers = #tpu.dot_dimension_numbers<[2], [2], [1], [1], [0, 0, 0, 1, 1, 1], [0], [0]>} : vector<2x8x8xbf16>, vector<2x32x8xbf16>, vector<2x8x32xf32> -> vector<2x8x32xf32>
    "tpu.trace_stop"() : () -> ()
    %cst_21 = arith.constant dense<0xFF800000> : vector<2x8xf32>
    %44 = vector.multi_reduction <maximumf>, %43, %cst_21 [2] : vector<2x8x32xf32> to vector<2x8xf32>
    %45 = vector.shape_cast %44 : vector<2x8xf32> to vector<2x8x1xf32>
    %46 = vector.broadcast %45 : vector<2x8x1xf32> to vector<2x8x32xf32>
    %47 = arith.subf %43, %46 : vector<2x8x32xf32>
    %48 = math.exp %47 : vector<2x8x32xf32>
    %cst_22 = arith.constant dense<0.000000e+00> : vector<2x8xf32>
    %49 = vector.multi_reduction <add>, %48, %cst_22 [2] : vector<2x8x32xf32> to vector<2x8xf32>
    %50 = vector.shape_cast %49 : vector<2x8xf32> to vector<2x8x1xf32>
    %51 = tpu.reciprocal %50 {approx = true} : vector<2x8x1xf32> -> vector<2x8x1xf32>
    %52 = vector.broadcast %51 : vector<2x8x1xf32> to vector<2x8x32xf32>
    %53 = arith.mulf %48, %52 : vector<2x8x32xf32>
    %54 = arith.truncf %53 : vector<2x8x32xf32> to vector<2x8x32xbf16>
    %55 = vector.extract_strided_slice %2 {offsets = [0, 0, 16], sizes = [2, 32, 8], strides = [1, 1, 1]} : vector<2x32x32xbf16> to vector<2x32x8xbf16>
    "tpu.trace_start"() <{level = 10 : i32, message = "bqk,bkd->bqd"}> : () -> ()
    %cst_23 = arith.constant dense<0.000000e+00> : vector<2x8x8xf32>
    %56 = tpu.matmul %54, %55, %cst_23 {dimension_numbers = #tpu.dot_dimension_numbers<[2], [1], [1], [2], [0, 0, 0, 1, 1, 2], [0], [0]>} : vector<2x8x32xbf16>, vector<2x32x8xbf16>, vector<2x8x8xf32> -> vector<2x8x8xf32>
    "tpu.trace_stop"() : () -> ()
    %c0_24 = arith.constant 0 : index
    %c0_25 = arith.constant 0 : index
    %c16 = arith.constant 16 : index
    %57 = vector.load %arg4[%c0_24, %c0_25, %c16] : memref<2x8x32xf32, #tpu.memory_space<vmem>>, vector<2x8x8xf32>
    tpu.vector_store %arg4[%c0_24, %c0_25, %c16], %56 {strides = array<i32>} : memref<2x8x32xf32, #tpu.memory_space<vmem>>, vector<2x8x8xf32>,
    %58 = vector.extract_strided_slice %6 {offsets = [0, 0, 24], sizes = [2, 8, 8], strides = [1, 1, 1]} : vector<2x8x32xbf16> to vector<2x8x8xbf16>
    %59 = vector.extract_strided_slice %1 {offsets = [0, 0, 24], sizes = [2, 32, 8], strides = [1, 1, 1]} : vector<2x32x32xbf16> to vector<2x32x8xbf16>
    "tpu.trace_start"() <{level = 10 : i32, message = "bqd,bkd->bqk"}> : () -> ()
    %cst_26 = arith.constant dense<0.000000e+00> : vector<2x8x32xf32>
    %60 = tpu.matmul %58, %59, %cst_26 {dimension_numbers = #tpu.dot_dimension_numbers<[2], [2], [1], [1], [0, 0, 0, 1, 1, 1], [0], [0]>} : vector<2x8x8xbf16>, vector<2x32x8xbf16>, vector<2x8x32xf32> -> vector<2x8x32xf32>
    "tpu.trace_stop"() : () -> ()
    %cst_27 = arith.constant dense<0xFF800000> : vector<2x8xf32>
    %61 = vector.multi_reduction <maximumf>, %60, %cst_27 [2] : vector<2x8x32xf32> to vector<2x8xf32>
    %62 = vector.shape_cast %61 : vector<2x8xf32> to vector<2x8x1xf32>
    %63 = vector.broadcast %62 : vector<2x8x1xf32> to vector<2x8x32xf32>
    %64 = arith.subf %60, %63 : vector<2x8x32xf32>
    %65 = math.exp %64 : vector<2x8x32xf32>
    %cst_28 = arith.constant dense<0.000000e+00> : vector<2x8xf32>
    %66 = vector.multi_reduction <add>, %65, %cst_28 [2] : vector<2x8x32xf32> to vector<2x8xf32>
    %67 = vector.shape_cast %66 : vector<2x8xf32> to vector<2x8x1xf32>
    %68 = tpu.reciprocal %67 {approx = true} : vector<2x8x1xf32> -> vector<2x8x1xf32>
    %69 = vector.broadcast %68 : vector<2x8x1xf32> to vector<2x8x32xf32>
    %70 = arith.mulf %65, %69 : vector<2x8x32xf32>
    %71 = arith.truncf %70 : vector<2x8x32xf32> to vector<2x8x32xbf16>
    %72 = vector.extract_strided_slice %2 {offsets = [0, 0, 24], sizes = [2, 32, 8], strides = [1, 1, 1]} : vector<2x32x32xbf16> to vector<2x32x8xbf16>
    "tpu.trace_start"() <{level = 10 : i32, message = "bqk,bkd->bqd"}> : () -> ()
    %cst_29 = arith.constant dense<0.000000e+00> : vector<2x8x8xf32>
    %73 = tpu.matmul %71, %72, %cst_29 {dimension_numbers = #tpu.dot_dimension_numbers<[2], [1], [1], [2], [0, 0, 0, 1, 1, 2], [0], [0]>} : vector<2x8x32xbf16>, vector<2x32x8xbf16>, vector<2x8x8xf32> -> vector<2x8x8xf32>
    "tpu.trace_stop"() : () -> ()
    %c0_30 = arith.constant 0 : index
    %c0_31 = arith.constant 0 : index
    %c24 = arith.constant 24 : index
    %74 = vector.load %arg4[%c0_30, %c0_31, %c24] : memref<2x8x32xf32, #tpu.memory_space<vmem>>, vector<2x8x8xf32>
    tpu.vector_store %arg4[%c0_30, %c0_31, %c24], %73 {strides = array<i32>} : memref<2x8x32xf32, #tpu.memory_space<vmem>>, vector<2x8x8xf32>,
    %c0_32 = arith.constant 0 : index
    %c0_33 = arith.constant 0 : index
    %c0_34 = arith.constant 0 : index
    %75 = vector.load %arg4[%c0_32, %c0_33, %c0_34] : memref<2x8x32xf32, #tpu.memory_space<vmem>>, vector<2x8x32xf32>
    %76 = arith.truncf %75 : vector<2x8x32xf32> to vector<2x8x32xbf16>
    %c0_35 = arith.constant 0 : index
    %c0_36 = arith.constant 0 : index
    %c0_37 = arith.constant 0 : index
    %77 = vector.load %arg3[%c0_35, %c0_36, %c0_37] : memref<2x8x32xbf16, #tpu.memory_space<vmem>>, vector<2x8x32xbf16>
    tpu.vector_store %arg3[%c0_35, %c0_36, %c0_37], %76 {strides = array<i32>} : memref<2x8x32xbf16, #tpu.memory_space<vmem>>, vector<2x8x32xbf16>,
    return
  }
  func.func @transform_0(%arg0: i32) -> (i32, i32, i32) {
    %c0_i32 = arith.constant 0 : i32
    %c0_i32_0 = arith.constant 0 : i32
    %c0_i32_1 = arith.constant 0 : i32
    return %arg0, %c0_i32, %c0_i32_0 : i32, i32, i32
  }
  func.func @transform_1(%arg0: i32) -> (i32, i32, i32) {
    %c0_i32 = arith.constant 0 : i32
    %c0_i32_0 = arith.constant 0 : i32
    %c0_i32_1 = arith.constant 0 : i32
    return %arg0, %c0_i32, %c0_i32_0 : i32, i32, i32
  }
  func.func @transform_2(%arg0: i32) -> (i32, i32, i32) {
    %c0_i32 = arith.constant 0 : i32
    %c0_i32_0 = arith.constant 0 : i32
    %c0_i32_1 = arith.constant 0 : i32
    return %arg0, %c0_i32, %c0_i32_0 : i32, i32, i32
  }
}

module attributes {stable_mosaic.version = 11 : i64} {
  func.func @_matmul_bias_kernel(%arg0: i32, %arg1: i32, %arg2: memref<8x32xf32, #tpu.memory_space<vmem>>, %arg3: memref<32x64xbf16, #tpu.memory_space<vmem>>, %arg4: memref<1x64xf32, #tpu.memory_space<vmem>>, %arg5: memref<8x64xf32, #tpu.memory_space<vmem>>) attributes {dimension_semantics = [#tpu.dimension_semantics<parallel>, #tpu.dimension_semantics<parallel>], iteration_bounds = array<i64: 2, 1>, scalar_prefetch = 0 : i64, scratch_operands = 0 : i64, tpu.core_type = #tpu.core_type<tc>, window_params = [{transform_indices = @transform_0, window_bounds = array<i64: 8, 32>}, {transform_indices = @transform_1, window_bounds = array<i64: 32, 64>}, {transform_indices = @transform_2, window_bounds = array<i64: 1, 64>}, {transform_indices = @transform_3, window_bounds = array<i64: 8, 64>}]} {
    %c0 = arith.constant 0 : index
    %c0_0 = arith.constant 0 : index
    %0 = vector.load %arg2[%c0, %c0_0] : memref<8x32xf32, #tpu.memory_space<vmem>>, vector<8x32xf32>
    %1 = arith.truncf %0 : vector<8x32xf32> to vector<8x32xbf16>
    %c0_1 = arith.constant 0 : index
    %c0_2 = arith.constant 0 : index
    %2 = vector.load %arg3[%c0_1, %c0_2] : memref<32x64xbf16, #tpu.memory_space<vmem>>, vector<32x64xbf16>
    %cst = arith.constant dense<0.000000e+00> : vector<8x64xf32>
    %3 = tpu.matmul %1, %2, %cst {dimension_numbers = #tpu.dot_dimension_numbers<[1], [0], [0], [1], [0, 0, 1, 1], [], []>} : vector<8x32xbf16>, vector<32x64xbf16>, vector<8x64xf32> -> vector<8x64xf32>
    %c0_3 = arith.constant 0 : index
    %c0_4 = arith.constant 0 : index
    %4 = vector.load %arg4[%c0_3, %c0_4] : memref<1x64xf32, #tpu.memory_space<vmem>>, vector<1x64xf32>
    %5 = vector.broadcast %4 : vector<1x64xf32> to vector<8x64xf32>
    %6 = arith.addf %3, %5 : vector<8x64xf32>
    %c0_5 = arith.constant 0 : index
    %c0_6 = arith.constant 0 : index
    %7 = vector.load %arg5[%c0_5, %c0_6] : memref<8x64xf32, #tpu.memory_space<vmem>>, vector<8x64xf32>
    tpu.vector_store %arg5[%c0_5, %c0_6], %6 {strides = array<i32>} : memref<8x64xf32, #tpu.memory_space<vmem>>, vector<8x64xf32>,
    return
  }
  func.func @transform_0(%arg0: i32, %arg1: i32) -> (i32, i32) {
    %c0_i32 = arith.constant 0 : i32
    %c0_i32_0 = arith.constant 0 : i32
    return %arg0, %c0_i32 : i32, i32
  }
  func.func @transform_1(%arg0: i32, %arg1: i32) -> (i32, i32) {
    %c0_i32 = arith.constant 0 : i32
    %c0_i32_0 = arith.constant 0 : i32
    return %c0_i32, %arg1 : i32, i32
  }
  func.func @transform_2(%arg0: i32, %arg1: i32) -> (i32, i32) {
    %c0_i32 = arith.constant 0 : i32
    %c0_i32_0 = arith.constant 0 : i32
    return %c0_i32, %arg1 : i32, i32
  }
  func.func @transform_3(%arg0: i32, %arg1: i32) -> (i32, i32) {
    %c0_i32 = arith.constant 0 : i32
    return %arg0, %arg1 : i32, i32
  }
}

module attributes {stable_mosaic.version = 11 : i64} {
  func.func @_ffn_ln_kernel(%arg0: i32, %arg1: memref<8x32xf32, #tpu.memory_space<vmem>>, %arg2: memref<32x128xbf16, #tpu.memory_space<vmem>>, %arg3: memref<1x128xf32, #tpu.memory_space<vmem>>, %arg4: memref<128x32xbf16, #tpu.memory_space<vmem>>, %arg5: memref<1x32xf32, #tpu.memory_space<vmem>>, %arg6: memref<1x32xf32, #tpu.memory_space<vmem>>, %arg7: memref<1x32xf32, #tpu.memory_space<vmem>>, %arg8: memref<8x32xf32, #tpu.memory_space<vmem>>) attributes {dimension_semantics = [#tpu.dimension_semantics<parallel>], iteration_bounds = array<i64: 2>, scalar_prefetch = 0 : i64, scratch_operands = 0 : i64, tpu.core_type = #tpu.core_type<tc>, window_params = [{transform_indices = @transform_0, window_bounds = array<i64: 8, 32>}, {pipeline_mode = #tpu.pipeline_mode<synchronous>, transform_indices = @transform_1, window_bounds = array<i64: 32, 128>}, {pipeline_mode = #tpu.pipeline_mode<synchronous>, transform_indices = @transform_2, window_bounds = array<i64: 1, 128>}, {pipeline_mode = #tpu.pipeline_mode<synchronous>, transform_indices = @transform_3, window_bounds = array<i64: 128, 32>}, {pipeline_mode = #tpu.pipeline_mode<synchronous>, transform_indices = @transform_4, window_bounds = array<i64: 1, 32>}, {pipeline_mode = #tpu.pipeline_mode<synchronous>, transform_indices = @transform_5, window_bounds = array<i64: 1, 32>}, {pipeline_mode = #tpu.pipeline_mode<synchronous>, transform_indices = @transform_6, window_bounds = array<i64: 1, 32>}, {transform_indices = @transform_7, window_bounds = array<i64: 8, 32>}]} {
    %c0 = arith.constant 0 : index
    %c0_0 = arith.constant 0 : index
    %0 = vector.load %arg1[%c0, %c0_0] : memref<8x32xf32, #tpu.memory_space<vmem>>, vector<8x32xf32>
    %1 = arith.truncf %0 : vector<8x32xf32> to vector<8x32xbf16>
    %c0_1 = arith.constant 0 : index
    %c0_2 = arith.constant 0 : index
    %2 = vector.load %arg2[%c0_1, %c0_2] : memref<32x128xbf16, #tpu.memory_space<vmem>>, vector<32x128xbf16>
    %cst = arith.constant dense<0.000000e+00> : vector<8x128xf32>
    %3 = tpu.matmul %1, %2, %cst {dimension_numbers = #tpu.dot_dimension_numbers<[1], [0], [0], [1], [0, 0, 1, 1], [], []>} : vector<8x32xbf16>, vector<32x128xbf16>, vector<8x128xf32> -> vector<8x128xf32>
    %c0_3 = arith.constant 0 : index
    %c0_4 = arith.constant 0 : index
    %4 = vector.load %arg3[%c0_3, %c0_4] : memref<1x128xf32, #tpu.memory_space<vmem>>, vector<1x128xf32>
    %5 = vector.broadcast %4 : vector<1x128xf32> to vector<8x128xf32>
    %6 = arith.addf %3, %5 : vector<8x128xf32>
    %7 = arith.mulf %6, %6 : vector<8x128xf32>
    %8 = arith.mulf %6, %7 : vector<8x128xf32>
    %cst_5 = arith.constant 4.471500e-02 : f32
    %9 = vector.broadcast %cst_5 : f32 to vector<8x128xf32>
    %10 = arith.mulf %9, %8 : vector<8x128xf32>
    %11 = arith.addf %6, %10 : vector<8x128xf32>
    %cst_6 = arith.constant 0.797884583 : f32
    %12 = vector.broadcast %cst_6 : f32 to vector<8x128xf32>
    %13 = arith.mulf %12, %11 : vector<8x128xf32>
    %14 = math.tanh %13 : vector<8x128xf32>
    %cst_7 = arith.constant 1.000000e+00 : f32
    %15 = vector.broadcast %cst_7 : f32 to vector<8x128xf32>
    %16 = arith.addf %15, %14 : vector<8x128xf32>
    %cst_8 = arith.constant 5.000000e-01 : f32
    %17 = vector.broadcast %cst_8 : f32 to vector<8x128xf32>
    %18 = arith.mulf %17, %16 : vector<8x128xf32>
    %19 = arith.mulf %6, %18 : vector<8x128xf32>
    %20 = arith.truncf %19 : vector<8x128xf32> to vector<8x128xbf16>
    %c0_9 = arith.constant 0 : index
    %c0_10 = arith.constant 0 : index
    %21 = vector.load %arg4[%c0_9, %c0_10] : memref<128x32xbf16, #tpu.memory_space<vmem>>, vector<128x32xbf16>
    %cst_11 = arith.constant dense<0.000000e+00> : vector<8x32xf32>
    %22 = tpu.matmul %20, %21, %cst_11 {dimension_numbers = #tpu.dot_dimension_numbers<[1], [0], [0], [1], [0, 0, 1, 1], [], []>} : vector<8x128xbf16>, vector<128x32xbf16>, vector<8x32xf32> -> vector<8x32xf32>
    %c0_12 = arith.constant 0 : index
    %c0_13 = arith.constant 0 : index
    %23 = vector.load %arg5[%c0_12, %c0_13] : memref<1x32xf32, #tpu.memory_space<vmem>>, vector<1x32xf32>
    %24 = vector.broadcast %23 : vector<1x32xf32> to vector<8x32xf32>
    %25 = arith.addf %22, %24 : vector<8x32xf32>
    %26 = arith.addf %25, %0 : vector<8x32xf32>
    %cst_14 = arith.constant dense<0.000000e+00> : vector<8xf32>
    %27 = vector.multi_reduction <add>, %26, %cst_14 [1] : vector<8x32xf32> to vector<8xf32>
    %28 = vector.shape_cast %27 : vector<8xf32> to vector<8x1xf32>
    %cst_15 = arith.constant 3.200000e+01 : f32
    %29 = vector.broadcast %cst_15 : f32 to vector<8x1xf32>
    %30 = arith.divf %28, %29 : vector<8x1xf32>
    %31 = vector.broadcast %30 : vector<8x1xf32> to vector<8x32xf32>
    %32 = arith.subf %26, %31 : vector<8x32xf32>
    %33 = arith.mulf %32, %32 : vector<8x32xf32>
    %cst_16 = arith.constant dense<0.000000e+00> : vector<8xf32>
    %34 = vector.multi_reduction <add>, %33, %cst_16 [1] : vector<8x32xf32> to vector<8xf32>
    %35 = vector.shape_cast %34 : vector<8xf32> to vector<8x1xf32>
    %cst_17 = arith.constant 3.200000e+01 : f32
    %36 = vector.broadcast %cst_17 : f32 to vector<8x1xf32>
    %37 = arith.divf %35, %36 : vector<8x1xf32>
    %38 = vector.broadcast %30 : vector<8x1xf32> to vector<8x32xf32>
    %39 = arith.subf %26, %38 : vector<8x32xf32>
    %cst_18 = arith.constant 9.99999996E-13 : f32
    %40 = vector.broadcast %cst_18 : f32 to vector<8x1xf32>
    %41 = arith.addf %37, %40 : vector<8x1xf32>
    %42 = math.rsqrt %41 : vector<8x1xf32>
    %43 = vector.broadcast %42 : vector<8x1xf32> to vector<8x32xf32>
    %44 = arith.mulf %39, %43 : vector<8x32xf32>
    %c0_19 = arith.constant 0 : index
    %c0_20 = arith.constant 0 : index
    %45 = vector.load %arg6[%c0_19, %c0_20] : memref<1x32xf32, #tpu.memory_space<vmem>>, vector<1x32xf32>
    %46 = vector.broadcast %45 : vector<1x32xf32> to vector<8x32xf32>
    %47 = arith.mulf %44, %46 : vector<8x32xf32>
    %c0_21 = arith.constant 0 : index
    %c0_22 = arith.constant 0 : index
    %48 = vector.load %arg7[%c0_21, %c0_22] : memref<1x32xf32, #tpu.memory_space<vmem>>, vector<1x32xf32>
    %49 = vector.broadcast %48 : vector<1x32xf32> to vector<8x32xf32>
    %50 = arith.addf %47, %49 : vector<8x32xf32>
    %c0_23 = arith.constant 0 : index
    %c0_24 = arith.constant 0 : index
    %51 = vector.load %arg8[%c0_23, %c0_24] : memref<8x32xf32, #tpu.memory_space<vmem>>, vector<8x32xf32>
    tpu.vector_store %arg8[%c0_23, %c0_24], %50 {strides = array<i32>} : memref<8x32xf32, #tpu.memory_space<vmem>>, vector<8x32xf32>,
    return
  }
  func.func @transform_0(%arg0: i32) -> (i32, i32) {
    %c0_i32 = arith.constant 0 : i32
    %c0_i32_0 = arith.constant 0 : i32
    return %arg0, %c0_i32 : i32, i32
  }
  func.func @transform_1(%arg0: i32) -> (i32, i32) {
    %c0_i32 = arith.constant 0 : i32
    %c0_i32_0 = arith.constant 0 : i32
    %c0_i32_1 = arith.constant 0 : i32
    return %c0_i32, %c0_i32_0 : i32, i32
  }
  func.func @transform_2(%arg0: i32) -> (i32, i32) {
    %c0_i32 = arith.constant 0 : i32
    %c0_i32_0 = arith.constant 0 : i32
    %c0_i32_1 = arith.constant 0 : i32
    return %c0_i32, %c0_i32_0 : i32, i32
  }
  func.func @transform_3(%arg0: i32) -> (i32, i32) {
    %c0_i32 = arith.constant 0 : i32
    %c0_i32_0 = arith.constant 0 : i32
    %c0_i32_1 = arith.constant 0 : i32
    return %c0_i32, %c0_i32_0 : i32, i32
  }
  func.func @transform_4(%arg0: i32) -> (i32, i32) {
    %c0_i32 = arith.constant 0 : i32
    %c0_i32_0 = arith.constant 0 : i32
    %c0_i32_1 = arith.constant 0 : i32
    return %c0_i32, %c0_i32_0 : i32, i32
  }
  func.func @transform_5(%arg0: i32) -> (i32, i32) {
    %c0_i32 = arith.constant 0 : i32
    %c0_i32_0 = arith.constant 0 : i32
    %c0_i32_1 = arith.constant 0 : i32
    return %c0_i32, %c0_i32_0 : i32, i32
  }
  func.func @transform_6(%arg0: i32) -> (i32, i32) {
    %c0_i32 = arith.constant 0 : i32
    %c0_i32_0 = arith.constant 0 : i32
    %c0_i32_1 = arith.constant 0 : i32
    return %c0_i32, %c0_i32_0 : i32, i32
  }
  func.func @transform_7(%arg0: i32) -> (i32, i32) {
    %c0_i32 = arith.constant 0 : i32
    %c0_i32_0 = arith.constant 0 : i32
    return %arg0, %c0_i32 : i32, i32
  }
}

</mosaic_0001>

<bundles_post_ra>
// kernel: tpu_custom_call.1
= control target key start
LH: loop header
LB: loop body
LE: loop exit
PB: predicated region body
PF: predicated region fallthrough
CT: control target
= control target key end

     0   :  { %7 = vsyncpa [#allocation3], 0  ;;  %s633_s0 = inlined_call_operand.hbm [shape: f32[16,128], index: 0, kind: input, shape index: {}]   ;;  %s634_s1 = inlined_call_operand.hbm [shape: f32[8,128], index: 1, kind: input, shape index: {}]   ;;  %s635_s2 = inlined_call_operand.hbm [shape: f32[16,128], index: 2, kind: output, shape index: {}]  }
   0x1   :  { %9 = vsyncpa [#allocation3 + $0x1], 0 }
   0x2   :  { %10 = vsyncpa [#allocation6], 0 }
   0x3   :  { %11 = vsyncpa [#allocation4], 0 }
   0x4   :  { %13 = vsyncpa [#allocation4 + $0x1], 0  ;;  %s495_s9 = smov 0   ;;  %s497_s10 = smov 0  }
   0x5   :  { %s499_s11 = smov 0   ;;  %s501_s12 = smov 0  }
   0x6 LB: > { %s516_s13 = sadd.s32 4294967295, %s477_s12   ;;  %s276_s14 = sadd.s32 4294967294, %s477_s12   ;;  %s477_s12 = sphi %s501_s12, %s645_s12   ;;  %s473_s11 = sphi %s499_s11, %s644_s11   ;;  %s469_s10 = sphi %s497_s10, %s643_s10   ;;  %s465_s9 = sphi %s495_s9, %s642_s9  }
   0x7   : > { %p39_p0 = scmp.ne.s32.totalorder %s469_s10, %s465_s9  ;;  %p40_p1 = scmp.eq.s32.totalorder %s516_s13, 0 }
   0x8   : > { %p84_p2 = scmp.eq.s32.totalorder %s516_s13, 1  ;;  %p90_p3 = scmp.eq.s32.totalorder %s276_s14, 1 }
   0x9   : > { %p525_p4 = por %p40_p1, %p39_p0  ;;  %p277_p5 = scmp.ge.s32.totalorder %s477_s12, 1 }
   0xa   : > { %p530_p6 = por %p90_p3, %p39_p0  ;;  %p97_p7 = scmp.lt.s32.totalorder %s477_s12, 3 }
   0xb   : > { %s109_s19 = sshll.u32 %s634_s1, 4  ;;  %s479_s21 = smov [#allocation5]   ;;  %s110_s19 = int_to_ptr.hbm [resolvable:$true] %s109_s19 }
   0xc   : > { %p538_p8 = pnand %p277_p5, %p97_p7  ;;  %s111_s22 = sshll.u32 %s479_s21, 4  ;;  %s112_s22 = int_to_ptr.vmem [resolvable:$true] %s111_s22 }
   0xd   : > { %s548_s23 = sadd.s32 1, %s477_s12   ;;  %s26_s24 = sadd.s32 1, %s473_s11 }
   0xe   : > { %p298_p10 = pneg %p538_p8  ;;  %s23_s25 = ssub.s32 %s477_s12, %s548_s23 }
   0xf   : > { %p24_p12 = scmp.eq.s32.totalorder %s23_s25, 0  ;;  %p33_p13 = scmp.ne.s32.totalorder %s473_s11, %s469_s10 }
  0x10   : > { %p299_p11 = pnand %p298_p10, %p40_p1  ;;  %p34_p0 = scmp.eq.s32.totalorder %s477_s12, 0 }
  0x11   : > { %s557_s26 = scalar_select %p24_p12, %s473_s11, %s26_s24  }
  0x12   : > { %301 = dma.hbm_to_vmem [thread:$0]  (!%p299_p11), %s110_s19, 128, %s112_s22, [#allocation6]  }
  0x13   : > { %p561_p3 = por %p84_p2, %p33_p13  ;;  %p311_p5 = scmp.lt.s32.totalorder %s477_s12, 2 }
  0x14   : > { %s122_s28 = sand.u32 1, %s473_s11   ;;  %s281_s29 = sshll.u32 %s477_s12, 3 }
  0x15   : > { %p35_p7 = por %p34_p0, %p33_p13  ;;  %s280_s30 = sshll.u32 %s122_s28, 3 }
  0x16   : > { %s130_s5 = scalar_lea.hbm %s633_s0, %s281_s29  ;;  %s126_s7 = scalar_lea.vmem [#allocation2], %s280_s30 }
  0x17   : > { %s132_s6 = sshll.u32 %s130_s5, 4  ;;  %s134_s8 = sshll.u32 %s126_s7, 4  ;;  %s133_s6 = int_to_ptr.hbm [resolvable:$true] %s132_s6  ;;  %s135_s8 = int_to_ptr.vmem [resolvable:$true] %s134_s8 }
  0x18   : > { %p571_p10 = pnand %p311_p5, %p35_p7  ;;  %s123_s17 = scalar_lea.sflag [#allocation3], %s122_s28 }
  0x19   : > { %s377_s18 = sshra.s32 %s133_s6, 4  ;;  %s384_s24 = scalar_lea.hbm %s633_s0, 16  ;;  %s378_s18 = int_to_ptr.hbm [resolvable:$true] %s377_s18 }
  0x1a   : > { %s379_s19 = scalar_lea.hbm %s378_s18, 8  ;;  %p381_p11 = pneg %p571_p10 }
  0x1b   : > { %p380_p2 = scmp.ne.s32.totalorder %s378_s18, %s379_s19  ;;  %p385_p0 = scmp.lt.s32.totalorder %s378_s18, %s633_s0 }
  0x1c   : > { %p386_p5 = scmp.lt.s32.totalorder %s384_s24, %s379_s19 }
  0x1d   : > { %p382_p12 = pnand %p381_p11, %p380_p2 }
  0x1e   : > { %p387_p7 = por %p386_p5, %p385_p0 }
  0x1f   : > { %p383_p13 = pneg %p382_p12 }
  0x21   : > { %p388_p9 = pnand %p387_p7, %p383_p13 }
  0x23   : > { %391 = shalt.err (!%p388_p9)
}
  0x24   : > { %305 = dma.hbm_to_vmem [thread:$0]  (!%p571_p10), %s133_s6, 128, %s135_s8, %s123_s17  }
  0x25   : > { %143 = sbr.rel (%p538_p8) target bundleno = 60 (0x3c), region = 28  ;;  %s588_s28 = sand.u32 (!%p538_p8), 1, %s469_s10  }
  0x26   : > { %s283_s30 = sshll.u32 (!%p538_p8), %s588_s28, 3  ;;  %s146_s3 = scalar_lea.sflag (!%p538_p8), [#allocation3], %s588_s28 }
  0x27   : > { %s149_s4 = scalar_lea.vmem (!%p538_p8), [#allocation2], %s283_s30 }
  0x2a   : > { %452 = dma.done.wait (%p525_p4), %s146_s3, 128  }
  0x2b   : > { %454 = vsyncadd (%p525_p4), %s146_s3, 4294967168 }
  0x2c   : > { %456 = dma.done.wait (%p40_p1), [#allocation6], 128  }
  0x2d   : > { %458 = vsyncadd (%p40_p1), [#allocation6], 4294967168  ;;  %s287_s20 = sshll.u32 %s516_s13, 3  ;;  %s175_s8 = scalar_lea.vmem [#allocation7], %s283_s30  ;;  %v176_v0 = vld [vmem:[%s149_s4] sm:$0xff]  ;;  %v177_v1 = vld [vmem:[#allocation5] sm:$0xff] }
  0x2e   : > { %s191_s7 = scalar_lea.hbm %s635_s2, %s287_s20  ;;  %s193_s14 = sshll.u32 %s175_s8, 4  ;;  %v178_v2 = vadd.f32 %v177_v1, %v176_v0  ;;  %s194_s14 = int_to_ptr.vmem [resolvable:$true] %s193_s14 }
  0x2f   : > { %s195_s17 = sshll.u32 %s191_s7, 4  ;;  %s181_s15 = scalar_lea.sflag [#allocation4], %s588_s28  ;;  %s196_s17 = int_to_ptr.hbm [resolvable:$true] %s195_s17 }
  0x30   : > { %179 = vst [vmem:[%s175_s8] sm:$0xff] %v178_v2  ;;  %s421_s18 = sshra.s32 %s196_s17, 4  ;;  %s427_s22 = scalar_lea.hbm %s635_s2, 16  ;;  %s422_s18 = int_to_ptr.hbm [resolvable:$true] %s421_s18 }
  0x31   : > { %s423_s19 = scalar_lea.hbm %s422_s18, 8  ;;  %p428_p9 = scmp.lt.s32.totalorder %s422_s18, %s635_s2 }
  0x32   : > { %p424_p1 = scmp.ne.s32.totalorder %s422_s18, %s423_s19  ;;  %p429_p10 = scmp.lt.s32.totalorder %s427_s22, %s423_s19 }
  0x34   : > { %p425_p4 = pnand %p424_p1, %p561_p3  ;;  %p430_p2 = por %p429_p10, %p428_p9 }
  0x36   : > { %p426_p8 = pneg %p425_p4 }
  0x38   : > { %p431_p11 = pnand %p430_p2, %p426_p8 }
  0x3a   : > { %434 = shalt.err (!%p431_p11)
}
  0x3b   : > { %296 = dma.vmem_to_hbm [thread:$0]  (%p561_p3), %s194_s14, 128, %s196_s17, %s181_s15  }
  0x3c PF: > { %s207_s29 = sand.u32 1, %s465_s9   ;;  %p641_p12 = scmp.ge.s32.totalorder %s477_s12, 2 }
  0x3d   : > { %s208_s28 = scalar_lea.sflag [#allocation4], %s207_s29 }
  0x3e   : > { %p307_p13 = pnand %p641_p12, %p530_p6 }
  0x40   : > { %p308_p0 = pneg %p307_p13 }
  0x42   : > { %460 = dma.done.wait (%p308_p0), %s208_s28, 128  }
  0x43   : > { %462 = vsyncadd (%p308_p0), %s208_s28, 4294967168  ;;  %p16_p5 = scmp.ge.s32.totalorder %s548_s23, 4   ;;  %s642_s9 = smov %s469_s10 }
  0x44   : > { %s643_s10 = smov %s473_s11  ;;  %s644_s11 = smov %s557_s26 }
  0x45   : > { %s645_s12 = smov %s548_s23  ;;  %18 = sbr.rel (!%p16_p5) target bundleno = 6 (0x6), region = 77 }
  0x4a   :  { %214 = vsyncpa [#allocation3], 1 }
  0x4b   :  { %216 = vsyncpa [#allocation3 + $0x1], 1 }
  0x4c   :  { %217 = vsyncpa [#allocation6], 1 }
  0x4d   :  { %218 = vsyncpa [#allocation4], 1 }
  0x4e   :  { %220 = vsyncpa [#allocation4 + $0x1], 1 }

// kernel: videollama_forward.35
= control target key start
LH: loop header
LB: loop body
LE: loop exit
PB: predicated region body
PF: predicated region fallthrough
CT: control target
= control target key end

     0   :  { %s411_s12 = smov 0   ;;  %s468_s0 = inlined_call_operand.vmem [shape: f32[64,32], index: 0, kind: input, shape index: {}]   ;;  %s469_s1 = inlined_call_operand.vmem [shape: f32[1,32], index: 1, kind: input, shape index: {}]   ;;  %s470_s2 = inlined_call_operand.vmem [shape: f32[1,32], index: 2, kind: input, shape index: {}]   ;;  %s471_s3 = inlined_call_operand.vmem [shape: f32[64,32], index: 3, kind: output, shape index: {}]  }
   0x1 LB: > { %s350_s13 = sadd.s32 4294967295, %s388_s12   ;;  %p354_p0 = scmp.ge.s32.totalorder %s388_s12, 1  ;;  %s388_s12 = sphi %s411_s12, %s13_s12  }
   0x2   : > { %p138_p1 = scmp.lt.s32.totalorder %s388_s12, 3 }
   0x4   : > { %p139_p2 = pnand %p354_p0, %p138_p1 }
   0x5   : > { %s355_s14 = sshll.u32 (!%p139_p2), %s350_s13, 2 }
   0x6   : > { %142 = sbr.rel (%p139_p2) target bundleno = 293 (0x125), region = 32  ;;  %p163_p3 = scmp.lt.s32.totalorder (!%p139_p2), %s355_s14, 7 }
   0xb   : > { %s473_s14 = smov (!%p163_p3, %s355_s14), 7  ;;  %vm178_vm0 = vcmask 261120   ;;  %v390_v8 = vmov 32.0   ;;  %v370_v61 = vld [vmem:[%s469_s1] ss:$0 sm:$0xff] }
   0xc   : > { %s356_s15 = sshll.u32 %s473_s14, 3  ;;  %372 = vrcp.f32 %v390_v8 }
   0xd   : > { %s166_s18 = scalar_lea.vmem %s468_s0, %s356_s15  ;;  %s172_s25 = scalar_lea.vmem %s471_s3, %s356_s15 }
   0xe   : > { %v176_v0 = vld [vmem:[%s166_s18 + $0x10] sm:$0xff]  ;;  %v174_v1 = vld [vmem:[%s166_s18] sm:$0xff]  ;;  %v177_v4 = vld [vmem:[%s166_s18 + $0x18] sm:$0xff] }
   0xf   : > { %v185_v2 = vsel %vm178_vm0, %v176_v0, 0.0  ;;  %v179_v3 = vsel %vm178_vm0, %v174_v1, 0.0  ;;  %v175_v5 = vld [vmem:[%s166_s18 + $0x8] sm:$0xff]  ;;  %v188_v6 = vsel %vm178_vm0, %v177_v4, 0.0 }
  0x10   : > { %186 = vadd.xlane.f32.xlu1 %v185_v2  ;;  %180 = vadd.xlane.f32.xlu0 %v179_v3  ;;  %v182_v7 = vsel %vm178_vm0, %v175_v5, 0.0  ;;  %v371_v2 = vld [vmem:[%s470_s2] ss:$0 sm:$0xff] }
  0x12   : > { %v373_v9 = vpop.eup %372 }
  0x13   : > { %v192_v10 = vmul.f32 32.0, %v373_v9  ;;  %vm196_vm1 = vweird.f32 %v373_v9 }
  0x15   : > { %v193_v11 = vsub.f32 1.0, %v192_v10 }
  0x17   : > { %v194_v12 = vmul.f32 %v373_v9, %v193_v11 }
  0x18   : > { %189 = vadd.xlane.f32.xlu1 %v188_v6  ;;  %183 = vadd.xlane.f32.xlu0 %v182_v7 }
  0x19   : > { %v195_v13 = vadd.f32 %v373_v9, %v194_v12 }
  0x1b   : > { %v197_v14 = vsel %vm196_vm1, %v373_v9, %v195_v13 }
  0x83   : > { %v187_v15 = vpop.xlane.xlu1 %186  ;;  %v181_v16 = vpop.xlane.xlu0 %180 }
  0x84   : > { %v200_v17 = vmul.f32 %v197_v14, %v187_v15  ;;  %v198_v18 = vmul.f32 %v197_v14, %v181_v16 }
  0x86   : > { %v431_v19 = vsub.f32 %v176_v0, %v200_v17  ;;  %v202_v20 = vsub.f32 %v174_v1, %v198_v18 }
  0x88   : > { %v208_v21 = vmul.f32 %v431_v19, %v431_v19  ;;  %v206_v22 = vmul.f32 %v202_v20, %v202_v20 }
  0x8a   : > { %v216_v23 = vsel %vm178_vm0, %v208_v21, 0.0  ;;  %v210_v24 = vsel %vm178_vm0, %v206_v22, 0.0 }
  0x8b   : > { %v190_v25 = vpop.xlane.xlu1 %189  ;;  %217 = vadd.xlane.f32.xlu0 %v216_v23  ;;  %211 = vadd.xlane.f32.xlu2 %v210_v24  ;;  %v184_v26 = vpop.xlane.xlu0 %183 }
  0x8c   : > { %v201_v27 = vmul.f32 %v197_v14, %v190_v25  ;;  %v199_v28 = vmul.f32 %v197_v14, %v184_v26 }
  0x8e   : > { %v437_v29 = vsub.f32 %v177_v4, %v201_v27  ;;  %v439_v30 = vsub.f32 %v175_v5, %v199_v28 }
  0x90   : > { %v209_v31 = vmul.f32 %v437_v29, %v437_v29  ;;  %v207_v32 = vmul.f32 %v439_v30, %v439_v30 }
  0x92   : > { %v219_v33 = vsel %vm178_vm0, %v209_v31, 0.0  ;;  %v213_v34 = vsel %vm178_vm0, %v207_v32, 0.0 }
  0x93   : > { %220 = vadd.xlane.f32.xlu1 %v219_v33  ;;  %214 = vadd.xlane.f32.xlu2 %v213_v34 }
  0xfe   : > { %v212_v35 = vpop.xlane.xlu2 %211  ;;  %v218_v36 = vpop.xlane.xlu0 %217 }
  0xff   : > { %v222_v37 = vmul.f32 %v212_v35, %v197_v14  ;;  %v224_v38 = vmul.f32 %v218_v36, %v197_v14 }
 0x101   : > { %v226_v39 = vadd.f32 1e-12, %v222_v37  ;;  %v228_v40 = vadd.f32 1e-12, %v224_v38 }
 0x103   : > { %374 = vrsqrt.f32 %v226_v39  ;;  %vm236_vm3 = vweird.f32 %v226_v39  ;;  %vm256_vm6 = vweird.f32 %v228_v40 }
 0x104   : > { %376 = vrsqrt.f32 %v228_v40 }
 0x106   : > { %v221_v41 = vpop.xlane.xlu1 %220  ;;  %v215_v42 = vpop.xlane.xlu2 %214 }
 0x107   : > { %v225_v43 = vmul.f32 %v221_v41, %v197_v14  ;;  %v223_v44 = vmul.f32 %v215_v42, %v197_v14 }
 0x109   : > { %v375_v45 = vpop.eup %374  ;;  %v229_v46 = vadd.f32 1e-12, %v225_v43  ;;  %v227_v47 = vadd.f32 1e-12, %v223_v44 }
 0x10a   : > { %v377_v48 = vpop.eup %376  ;;  %v231_v49 = vmul.f32 %v375_v45, %v226_v39  ;;  %vm237_vm2 = vweird.f32 %v375_v45 }
 0x10b   : > { %v251_v50 = vmul.f32 %v377_v48, %v228_v40  ;;  %378 = vrsqrt.f32 %v229_v46  ;;  %vm238_vm4 = vmor %vm236_vm3, %vm237_vm2  ;;  %vm257_vm5 = vweird.f32 %v377_v48  ;;  %vm266_vm10 = vweird.f32 %v229_v46 }
 0x10c   : > { %v232_v51 = vmul.f32 %v375_v45, %v231_v49  ;;  %380 = vrsqrt.f32 %v227_v47  ;;  %vm258_vm7 = vmor %vm256_vm6, %vm257_vm5  ;;  %vm246_vm12 = vweird.f32 %v227_v47 }
 0x10d   : > { %v252_v52 = vmul.f32 %v377_v48, %v251_v50 }
 0x10e   : > { %v233_v53 = vmul.f32 0.5, %v232_v51 }
 0x10f   : > { %v253_v54 = vmul.f32 0.5, %v252_v52 }
 0x110   : > { %v234_v55 = vsub.f32 1.5, %v233_v53 }
 0x111   : > { %v379_v56 = vpop.eup %378  ;;  %v254_v57 = vsub.f32 1.5, %v253_v54 }
 0x112   : > { %v381_v58 = vpop.eup %380  ;;  %v235_v59 = vmul.f32 %v375_v45, %v234_v55  ;;  %v261_v60 = vmul.f32 %v379_v56, %v229_v46  ;;  %vm267_vm8 = vweird.f32 %v379_v56 }
 0x113   : > { %v241_v62 = vmul.f32 %v381_v58, %v227_v47  ;;  %v255_v0 = vmul.f32 %v377_v48, %v254_v57  ;;  %vm247_vm9 = vweird.f32 %v381_v58  ;;  %vm268_vm11 = vmor %vm266_vm10, %vm267_vm8 }
 0x114   : > { %v239_v63 = vsel %vm238_vm4, %v375_v45, %v235_v59  ;;  %v262_v1 = vmul.f32 %v379_v56, %v261_v60  ;;  %vm248_vm13 = vmor %vm246_vm12, %vm247_vm9 }
 0x115   : > { %v270_v3 = vmul.f32 %v239_v63, %v202_v20  ;;  %v242_v4 = vmul.f32 %v381_v58, %v241_v62  ;;  %v259_v8 = vsel %vm258_vm7, %v377_v48, %v255_v0 }
 0x116   : > { %v263_v5 = vmul.f32 0.5, %v262_v1  ;;  %v272_v13 = vmul.f32 %v259_v8, %v431_v19 }
 0x117   : > { %v278_v6 = vmul.f32 %v370_v61, %v270_v3  ;;  %v243_v7 = vmul.f32 0.5, %v242_v4 }
 0x118   : > { %v264_v9 = vsub.f32 1.5, %v263_v5  ;;  %v280_v20 = vmul.f32 %v370_v61, %v272_v13 }
 0x119   : > { %v286_v10 = vadd.f32 %v371_v2, %v278_v6  ;;  %v244_v11 = vsub.f32 1.5, %v243_v7 }
 0x11a   : > { %v265_v12 = vmul.f32 %v379_v56, %v264_v9  ;;  %v288_v24 = vadd.f32 %v371_v2, %v280_v20 }
 0x11b   : > { %290 = vst.msk [vmem:[%s172_s25] sm:$0xff] %vm178_vm0, %v286_v10  ;;  %v245_v14 = vmul.f32 %v381_v58, %v244_v11 }
 0x11c   : > { %v269_v15 = vsel %vm268_vm11, %v379_v56, %v265_v12  ;;  %292 = vst.msk [vmem:[%s172_s25 + $0x10] sm:$0xff] %vm178_vm0, %v288_v24 }
 0x11d   : > { %v273_v16 = vmul.f32 %v269_v15, %v437_v29  ;;  %v249_v17 = vsel %vm248_vm13, %v381_v58, %v245_v14 }
 0x11e   : > { %v271_v18 = vmul.f32 %v249_v17, %v439_v30 }
 0x11f   : > { %v281_v21 = vmul.f32 %v370_v61, %v273_v16 }
 0x120   : > { %v279_v22 = vmul.f32 %v370_v61, %v271_v18 }
 0x121   : > { %v289_v25 = vadd.f32 %v371_v2, %v281_v21 }
 0x122   : > { %v287_v23 = vadd.f32 %v371_v2, %v279_v22 }
 0x123   : > { %293 = vst.msk [vmem:[%s172_s25 + $0x18] sm:$0xff] %vm178_vm0, %v289_v25 }
 0x124   : > { %291 = vst.msk [vmem:[%s172_s25 + $0x8] sm:$0xff] %vm178_vm0, %v287_v23 }
 0x125 PF: > { %s13_s12 = sadd.s32 1, %s388_s12  }
 0x126   : > { %p10_p4 = scmp.ge.s32.totalorder %s13_s12, 4  }
 0x128   :  { %12 = sbr.rel (!%p10_p4) target bundleno = 1 (0x1), region = 62 }

// kernel: videollama_forward.36
= control target key start
LH: loop header
LB: loop body
LE: loop exit
PB: predicated region body
PF: predicated region fallthrough
CT: control target
= control target key end

     0   :  { %s485_s12 = smov 0   ;;  %s487_s13 = smov 0   ;;  %s527_s0 = inlined_call_operand.vmem [shape: f32[64,32], index: 0, kind: input, shape index: {}]   ;;  %s528_s1 = inlined_call_operand.vmem [shape: bf16[32,96], index: 1, kind: input, shape index: {}]   ;;  %s529_s2 = inlined_call_operand.vmem [shape: f32[1,96], index: 2, kind: input, shape index: {}]   ;;  %s530_s3 = inlined_call_operand.vmem [shape: bf16[64,96], index: 3, kind: output, shape index: {}]  }
   0x1   :  { %s489_s14 = smov 0  }
   0x2 LB: > { %s25_s15 = sadd.s32 1, %s459_s13  ;;  %p395_p0 = scmp.ge.s32.totalorder %s463_s14, 1  ;;  %s463_s14 = sphi %s489_s14, %s13_s14   ;;  %s459_s13 = sphi %s487_s13, %s532_s13   ;;  %s455_s12 = sphi %s485_s12, %s531_s12  }
   0x3   : > { %p27_p1 = scmp.ge.s32.totalorder %s25_s15, 2  ;;  %p169_p2 = scmp.lt.s32.totalorder %s463_s14, 3 }
   0x5   : > { %s534_s15 = smov (%p27_p1, %s25_s15), 0  ;;  %p170_p3 = pnand %p395_p0, %p169_p2 }
   0x6   : > { %s396_s18 = sshll.u32 (!%p170_p3), %s455_s12, 2 }
   0x7   : > { %173 = sbr.rel (%p170_p3) target bundleno = 160 (0xa0), region = 32  ;;  %p204_p4 = scmp.lt.s32.totalorder (!%p170_p3), %s396_s18, 7 }
   0xc   : > { %v413_v0 = vld [vmem:[%s528_s1 + $0x8] sm:$0xff]  ;;  %v412_v1 = vld [vmem:[%s528_s1] sm:$0xff]  ;;  %s536_s18 = smov (!%p204_p4, %s396_s18), 7  ;;  %vm252_vm0 = vcmask 261120   ;;  %vm282_vm1 = vcmask 781312  }
   0xd   : > { %265 = vmatpush.bf16.msra.mxu0 %v413_v0  ;;  %414 = vmatpush.bf16.msra.mxu1 %v413_v0  ;;  %s397_s21 = sshll.u32 %s536_s18, 3  ;;  %v440_v8 = vld [vmem:[%s529_s2] ss:$0 sm:$0xff]  ;;  %s399_s27 = sshll.u32 %s536_s18, 2 }
   0xe   : > { %s207_s24 = scalar_lea.vmem %s527_s0, %s397_s21  ;;  %s223_s30 = scalar_lea.vmem %s530_s3, %s399_s27 }
   0xf   : > { %v226_v2 = vld [vmem:[%s207_s24] sm:$0xff]  ;;  %v227_v3 = vld [vmem:[%s207_s24 + $0x8] sm:$0xff]  ;;  %v228_v4 = vld [vmem:[%s207_s24 + $0x10] sm:$0xff] }
  0x10   : > { %v230_v5 = vpack.c.bf16 %v227_v3, %v226_v2  ;;  %v229_v6 = vld [vmem:[%s207_s24 + $0x18] sm:$0xff] }
  0x11   : > { %266 = vmatpush.bf16.msra.mxu0 %v412_v1  ;;  %415 = vmatpush.bf16.msra.mxu1 %v412_v1  ;;  %v231_v7 = vpack.c.bf16 %v229_v6, %v228_v4 }
  0x14   : > { %408 = vmatmul.msk.bf16.vlgmr.msra.gmra.mxu0 %vm252_vm0, %v230_v5  ;;  %409 = vmatmul.msk.bf16.vlgmr.msra.gmra.mxu1 %vm252_vm0, %v231_v7 }
  0x91   : > { %v268_v9 = vpop.f32.mrf.mxu0  ;;  %v273_v11 = vpop.f32.mrf.mxu1 }
  0x92   : > { %v269_v10 = vadd.f32 %v440_v8, %v268_v9  ;;  %v274_v13 = vadd.f32 %v440_v8, %v273_v11 }
  0x94   : > { %v278_v12 = vpack.c.bf16 %v269_v10, %v269_v10  ;;  %v280_v19 = vpack.c.bf16 %v274_v13, %v274_v13 }
  0x96   : > { %283 = vst.msk [vmem:[%s223_s30] sm:$0xf] %vm282_vm1, %v278_v12 }
  0x97   : > { %285 = vst.msk [vmem:[%s223_s30 + $0x8] sm:$0xf] %vm282_vm1, %v280_v19 }
  0x99   : > { %v270_v14 = vpop.f32.mrf.mxu0  ;;  %v275_v16 = vpop.f32.mrf.mxu1 }
  0x9a   : > { %v271_v15 = vadd.f32 %v440_v8, %v270_v14  ;;  %v276_v17 = vadd.f32 %v440_v8, %v275_v16 }
  0x9c   : > { %v279_v18 = vpack.c.bf16 %v271_v15, %v271_v15  ;;  %v281_v20 = vpack.c.bf16 %v276_v17, %v276_v17 }
  0x9e   : > { %284 = vst.msk [vmem:[%s223_s30 + $0x4] sm:$0xf] %vm282_vm1, %v279_v18 }
  0x9f   : > { %286 = vst.msk [vmem:[%s223_s30 + $0xc] sm:$0xf] %vm282_vm1, %v281_v20 }
  0xa0 PF: > { %s13_s14 = sadd.s32 1, %s463_s14   ;;  %s531_s12 = smov %s459_s13 }
  0xa1   : > { %p10_p5 = scmp.ge.s32.totalorder %s13_s14, 4   ;;  %s532_s13 = smov %s534_s15 }
  0xa3   :  { %12 = sbr.rel (!%p10_p5) target bundleno = 2 (0x2), region = 68 }

// kernel: videollama_forward.38
= control target key start
LH: loop header
LB: loop body
LE: loop exit
PB: predicated region body
PF: predicated region fallthrough
CT: control target
= control target key end

     0   :  { %11 = vsyncpa [#allocation3], 0  ;;  %s713_s21 = smov 0   ;;  %s782_s0 = inlined_call_operand.vmem [shape: bf16[64,32], index: 0, kind: input, shape index: {}]   ;;  %s783_s1 = inlined_call_operand.hbm [shape: bf16[32,32], index: 1, kind: input, shape index: {}]   ;;  %s784_s2 = inlined_call_operand.vmem [shape: f32[1,32], index: 2, kind: input, shape index: {}]   ;;  %s785_s3 = inlined_call_operand.vmem [shape: f32[64,32], index: 3, kind: input, shape index: {}]   ;;  %s786_s4 = inlined_call_operand.vmem [shape: f32[1,32], index: 4, kind: input, shape index: {}]   ;;  %s787_s5 = inlined_call_operand.vmem [shape: f32[1,32], index: 5, kind: input, shape index: {}]   ;;  %s788_s6 = inlined_call_operand.vmem [shape: f32[64,32], index: 6, kind: output, shape index: {}]  }
   0x1 LB: > { %s195_s24 = sshll.u32 %s783_s1, 4  ;;  %s558_s25 = sadd.s32 4294967295, %s672_s21   ;;  %s672_s21 = sphi %s713_s21, %s17_s21   ;;  %s196_s24 = int_to_ptr.hbm [resolvable:$true] %s195_s24 }
   0x2   : > { %p560_p0 = scmp.ge.s32.totalorder %s672_s21, 1  ;;  %p184_p1 = scmp.lt.s32.totalorder %s672_s21, 3 }
   0x3   : > { %p605_p2 = scmp.eq.s32.totalorder %s558_s25, 0  ;;  %s674_s26 = smov [#allocation2]  }
   0x4   : > { %p185_p3 = pnand %p560_p0, %p184_p1  ;;  %s197_s27 = sshll.u32 %s674_s26, 4  ;;  %s198_s27 = int_to_ptr.vmem [resolvable:$true] %s197_s27 }
   0x5   : > { %s675_s28 = smov 64   ;;  %s676_s29 = smov 4  }
   0x6   : > { %p601_p4 = pneg %p185_p3  ;;  %240 = sbr.rel (%p185_p3) target bundleno = 428 (0x1ac), region = 44 }
   0x8   : > { %p602_p5 = pnand %p605_p2, %p601_p4 }
   0xa   : > { %604 = dma.hbm_to_vmem [thread:$0]  (!%p602_p5), %s196_s24, 256, %s198_s27, [#allocation3], %s675_s28, %s675_s28, %s676_s29  }
   0xb   : > { %667 = dma.done.wait (%p605_p2), [#allocation3], 256  }
   0xc   : > { %669 = vsyncadd (%p605_p2), [#allocation3], 4294967040  ;;  %s565_s30 = sshll.u32 %s558_s25, 2  ;;  %v594_v0 = vld [vmem:[#allocation2 + $0x8] sm:$0xff]  ;;  %v593_v1 = vld [vmem:[#allocation2] sm:$0xff]  ;;  %vm329_vm0 = vcmask 261120  }
   0xd   : > { %p277_p6 = scmp.lt.s32.totalorder %s565_s30, 7  ;;  %342 = vmatpush.bf16.msra.mxu0 %v594_v0  ;;  %595 = vmatpush.bf16.msra.mxu1 %v594_v0  ;;  %v619_v4 = vld [vmem:[%s784_s2] ss:$0 sm:$0xff]  ;;  %v677_v25 = vmov 32.0  }
   0xe   : > { %622 = vrcp.f32 %v677_v25 }
   0xf   : > { %s790_s30 = smov (!%p277_p6, %s565_s30), 7 }
  0x10   : > { %s566_s7 = sshll.u32 %s790_s30, 2  ;;  %s568_s11 = sshll.u32 %s790_s30, 3 }
  0x11   : > { %s280_s10 = scalar_lea.vmem %s782_s0, %s566_s7  ;;  %343 = vmatpush.bf16.msra.mxu0 %v593_v1  ;;  %596 = vmatpush.bf16.msra.mxu1 %v593_v1  ;;  %s286_s16 = scalar_lea.vmem %s785_s3, %s568_s11 }
  0x12   : > { %v591_v2 = vld [vmem:[%s280_s10] sm:$0xff]  ;;  %v592_v3 = vld [vmem:[%s280_s10 + $0x8] sm:$0xff]  ;;  %v357_v7 = vld [vmem:[%s286_s16 + $0x10] sm:$0xff]  ;;  %s292_s24 = scalar_lea.vmem %s788_s6, %s568_s11 }
  0x13   : > { %v355_v8 = vld [vmem:[%s286_s16] sm:$0xff]  ;;  %v358_v17 = vld [vmem:[%s286_s16 + $0x18] sm:$0xff]  ;;  %v356_v18 = vld [vmem:[%s286_s16 + $0x8] sm:$0xff] }
  0x14   : > { %587 = vmatmul.msk.bf16.vlgmr.msra.gmra.mxu0 %vm329_vm0, %v591_v2  ;;  %588 = vmatmul.msk.bf16.vlgmr.msra.gmra.mxu1 %vm329_vm0, %v592_v3  ;;  %v623_v26 = vpop.eup %622 }
  0x15   : > { %v376_v27 = vmul.f32 32.0, %v623_v26  ;;  %vm380_vm1 = vweird.f32 %v623_v26 }
  0x17   : > { %v377_v28 = vsub.f32 1.0, %v376_v27 }
  0x19   : > { %v378_v29 = vmul.f32 %v623_v26, %v377_v28 }
  0x1b   : > { %v379_v30 = vadd.f32 %v623_v26, %v378_v29 }
  0x1d   : > { %v381_v31 = vsel %vm380_vm1, %v623_v26, %v379_v30 }
  0x91   : > { %v345_v5 = vpop.f32.mrf.mxu0  ;;  %v350_v6 = vpop.f32.mrf.mxu1 }
  0x92   : > { %v346_v9 = vadd.f32 %v619_v4, %v345_v5  ;;  %v351_v10 = vadd.f32 %v619_v4, %v350_v6 }
  0x94   : > { %v361_v11 = vadd.f32 %v357_v7, %v351_v10  ;;  %v359_v12 = vadd.f32 %v355_v8, %v346_v9 }
  0x96   : > { %v369_v13 = vsel %vm329_vm0, %v361_v11, 0.0  ;;  %v363_v14 = vsel %vm329_vm0, %v359_v12, 0.0 }
  0x97   : > { %370 = vadd.xlane.f32.xlu1 %v369_v13  ;;  %364 = vadd.xlane.f32.xlu0 %v363_v14  ;;  %v620_v14 = vld [vmem:[%s786_s4] ss:$0 sm:$0xff] }
  0x99   : > { %v347_v15 = vpop.f32.mrf.mxu0  ;;  %v352_v16 = vpop.f32.mrf.mxu1 }
  0x9a   : > { %v348_v19 = vadd.f32 %v619_v4, %v347_v15  ;;  %v353_v20 = vadd.f32 %v619_v4, %v352_v16 }
  0x9c   : > { %v362_v21 = vadd.f32 %v358_v17, %v353_v20  ;;  %v360_v22 = vadd.f32 %v356_v18, %v348_v19  ;;  %v621_v19 = vld [vmem:[%s787_s5] ss:$0 sm:$0xff] }
  0x9e   : > { %v372_v23 = vsel %vm329_vm0, %v362_v21, 0.0  ;;  %v366_v24 = vsel %vm329_vm0, %v360_v22, 0.0 }
  0x9f   : > { %373 = vadd.xlane.f32.xlu1 %v372_v23  ;;  %367 = vadd.xlane.f32.xlu0 %v366_v24 }
 0x10a   : > { %v371_v32 = vpop.xlane.xlu1 %370  ;;  %v365_v33 = vpop.xlane.xlu0 %364 }
 0x10b   : > { %v384_v34 = vmul.f32 %v381_v31, %v371_v32  ;;  %v382_v35 = vmul.f32 %v381_v31, %v365_v33 }
 0x10d   : > { %v745_v36 = vsub.f32 %v361_v11, %v384_v34  ;;  %v386_v37 = vsub.f32 %v359_v12, %v382_v35 }
 0x10f   : > { %v392_v38 = vmul.f32 %v745_v36, %v745_v36  ;;  %v390_v39 = vmul.f32 %v386_v37, %v386_v37 }
 0x111   : > { %v400_v40 = vsel %vm329_vm0, %v392_v38, 0.0  ;;  %v394_v41 = vsel %vm329_vm0, %v390_v39, 0.0 }
 0x112   : > { %v374_v42 = vpop.xlane.xlu1 %373  ;;  %401 = vadd.xlane.f32.xlu0 %v400_v40  ;;  %395 = vadd.xlane.f32.xlu2 %v394_v41  ;;  %v368_v43 = vpop.xlane.xlu0 %367 }
 0x113   : > { %v385_v44 = vmul.f32 %v381_v31, %v374_v42  ;;  %v383_v45 = vmul.f32 %v381_v31, %v368_v43 }
 0x115   : > { %v751_v46 = vsub.f32 %v362_v21, %v385_v44  ;;  %v753_v47 = vsub.f32 %v360_v22, %v383_v45 }
 0x117   : > { %v393_v48 = vmul.f32 %v751_v46, %v751_v46  ;;  %v391_v49 = vmul.f32 %v753_v47, %v753_v47 }
 0x119   : > { %v403_v50 = vsel %vm329_vm0, %v393_v48, 0.0  ;;  %v397_v51 = vsel %vm329_vm0, %v391_v49, 0.0 }
 0x11a   : > { %404 = vadd.xlane.f32.xlu1 %v403_v50  ;;  %398 = vadd.xlane.f32.xlu2 %v397_v51 }
 0x185   : > { %v396_v52 = vpop.xlane.xlu2 %395  ;;  %v402_v53 = vpop.xlane.xlu0 %401 }
 0x186   : > { %v406_v54 = vmul.f32 %v396_v52, %v381_v31  ;;  %v408_v55 = vmul.f32 %v402_v53, %v381_v31 }
 0x188   : > { %v410_v56 = vadd.f32 1e-12, %v406_v54  ;;  %v412_v57 = vadd.f32 1e-12, %v408_v55 }
 0x18a   : > { %624 = vrsqrt.f32 %v410_v56  ;;  %vm420_vm3 = vweird.f32 %v410_v56  ;;  %vm440_vm6 = vweird.f32 %v412_v57 }
 0x18b   : > { %626 = vrsqrt.f32 %v412_v57 }
 0x18d   : > { %v405_v58 = vpop.xlane.xlu1 %404  ;;  %v399_v59 = vpop.xlane.xlu2 %398 }
 0x18e   : > { %v409_v60 = vmul.f32 %v405_v58, %v381_v31  ;;  %v407_v61 = vmul.f32 %v399_v59, %v381_v31 }
 0x190   : > { %v625_v62 = vpop.eup %624  ;;  %v413_v63 = vadd.f32 1e-12, %v409_v60  ;;  %v411_v0 = vadd.f32 1e-12, %v407_v61 }
 0x191   : > { %v627_v1 = vpop.eup %626  ;;  %v415_v2 = vmul.f32 %v625_v62, %v410_v56  ;;  %vm421_vm2 = vweird.f32 %v625_v62 }
 0x192   : > { %v435_v3 = vmul.f32 %v627_v1, %v412_v57  ;;  %628 = vrsqrt.f32 %v413_v63  ;;  %vm422_vm4 = vmor %vm420_vm3, %vm421_vm2  ;;  %vm441_vm5 = vweird.f32 %v627_v1  ;;  %vm450_vm10 = vweird.f32 %v413_v63 }
 0x193   : > { %v416_v4 = vmul.f32 %v625_v62, %v415_v2  ;;  %630 = vrsqrt.f32 %v411_v0  ;;  %vm442_vm7 = vmor %vm440_vm6, %vm441_vm5  ;;  %vm430_vm12 = vweird.f32 %v411_v0 }
 0x194   : > { %v436_v5 = vmul.f32 %v627_v1, %v435_v3 }
 0x195   : > { %v417_v6 = vmul.f32 0.5, %v416_v4 }
 0x196   : > { %v437_v7 = vmul.f32 0.5, %v436_v5 }
 0x197   : > { %v418_v8 = vsub.f32 1.5, %v417_v6 }
 0x198   : > { %v629_v9 = vpop.eup %628  ;;  %v438_v10 = vsub.f32 1.5, %v437_v7 }
 0x199   : > { %v631_v11 = vpop.eup %630  ;;  %v419_v12 = vmul.f32 %v625_v62, %v418_v8  ;;  %v445_v13 = vmul.f32 %v629_v9, %v413_v63  ;;  %vm451_vm8 = vweird.f32 %v629_v9 }
 0x19a   : > { %v425_v15 = vmul.f32 %v631_v11, %v411_v0  ;;  %v439_v17 = vmul.f32 %v627_v1, %v438_v10  ;;  %vm431_vm9 = vweird.f32 %v631_v11  ;;  %vm452_vm11 = vmor %vm450_vm10, %vm451_vm8 }
 0x19b   : > { %v423_v16 = vsel %vm422_vm4, %v625_v62, %v419_v12  ;;  %v446_v18 = vmul.f32 %v629_v9, %v445_v13  ;;  %vm432_vm13 = vmor %vm430_vm12, %vm431_vm9 }
 0x19c   : > { %v454_v20 = vmul.f32 %v423_v16, %v386_v37  ;;  %v426_v21 = vmul.f32 %v631_v11, %v425_v15  ;;  %v443_v25 = vsel %vm442_vm7, %v627_v1, %v439_v17 }
 0x19d   : > { %v447_v22 = vmul.f32 0.5, %v446_v18  ;;  %v456_v30 = vmul.f32 %v443_v25, %v745_v36 }
 0x19e   : > { %v462_v23 = vmul.f32 %v620_v14, %v454_v20  ;;  %v427_v24 = vmul.f32 0.5, %v426_v21 }
 0x19f   : > { %v448_v26 = vsub.f32 1.5, %v447_v22  ;;  %v464_v37 = vmul.f32 %v620_v14, %v456_v30 }
 0x1a0   : > { %v470_v27 = vadd.f32 %v621_v19, %v462_v23  ;;  %v428_v28 = vsub.f32 1.5, %v427_v24 }
 0x1a1   : > { %v449_v29 = vmul.f32 %v629_v9, %v448_v26  ;;  %v472_v41 = vadd.f32 %v621_v19, %v464_v37 }
 0x1a2   : > { %474 = vst.msk [vmem:[%s292_s24] sm:$0xff] %vm329_vm0, %v470_v27  ;;  %v429_v31 = vmul.f32 %v631_v11, %v428_v28 }
 0x1a3   : > { %v453_v32 = vsel %vm452_vm11, %v629_v9, %v449_v29  ;;  %476 = vst.msk [vmem:[%s292_s24 + $0x10] sm:$0xff] %vm329_vm0, %v472_v41 }
 0x1a4   : > { %v457_v33 = vmul.f32 %v453_v32, %v751_v46  ;;  %v433_v34 = vsel %vm432_vm13, %v631_v11, %v429_v31 }
 0x1a5   : > { %v455_v35 = vmul.f32 %v433_v34, %v753_v47 }
 0x1a6   : > { %v465_v38 = vmul.f32 %v620_v14, %v457_v33 }
 0x1a7   : > { %v463_v39 = vmul.f32 %v620_v14, %v455_v35 }
 0x1a8   : > { %v473_v42 = vadd.f32 %v621_v19, %v465_v38 }
 0x1a9   : > { %v471_v40 = vadd.f32 %v621_v19, %v463_v39 }
 0x1aa   : > { %477 = vst.msk [vmem:[%s292_s24 + $0x18] sm:$0xff] %vm329_vm0, %v473_v42 }
 0x1ab   : > { %475 = vst.msk [vmem:[%s292_s24 + $0x8] sm:$0xff] %vm329_vm0, %v471_v40 }
 0x1ac PF: > { %s17_s21 = sadd.s32 1, %s672_s21  }
 0x1ad   : > { %p14_p7 = scmp.ge.s32.totalorder %s17_s21, 4  }
 0x1af   :  { %16 = sbr.rel (!%p14_p7) target bundleno = 1 (0x1), region = 82 }
 0x1b4   :  { %500 = vsyncpa [#allocation3], 1 }
 0x1b5   :  { %502 = vsyncpa [#allocation3 + $0x1], 1 }

// kernel: videollama_forward.37
= control target key start
LH: loop header
LB: loop body
LE: loop exit
PB: predicated region body
PF: predicated region fallthrough
CT: control target
= control target key end

     0   :  { %s1348_s6 = smov 0   ;;  %s1602_s0 = inlined_call_operand.vmem [shape: bf16[8,8,96], index: 0, kind: input, shape index: {}]   ;;  %s1603_s1 = inlined_call_operand.vmem [shape: bf16[8,8,32], index: 1, kind: output, shape index: {}]  }
   0x1 LB: > { %s1187_s7 = sadd.s32 4294967295, %s1322_s6   ;;  %p1191_p0 = scmp.ge.s32.totalorder %s1322_s6, 1  ;;  %s1322_s6 = sphi %s1348_s6, %s11_s6  }
   0x2   : > { %p88_p1 = scmp.lt.s32.totalorder %s1322_s6, 3 }
   0x4   : > { %p89_p2 = pnand %p1191_p0, %p88_p1 }
   0x5   : > { %s1192_s8 = sshll.u32 (!%p89_p2), %s1187_s7, 2  ;;  %s1324_s13 = smov (!%p89_p2), 96  }
   0x6   : > { %92 = sbr.rel (%p89_p2) target bundleno = 2031 (0x7ef), region = 24  ;;  %p109_p3 = scmp.lt.s32.totalorder (!%p89_p2), %s1192_s8, 7 }
   0x7   : > { %s1325_s14 = smov (!%p89_p2), 64   ;;  %s1326_s15 = smov (!%p89_p2), 88  }
   0x8   : > { %s1327_s16 = smov (!%p89_p2), 120   ;;  %s1328_s17 = smov (!%p89_p2), 56  }
   0x9   : > { %s1329_s18 = smov (!%p89_p2), 80   ;;  %s1330_s19 = smov (!%p89_p2), 112  }
   0xa   : > { %s1331_s20 = smov (!%p89_p2), 48   ;;  %s1332_s21 = smov (!%p89_p2), 72  }
   0xb   : > { %s1605_s8 = smov (!%p109_p3, %s1192_s8), 7  ;;  %vm142_vm0 = vcmask 64512   ;;  %vm287_vm1 = vcmask 1043456   ;;  %s1333_s22 = smov 104   ;;  %vm623_vm2 = vcmask 130112   ;;  %vm868_vm3 = vcmask 195712  }
   0xc   : > { %s1193_s9 = sshll.u32 %s1605_s8, 2  ;;  %s1334_s23 = smov 40   ;;  %vm1113_vm4 = vcmask 261312   ;;  %vm1126_vm5 = vcmask 257024  }
   0xd   : > { %s112_s12 = scalar_lea.vmem %s1602_s0, %s1193_s9  ;;  %s1335_s24 = smov 8  }
   0xe   : > { %v123_v0 = vld [vmem:[%s112_s12 + $0x8] sm:$0xf]  ;;  %v121_v1 = vld [vmem:[%s112_s12] sm:$0xf]  ;;  %v124_v4 = vld [vmem:[%s112_s12 + $0xc] sm:$0xf]  ;;  %s118_s29 = scalar_lea.vmem %s1603_s1, %s1193_s9 }
   0xf   : > { %v187_v2 = vunpack.c.l.b16 %v123_v0  ;;  %v138_v3 = vunpack.c.l.b16 %v121_v1  ;;  %v122_v5 = vld [vmem:[%s112_s12 + $0x4] sm:$0xf]  ;;  %v211_v8 = vunpack.c.l.b16 %v124_v4  ;;  %v125_v12 = vunpack.c.l.bf16 %v121_v1  ;;  %s1336_s25 = smov 16   ;;  %s1337_s26 = smov 24  }
  0x10   : > { %v163_v9 = vunpack.c.l.b16 %v122_v5  ;;  %v127_v13 = vunpack.c.l.bf16 %v123_v0  ;;  %v126_v22 = vunpack.c.l.bf16 %v122_v5  ;;  %v128_v23 = vunpack.c.l.bf16 %v124_v4 }
  0x11   : > { %v1364_v6 = vpack.c.b16 %v187_v2, %v187_v2  ;;  %v1366_v7 = vpack.c.b16 %v138_v3, %v138_v3  ;;  %v1370_v10 = vpack.c.b16 %v211_v8, %v211_v8  ;;  %v129_v18 = vmul.f32 0.35355338, %v125_v12 }
  0x12   : > { %v1372_v11 = vpack.c.b16 %v163_v9, %v163_v9  ;;  %v131_v19 = vmul.f32 0.35355338, %v127_v13  ;;  %v130_v28 = vmul.f32 0.35355338, %v126_v22  ;;  %v132_v29 = vmul.f32 0.35355338, %v128_v23 }
  0x13   : > { %189 = vrot.lane.b32.xlu0 %v1364_v6, %s1324_s13  ;;  %140 = vrot.lane.b32.xlu1 %v1366_v7, %s1324_s13  ;;  %v1380_v20 = vpack.c.bf16 %v129_v18, %v129_v18 }
  0x14   : > { %325 = vrot.lane.b32.xlu2 %v1364_v6, %s1325_s14  ;;  %v135_v21 = vpack.c.bf16 %v131_v19, %v131_v19  ;;  %v134_v30 = vpack.c.bf16 %v130_v28, %v130_v28  ;;  %v136_v31 = vpack.c.bf16 %v132_v29, %v132_v29 }
  0x16   : > { %v424_v46 = vunpack.c.l.b16 %v135_v21  ;;  %v450_v48 = vunpack.c.l.b16 %v136_v31  ;;  %v398_v58 = vunpack.c.l.b16 %v134_v30 }
  0x18   : > { %v1398_v47 = vpack.c.b16 %v424_v46, %v424_v46  ;;  %v1402_v49 = vpack.c.b16 %v450_v48, %v450_v48  ;;  %v1410_v61 = vpack.c.b16 %v398_v58, %v398_v58 }
  0x1b   : > { %213 = vrot.lane.b32.xlu0 %v1370_v10, %s1324_s13  ;;  %165 = vrot.lane.b32.xlu1 %v1372_v11, %s1324_s13 }
  0x6e   : > { %v326_v32 = vpop.permute.xlu2 %325 }
  0x6f   : > { %v331_v33 = vsel %vm287_vm1, %v326_v32, 0 }
  0x85   : > { %v190_v14 = vpop.permute.xlu0 %189  ;;  %v141_v15 = vpop.permute.xlu1 %140 }
  0x86   : > { %v147_v16 = vsel %vm142_vm0, %v141_v15, 0  ;;  %v195_v17 = vsel %vm142_vm0, %v190_v14, 0 }
  0x87   : > { %156 = vmatpush.bf16.xpose.msra.mxu0 %v147_v16  ;;  %204 = vmatpush.bf16.xpose.msra.mxu2 %v195_v17  ;;  %v372_v17 = vunpack.c.l.b16 %v1380_v20 }
  0x89   : > { %v1422_v19 = vpack.c.b16 %v372_v17, %v372_v17 }
  0x8d   : > { %v214_v24 = vpop.permute.xlu0 %213  ;;  %v166_v25 = vpop.permute.xlu1 %165 }
  0x8e   : > { %1196 = vmatmul.msk.bf16.vlgmr.msra.gmra.mxu0 %vm142_vm0, %v1380_v20  ;;  %1198 = vmatmul.msk.bf16.vlgmr.msra.gmra.mxu2 %vm142_vm0, %v135_v21  ;;  %v171_v26 = vsel %vm142_vm0, %v166_v25, 0  ;;  %v219_v27 = vsel %vm142_vm0, %v214_v24, 0 }
  0x8f   : > { %180 = vmatpush.bf16.xpose.msra.mxu1 %v171_v26  ;;  %228 = vmatpush.bf16.xpose.msra.mxu3 %v219_v27 }
  0x90   : > { %340 = vmatpush.bf16.msrb.mxu2 %v331_v33 }
  0x96   : > { %1197 = vmatmul.msk.bf16.vlgmr.msra.gmra.mxu1 %vm142_vm0, %v134_v30  ;;  %1199 = vmatmul.msk.bf16.vlgmr.msra.gmra.mxu3 %vm142_vm0, %v136_v31 }
 0x10b   : > { %v158_v34 = vpop.f32.mrf.mxu0 }
 0x10c   : > { %v234_v35 = vsel %vm142_vm0, %v158_v34, -inf }
 0x10d   : > { %235 = vmax.xlane.f32.xlu0 %v234_v35 }
 0x111   : > { %v206_v36 = vpop.f32.mrf.mxu2 }
 0x112   : > { %v240_v37 = vsel %vm142_vm0, %v206_v36, -inf }
 0x113   : > { %241 = vmax.xlane.f32.xlu2 %v240_v37  ;;  %v160_v38 = vpop.f32.mrf.mxu0  ;;  %v182_v39 = vpop.f32.mrf.mxu1 }
 0x114   : > { %v237_v40 = vsel %vm142_vm0, %v182_v39, -inf }
 0x115   : > { %238 = vmax.xlane.f32.xlu1 %v237_v40 }
 0x119   : > { %v208_v41 = vpop.f32.mrf.mxu2  ;;  %v230_v42 = vpop.f32.mrf.mxu3 }
 0x11a   : > { %v243_v43 = vsel %vm142_vm0, %v230_v42, -inf }
 0x11b   : > { %244 = vmax.xlane.f32.xlu2 %v243_v43  ;;  %v184_v44 = vpop.f32.mrf.mxu1 }
 0x121   : > { %v232_v45 = vpop.f32.mrf.mxu3  ;;  %428 = vrot.lane.b32.xlu0 %v1364_v6, %s1326_s15 }
 0x12e   : > { %454 = vrot.lane.b32.xlu1 %v1370_v10, %s1326_s15 }
 0x133   : > { %346 = vrot.lane.b32.xlu2 %v1370_v10, %s1325_s14 }
 0x136   : > { %426 = vrot.lane.b32.xlu1 %v1398_v47, %s1327_s16 }
 0x13e   : > { %452 = vrot.lane.b32.xlu1 %v1402_v49, %s1327_s16 }
 0x146   : > { %282 = vrot.lane.b32.xlu1 %v1366_v7, %s1325_s14 }
 0x14e   : > { %376 = vrot.lane.b32.xlu1 %v1366_v7, %s1326_s15 }
 0x156   : > { %402 = vrot.lane.b32.xlu1 %v1372_v11, %s1326_s15 }
 0x15e   : > { %400 = vrot.lane.b32.xlu1 %v1410_v61, %s1327_s16 }
 0x180   : > { %v236_v50 = vpop.xlane.xlu0 %235 }
 0x181   : > { %v246_v51 = vsub.f32 %v158_v34, %v236_v50 }
 0x183   : > { %v250_v52 = vmul.f32 1.442695, %v246_v51 }
 0x185   : > { %1252 = vpow2.f32 %v250_v52 }
 0x186   : > { %v242_v53 = vpop.xlane.xlu2 %241 }
 0x187   : > { %v248_v54 = vsub.f32 %v206_v36, %v242_v53 }
 0x188   : > { %v239_v55 = vpop.xlane.xlu1 %238 }
 0x189   : > { %v254_v56 = vmul.f32 1.442695, %v248_v54  ;;  %v247_v57 = vsub.f32 %v182_v39, %v239_v55 }
 0x18b   : > { %v1253_v59 = vpop.eup %1252  ;;  %1254 = vpow2.f32 %v254_v56  ;;  %v252_v60 = vmul.f32 1.442695, %v247_v57 }
 0x18c   : > { %v258_v62 = vsel %vm142_vm0, %v1253_v59, 0.0 }
 0x18d   : > { %1256 = vpow2.f32 %v252_v60  ;;  %259 = vadd.xlane.f32.xlu2 %v258_v62 }
 0x18e   : > { %v245_v63 = vpop.xlane.xlu2 %244 }
 0x18f   : > { %v249_v0 = vsub.f32 %v230_v42, %v245_v63 }
 0x191   : > { %v1255_v1 = vpop.eup %1254  ;;  %v256_v2 = vmul.f32 1.442695, %v249_v0 }
 0x192   : > { %v264_v5 = vsel %vm142_vm0, %v1255_v1, 0.0 }
 0x193   : > { %v1257_v3 = vpop.eup %1256  ;;  %1258 = vpow2.f32 %v256_v2  ;;  %v429_v8 = vpop.permute.xlu0 %428 }
 0x194   : > { %v261_v4 = vsel %vm142_vm0, %v1257_v3, 0.0  ;;  %v434_v12 = vsel %vm142_vm0, %v429_v8, 0 }
 0x195   : > { %262 = vadd.xlane.f32.xlu0 %v261_v4  ;;  %265 = vadd.xlane.f32.xlu2 %v264_v5 }
 0x196   : > { %v347_v9 = vpop.permute.xlu2 %346  ;;  %443 = vmatpush.bf16.xpose.msra.mxu2 %v434_v12 }
 0x197   : > { %v352_v13 = vsel %vm287_vm1, %v347_v9, 0 }
 0x198   : > { %361 = vmatpush.bf16.msrb.mxu3 %v352_v13 }
 0x199   : > { %v1259_v14 = vpop.eup %1258 }
 0x19a   : > { %v267_v15 = vsel %vm142_vm0, %v1259_v14, 0.0 }
 0x19d   : > { %268 = vadd.xlane.f32.xlu2 %v267_v15 }
 0x1a0   : > { %v455_v16 = vpop.permute.xlu1 %454 }
 0x1a1   : > { %v460_v18 = vsel %vm142_vm0, %v455_v16, 0 }
 0x1a2   : > { %469 = vmatpush.bf16.xpose.msra.mxu3 %v460_v18 }
 0x1a8   : > { %v427_v21 = vpop.permute.xlu1 %426 }
 0x1a9   : > { %374 = vrot.lane.b32.xlu0 %v1422_v19, %s1327_s16 }
 0x1b0   : > { %v453_v22 = vpop.permute.xlu1 %452 }
 0x1b5   : > { %304 = vrot.lane.b32.xlu2 %v1372_v11, %s1325_s14 }
 0x1b8   : > { %v283_v23 = vpop.permute.xlu1 %282 }
 0x1b9   : > { %v289_v24 = vsel %vm287_vm1, %v283_v23, 0 }
 0x1ba   : > { %298 = vmatpush.bf16.msrb.mxu0 %v289_v24 }
 0x1c0   : > { %v377_v25 = vpop.permute.xlu1 %376 }
 0x1c1   : > { %v382_v20 = vsel %vm142_vm0, %v377_v25, 0 }
 0x1c2   : > { %391 = vmatpush.bf16.xpose.msra.mxu0 %v382_v20 }
 0x1c8   : > { %v403_v37 = vpop.permute.xlu1 %402 }
 0x1c9   : > { %v408_v42 = vsel %vm142_vm0, %v403_v37, 0 }
 0x1d0   : > { %v401_v48 = vpop.permute.xlu1 %400 }
 0x200   : > { %v260_v26 = vpop.xlane.xlu2 %259 }
 0x201   : > { %1260 = vrcp.f32 %v260_v26 }
 0x207   : > { %v1261_v27 = vpop.eup %1260 }
 0x208   : > { %v274_v28 = vmul.f32 %v1261_v27, %v1253_v59  ;;  %v266_v29 = vpop.xlane.xlu2 %265  ;;  %v263_v31 = vpop.xlane.xlu0 %262 }
 0x209   : > { %1262 = vrcp.f32 %v266_v29 }
 0x20a   : > { %v278_v30 = vpack.c.bf16 %v274_v28, %v274_v28  ;;  %1264 = vrcp.f32 %v263_v31 }
 0x20c   : > { %1200 = vmatmul.msk.bf16.vlgmr.msrb.gmra.mxu0 %vm142_vm0, %v278_v30 }
 0x20f   : > { %v1263_v32 = vpop.eup %1262 }
 0x210   : > { %v276_v33 = vmul.f32 %v1263_v32, %v1255_v1  ;;  %v269_v34 = vpop.xlane.xlu2 %268  ;;  %v1265_v36 = vpop.eup %1264 }
 0x211   : > { %1266 = vrcp.f32 %v269_v34  ;;  %v275_v39 = vmul.f32 %v1265_v36, %v1257_v3 }
 0x212   : > { %v280_v35 = vpack.c.bf16 %v276_v33, %v276_v33 }
 0x213   : > { %v279_v46 = vpack.c.bf16 %v275_v39, %v275_v39 }
 0x214   : > { %1202 = vmatmul.msk.bf16.vlgmr.msrb.gmra.mxu2 %vm142_vm0, %v280_v35 }
 0x217   : > { %v1267_v38 = vpop.eup %1266 }
 0x218   : > { %v277_v40 = vmul.f32 %v1267_v38, %v1259_v14  ;;  %v305_v41 = vpop.permute.xlu2 %304 }
 0x219   : > { %v310_v43 = vsel %vm287_vm1, %v305_v41, 0 }
 0x21a   : > { %319 = vmatpush.bf16.msrb.mxu1 %v310_v43  ;;  %v281_v44 = vpack.c.bf16 %v277_v40, %v277_v40 }
 0x21b   : > { %v375_v45 = vpop.permute.xlu0 %374 }
 0x21c   : > { %1203 = vmatmul.msk.bf16.vlgmr.msrb.gmra.mxu3 %vm142_vm0, %v281_v44  ;;  %1204 = vmatmul.msk.bf16.vlgmr.msra.gmra.mxu0 %vm142_vm0, %v375_v45 }
 0x21d   : > { %1201 = vmatmul.msk.bf16.vlgmr.msrb.gmra.mxu1 %vm142_vm0, %v279_v46 }
 0x21e   : > { %417 = vmatpush.bf16.xpose.msra.mxu1 %v408_v42 }
 0x224   : > { %1206 = vmatmul.msk.bf16.vlgmr.msra.gmra.mxu2 %vm142_vm0, %v427_v21 }
 0x22c   : > { %1207 = vmatmul.msk.bf16.vlgmr.msra.gmra.mxu3 %vm142_vm0, %v453_v22 }
 0x22d   : > { %1205 = vmatmul.msk.bf16.vlgmr.msra.gmra.mxu1 %vm142_vm0, %v401_v48 }
 0x289   : > { %v300_v50 = vpop.f32.mrf.mxu0 }
 0x28a   : > { %367 = vst.msk [vmem:[#allocation2] sm:$0xff] %vm142_vm0, %v300_v50 }
 0x291   : > { %v302_v51 = vpop.f32.mrf.mxu0 }
 0x297   : > { %v342_v52 = vpop.f32.mrf.mxu2 }
 0x298   : > { %369 = vst.msk [vmem:[#allocation2 + $0x10] sm:$0xff] %vm142_vm0, %v342_v52 }
 0x299   : > { %v393_v53 = vpop.f32.mrf.mxu0 }
 0x29a   : > { %v321_v54 = vpop.f32.mrf.mxu1  ;;  %v475_v55 = vsel %vm142_vm0, %v393_v53, -inf }
 0x29b   : > { %368 = vst.msk [vmem:[#allocation2 + $0x8] sm:$0xff] %vm142_vm0, %v321_v54  ;;  %476 = vmax.xlane.f32.xlu0 %v475_v55 }
 0x29f   : > { %v344_v56 = vpop.f32.mrf.mxu2  ;;  %v363_v57 = vpop.f32.mrf.mxu3 }
 0x2a0   : > { %370 = vst.msk [vmem:[#allocation2 + $0x18] sm:$0xff] %vm142_vm0, %v363_v57 }
 0x2a1   : > { %v395_v58 = vpop.f32.mrf.mxu0 }
 0x2a2   : > { %v323_v59 = vpop.f32.mrf.mxu1 }
 0x2a7   : > { %v365_v60 = vpop.f32.mrf.mxu3  ;;  %v445_v62 = vpop.f32.mrf.mxu2 }
 0x2a8   : > { %v481_v63 = vsel %vm142_vm0, %v445_v62, -inf }
 0x2a9   : > { %482 = vmax.xlane.f32.xlu2 %v481_v63 }
 0x2aa   : > { %v419_v0 = vpop.f32.mrf.mxu1 }
 0x2ab   : > { %v478_v1 = vsel %vm142_vm0, %v419_v0, -inf }
 0x2af   : > { %v447_v2 = vpop.f32.mrf.mxu2  ;;  %v471_v3 = vpop.f32.mrf.mxu3  ;;  %586 = vrot.lane.b32.xlu0 %v1370_v10, %s1328_s17 }
 0x2b0   : > { %v484_v4 = vsel %vm142_vm0, %v471_v3, -inf }
 0x2b1   : > { %485 = vmax.xlane.f32.xlu1 %v484_v4  ;;  %479 = vmax.xlane.f32.xlu2 %v478_v1 }
 0x2b2   : > { %v421_v5 = vpop.f32.mrf.mxu1 }
 0x2b7   : > { %v473_v8 = vpop.f32.mrf.mxu3  ;;  %676 = vrot.lane.b32.xlu0 %v1364_v6, %s1329_s18 }
 0x2bf   : > { %544 = vrot.lane.b32.xlu0 %v1372_v11, %s1328_s17 }
 0x2c7   : > { %697 = vrot.lane.b32.xlu0 %v1402_v49, %s1330_s19 }
 0x2ca   : > { %565 = vrot.lane.b32.xlu1 %v1364_v6, %s1328_s17 }
 0x2cf   : > { %653 = vrot.lane.b32.xlu0 %v1372_v11, %s1329_s18 }
 0x30e   : > { %v477_v9 = vpop.xlane.xlu0 %476 }
 0x30f   : > { %v487_v12 = vsub.f32 %v393_v53, %v477_v9 }
 0x311   : > { %v491_v13 = vmul.f32 1.442695, %v487_v12 }
 0x313   : > { %1268 = vpow2.f32 %v491_v13 }
 0x319   : > { %v1460_v14 = vpop.eup %1268 }
 0x31a   : > { %v499_v15 = vsel %vm142_vm0, %v1460_v14, 0.0 }
 0x31b   : > { %500 = vadd.xlane.f32.xlu2 %v499_v15 }
 0x31c   : > { %v483_v16 = vpop.xlane.xlu2 %482 }
 0x31d   : > { %v489_v17 = vsub.f32 %v445_v62, %v483_v16 }
 0x31f   : > { %v495_v18 = vmul.f32 1.442695, %v489_v17 }
 0x321   : > { %1270 = vpow2.f32 %v495_v18  ;;  %v587_v34 = vpop.permute.xlu0 %586 }
 0x322   : > { %v592_v35 = vsel %vm287_vm1, %v587_v34, 0 }
 0x323   : > { %601 = vmatpush.bf16.msrb.mxu3 %v592_v35 }
 0x324   : > { %v480_v21 = vpop.xlane.xlu2 %479  ;;  %v486_v22 = vpop.xlane.xlu1 %485 }
 0x325   : > { %v488_v23 = vsub.f32 %v419_v0, %v480_v21  ;;  %v490_v20 = vsub.f32 %v471_v3, %v486_v22 }
 0x327   : > { %v1271_v24 = vpop.eup %1270  ;;  %v493_v25 = vmul.f32 1.442695, %v488_v23  ;;  %v497_v27 = vmul.f32 1.442695, %v490_v20 }
 0x328   : > { %v505_v26 = vsel %vm142_vm0, %v1271_v24, 0.0 }
 0x329   : > { %506 = vadd.xlane.f32.xlu1 %v505_v26  ;;  %1272 = vpow2.f32 %v493_v25  ;;  %v677_v36 = vpop.permute.xlu0 %676 }
 0x32a   : > { %1274 = vpow2.f32 %v497_v27  ;;  %v682_v37 = vsel %vm142_vm0, %v677_v36, 0 }
 0x32f   : > { %v1273_v28 = vpop.eup %1272 }
 0x330   : > { %v502_v29 = vsel %vm142_vm0, %v1273_v28, 0.0  ;;  %v1275_v30 = vpop.eup %1274 }
 0x331   : > { %503 = vadd.xlane.f32.xlu2 %v502_v29  ;;  %v508_v31 = vsel %vm142_vm0, %v1275_v30, 0.0  ;;  %v545_v38 = vpop.permute.xlu0 %544 }
 0x332   : > { %v550_v39 = vsel %vm287_vm1, %v545_v38, 0 }
 0x333   : > { %559 = vmatpush.bf16.msrb.mxu1 %v550_v39 }
 0x339   : > { %509 = vadd.xlane.f32.xlu2 %v508_v31  ;;  %v698_v42 = vpop.permute.xlu0 %697 }
 0x33c   : > { %v566_v32 = vpop.permute.xlu1 %565 }
 0x33d   : > { %v571_v33 = vsel %vm287_vm1, %v566_v32, 0 }
 0x33e   : > { %580 = vmatpush.bf16.msrb.mxu2 %v571_v33 }
 0x341   : > { %v654_v46 = vpop.permute.xlu0 %653 }
 0x342   : > { %523 = vrot.lane.b32.xlu1 %v1366_v7, %s1328_s17  ;;  %691 = vmatpush.bf16.xpose.msra.mxu2 %v682_v37  ;;  %v659_v50 = vsel %vm142_vm0, %v654_v46, 0 }
 0x343   : > { %668 = vmatpush.bf16.xpose.msra.mxu1 %v659_v50 }
 0x34a   : > { %674 = vrot.lane.b32.xlu1 %v1398_v47, %s1330_s19 }
 0x351   : > { %699 = vrot.lane.b32.xlu2 %v1370_v10, %s1329_s18 }
 0x352   : > { %630 = vrot.lane.b32.xlu1 %v1366_v7, %s1329_s18 }
 0x359   : > { %628 = vrot.lane.b32.xlu2 %v1422_v19, %s1330_s19 }
 0x35a   : > { %651 = vrot.lane.b32.xlu1 %v1410_v61, %s1330_s19 }
 0x38e   : > { %v501_v41 = vpop.xlane.xlu2 %500 }
 0x39c   : > { %v507_v40 = vpop.xlane.xlu1 %506 }
 0x39d   : > { %1276 = vrcp.f32 %v507_v40 }
 0x3a3   : > { %v1277_v43 = vpop.eup %1276 }
 0x3a4   : > { %v517_v44 = vmul.f32 %v1277_v43, %v1271_v24  ;;  %v504_v45 = vpop.xlane.xlu2 %503 }
 0x3a5   : > { %1278 = vrcp.f32 %v504_v45 }
 0x3a6   : > { %v521_v48 = vpack.c.bf16 %v517_v44, %v517_v44  ;;  %1280 = vrcp.f32 %v501_v41 }
 0x3a8   : > { %1210 = vmatmul.msk.bf16.vlgmr.msrb.gmra.mxu2 %vm142_vm0, %v521_v48 }
 0x3ab   : > { %v1279_v51 = vpop.eup %1278 }
 0x3ac   : > { %v516_v52 = vmul.f32 %v1279_v51, %v1273_v28  ;;  %v510_v53 = vpop.xlane.xlu2 %509  ;;  %v1281_v55 = vpop.eup %1280 }
 0x3ad   : > { %1282 = vrcp.f32 %v510_v53  ;;  %v515_v56 = vmul.f32 %v1281_v55, %v1460_v14 }
 0x3ae   : > { %v520_v54 = vpack.c.bf16 %v516_v52, %v516_v52 }
 0x3af   : > { %v519_v0 = vpack.c.bf16 %v515_v56, %v515_v56 }
 0x3b0   : > { %1209 = vmatmul.msk.bf16.vlgmr.msrb.gmra.mxu1 %vm142_vm0, %v520_v54 }
 0x3b3   : > { %v1283_v57 = vpop.eup %1282 }
 0x3b4   : > { %v524_v58 = vpop.permute.xlu1 %523  ;;  %v518_v59 = vmul.f32 %v1283_v57, %v1275_v30  ;;  %v700_v62 = vpop.permute.xlu2 %699 }
 0x3b5   : > { %v529_v60 = vsel %vm287_vm1, %v524_v58, 0  ;;  %v705_v63 = vsel %vm142_vm0, %v700_v62, 0 }
 0x3b6   : > { %538 = vmatpush.bf16.msrb.mxu0 %v529_v60  ;;  %v522_v1 = vpack.c.bf16 %v518_v59, %v518_v59  ;;  %714 = vmatpush.bf16.xpose.msra.mxu3 %v705_v63 }
 0x3b8   : > { %1211 = vmatmul.msk.bf16.vlgmr.msrb.gmra.mxu3 %vm142_vm0, %v522_v1 }
 0x3b9   : > { %1208 = vmatmul.msk.bf16.vlgmr.msrb.gmra.mxu0 %vm142_vm0, %v519_v0 }
 0x3bc   : > { %v675_v2 = vpop.permute.xlu1 %674  ;;  %v629_v5 = vpop.permute.xlu2 %628 }
 0x3bd   : > { %1214 = vmatmul.msk.bf16.vlgmr.msra.gmra.mxu2 %vm142_vm0, %v675_v2 }
 0x3c4   : > { %v631_v3 = vpop.permute.xlu1 %630 }
 0x3c5   : > { %v636_v4 = vsel %vm142_vm0, %v631_v3, 0 }
 0x3c6   : > { %645 = vmatpush.bf16.xpose.msra.mxu0 %v636_v4 }
 0x3c8   : > { %1215 = vmatmul.msk.bf16.vlgmr.msra.gmra.mxu3 %vm142_vm0, %v698_v42 }
 0x3cc   : > { %v652_v8 = vpop.permute.xlu1 %651 }
 0x3cd   : > { %1212 = vmatmul.msk.bf16.vlgmr.msra.gmra.mxu0 %vm142_vm0, %v629_v5  ;;  %1213 = vmatmul.msk.bf16.vlgmr.msra.gmra.mxu1 %vm142_vm0, %v652_v8 }
 0x42b   : > { %v1496_v9 = vpop.f32.mrf.mxu2 }
 0x42d   : > { %v1498_v12 = vpop.f32.mrf.mxu1 }
 0x433   : > { %v584_v13 = vpop.f32.mrf.mxu2 }
 0x435   : > { %v563_v14 = vpop.f32.mrf.mxu1 }
 0x436   : > { %v1500_v15 = vpop.f32.mrf.mxu0 }
 0x43b   : > { %v1502_v16 = vpop.f32.mrf.mxu3 }
 0x43e   : > { %v542_v17 = vpop.f32.mrf.mxu0 }
 0x440   : > { %v693_v18 = vpop.f32.mrf.mxu2 }
 0x441   : > { %v726_v21 = vsel %vm142_vm0, %v693_v18, -inf }
 0x442   : > { %727 = vmax.xlane.f32.xlu0 %v726_v21 }
 0x443   : > { %v605_v22 = vpop.f32.mrf.mxu3 }
 0x448   : > { %v695_v23 = vpop.f32.mrf.mxu2 }
 0x44a   : > { %v647_v24 = vpop.f32.mrf.mxu0  ;;  %v670_v25 = vpop.f32.mrf.mxu1 }
 0x44b   : > { %v720_v20 = vsel %vm142_vm0, %v647_v24, -inf  ;;  %v716_v26 = vpop.f32.mrf.mxu3  ;;  %v723_v30 = vsel %vm142_vm0, %v670_v25, -inf }
 0x44c   : > { %721 = vmax.xlane.f32.xlu1 %v720_v20  ;;  %v729_v27 = vsel %vm142_vm0, %v716_v26, -inf }
 0x44d   : > { %730 = vmax.xlane.f32.xlu2 %v729_v27 }
 0x452   : > { %v649_v28 = vpop.f32.mrf.mxu0  ;;  %v672_v29 = vpop.f32.mrf.mxu1 }
 0x453   : > { %v718_v31 = vpop.f32.mrf.mxu3 }
 0x455   : > { %724 = vmax.xlane.f32.xlu2 %v723_v30 }
 0x456   : > { %831 = vrot.lane.b32.xlu0 %v1370_v10, %s1331_s20 }
 0x45e   : > { %768 = vrot.lane.b32.xlu0 %v1366_v7, %s1331_s20 }
 0x465   : > { %789 = vrot.lane.b32.xlu1 %v1372_v11, %s1331_s20 }
 0x466   : > { %944 = vrot.lane.b32.xlu0 %v1370_v10, %s1332_s21 }
 0x46d   : > { %810 = vrot.lane.b32.xlu2 %v1364_v6, %s1331_s20 }
 0x46e   : > { %942 = vrot.lane.b32.xlu0 %v1402_v49, %s1333_s22 }
 0x475   : > { %921 = vrot.lane.b32.xlu2 %v1364_v6, %s1332_s21 }
 0x47d   : > { %919 = vrot.lane.b32.xlu2 %v1398_v47, %s1333_s22 }
 0x485   : > { %875 = vrot.lane.b32.xlu2 %v1366_v7, %s1332_s21 }
 0x48d   : > { %896 = vrot.lane.b32.xlu2 %v1410_v61, %s1333_s22 }
 0x4b5   : > { %v728_v32 = vpop.xlane.xlu0 %727 }
 0x4b6   : > { %v734_v33 = vsub.f32 %v693_v18, %v728_v32 }
 0x4b8   : > { %v740_v34 = vmul.f32 1.442695, %v734_v33 }
 0x4ba   : > { %1284 = vpow2.f32 %v740_v34 }
 0x4bf   : > { %v722_v35 = vpop.xlane.xlu1 %721 }
 0x4c0   : > { %v1285_v49 = vpop.eup %1284  ;;  %v732_v36 = vsub.f32 %v647_v24, %v722_v35  ;;  %v731_v37 = vpop.xlane.xlu2 %730 }
 0x4c1   : > { %v750_v38 = vsel %vm142_vm0, %v1285_v49, 0.0  ;;  %v735_v43 = vsub.f32 %v716_v26, %v731_v37 }
 0x4c2   : > { %v736_v39 = vmul.f32 1.442695, %v732_v36  ;;  %751 = vadd.xlane.f32.xlu0 %v750_v38 }
 0x4c3   : > { %v742_v44 = vmul.f32 1.442695, %v735_v43 }
 0x4c4   : > { %1286 = vpow2.f32 %v736_v39 }
 0x4c8   : > { %v725_v47 = vpop.xlane.xlu2 %724  ;;  %v832_v48 = vpop.permute.xlu0 %831 }
 0x4c9   : > { %v733_v41 = vsub.f32 %v670_v25, %v725_v47  ;;  %v837_v51 = vsel %vm287_vm1, %v832_v48, 0 }
 0x4ca   : > { %v1287_v40 = vpop.eup %1286  ;;  %846 = vmatpush.bf16.msrb.mxu3 %v837_v51 }
 0x4cb   : > { %v744_v42 = vsel %vm142_vm0, %v1287_v40, 0.0  ;;  %v738_v61 = vmul.f32 1.442695, %v733_v41 }
 0x4cc   : > { %745 = vadd.xlane.f32.xlu1 %v744_v42 }
 0x4cd   : > { %1288 = vpow2.f32 %v738_v61 }
 0x4ce   : > { %1290 = vpow2.f32 %v742_v44 }
 0x4d0   : > { %v769_v55 = vpop.permute.xlu0 %768  ;;  %v811_v59 = vpop.permute.xlu2 %810 }
 0x4d1   : > { %v774_v56 = vsel %vm287_vm1, %v769_v55, 0  ;;  %v816_v60 = vsel %vm287_vm1, %v811_v59, 0 }
 0x4d2   : > { %783 = vmatpush.bf16.msrb.mxu0 %v774_v56  ;;  %825 = vmatpush.bf16.msrb.mxu2 %v816_v60 }
 0x4d3   : > { %v1289_v45 = vpop.eup %1288 }
 0x4d4   : > { %v747_v46 = vsel %vm142_vm0, %v1289_v45, 0.0  ;;  %v1291_v53 = vpop.eup %1290 }
 0x4d5   : > { %748 = vadd.xlane.f32.xlu1 %v747_v46  ;;  %v753_v54 = vsel %vm142_vm0, %v1291_v53, 0.0 }
 0x4d6   : > { %898 = vrot.lane.b32.xlu0 %v1372_v11, %s1332_s21 }
 0x4d7   : > { %v790_v50 = vpop.permute.xlu1 %789 }
 0x4d8   : > { %v795_v52 = vsel %vm287_vm1, %v790_v50, 0  ;;  %v945_v57 = vpop.permute.xlu0 %944  ;;  %v922_v62 = vpop.permute.xlu2 %921 }
 0x4d9   : > { %804 = vmatpush.bf16.msrb.mxu1 %v795_v52  ;;  %v950_v58 = vsel %vm142_vm0, %v945_v57, 0  ;;  %v927_v63 = vsel %vm142_vm0, %v922_v62, 0 }
 0x4da   : > { %959 = vmatpush.bf16.xpose.msra.mxu3 %v950_v58  ;;  %936 = vmatpush.bf16.xpose.msra.mxu2 %v927_v63 }
 0x4dd   : > { %754 = vadd.xlane.f32.xlu1 %v753_v54 }
 0x4e0   : > { %v943_v0 = vpop.permute.xlu0 %942  ;;  %v920_v1 = vpop.permute.xlu2 %919 }
 0x4e8   : > { %v876_v3 = vpop.permute.xlu2 %875 }
 0x4e9   : > { %v881_v5 = vsel %vm142_vm0, %v876_v3, 0 }
 0x4ea   : > { %890 = vmatpush.bf16.xpose.msra.mxu0 %v881_v5 }
 0x4f0   : > { %v897_v30 = vpop.permute.xlu2 %896 }
 0x4f6   : > { %873 = vrot.lane.b32.xlu1 %v1422_v19, %s1333_s22 }
 0x535   : > { %v752_v2 = vpop.xlane.xlu0 %751 }
 0x536   : > { %1292 = vrcp.f32 %v752_v2 }
 0x53c   : > { %v1293_v4 = vpop.eup %1292 }
 0x53d   : > { %v762_v8 = vmul.f32 %v1293_v4, %v1285_v49 }
 0x53f   : > { %v766_v13 = vpack.c.bf16 %v762_v8, %v762_v8  ;;  %v746_v19 = vpop.xlane.xlu1 %745 }
 0x540   : > { %1294 = vrcp.f32 %v746_v19 }
 0x541   : > { %1218 = vmatmul.msk.bf16.vlgmr.msrb.gmra.mxu2 %vm142_vm0, %v766_v13 }
 0x546   : > { %v1295_v14 = vpop.eup %1294 }
 0x547   : > { %v760_v17 = vmul.f32 %v1295_v14, %v1287_v40 }
 0x548   : > { %v899_v18 = vpop.permute.xlu0 %898  ;;  %v749_v22 = vpop.xlane.xlu1 %748 }
 0x549   : > { %v764_v21 = vpack.c.bf16 %v760_v17, %v760_v17  ;;  %v904_v23 = vsel %vm142_vm0, %v899_v18, 0  ;;  %1296 = vrcp.f32 %v749_v22 }
 0x54a   : > { %913 = vmatpush.bf16.xpose.msra.mxu1 %v904_v23 }
 0x54b   : > { %1216 = vmatmul.msk.bf16.vlgmr.msrb.gmra.mxu0 %vm142_vm0, %v764_v21 }
 0x54f   : > { %v1297_v24 = vpop.eup %1296 }
 0x550   : > { %v761_v25 = vmul.f32 %v1297_v24, %v1289_v45  ;;  %v755_v20 = vpop.xlane.xlu1 %754 }
 0x551   : > { %1222 = vmatmul.msk.bf16.vlgmr.msra.gmra.mxu2 %vm142_vm0, %v920_v1  ;;  %1298 = vrcp.f32 %v755_v20 }
 0x552   : > { %v765_v26 = vpack.c.bf16 %v761_v25, %v761_v25 }
 0x554   : > { %1217 = vmatmul.msk.bf16.vlgmr.msrb.gmra.mxu1 %vm142_vm0, %v765_v26 }
 0x557   : > { %v1299_v27 = vpop.eup %1298 }
 0x558   : > { %v763_v28 = vmul.f32 %v1299_v27, %v1291_v53 }
 0x55a   : > { %v767_v29 = vpack.c.bf16 %v763_v28, %v763_v28 }
 0x55c   : > { %1219 = vmatmul.msk.bf16.vlgmr.msrb.gmra.mxu3 %vm142_vm0, %v767_v29 }
 0x564   : > { %1221 = vmatmul.msk.bf16.vlgmr.msra.gmra.mxu1 %vm142_vm0, %v897_v30 }
 0x568   : > { %v874_v31 = vpop.permute.xlu1 %873 }
 0x569   : > { %1220 = vmatmul.msk.bf16.vlgmr.msra.gmra.mxu0 %vm142_vm0, %v874_v31 }
 0x56c   : > { %1223 = vmatmul.msk.bf16.vlgmr.msra.gmra.mxu3 %vm142_vm0, %v943_v0 }
 0x5c4   : > { %v1548_v32 = vpop.f32.mrf.mxu2 }
 0x5c8   : > { %v1550_v33 = vpop.f32.mrf.mxu0 }
 0x5cc   : > { %v829_v34 = vpop.f32.mrf.mxu2 }
 0x5d0   : > { %v787_v35 = vpop.f32.mrf.mxu0 }
 0x5d1   : > { %v806_v49 = vpop.f32.mrf.mxu1 }
 0x5d4   : > { %v938_v36 = vpop.f32.mrf.mxu2 }
 0x5d5   : > { %v971_v37 = vsel %vm142_vm0, %v938_v36, -inf }
 0x5d6   : > { %972 = vmax.xlane.f32.xlu0 %v971_v37 }
 0x5d9   : > { %v808_v38 = vpop.f32.mrf.mxu1 }
 0x5dc   : > { %v940_v39 = vpop.f32.mrf.mxu2 }
 0x5df   : > { %v848_v47 = vpop.f32.mrf.mxu3 }
 0x5e1   : > { %v915_v40 = vpop.f32.mrf.mxu1 }
 0x5e2   : > { %v968_v41 = vsel %vm142_vm0, %v915_v40, -inf }
 0x5e3   : > { %969 = vmax.xlane.f32.xlu0 %v968_v41 }
 0x5e6   : > { %v892_v42 = vpop.f32.mrf.mxu0 }
 0x5e7   : > { %v850_v43 = vpop.f32.mrf.mxu3  ;;  %v965_v61 = vsel %vm142_vm0, %v892_v42, -inf }
 0x5e8   : > { %966 = vmax.xlane.f32.xlu2 %v965_v61 }
 0x5e9   : > { %v917_v44 = vpop.f32.mrf.mxu1 }
 0x5ee   : > { %v894_v45 = vpop.f32.mrf.mxu0 }
 0x5ef   : > { %v961_v46 = vpop.f32.mrf.mxu3 }
 0x5f0   : > { %v974_v48 = vsel %vm142_vm0, %v961_v46, -inf }
 0x5f1   : > { %975 = vmax.xlane.f32.xlu1 %v974_v48 }
 0x5f7   : > { %v963_v50 = vpop.f32.mrf.mxu3 }
 0x600   : > { %1055 = vrot.lane.b32.xlu2 %v1364_v6, %s1334_s23 }
 0x649   : > { %v973_v51 = vpop.xlane.xlu0 %972 }
 0x64a   : > { %v979_v54 = vsub.f32 %v938_v36, %v973_v51 }
 0x64c   : > { %v985_v58 = vmul.f32 1.442695, %v979_v54 }
 0x656   : > { %v970_v52 = vpop.xlane.xlu0 %969 }
 0x657   : > { %v978_v53 = vsub.f32 %v915_v40, %v970_v52 }
 0x659   : > { %v983_v55 = vmul.f32 1.442695, %v978_v53 }
 0x65b   : > { %1300 = vpow2.f32 %v983_v55  ;;  %v967_v56 = vpop.xlane.xlu2 %966 }
 0x65c   : > { %v977_v57 = vsub.f32 %v892_v42, %v967_v56 }
 0x65e   : > { %v981_v59 = vmul.f32 1.442695, %v977_v57 }
 0x660   : > { %1302 = vpow2.f32 %v981_v59 }
 0x661   : > { %v1301_v60 = vpop.eup %1300  ;;  %1304 = vpow2.f32 %v985_v58 }
 0x662   : > { %v992_v62 = vsel %vm142_vm0, %v1301_v60, 0.0 }
 0x663   : > { %993 = vadd.xlane.f32.xlu1 %v992_v62  ;;  %v1056_v13 = vpop.permute.xlu2 %1055 }
 0x664   : > { %v976_v63 = vpop.xlane.xlu1 %975  ;;  %v1061_v19 = vsel %vm287_vm1, %v1056_v13, 0 }
 0x665   : > { %v980_v0 = vsub.f32 %v961_v46, %v976_v63  ;;  %1070 = vmatpush.bf16.msrb.mxu2 %v1061_v19 }
 0x666   : > { %v1303_v1 = vpop.eup %1302 }
 0x667   : > { %v1305_v6 = vpop.eup %1304  ;;  %v987_v2 = vmul.f32 1.442695, %v980_v0  ;;  %v989_v3 = vsel %vm142_vm0, %v1303_v1, 0.0 }
 0x668   : > { %990 = vadd.xlane.f32.xlu0 %v989_v3  ;;  %v995_v4 = vsel %vm142_vm0, %v1305_v6, 0.0 }
 0x669   : > { %1306 = vpow2.f32 %v987_v2 }
 0x66b   : > { %996 = vadd.xlane.f32.xlu1 %v995_v4 }
 0x66f   : > { %v1307_v5 = vpop.eup %1306 }
 0x670   : > { %v998_v8 = vsel %vm142_vm0, %v1307_v5, 0.0 }
 0x671   : > { %999 = vadd.xlane.f32.xlu2 %v998_v8 }
 0x67c   : > { %1076 = vrot.lane.b32.xlu0 %v1370_v10, %s1334_s23 }
 0x684   : > { %1013 = vrot.lane.b32.xlu1 %v1366_v7, %s1334_s23  ;;  %611 = vrot.lane.b32.xlu0 %v1500_v15, %s1335_s24 }
 0x689   : > { %1034 = vrot.lane.b32.xlu2 %v1372_v11, %s1334_s23 }
 0x68c   : > { %613 = vrot.lane.b32.xlu1 %v1498_v12, %s1335_s24  ;;  %615 = vrot.lane.b32.xlu0 %v1496_v9, %s1335_s24 }
 0x691   : > { %856 = vrot.lane.b32.xlu2 %v1550_v33, %s1336_s25 }
 0x694   : > { %858 = vrot.lane.b32.xlu1 %v806_v49, %s1336_s25  ;;  %617 = vrot.lane.b32.xlu0 %v1502_v16, %s1335_s24 }
 0x69c   : > { %860 = vrot.lane.b32.xlu1 %v1548_v32, %s1336_s25  ;;  %862 = vrot.lane.b32.xlu0 %v848_v47, %s1336_s25 }
 0x6d6   : > { %v994_v7 = vpop.xlane.xlu1 %993 }
 0x6db   : > { %v991_v11 = vpop.xlane.xlu0 %990 }
 0x6de   : > { %v997_v10 = vpop.xlane.xlu1 %996 }
 0x6df   : > { %1308 = vrcp.f32 %v997_v10 }
 0x6e0   : > { %1310 = vrcp.f32 %v994_v7 }
 0x6e4   : > { %v1000_v15 = vpop.xlane.xlu2 %999 }
 0x6e5   : > { %v1309_v14 = vpop.eup %1308  ;;  %1312 = vrcp.f32 %v1000_v15 }
 0x6e6   : > { %v1007_v12 = vmul.f32 %v1309_v14, %v1305_v6  ;;  %v1311_v17 = vpop.eup %1310  ;;  %1314 = vrcp.f32 %v991_v11 }
 0x6e7   : > { %v1006_v21 = vmul.f32 %v1311_v17, %v1301_v60 }
 0x6e8   : > { %v1011_v9 = vpack.c.bf16 %v1007_v12, %v1007_v12 }
 0x6e9   : > { %v1010_v25 = vpack.c.bf16 %v1006_v21, %v1006_v21 }
 0x6ea   : > { %1226 = vmatmul.msk.bf16.vlgmr.msrb.gmra.mxu2 %vm142_vm0, %v1011_v9 }
 0x6eb   : > { %v1313_v18 = vpop.eup %1312 }
 0x6ec   : > { %v1035_v16 = vpop.permute.xlu2 %1034  ;;  %v1008_v22 = vmul.f32 %v1313_v18, %v1307_v5  ;;  %v1315_v27 = vpop.eup %1314 }
 0x6ed   : > { %v1040_v23 = vsel %vm287_vm1, %v1035_v16, 0  ;;  %v1005_v28 = vmul.f32 %v1315_v27, %v1303_v1 }
 0x6ee   : > { %v1077_v24 = vpop.permute.xlu0 %1076  ;;  %1049 = vmatpush.bf16.msrb.mxu1 %v1040_v23  ;;  %v1012_v26 = vpack.c.bf16 %v1008_v22, %v1008_v22 }
 0x6ef   : > { %v1082_v20 = vsel %vm287_vm1, %v1077_v24, 0  ;;  %v1009_v33 = vpack.c.bf16 %v1005_v28, %v1005_v28 }
 0x6f0   : > { %1091 = vmatpush.bf16.msrb.mxu3 %v1082_v20 }
 0x6f1   : > { %1225 = vmatmul.msk.bf16.vlgmr.msrb.gmra.mxu1 %vm142_vm0, %v1010_v25 }
 0x6f3   : > { %1227 = vmatmul.msk.bf16.vlgmr.msrb.gmra.mxu3 %vm142_vm0, %v1012_v26 }
 0x6f4   : > { %v857_v31 = vpop.permute.xlu2 %856 }
 0x6f6   : > { %v1014_v29 = vpop.permute.xlu1 %1013  ;;  %v612_v30 = vpop.permute.xlu0 %611 }
 0x6f7   : > { %v1019_v32 = vsel %vm287_vm1, %v1014_v29, 0  ;;  %624 = vst.msk [vmem:[#allocation2] sm:$0xff] %vm623_vm2, %v612_v30 }
 0x6f8   : > { %1028 = vmatpush.bf16.msrb.mxu0 %v1019_v32  ;;  %869 = vst.msk [vmem:[#allocation2] sm:$0xff] %vm868_vm3, %v857_v31 }
 0x6fb   : > { %1224 = vmatmul.msk.bf16.vlgmr.msrb.gmra.mxu0 %vm142_vm0, %v1009_v33 }
 0x6fe   : > { %v614_v34 = vpop.permute.xlu1 %613  ;;  %v616_v35 = vpop.permute.xlu0 %615 }
 0x6ff   : > { %625 = vst.msk [vmem:[#allocation2 + $0x8] sm:$0xff] %vm623_vm2, %v614_v34 }
 0x700   : > { %626 = vst.msk [vmem:[#allocation2 + $0x10] sm:$0xff] %vm623_vm2, %v616_v35 }
 0x706   : > { %v859_v49 = vpop.permute.xlu1 %858  ;;  %v618_v36 = vpop.permute.xlu0 %617 }
 0x707   : > { %870 = vst.msk [vmem:[#allocation2 + $0x8] sm:$0xff] %vm868_vm3, %v859_v49 }
 0x708   : > { %627 = vst.msk [vmem:[#allocation2 + $0x18] sm:$0xff] %vm623_vm2, %v618_v36 }
 0x70e   : > { %v861_v37 = vpop.permute.xlu1 %860  ;;  %v863_v38 = vpop.permute.xlu0 %862 }
 0x70f   : > { %871 = vst.msk [vmem:[#allocation2 + $0x10] sm:$0xff] %vm868_vm3, %v861_v37 }
 0x710   : > { %872 = vst.msk [vmem:[#allocation2 + $0x18] sm:$0xff] %vm868_vm3, %v863_v38 }
 0x76d   : > { %v1072_v39 = vpop.f32.mrf.mxu2 }
 0x76e   : > { %1105 = vrot.lane.b32.xlu1 %v1072_v39, %s1337_s26  ;;  %v1051_v47 = vpop.f32.mrf.mxu1 }
 0x775   : > { %v1074_v40 = vpop.f32.mrf.mxu2 }
 0x776   : > { %v1053_v41 = vpop.f32.mrf.mxu1  ;;  %v1093_v42 = vpop.f32.mrf.mxu3 }
 0x778   : > { %v1030_v43 = vpop.f32.mrf.mxu0 }
 0x779   : > { %1101 = vrot.lane.b32.xlu2 %v1030_v43, %s1337_s26 }
 0x77e   : > { %v1095_v61 = vpop.f32.mrf.mxu3 }
 0x780   : > { %v1032_v44 = vpop.f32.mrf.mxu0 }
 0x781   : > { %1103 = vrot.lane.b32.xlu2 %v1051_v47, %s1337_s26 }
 0x789   : > { %1107 = vrot.lane.b32.xlu2 %v1093_v42, %s1337_s26 }
 0x7d3   : > { %v1102_v45 = vpop.permute.xlu2 %1101 }
 0x7d4   : > { %1114 = vst.msk [vmem:[#allocation2] sm:$0xff] %vm1113_vm4, %v1102_v45 }
 0x7db   : > { %v1118_v46 = vld [vmem:[#allocation2] sm:$0xff]  ;;  %v1104_v48 = vpop.permute.xlu2 %1103 }
 0x7dc   : > { %v1122_v50 = vpack.c.bf16 %v1118_v46, %v1118_v46  ;;  %1115 = vst.msk [vmem:[#allocation2 + $0x8] sm:$0xff] %vm1113_vm4, %v1104_v48 }
 0x7de   : > { %1127 = vst.msk [vmem:[%s118_s29] sm:$0xf] %vm1126_vm5, %v1122_v50 }
 0x7e0   : > { %v1106_v51 = vpop.permute.xlu1 %1105 }
 0x7e1   : > { %1116 = vst.msk [vmem:[#allocation2 + $0x10] sm:$0xff] %vm1113_vm4, %v1106_v51 }
 0x7e3   : > { %v1119_v52 = vld [vmem:[#allocation2 + $0x8] sm:$0xff]  ;;  %v1108_v53 = vpop.permute.xlu2 %1107 }
 0x7e4   : > { %v1123_v54 = vpack.c.bf16 %v1119_v52, %v1119_v52  ;;  %1117 = vst.msk [vmem:[#allocation2 + $0x18] sm:$0xff] %vm1113_vm4, %v1108_v53 }
 0x7e6   : > { %1128 = vst.msk [vmem:[%s118_s29 + $0x4] sm:$0xf] %vm1126_vm5, %v1123_v54 }
 0x7e8   : > { %v1120_v55 = vld [vmem:[#allocation2 + $0x10] sm:$0xff] }
 0x7e9   : > { %v1124_v56 = vpack.c.bf16 %v1120_v55, %v1120_v55 }
 0x7eb   : > { %1129 = vst.msk [vmem:[%s118_s29 + $0x8] sm:$0xf] %vm1126_vm5, %v1124_v56  ;;  %v1121_v57 = vld [vmem:[#allocation2 + $0x18] sm:$0xff] }
 0x7ec   : > { %v1125_v58 = vpack.c.bf16 %v1121_v57, %v1121_v57 }
 0x7ee   : > { %1130 = vst.msk [vmem:[%s118_s29 + $0xc] sm:$0xf] %vm1126_vm5, %v1125_v58 }
 0x7ef PF: > { %s11_s6 = sadd.s32 1, %s1322_s6  }
 0x7f0   : > { %p8_p4 = scmp.ge.s32.totalorder %s11_s6, 4  }
 0x7f2   :  { %10 = sbr.rel (!%p8_p4) target bundleno = 1 (0x1), region = 54 }

// kernel: videollama_forward.39
= control target key start
LH: loop header
LB: loop body
LE: loop exit
PB: predicated region body
PF: predicated region fallthrough
CT: control target
= control target key end

     0   :  { %8 = vsyncpa [#allocation3], 0  ;;  %s659_s0 = inlined_call_operand.vmem [shape: f32[64,32], index: 0, kind: input, shape index: {}]   ;;  %s660_s1 = inlined_call_operand.hbm [shape: bf16[32,32], index: 1, kind: input, shape index: {}]   ;;  %s661_s2 = inlined_call_operand.hbm [shape: f32[1,32], index: 2, kind: input, shape index: {}]   ;;  %s662_s3 = inlined_call_operand.vmem [shape: bf16[64,32], index: 3, kind: output, shape index: {}]  }
   0x1   :  { %9 = vsyncpa [#allocation5], 0  ;;  %s594_s12 = smov 0   ;;  %s596_s13 = smov 0  }
   0x2   :  { %s598_s14 = smov 0  }
   0x3 LB: > { %s401_s15 = sadd.s32 4294967295, %s568_s14   ;;  %s27_s16 = sadd.s32 1, %s564_s13  ;;  %s568_s14 = sphi %s598_s14, %s15_s14   ;;  %s564_s13 = sphi %s596_s13, %s666_s13   ;;  %s560_s12 = sphi %s594_s12, %s665_s12  }
   0x4   : > { %p29_p0 = scmp.ge.s32.totalorder %s27_s16, 2  ;;  %p403_p1 = scmp.ge.s32.totalorder %s568_s14, 1 }
   0x5   : > { %p138_p2 = scmp.lt.s32.totalorder %s568_s14, 3  ;;  %p619_p4 = scmp.eq.s32.totalorder %s401_s15, 0 }
   0x6   : > { %s668_s16 = smov (%p29_p0, %s27_s16), 0  ;;  %s151_s21 = sshll.u32 %s660_s1, 4  ;;  %s152_s21 = int_to_ptr.hbm [resolvable:$true] %s151_s21 }
   0x7   : > { %p615_p3 = pnand %p403_p1, %p138_p2  ;;  %s570_s22 = smov [#allocation2]  }
   0x8   : > { %s153_s23 = sshll.u32 %s570_s22, 4  ;;  %s167_s26 = sshll.u32 %s661_s2, 4  ;;  %s154_s23 = int_to_ptr.vmem [resolvable:$true] %s153_s23  ;;  %s168_s26 = int_to_ptr.hbm [resolvable:$true] %s167_s26 }
   0x9   : > { %p438_p5 = pneg %p615_p3  ;;  %s571_s27 = smov 64  }
   0xa   : > { %s572_s28 = smov 4   ;;  %s573_s29 = smov [#allocation4]  }
   0xb   : > { %p439_p6 = pnand %p619_p4, %p438_p5  ;;  %s169_s30 = sshll.u32 %s573_s29, 4  ;;  %s170_s30 = int_to_ptr.vmem [resolvable:$true] %s169_s30 }
   0xc   : > { %191 = sbr.rel (%p615_p3) target bundleno = 169 (0xa9), region = 32 }
   0xd   : > { %441 = dma.hbm_to_vmem [thread:$0]  (!%p439_p6), %s152_s21, 256, %s154_s23, [#allocation3], %s571_s27, %s571_s27, %s572_s28  }
   0xe   : > { %444 = dma.hbm_to_vmem [thread:$0]  (!%p439_p6), %s168_s26, 16, %s170_s30, [#allocation5]  }
  0x11   : > { %551 = dma.done.wait (%p619_p4), [#allocation3], 256  }
  0x12   : > { %553 = vsyncadd (%p619_p4), [#allocation3], 4294967040 }
  0x13   : > { %555 = dma.done.wait (%p619_p4), [#allocation5], 16  }
  0x14   : > { %557 = vsyncadd (%p619_p4), [#allocation5], 4294967280  ;;  %s410_s4 = sshll.u32 %s560_s12, 2  ;;  %v427_v0 = vld [vmem:[#allocation2 + $0x8] sm:$0xff]  ;;  %v426_v1 = vld [vmem:[#allocation2] sm:$0xff]  ;;  %vm266_vm0 = vcmask 261120  }
  0x15   : > { %p225_p7 = scmp.lt.s32.totalorder %s410_s4, 7  ;;  %279 = vmatpush.bf16.msra.mxu0 %v427_v0  ;;  %428 = vmatpush.bf16.msra.mxu1 %v427_v0  ;;  %v477_v8 = vld [vmem:[#allocation4] ss:$0 sm:$0xff]  ;;  %vm296_vm1 = vcmask 257024  }
  0x17   : > { %s670_s4 = smov (!%p225_p7, %s410_s4), 7 }
  0x18   : > { %s411_s5 = sshll.u32 %s670_s4, 3  ;;  %s413_s9 = sshll.u32 %s670_s4, 2 }
  0x19   : > { %s228_s8 = scalar_lea.vmem %s659_s0, %s411_s5  ;;  %280 = vmatpush.bf16.msra.mxu0 %v426_v1  ;;  %429 = vmatpush.bf16.msra.mxu1 %v426_v1  ;;  %s237_s12 = scalar_lea.vmem %s662_s3, %s413_s9 }
  0x1a   : > { %v240_v2 = vld [vmem:[%s228_s8] sm:$0xff]  ;;  %v241_v3 = vld [vmem:[%s228_s8 + $0x8] sm:$0xff]  ;;  %v242_v4 = vld [vmem:[%s228_s8 + $0x10] sm:$0xff] }
  0x1b   : > { %v243_v5 = vld [vmem:[%s228_s8 + $0x18] sm:$0xff]  ;;  %v244_v6 = vpack.c.bf16 %v241_v3, %v240_v2 }
  0x1c   : > { %v245_v7 = vpack.c.bf16 %v243_v5, %v242_v4 }
  0x1d   : > { %422 = vmatmul.msk.bf16.vlgmr.msra.gmra.mxu0 %vm266_vm0, %v244_v6 }
  0x1e   : > { %423 = vmatmul.msk.bf16.vlgmr.msra.gmra.mxu1 %vm266_vm0, %v245_v7 }
  0x9a   : > { %v282_v9 = vpop.f32.mrf.mxu0 }
  0x9b   : > { %v287_v10 = vpop.f32.mrf.mxu1  ;;  %v283_v11 = vadd.f32 %v477_v8, %v282_v9 }
  0x9c   : > { %v288_v13 = vadd.f32 %v477_v8, %v287_v10 }
  0x9d   : > { %v292_v12 = vpack.c.bf16 %v283_v11, %v283_v11 }
  0x9e   : > { %v294_v19 = vpack.c.bf16 %v288_v13, %v288_v13 }
  0x9f   : > { %297 = vst.msk [vmem:[%s237_s12] sm:$0xf] %vm296_vm1, %v292_v12 }
  0xa0   : > { %299 = vst.msk [vmem:[%s237_s12 + $0x8] sm:$0xf] %vm296_vm1, %v294_v19 }
  0xa2   : > { %v284_v14 = vpop.f32.mrf.mxu0 }
  0xa3   : > { %v289_v15 = vpop.f32.mrf.mxu1  ;;  %v285_v16 = vadd.f32 %v477_v8, %v284_v14 }
  0xa4   : > { %v290_v17 = vadd.f32 %v477_v8, %v289_v15 }
  0xa5   : > { %v293_v18 = vpack.c.bf16 %v285_v16, %v285_v16 }
  0xa6   : > { %v295_v20 = vpack.c.bf16 %v290_v17, %v290_v17 }
  0xa7   : > { %298 = vst.msk [vmem:[%s237_s12 + $0x4] sm:$0xf] %vm296_vm1, %v293_v18 }
  0xa8   : > { %300 = vst.msk [vmem:[%s237_s12 + $0xc] sm:$0xf] %vm296_vm1, %v295_v20 }
  0xa9 PF: > { %s15_s14 = sadd.s32 1, %s568_s14   ;;  %s665_s12 = smov %s564_s13 }
  0xaa   : > { %p12_p8 = scmp.ge.s32.totalorder %s15_s14, 4   ;;  %s666_s13 = smov %s668_s16 }
  0xac   :  { %14 = sbr.rel (!%p12_p8) target bundleno = 3 (0x3), region = 73 }
  0xb1   :  { %329 = vsyncpa [#allocation3], 1 }
  0xb2   :  { %331 = vsyncpa [#allocation3 + $0x1], 1 }
  0xb3   :  { %332 = vsyncpa [#allocation5], 1 }

// kernel: videollama_forward.40
= control target key start
LH: loop header
LB: loop body
LE: loop exit
PB: predicated region body
PF: predicated region fallthrough
CT: control target
= control target key end

     0   :  { %8 = vsyncpa [#allocation3], 0  ;;  %s739_s0 = inlined_call_operand.vmem [shape: f32[128,64], index: 0, kind: input, shape index: {}]   ;;  %s740_s1 = inlined_call_operand.hbm [shape: bf16[64,64], index: 1, kind: input, shape index: {}]   ;;  %s741_s2 = inlined_call_operand.hbm [shape: f32[1,64], index: 2, kind: input, shape index: {}]   ;;  %s742_s3 = inlined_call_operand.vmem [shape: bf16[128,64], index: 3, kind: output, shape index: {}]  }
   0x1   :  { %9 = vsyncpa [#allocation5], 0  ;;  %s662_s12 = smov 0   ;;  %s664_s13 = smov 0  }
   0x2   :  { %s666_s14 = smov 0  }
   0x3 LB: > { %s447_s15 = sadd.s32 4294967295, %s636_s14   ;;  %s27_s16 = sadd.s32 1, %s632_s13  ;;  %s636_s14 = sphi %s666_s14, %s15_s14   ;;  %s632_s13 = sphi %s664_s13, %s746_s13   ;;  %s628_s12 = sphi %s662_s12, %s745_s12  }
   0x4   : > { %p29_p0 = scmp.ge.s32.totalorder %s27_s16, 2  ;;  %p449_p1 = scmp.ge.s32.totalorder %s636_s14, 1 }
   0x5   : > { %p138_p2 = scmp.lt.s32.totalorder %s636_s14, 3  ;;  %p687_p4 = scmp.eq.s32.totalorder %s447_s15, 0 }
   0x6   : > { %s748_s16 = smov (%p29_p0, %s27_s16), 0  ;;  %s151_s21 = sshll.u32 %s740_s1, 4  ;;  %s152_s21 = int_to_ptr.hbm [resolvable:$true] %s151_s21 }
   0x7   : > { %p683_p3 = pnand %p449_p1, %p138_p2  ;;  %s638_s22 = smov [#allocation2]  }
   0x8   : > { %s153_s23 = sshll.u32 %s638_s22, 4  ;;  %s167_s26 = sshll.u32 %s741_s2, 4  ;;  %s154_s23 = int_to_ptr.vmem [resolvable:$true] %s153_s23  ;;  %s168_s26 = int_to_ptr.hbm [resolvable:$true] %s167_s26 }
   0x9   : > { %p506_p5 = pneg %p683_p3  ;;  %s639_s27 = smov 64  }
   0xa   : > { %s640_s28 = smov 4   ;;  %s641_s29 = smov [#allocation4]  }
   0xb   : > { %p507_p6 = pnand %p687_p4, %p506_p5  ;;  %s169_s30 = sshll.u32 %s641_s29, 4  ;;  %s170_s30 = int_to_ptr.vmem [resolvable:$true] %s169_s30 }
   0xc   : > { %191 = sbr.rel (%p683_p3) target bundleno = 183 (0xb7), region = 32 }
   0xd   : > { %509 = dma.hbm_to_vmem [thread:$0]  (!%p507_p6), %s152_s21, 512, %s154_s23, [#allocation3], %s639_s27, %s639_s27, %s640_s28  }
   0xe   : > { %512 = dma.hbm_to_vmem [thread:$0]  (!%p507_p6), %s168_s26, 16, %s170_s30, [#allocation5]  }
  0x11   : > { %619 = dma.done.wait (%p687_p4), [#allocation3], 512  }
  0x12   : > { %621 = vsyncadd (%p687_p4), [#allocation3], 4294966784 }
  0x13   : > { %623 = dma.done.wait (%p687_p4), [#allocation5], 16  }
  0x14   : > { %625 = vsyncadd (%p687_p4), [#allocation5], 4294967280  ;;  %s456_s4 = sshll.u32 %s628_s12, 3  ;;  %v485_v0 = vld [vmem:[#allocation2 + $0x18] sm:$0xff]  ;;  %v484_v1 = vld [vmem:[#allocation2 + $0x10] sm:$0xff]  ;;  %vm288_vm0 = vcmask 523264  }
  0x15   : > { %p225_p7 = scmp.lt.s32.totalorder %s456_s4, 15  ;;  %305 = vmatpush.bf16.msra.mxu0 %v485_v0  ;;  %486 = vmatpush.bf16.msra.mxu1 %v485_v0  ;;  %v483_v2 = vld [vmem:[#allocation2 + $0x8] sm:$0xff]  ;;  %v482_v3 = vld [vmem:[#allocation2] sm:$0xff]  ;;  %vm338_vm1 = vcmask 519168  }
  0x16   : > { %487 = vmatpush.bf16.msra.mxu2 %v485_v0  ;;  %488 = vmatpush.bf16.msra.mxu3 %v485_v0  ;;  %v545_v16 = vld [vmem:[#allocation4] ss:$0 sm:$0xff] }
  0x17   : > { %s750_s4 = smov (!%p225_p7, %s456_s4), 15 }
  0x18   : > { %s457_s5 = sshll.u32 %s750_s4, 3  ;;  %s459_s9 = sshll.u32 %s750_s4, 2 }
  0x19   : > { %306 = vmatpush.bf16.msra.mxu0 %v484_v1  ;;  %489 = vmatpush.bf16.msra.mxu1 %v484_v1  ;;  %s228_s8 = scalar_lea.vmem %s739_s0, %s457_s5  ;;  %s237_s12 = scalar_lea.vmem %s742_s3, %s459_s9 }
  0x1a   : > { %490 = vmatpush.bf16.msra.mxu2 %v484_v1  ;;  %491 = vmatpush.bf16.msra.mxu3 %v484_v1  ;;  %v240_v4 = vld [vmem:[%s228_s8] sm:$0xff]  ;;  %v241_v5 = vld [vmem:[%s228_s8 + $0x8] sm:$0xff]  ;;  %v242_v6 = vld [vmem:[%s228_s8 + $0x10] sm:$0xff] }
  0x1b   : > { %v243_v7 = vld [vmem:[%s228_s8 + $0x18] sm:$0xff]  ;;  %v244_v8 = vld [vmem:[%s228_s8 + $0x20] sm:$0xff]  ;;  %v245_v9 = vld [vmem:[%s228_s8 + $0x28] sm:$0xff]  ;;  %v248_v12 = vpack.c.bf16 %v241_v5, %v240_v4 }
  0x1c   : > { %v246_v10 = vld [vmem:[%s228_s8 + $0x30] sm:$0xff]  ;;  %v247_v11 = vld [vmem:[%s228_s8 + $0x38] sm:$0xff]  ;;  %v249_v13 = vpack.c.bf16 %v243_v7, %v242_v6  ;;  %v250_v14 = vpack.c.bf16 %v245_v9, %v244_v8 }
  0x1d   : > { %307 = vmatpush.bf16.msra.mxu0 %v483_v2  ;;  %492 = vmatpush.bf16.msra.mxu1 %v483_v2  ;;  %v251_v15 = vpack.c.bf16 %v247_v11, %v246_v10 }
  0x1e   : > { %493 = vmatpush.bf16.msra.mxu2 %v483_v2  ;;  %494 = vmatpush.bf16.msra.mxu3 %v483_v2 }
  0x21   : > { %308 = vmatpush.bf16.msra.mxu0 %v482_v3  ;;  %495 = vmatpush.bf16.msra.mxu1 %v482_v3 }
  0x22   : > { %496 = vmatpush.bf16.msra.mxu2 %v482_v3  ;;  %497 = vmatpush.bf16.msra.mxu3 %v482_v3 }
  0x24   : > { %476 = vmatmul.msk.bf16.vlgmr.msra.gmra.mxu0 %vm288_vm0, %v248_v12  ;;  %477 = vmatmul.msk.bf16.vlgmr.msra.gmra.mxu1 %vm288_vm0, %v249_v13 }
  0x25   : > { %478 = vmatmul.msk.bf16.vlgmr.msra.gmra.mxu2 %vm288_vm0, %v250_v14  ;;  %479 = vmatmul.msk.bf16.vlgmr.msra.gmra.mxu3 %vm288_vm0, %v251_v15 }
  0xa1   : > { %v310_v17 = vpop.f32.mrf.mxu0  ;;  %v315_v18 = vpop.f32.mrf.mxu1 }
  0xa2   : > { %v311_v19 = vadd.f32 %v545_v16, %v310_v17  ;;  %v316_v20 = vadd.f32 %v545_v16, %v315_v18 }
  0xa4   : > { %v330_v21 = vpack.c.bf16 %v311_v19, %v311_v19  ;;  %v332_v22 = vpack.c.bf16 %v316_v20, %v316_v20 }
  0xa6   : > { %339 = vst.msk [vmem:[%s237_s12] sm:$0xf] %vm338_vm1, %v330_v21 }
  0xa7   : > { %341 = vst.msk [vmem:[%s237_s12 + $0x8] sm:$0xf] %vm338_vm1, %v332_v22 }
  0xa8   : > { %v320_v23 = vpop.f32.mrf.mxu2  ;;  %v325_v24 = vpop.f32.mrf.mxu3 }
  0xa9   : > { %v321_v25 = vadd.f32 %v545_v16, %v320_v23  ;;  %v326_v26 = vadd.f32 %v545_v16, %v325_v24  ;;  %v312_v27 = vpop.f32.mrf.mxu0  ;;  %v317_v28 = vpop.f32.mrf.mxu1 }
  0xaa   : > { %v313_v29 = vadd.f32 %v545_v16, %v312_v27  ;;  %v318_v30 = vadd.f32 %v545_v16, %v317_v28 }
  0xab   : > { %v334_v31 = vpack.c.bf16 %v321_v25, %v321_v25  ;;  %v336_v32 = vpack.c.bf16 %v326_v26, %v326_v26 }
  0xac   : > { %v331_v33 = vpack.c.bf16 %v313_v29, %v313_v29  ;;  %v333_v34 = vpack.c.bf16 %v318_v30, %v318_v30 }
  0xad   : > { %343 = vst.msk [vmem:[%s237_s12 + $0x10] sm:$0xf] %vm338_vm1, %v334_v31 }
  0xae   : > { %345 = vst.msk [vmem:[%s237_s12 + $0x18] sm:$0xf] %vm338_vm1, %v336_v32 }
  0xaf   : > { %340 = vst.msk [vmem:[%s237_s12 + $0x4] sm:$0xf] %vm338_vm1, %v331_v33 }
  0xb0   : > { %342 = vst.msk [vmem:[%s237_s12 + $0xc] sm:$0xf] %vm338_vm1, %v333_v34  ;;  %v322_v35 = vpop.f32.mrf.mxu2  ;;  %v327_v36 = vpop.f32.mrf.mxu3 }
  0xb1   : > { %v323_v37 = vadd.f32 %v545_v16, %v322_v35  ;;  %v328_v38 = vadd.f32 %v545_v16, %v327_v36 }
  0xb3   : > { %v335_v39 = vpack.c.bf16 %v323_v37, %v323_v37  ;;  %v337_v40 = vpack.c.bf16 %v328_v38, %v328_v38 }
  0xb5   : > { %344 = vst.msk [vmem:[%s237_s12 + $0x14] sm:$0xf] %vm338_vm1, %v335_v39 }
  0xb6   : > { %346 = vst.msk [vmem:[%s237_s12 + $0x1c] sm:$0xf] %vm338_vm1, %v337_v40 }
  0xb7 PF: > { %s15_s14 = sadd.s32 1, %s636_s14   ;;  %s745_s12 = smov %s632_s13 }
  0xb8   : > { %p12_p8 = scmp.ge.s32.totalorder %s15_s14, 4   ;;  %s746_s13 = smov %s748_s16 }
  0xba   :  { %14 = sbr.rel (!%p12_p8) target bundleno = 3 (0x3), region = 73 }
  0xbf   :  { %375 = vsyncpa [#allocation3], 1 }
  0xc0   :  { %377 = vsyncpa [#allocation3 + $0x1], 1 }
  0xc1   :  { %378 = vsyncpa [#allocation5], 1 }

// kernel: videollama_forward.42
= control target key start
LH: loop header
LB: loop body
LE: loop exit
PB: predicated region body
PF: predicated region fallthrough
CT: control target
= control target key end

     0   :  { %11 = vsyncpa [#allocation3], 0  ;;  %s1034_s0 = inlined_call_operand.vmem [shape: bf16[64,32], index: 0, kind: input, shape index: {}]   ;;  %s1035_s1 = inlined_call_operand.hbm [shape: bf16[32,32], index: 1, kind: input, shape index: {}]   ;;  %s1036_s2 = inlined_call_operand.hbm [shape: f32[1,32], index: 2, kind: input, shape index: {}]   ;;  %s1037_s3 = inlined_call_operand.vmem [shape: f32[64,32], index: 3, kind: input, shape index: {}]   ;;  %s1038_s4 = inlined_call_operand.hbm [shape: f32[1,32], index: 4, kind: input, shape index: {}]   ;;  %s1039_s5 = inlined_call_operand.hbm [shape: f32[1,32], index: 5, kind: input, shape index: {}]   ;;  %s1040_s6 = inlined_call_operand.vmem [shape: f32[64,32], index: 6, kind: output, shape index: {}]  }
   0x1   :  { %12 = vsyncpa [#allocation5], 0 }
   0x2   :  { %13 = vsyncpa [#allocation8], 0  ;;  %s923_s21 = smov 0  }
   0x3 LB: > { %s212_s24 = sshll.u32 %s1036_s2, 4  ;;  %s631_s25 = sadd.s32 4294967295, %s879_s21   ;;  %s879_s21 = sphi %s923_s21, %s19_s21   ;;  %s213_s24 = int_to_ptr.hbm [resolvable:$true] %s212_s24 }
   0x4   : > { %p633_p0 = scmp.ge.s32.totalorder %s879_s21, 1  ;;  %p186_p1 = scmp.lt.s32.totalorder %s879_s21, 3 }
   0x5   : > { %p936_p2 = scmp.eq.s32.totalorder %s631_s25, 0  ;;  %s881_s28 = smov [#allocation4]  }
   0x6   : > { %p940_p3 = pnand %p633_p0, %p186_p1  ;;  %s214_s29 = sshll.u32 %s881_s28, 4  ;;  %s215_s29 = int_to_ptr.vmem [resolvable:$true] %s214_s29 }
   0x7   : > { %s197_s8 = sshll.u32 %s1035_s1, 4  ;;  %s882_s10 = smov [#allocation2]   ;;  %s198_s8 = int_to_ptr.hbm [resolvable:$true] %s197_s8 }
   0x8   : > { %p692_p4 = pneg %p940_p3  ;;  %s199_s11 = sshll.u32 %s882_s10, 4  ;;  %s200_s11 = int_to_ptr.vmem [resolvable:$true] %s199_s11 }
   0x9   : > { %s224_s14 = sshll.u32 %s1038_s4, 4  ;;  %s883_s15 = smov 64   ;;  %s225_s14 = int_to_ptr.hbm [resolvable:$true] %s224_s14 }
   0xa   : > { %p951_p5 = pnand %p936_p2, %p692_p4  ;;  %s884_s16 = smov 4  }
   0xb   : > { %s885_s17 = smov [#allocation6]   ;;  %s236_s22 = sshll.u32 %s1039_s5, 4  ;;  %s237_s22 = int_to_ptr.hbm [resolvable:$true] %s236_s22 }
   0xc   : > { %698 = dma.hbm_to_vmem [thread:$0]  (!%p951_p5), %s213_s24, 16, %s215_s29, [#allocation5]  }
   0xd   : > { %695 = dma.hbm_to_vmem [thread:$0]  (!%p951_p5), %s198_s8, 256, %s200_s11, [#allocation3], %s883_s15, %s883_s15, %s884_s16  }
   0xe   : > { %s226_s18 = sshll.u32 %s885_s17, 4  ;;  %s886_s23 = smov [#allocation7]   ;;  %s227_s18 = int_to_ptr.vmem [resolvable:$true] %s226_s18 }
   0xf   : > { %701 = dma.hbm_to_vmem [thread:$0]  (!%p951_p5), %s225_s14, 16, %s227_s18, [#allocation5]  }
  0x10   : > { %s238_s28 = sshll.u32 %s886_s23, 4  ;;  %269 = sbr.rel (%p940_p3) target bundleno = 442 (0x1ba), region = 44  ;;  %s239_s28 = int_to_ptr.vmem [resolvable:$true] %s238_s28 }
  0x11   : > { %704 = dma.hbm_to_vmem [thread:$0]  (!%p951_p5), %s237_s22, 16, %s239_s28, [#allocation8]  }
  0x15   : > { %866 = dma.done.wait (%p936_p2), [#allocation3], 256  }
  0x16   : > { %868 = vsyncadd (%p936_p2), [#allocation3], 4294967040 }
  0x17   : > { %870 = dma.done.wait (%p936_p2), [#allocation5], 32  }
  0x18   : > { %872 = vsyncadd (%p936_p2), [#allocation5], 4294967264 }
  0x19   : > { %874 = dma.done.wait (%p936_p2), [#allocation8], 16  }
  0x1a   : > { %876 = vsyncadd (%p936_p2), [#allocation8], 4294967280  ;;  %s644_s24 = sshll.u32 %s631_s25, 2  ;;  %v673_v0 = vld [vmem:[#allocation2 + $0x8] sm:$0xff]  ;;  %v672_v1 = vld [vmem:[#allocation2] sm:$0xff]  ;;  %vm373_vm0 = vcmask 261120  }
  0x1b   : > { %p321_p6 = scmp.lt.s32.totalorder %s644_s24, 7  ;;  %386 = vmatpush.bf16.msra.mxu0 %v673_v0  ;;  %674 = vmatpush.bf16.msra.mxu1 %v673_v0  ;;  %v728_v4 = vld [vmem:[#allocation4] ss:$0 sm:$0xff]  ;;  %v887_v25 = vmov 32.0  }
  0x1c   : > { %731 = vrcp.f32 %v887_v25 }
  0x1d   : > { %s1045_s24 = smov (!%p321_p6, %s644_s24), 7 }
  0x1e   : > { %s645_s27 = sshll.u32 %s1045_s24, 2  ;;  %s647_s25 = sshll.u32 %s1045_s24, 3 }
  0x1f   : > { %s324_s7 = scalar_lea.vmem %s1034_s0, %s645_s27  ;;  %387 = vmatpush.bf16.msra.mxu0 %v672_v1  ;;  %675 = vmatpush.bf16.msra.mxu1 %v672_v1  ;;  %s330_s9 = scalar_lea.vmem %s1037_s3, %s647_s25 }
  0x20   : > { %v670_v2 = vld [vmem:[%s324_s7] sm:$0xff]  ;;  %v671_v3 = vld [vmem:[%s324_s7 + $0x8] sm:$0xff]  ;;  %v401_v7 = vld [vmem:[%s330_s9 + $0x10] sm:$0xff]  ;;  %s336_s12 = scalar_lea.vmem %s1040_s6, %s647_s25 }
  0x21   : > { %v399_v8 = vld [vmem:[%s330_s9] sm:$0xff]  ;;  %v402_v17 = vld [vmem:[%s330_s9 + $0x18] sm:$0xff]  ;;  %v400_v18 = vld [vmem:[%s330_s9 + $0x8] sm:$0xff] }
  0x22   : > { %666 = vmatmul.msk.bf16.vlgmr.msra.gmra.mxu0 %vm373_vm0, %v670_v2  ;;  %667 = vmatmul.msk.bf16.vlgmr.msra.gmra.mxu1 %vm373_vm0, %v671_v3  ;;  %v732_v26 = vpop.eup %731 }
  0x23   : > { %v420_v27 = vmul.f32 32.0, %v732_v26  ;;  %vm424_vm1 = vweird.f32 %v732_v26 }
  0x25   : > { %v421_v28 = vsub.f32 1.0, %v420_v27 }
  0x27   : > { %v422_v29 = vmul.f32 %v732_v26, %v421_v28 }
  0x29   : > { %v423_v30 = vadd.f32 %v732_v26, %v422_v29 }
  0x2b   : > { %v425_v31 = vsel %vm424_vm1, %v732_v26, %v423_v30 }
  0x9f   : > { %v389_v5 = vpop.f32.mrf.mxu0  ;;  %v394_v6 = vpop.f32.mrf.mxu1 }
  0xa0   : > { %v390_v9 = vadd.f32 %v728_v4, %v389_v5  ;;  %v395_v10 = vadd.f32 %v728_v4, %v394_v6 }
  0xa2   : > { %v405_v11 = vadd.f32 %v401_v7, %v395_v10  ;;  %v403_v12 = vadd.f32 %v399_v8, %v390_v9 }
  0xa4   : > { %v413_v13 = vsel %vm373_vm0, %v405_v11, 0.0  ;;  %v407_v14 = vsel %vm373_vm0, %v403_v12, 0.0 }
  0xa5   : > { %414 = vadd.xlane.f32.xlu1 %v413_v13  ;;  %408 = vadd.xlane.f32.xlu0 %v407_v14  ;;  %v729_v14 = vld [vmem:[#allocation6] ss:$0 sm:$0xff] }
  0xa7   : > { %v391_v15 = vpop.f32.mrf.mxu0  ;;  %v396_v16 = vpop.f32.mrf.mxu1 }
  0xa8   : > { %v392_v19 = vadd.f32 %v728_v4, %v391_v15  ;;  %v397_v20 = vadd.f32 %v728_v4, %v396_v16 }
  0xaa   : > { %v406_v21 = vadd.f32 %v402_v17, %v397_v20  ;;  %v404_v22 = vadd.f32 %v400_v18, %v392_v19  ;;  %v730_v19 = vld [vmem:[#allocation7] ss:$0 sm:$0xff] }
  0xac   : > { %v416_v23 = vsel %vm373_vm0, %v406_v21, 0.0  ;;  %v410_v24 = vsel %vm373_vm0, %v404_v22, 0.0 }
  0xad   : > { %417 = vadd.xlane.f32.xlu1 %v416_v23  ;;  %411 = vadd.xlane.f32.xlu0 %v410_v24 }
 0x118   : > { %v415_v32 = vpop.xlane.xlu1 %414  ;;  %v409_v33 = vpop.xlane.xlu0 %408 }
 0x119   : > { %v428_v34 = vmul.f32 %v425_v31, %v415_v32  ;;  %v426_v35 = vmul.f32 %v425_v31, %v409_v33 }
 0x11b   : > { %v1003_v36 = vsub.f32 %v405_v11, %v428_v34  ;;  %v430_v37 = vsub.f32 %v403_v12, %v426_v35 }
 0x11d   : > { %v436_v38 = vmul.f32 %v1003_v36, %v1003_v36  ;;  %v434_v39 = vmul.f32 %v430_v37, %v430_v37 }
 0x11f   : > { %v444_v40 = vsel %vm373_vm0, %v436_v38, 0.0  ;;  %v438_v41 = vsel %vm373_vm0, %v434_v39, 0.0 }
 0x120   : > { %v418_v42 = vpop.xlane.xlu1 %417  ;;  %445 = vadd.xlane.f32.xlu0 %v444_v40  ;;  %439 = vadd.xlane.f32.xlu2 %v438_v41  ;;  %v412_v43 = vpop.xlane.xlu0 %411 }
 0x121   : > { %v429_v44 = vmul.f32 %v425_v31, %v418_v42  ;;  %v427_v45 = vmul.f32 %v425_v31, %v412_v43 }
 0x123   : > { %v1009_v46 = vsub.f32 %v406_v21, %v429_v44  ;;  %v1011_v47 = vsub.f32 %v404_v22, %v427_v45 }
 0x125   : > { %v437_v48 = vmul.f32 %v1009_v46, %v1009_v46  ;;  %v435_v49 = vmul.f32 %v1011_v47, %v1011_v47 }
 0x127   : > { %v447_v50 = vsel %vm373_vm0, %v437_v48, 0.0  ;;  %v441_v51 = vsel %vm373_vm0, %v435_v49, 0.0 }
 0x128   : > { %448 = vadd.xlane.f32.xlu1 %v447_v50  ;;  %442 = vadd.xlane.f32.xlu2 %v441_v51 }
 0x193   : > { %v440_v52 = vpop.xlane.xlu2 %439  ;;  %v446_v53 = vpop.xlane.xlu0 %445 }
 0x194   : > { %v450_v54 = vmul.f32 %v440_v52, %v425_v31  ;;  %v452_v55 = vmul.f32 %v446_v53, %v425_v31 }
 0x196   : > { %v454_v56 = vadd.f32 1e-12, %v450_v54  ;;  %v456_v57 = vadd.f32 1e-12, %v452_v55 }
 0x198   : > { %733 = vrsqrt.f32 %v454_v56  ;;  %vm464_vm3 = vweird.f32 %v454_v56  ;;  %vm484_vm6 = vweird.f32 %v456_v57 }
 0x199   : > { %735 = vrsqrt.f32 %v456_v57 }
 0x19b   : > { %v449_v58 = vpop.xlane.xlu1 %448  ;;  %v443_v59 = vpop.xlane.xlu2 %442 }
 0x19c   : > { %v453_v60 = vmul.f32 %v449_v58, %v425_v31  ;;  %v451_v61 = vmul.f32 %v443_v59, %v425_v31 }
 0x19e   : > { %v734_v62 = vpop.eup %733  ;;  %v457_v63 = vadd.f32 1e-12, %v453_v60  ;;  %v455_v0 = vadd.f32 1e-12, %v451_v61 }
 0x19f   : > { %v736_v1 = vpop.eup %735  ;;  %v459_v2 = vmul.f32 %v734_v62, %v454_v56  ;;  %vm465_vm2 = vweird.f32 %v734_v62 }
 0x1a0   : > { %v479_v3 = vmul.f32 %v736_v1, %v456_v57  ;;  %737 = vrsqrt.f32 %v457_v63  ;;  %vm466_vm4 = vmor %vm464_vm3, %vm465_vm2  ;;  %vm485_vm5 = vweird.f32 %v736_v1  ;;  %vm494_vm10 = vweird.f32 %v457_v63 }
 0x1a1   : > { %v460_v4 = vmul.f32 %v734_v62, %v459_v2  ;;  %739 = vrsqrt.f32 %v455_v0  ;;  %vm486_vm7 = vmor %vm484_vm6, %vm485_vm5  ;;  %vm474_vm12 = vweird.f32 %v455_v0 }
 0x1a2   : > { %v480_v5 = vmul.f32 %v736_v1, %v479_v3 }
 0x1a3   : > { %v461_v6 = vmul.f32 0.5, %v460_v4 }
 0x1a4   : > { %v481_v7 = vmul.f32 0.5, %v480_v5 }
 0x1a5   : > { %v462_v8 = vsub.f32 1.5, %v461_v6 }
 0x1a6   : > { %v738_v9 = vpop.eup %737  ;;  %v482_v10 = vsub.f32 1.5, %v481_v7 }
 0x1a7   : > { %v740_v11 = vpop.eup %739  ;;  %v463_v12 = vmul.f32 %v734_v62, %v462_v8  ;;  %v489_v13 = vmul.f32 %v738_v9, %v457_v63  ;;  %vm495_vm8 = vweird.f32 %v738_v9 }
 0x1a8   : > { %v469_v15 = vmul.f32 %v740_v11, %v455_v0  ;;  %v483_v17 = vmul.f32 %v736_v1, %v482_v10  ;;  %vm475_vm9 = vweird.f32 %v740_v11  ;;  %vm496_vm11 = vmor %vm494_vm10, %vm495_vm8 }
 0x1a9   : > { %v467_v16 = vsel %vm466_vm4, %v734_v62, %v463_v12  ;;  %v490_v18 = vmul.f32 %v738_v9, %v489_v13  ;;  %vm476_vm13 = vmor %vm474_vm12, %vm475_vm9 }
 0x1aa   : > { %v498_v20 = vmul.f32 %v467_v16, %v430_v37  ;;  %v470_v21 = vmul.f32 %v740_v11, %v469_v15  ;;  %v487_v25 = vsel %vm486_vm7, %v736_v1, %v483_v17 }
 0x1ab   : > { %v491_v22 = vmul.f32 0.5, %v490_v18  ;;  %v500_v30 = vmul.f32 %v487_v25, %v1003_v36 }
 0x1ac   : > { %v506_v23 = vmul.f32 %v729_v14, %v498_v20  ;;  %v471_v24 = vmul.f32 0.5, %v470_v21 }
 0x1ad   : > { %v492_v26 = vsub.f32 1.5, %v491_v22  ;;  %v508_v37 = vmul.f32 %v729_v14, %v500_v30 }
 0x1ae   : > { %v514_v27 = vadd.f32 %v730_v19, %v506_v23  ;;  %v472_v28 = vsub.f32 1.5, %v471_v24 }
 0x1af   : > { %v493_v29 = vmul.f32 %v738_v9, %v492_v26  ;;  %v516_v41 = vadd.f32 %v730_v19, %v508_v37 }
 0x1b0   : > { %518 = vst.msk [vmem:[%s336_s12] sm:$0xff] %vm373_vm0, %v514_v27  ;;  %v473_v31 = vmul.f32 %v740_v11, %v472_v28 }
 0x1b1   : > { %v497_v32 = vsel %vm496_vm11, %v738_v9, %v493_v29  ;;  %520 = vst.msk [vmem:[%s336_s12 + $0x10] sm:$0xff] %vm373_vm0, %v516_v41 }
 0x1b2   : > { %v501_v33 = vmul.f32 %v497_v32, %v1009_v46  ;;  %v477_v34 = vsel %vm476_vm13, %v740_v11, %v473_v31 }
 0x1b3   : > { %v499_v35 = vmul.f32 %v477_v34, %v1011_v47 }
 0x1b4   : > { %v509_v38 = vmul.f32 %v729_v14, %v501_v33 }
 0x1b5   : > { %v507_v39 = vmul.f32 %v729_v14, %v499_v35 }
 0x1b6   : > { %v517_v42 = vadd.f32 %v730_v19, %v509_v38 }
 0x1b7   : > { %v515_v40 = vadd.f32 %v730_v19, %v507_v39 }
 0x1b8   : > { %521 = vst.msk [vmem:[%s336_s12 + $0x18] sm:$0xff] %vm373_vm0, %v517_v42 }
 0x1b9   : > { %519 = vst.msk [vmem:[%s336_s12 + $0x8] sm:$0xff] %vm373_vm0, %v515_v40 }
 0x1ba PF: > { %s19_s21 = sadd.s32 1, %s879_s21  }
 0x1bb   : > { %p16_p7 = scmp.ge.s32.totalorder %s19_s21, 4  }
 0x1bd   :  { %18 = sbr.rel (!%p16_p7) target bundleno = 3 (0x3), region = 94 }
 0x1c2   :  { %544 = vsyncpa [#allocation3], 1 }
 0x1c3   :  { %546 = vsyncpa [#allocation3 + $0x1], 1 }
 0x1c4   :  { %547 = vsyncpa [#allocation5], 1 }
 0x1c5   :  { %548 = vsyncpa [#allocation8], 1 }

// kernel: videollama_forward.41
= control target key start
LH: loop header
LB: loop body
LE: loop exit
PB: predicated region body
PF: predicated region fallthrough
CT: control target
= control target key end

     0   :  { %s1418_s9 = smov 0   ;;  %s1661_s0 = inlined_call_operand.vmem [shape: bf16[8,8,32], index: 0, kind: input, shape index: {}]   ;;  %s1662_s1 = inlined_call_operand.vmem [shape: bf16[8,16,64], index: 1, kind: input, shape index: {}]   ;;  %s1663_s2 = inlined_call_operand.vmem [shape: bf16[8,8,32], index: 2, kind: output, shape index: {}]  }
   0x1 LB: > { %s1227_s10 = sadd.s32 4294967295, %s1391_s9   ;;  %p1231_p0 = scmp.ge.s32.totalorder %s1391_s9, 1  ;;  %s1391_s9 = sphi %s1418_s9, %s12_s9  }
   0x2   : > { %p125_p1 = scmp.lt.s32.totalorder %s1391_s9, 3 }
   0x4   : > { %p126_p2 = pnand %p1231_p0, %p125_p1 }
   0x5   : > { %s1232_s11 = sshll.u32 (!%p126_p2), %s1227_s10, 2  ;;  %s1393_s20 = smov (!%p126_p2), 120  }
   0x6   : > { %129 = sbr.rel (%p126_p2) target bundleno = 1965 (0x7ad), region = 28  ;;  %p154_p3 = scmp.lt.s32.totalorder (!%p126_p2), %s1232_s11, 7 }
   0x7   : > { %s1394_s21 = smov (!%p126_p2), 96   ;;  %s1395_s22 = smov (!%p126_p2), 88  }
   0x8   : > { %s1396_s23 = smov (!%p126_p2), 112   ;;  %s1397_s24 = smov (!%p126_p2), 80  }
   0x9   : > { %s1398_s25 = smov (!%p126_p2), 104   ;;  %s1399_s26 = smov (!%p126_p2), 72  }
   0xa   : > { %s1400_s27 = smov (!%p126_p2), 8   ;;  %s1401_s28 = smov (!%p126_p2), 16  }
   0xb   : > { %s1665_s11 = smov (!%p154_p3, %s1232_s11), 7  ;;  %vm202_vm0 = vcmask 64512   ;;  %vm294_vm1 = vcmask 130048   ;;  %vm667_vm2 = vcmask 130112   ;;  %vm904_vm3 = vcmask 195712   ;;  %s1402_s29 = smov 24  }
   0xc   : > { %s1289_s12 = sshll.u32 %s1665_s11, 3  ;;  %s1233_s13 = sshll.u32 %s1665_s11, 2  ;;  %vm1141_vm4 = vcmask 261312   ;;  %vm1154_vm5 = vcmask 257024  }
   0xd   : > { %s164_s16 = scalar_lea.vmem %s1662_s1, %s1289_s12  ;;  %s157_s19 = scalar_lea.vmem %s1661_s0, %s1233_s13 }
   0xe   : > { %v1438_v0 = vld [vmem:[%s164_s16] sm:$0xff]  ;;  %v1440_v1 = vld [vmem:[%s164_s16 + $0x10] sm:$0xff]  ;;  %v1442_v2 = vld [vmem:[%s164_s16 + $0x18] sm:$0xff]  ;;  %s170_s4 = scalar_lea.vmem %s1663_s2, %s1233_s13 }
   0xf   : > { %v1295_v3 = vld [vmem:[%s157_s19] sm:$0xff]   ;;  %v1302_v4 = vld [vmem:[%s157_s19 + $0x8] sm:$0xff]   ;;  %v207_v6 = vsel %vm202_vm0, %v1438_v0, 0  ;;  %v255_v7 = vsel %vm202_vm0, %v1440_v1, 0  ;;  %v279_v8 = vsel %vm202_vm0, %v1442_v2, 0  ;;  %480 = vrot.lane.b32.xlu2 %v1440_v1, %s1393_s20 }
  0x10   : > { %v1444_v5 = vld [vmem:[%s164_s16 + $0x8] sm:$0xff]  ;;  %v1296_v9 = vunpack.c.l.bf16 %v1295_v3  ;;  %216 = vmatpush.bf16.xpose.msra.mxu0 %v207_v6  ;;  %264 = vmatpush.bf16.xpose.msra.mxu2 %v255_v7  ;;  %v1300_v10 = vunpack.c.l.bf16 %v1302_v4  ;;  %v1301_v11 = vunpack.c.h.bf16 %v1302_v4  ;;  %v1297_v13 = vunpack.c.h.bf16 %v1295_v3 }
  0x11   : > { %v231_v12 = vsel %vm202_vm0, %v1444_v5, 0  ;;  %288 = vmatpush.bf16.xpose.msra.mxu3 %v279_v8 }
  0x12   : > { %v189_v14 = vmul.f32 0.35355338, %v1296_v9  ;;  %240 = vmatpush.bf16.xpose.msra.mxu1 %v231_v12  ;;  %v191_v15 = vmul.f32 0.35355338, %v1300_v10  ;;  %v192_v16 = vmul.f32 0.35355338, %v1301_v11 }
  0x13   : > { %v190_v17 = vmul.f32 0.35355338, %v1297_v13 }
  0x14   : > { %v1454_v18 = vpack.c.bf16 %v189_v14, %v189_v14  ;;  %v195_v19 = vpack.c.bf16 %v191_v15, %v191_v15  ;;  %v196_v20 = vpack.c.bf16 %v192_v16, %v192_v16 }
  0x15   : > { %v194_v21 = vpack.c.bf16 %v190_v17, %v190_v17 }
  0x16   : > { %v476_v34 = vunpack.c.l.b16 %v195_v19  ;;  %v502_v36 = vunpack.c.l.b16 %v196_v20  ;;  %v424_v3 = vunpack.c.l.b16 %v1454_v18 }
  0x17   : > { %1243 = vmatmul.msk.bf16.vlgmr.msra.gmra.mxu0 %vm202_vm0, %v1454_v18  ;;  %1253 = vmatmul.msk.bf16.vlgmr.msra.gmra.mxu2 %vm202_vm0, %v195_v19  ;;  %v450_v41 = vunpack.c.l.b16 %v194_v21 }
  0x18   : > { %1258 = vmatmul.msk.bf16.vlgmr.msra.gmra.mxu3 %vm202_vm0, %v196_v20  ;;  %v1471_v35 = vpack.c.b16 %v476_v34, %v476_v34  ;;  %v1475_v37 = vpack.c.b16 %v502_v36, %v502_v36  ;;  %v1493_v6 = vpack.c.b16 %v424_v3, %v424_v3 }
  0x19   : > { %1248 = vmatmul.msk.bf16.vlgmr.msra.gmra.mxu1 %vm202_vm0, %v194_v21  ;;  %v1483_v46 = vpack.c.b16 %v450_v41, %v450_v41 }
  0x69   : > { %v481_v58 = vpop.permute.xlu2 %480 }
  0x6a   : > { %v486_v60 = vsel %vm202_vm0, %v481_v58, 0 }
  0x94   : > { %v218_v22 = vpop.f32.mrf.mxu0 }
  0x95   : > { %v295_v23 = vsel %vm294_vm1, %v218_v22, -inf }
  0x96   : > { %v242_v24 = vpop.f32.mrf.mxu1  ;;  %296 = vmax.xlane.f32.xlu1 %v295_v23 }
  0x97   : > { %v298_v28 = vsel %vm294_vm1, %v242_v24, -inf }
  0x9a   : > { %v266_v25 = vpop.f32.mrf.mxu2 }
  0x9b   : > { %v290_v26 = vpop.f32.mrf.mxu3  ;;  %v301_v27 = vsel %vm294_vm1, %v266_v25, -inf }
  0x9c   : > { %302 = vmax.xlane.f32.xlu0 %v301_v27  ;;  %v220_v29 = vpop.f32.mrf.mxu0  ;;  %v304_v31 = vsel %vm294_vm1, %v290_v26, -inf }
  0x9e   : > { %v244_v30 = vpop.f32.mrf.mxu1  ;;  %299 = vmax.xlane.f32.xlu1 %v298_v28 }
  0xa2   : > { %v268_v32 = vpop.f32.mrf.mxu2 }
  0xa3   : > { %v292_v33 = vpop.f32.mrf.mxu3 }
  0xa4   : > { %305 = vmax.xlane.f32.xlu0 %v304_v31 }
  0xb7   : > { %400 = vrot.lane.b32.xlu1 %v1442_v2, %s1394_s21 }
  0xb8   : > { %381 = vrot.lane.b32.xlu0 %v1440_v1, %s1394_s21 }
  0xc0   : > { %506 = vrot.lane.b32.xlu0 %v1442_v2, %s1393_s20 }
  0xc8   : > { %478 = vrot.lane.b32.xlu0 %v1471_v35, %s1393_s20 }
  0xd0   : > { %504 = vrot.lane.b32.xlu0 %v1475_v37, %s1393_s20 }
  0xd8   : > { %343 = vrot.lane.b32.xlu0 %v1438_v0, %s1394_s21 }
  0xe0   : > { %362 = vrot.lane.b32.xlu0 %v1444_v5, %s1394_s21 }
  0xe8   : > { %428 = vrot.lane.b32.xlu0 %v1438_v0, %s1393_s20 }
  0xf0   : > { %452 = vrot.lane.b32.xlu0 %v1483_v46, %s1393_s20 }
 0x109   : > { %v297_v38 = vpop.xlane.xlu1 %296 }
 0x10a   : > { %v307_v50 = vsub.f32 %v218_v22, %v297_v38 }
 0x10c   : > { %v311_v55 = vmul.f32 1.442695, %v307_v50 }
 0x10f   : > { %v303_v39 = vpop.xlane.xlu0 %302 }
 0x110   : > { %v309_v40 = vsub.f32 %v266_v25, %v303_v39 }
 0x111   : > { %v300_v42 = vpop.xlane.xlu1 %299 }
 0x112   : > { %v315_v43 = vmul.f32 1.442695, %v309_v40  ;;  %v308_v44 = vsub.f32 %v242_v24, %v300_v42 }
 0x114   : > { %1321 = vpow2.f32 %v315_v43  ;;  %v313_v45 = vmul.f32 1.442695, %v308_v44 }
 0x116   : > { %1323 = vpow2.f32 %v313_v45 }
 0x117   : > { %v306_v47 = vpop.xlane.xlu0 %305 }
 0x118   : > { %v310_v48 = vsub.f32 %v290_v26, %v306_v47 }
 0x11a   : > { %v1322_v49 = vpop.eup %1321  ;;  %v317_v51 = vmul.f32 1.442695, %v310_v48 }
 0x11b   : > { %v325_v52 = vsel %vm294_vm1, %v1322_v49, 0.0 }
 0x11c   : > { %v1324_v53 = vpop.eup %1323  ;;  %1325 = vpow2.f32 %v317_v51  ;;  %326 = vadd.xlane.f32.xlu2 %v325_v52 }
 0x11d   : > { %v322_v54 = vsel %vm294_vm1, %v1324_v53, 0.0  ;;  %1327 = vpow2.f32 %v311_v55 }
 0x11e   : > { %323 = vadd.xlane.f32.xlu1 %v322_v54 }
 0x122   : > { %v1326_v56 = vpop.eup %1325 }
 0x123   : > { %v328_v57 = vsel %vm294_vm1, %v1326_v56, 0.0  ;;  %v1328_v59 = vpop.eup %1327 }
 0x124   : > { %329 = vadd.xlane.f32.xlu2 %v328_v57  ;;  %v319_v63 = vsel %vm294_vm1, %v1328_v59, 0.0 }
 0x129   : > { %v401_v61 = vpop.permute.xlu1 %400 }
 0x12a   : > { %v382_v62 = vpop.permute.xlu0 %381  ;;  %413 = vmatpush.bf16.msrb.mxu3 %v401_v61 }
 0x12b   : > { %394 = vmatpush.bf16.msrb.mxu2 %v382_v62 }
 0x12c   : > { %320 = vadd.xlane.f32.xlu2 %v319_v63 }
 0x12f   : > { %495 = vmatpush.bf16.xpose.msra.mxu2 %v486_v60 }
 0x132   : > { %v507_v4 = vpop.permute.xlu0 %506 }
 0x133   : > { %v512_v7 = vsel %vm202_vm0, %v507_v4, 0 }
 0x134   : > { %521 = vmatpush.bf16.xpose.msra.mxu3 %v512_v7 }
 0x137   : > { %426 = vrot.lane.b32.xlu1 %v1493_v6, %s1393_s20 }
 0x13a   : > { %v479_v8 = vpop.permute.xlu0 %478 }
 0x142   : > { %v505_v9 = vpop.permute.xlu0 %504 }
 0x144   : > { %454 = vrot.lane.b32.xlu2 %v1444_v5, %s1393_s20 }
 0x14a   : > { %v344_v10 = vpop.permute.xlu0 %343 }
 0x14b   : > { %356 = vmatpush.bf16.msrb.mxu0 %v344_v10 }
 0x152   : > { %v363_v11 = vpop.permute.xlu0 %362 }
 0x153   : > { %375 = vmatpush.bf16.msrb.mxu1 %v363_v11 }
 0x15a   : > { %v429_v12 = vpop.permute.xlu0 %428 }
 0x15b   : > { %v434_v13 = vsel %vm202_vm0, %v429_v12, 0 }
 0x15c   : > { %443 = vmatpush.bf16.xpose.msra.mxu0 %v434_v13 }
 0x162   : > { %v453_v32 = vpop.permute.xlu0 %452 }
 0x18f   : > { %v327_v14 = vpop.xlane.xlu2 %326 }
 0x190   : > { %1329 = vrcp.f32 %v327_v14 }
 0x191   : > { %v324_v15 = vpop.xlane.xlu1 %323 }
 0x192   : > { %1331 = vrcp.f32 %v324_v15 }
 0x196   : > { %v1330_v16 = vpop.eup %1329 }
 0x197   : > { %v337_v17 = vmul.f32 %v1330_v16, %v1322_v49  ;;  %v330_v18 = vpop.xlane.xlu2 %329 }
 0x198   : > { %v1332_v19 = vpop.eup %1331  ;;  %1333 = vrcp.f32 %v330_v18 }
 0x199   : > { %v336_v20 = vmul.f32 %v1332_v19, %v1324_v53  ;;  %v341_v21 = vpack.c.bf16 %v337_v17, %v337_v17 }
 0x19b   : > { %1261 = vmatmul.msk.bf16.vlgmr.msrb.gmra.mxu2 %vm294_vm1, %v341_v21  ;;  %v340_v22 = vpack.c.bf16 %v336_v20, %v336_v20 }
 0x19d   : > { %1260 = vmatmul.msk.bf16.vlgmr.msrb.gmra.mxu1 %vm294_vm1, %v340_v22 }
 0x19e   : > { %v1334_v23 = vpop.eup %1333 }
 0x19f   : > { %v338_v24 = vmul.f32 %v1334_v23, %v1326_v56  ;;  %v321_v25 = vpop.xlane.xlu2 %320 }
 0x1a0   : > { %1335 = vrcp.f32 %v321_v25 }
 0x1a1   : > { %v342_v26 = vpack.c.bf16 %v338_v24, %v338_v24 }
 0x1a3   : > { %1262 = vmatmul.msk.bf16.vlgmr.msrb.gmra.mxu3 %vm294_vm1, %v342_v26 }
 0x1a6   : > { %v1336_v27 = vpop.eup %1335 }
 0x1a7   : > { %v335_v28 = vmul.f32 %v1336_v27, %v1328_v59  ;;  %v455_v29 = vpop.permute.xlu2 %454 }
 0x1a8   : > { %v460_v30 = vsel %vm202_vm0, %v455_v29, 0 }
 0x1a9   : > { %v339_v31 = vpack.c.bf16 %v335_v28, %v335_v28  ;;  %469 = vmatpush.bf16.xpose.msra.mxu1 %v460_v30  ;;  %v427_v33 = vpop.permute.xlu1 %426 }
 0x1ab   : > { %1259 = vmatmul.msk.bf16.vlgmr.msrb.gmra.mxu0 %vm294_vm1, %v339_v31  ;;  %1265 = vmatmul.msk.bf16.vlgmr.msra.gmra.mxu2 %vm202_vm0, %v479_v8 }
 0x1b0   : > { %1264 = vmatmul.msk.bf16.vlgmr.msra.gmra.mxu1 %vm202_vm0, %v453_v32 }
 0x1b3   : > { %1266 = vmatmul.msk.bf16.vlgmr.msra.gmra.mxu3 %vm202_vm0, %v505_v9 }
 0x1bb   : > { %1263 = vmatmul.msk.bf16.vlgmr.msra.gmra.mxu0 %vm202_vm0, %v427_v33 }
 0x21a   : > { %v377_v34 = vpop.f32.mrf.mxu1 }
 0x21b   : > { %420 = vst.msk [vmem:[#allocation2 + $0x8] sm:$0xff] %vm202_vm0, %v377_v34 }
 0x21e   : > { %v396_v36 = vpop.f32.mrf.mxu2 }
 0x21f   : > { %421 = vst.msk [vmem:[#allocation2 + $0x10] sm:$0xff] %vm202_vm0, %v396_v36 }
 0x222   : > { %v379_v38 = vpop.f32.mrf.mxu1 }
 0x226   : > { %v398_v39 = vpop.f32.mrf.mxu2  ;;  %v415_v40 = vpop.f32.mrf.mxu3 }
 0x227   : > { %422 = vst.msk [vmem:[#allocation2 + $0x18] sm:$0xff] %vm202_vm0, %v415_v40 }
 0x228   : > { %v358_v41 = vpop.f32.mrf.mxu0 }
 0x229   : > { %419 = vst.msk [vmem:[#allocation2] sm:$0xff] %vm202_vm0, %v358_v41 }
 0x22d   : > { %v471_v42 = vpop.f32.mrf.mxu1 }
 0x22e   : > { %v417_v43 = vpop.f32.mrf.mxu3  ;;  %v497_v44 = vpop.f32.mrf.mxu2  ;;  %v530_v48 = vsel %vm294_vm1, %v471_v42, -inf }
 0x22f   : > { %v533_v45 = vsel %vm294_vm1, %v497_v44, -inf }
 0x230   : > { %534 = vmax.xlane.f32.xlu0 %v533_v45  ;;  %v360_v47 = vpop.f32.mrf.mxu0 }
 0x235   : > { %v473_v49 = vpop.f32.mrf.mxu1 }
 0x236   : > { %v499_v50 = vpop.f32.mrf.mxu2  ;;  %v523_v51 = vpop.f32.mrf.mxu3 }
 0x237   : > { %v536_v52 = vsel %vm294_vm1, %v523_v51, -inf }
 0x238   : > { %537 = vmax.xlane.f32.xlu2 %v536_v52  ;;  %531 = vmax.xlane.f32.xlu0 %v530_v48  ;;  %v445_v53 = vpop.f32.mrf.mxu0 }
 0x239   : > { %v527_v54 = vsel %vm294_vm1, %v445_v53, -inf }
 0x23a   : > { %528 = vmax.xlane.f32.xlu1 %v527_v54 }
 0x23e   : > { %v525_v55 = vpop.f32.mrf.mxu3 }
 0x240   : > { %v447_v56 = vpop.f32.mrf.mxu0 }
 0x24c   : > { %613 = vrot.lane.b32.xlu0 %v1440_v1, %s1395_s22 }
 0x253   : > { %632 = vrot.lane.b32.xlu1 %v1442_v2, %s1395_s22 }
 0x254   : > { %720 = vrot.lane.b32.xlu0 %v1440_v1, %s1396_s23 }
 0x25b   : > { %575 = vrot.lane.b32.xlu1 %v1438_v0, %s1395_s22 }
 0x263   : > { %718 = vrot.lane.b32.xlu1 %v1471_v35, %s1396_s23 }
 0x26b   : > { %674 = vrot.lane.b32.xlu1 %v1438_v0, %s1396_s23 }
 0x273   : > { %695 = vrot.lane.b32.xlu1 %v1483_v46, %s1396_s23 }
 0x2a3   : > { %v535_v57 = vpop.xlane.xlu0 %534 }
 0x2a4   : > { %v541_v58 = vsub.f32 %v497_v44, %v535_v57 }
 0x2a6   : > { %v547_v59 = vmul.f32 1.442695, %v541_v58 }
 0x2a8   : > { %1337 = vpow2.f32 %v547_v59 }
 0x2ab   : > { %v532_v60 = vpop.xlane.xlu0 %531  ;;  %v538_v9 = vpop.xlane.xlu2 %537 }
 0x2ac   : > { %v540_v4 = vsub.f32 %v471_v42, %v532_v60  ;;  %v542_v11 = vsub.f32 %v523_v51, %v538_v9 }
 0x2ad   : > { %v529_v61 = vpop.xlane.xlu1 %528 }
 0x2ae   : > { %v1338_v62 = vpop.eup %1337  ;;  %v539_v63 = vsub.f32 %v445_v53, %v529_v61  ;;  %v545_v8 = vmul.f32 1.442695, %v540_v4  ;;  %v549_v13 = vmul.f32 1.442695, %v542_v11 }
 0x2af   : > { %v557_v3 = vsel %vm294_vm1, %v1338_v62, 0.0 }
 0x2b0   : > { %v543_v7 = vmul.f32 1.442695, %v539_v63  ;;  %558 = vadd.xlane.f32.xlu0 %v557_v3 }
 0x2b2   : > { %1339 = vpow2.f32 %v543_v7 }
 0x2b3   : > { %1341 = vpow2.f32 %v545_v8 }
 0x2b4   : > { %1343 = vpow2.f32 %v549_v13 }
 0x2b8   : > { %v1340_v10 = vpop.eup %1339 }
 0x2b9   : > { %v551_v12 = vsel %vm294_vm1, %v1340_v10, 0.0  ;;  %v1342_v14 = vpop.eup %1341 }
 0x2ba   : > { %552 = vadd.xlane.f32.xlu2 %v551_v12  ;;  %v554_v15 = vsel %vm294_vm1, %v1342_v14, 0.0  ;;  %v1344_v16 = vpop.eup %1343 }
 0x2bb   : > { %v560_v17 = vsel %vm294_vm1, %v1344_v16, 0.0 }
 0x2be   : > { %v614_v18 = vpop.permute.xlu0 %613 }
 0x2bf   : > { %626 = vmatpush.bf16.msrb.mxu2 %v614_v18 }
 0x2c2   : > { %555 = vadd.xlane.f32.xlu2 %v554_v15 }
 0x2c4   : > { %594 = vrot.lane.b32.xlu0 %v1444_v5, %s1395_s22 }
 0x2c5   : > { %v633_v21 = vpop.permute.xlu1 %632 }
 0x2c6   : > { %v721_v19 = vpop.permute.xlu0 %720  ;;  %645 = vmatpush.bf16.msrb.mxu3 %v633_v21 }
 0x2c7   : > { %v726_v20 = vsel %vm202_vm0, %v721_v19, 0 }
 0x2c8   : > { %735 = vmatpush.bf16.xpose.msra.mxu2 %v726_v20 }
 0x2ca   : > { %561 = vadd.xlane.f32.xlu2 %v560_v17 }
 0x2cc   : > { %741 = vrot.lane.b32.xlu0 %v1475_v37, %s1396_s23 }
 0x2cd   : > { %v576_v22 = vpop.permute.xlu1 %575 }
 0x2ce   : > { %588 = vmatpush.bf16.msrb.mxu0 %v576_v22 }
 0x2d4   : > { %697 = vrot.lane.b32.xlu0 %v1444_v5, %s1396_s23 }
 0x2d5   : > { %v719_v23 = vpop.permute.xlu1 %718 }
 0x2dd   : > { %v675_v25 = vpop.permute.xlu1 %674 }
 0x2de   : > { %v680_v26 = vsel %vm202_vm0, %v675_v25, 0 }
 0x2df   : > { %689 = vmatpush.bf16.xpose.msra.mxu0 %v680_v26 }
 0x2e2   : > { %743 = vrot.lane.b32.xlu2 %v1442_v2, %s1396_s23 }
 0x2e5   : > { %v696_v52 = vpop.permute.xlu1 %695 }
 0x2ea   : > { %672 = vrot.lane.b32.xlu2 %v1493_v6, %s1396_s23 }
 0x323   : > { %v559_v24 = vpop.xlane.xlu0 %558 }
 0x324   : > { %1345 = vrcp.f32 %v559_v24 }
 0x32a   : > { %v1346_v27 = vpop.eup %1345 }
 0x32b   : > { %v569_v28 = vmul.f32 %v1346_v27, %v1338_v62 }
 0x32d   : > { %v573_v29 = vpack.c.bf16 %v569_v28, %v569_v28  ;;  %v553_v30 = vpop.xlane.xlu2 %552 }
 0x32e   : > { %1347 = vrcp.f32 %v553_v30 }
 0x32f   : > { %1269 = vmatmul.msk.bf16.vlgmr.msrb.gmra.mxu2 %vm294_vm1, %v573_v29 }
 0x334   : > { %v1348_v31 = vpop.eup %1347 }
 0x335   : > { %v567_v32 = vmul.f32 %v1348_v31, %v1340_v10  ;;  %v556_v33 = vpop.xlane.xlu2 %555 }
 0x336   : > { %1349 = vrcp.f32 %v556_v33  ;;  %v595_v34 = vpop.permute.xlu0 %594 }
 0x337   : > { %v571_v36 = vpack.c.bf16 %v567_v32, %v567_v32  ;;  %607 = vmatpush.bf16.msrb.mxu1 %v595_v34 }
 0x339   : > { %1267 = vmatmul.msk.bf16.vlgmr.msrb.gmra.mxu0 %vm294_vm1, %v571_v36 }
 0x33c   : > { %v1350_v38 = vpop.eup %1349 }
 0x33d   : > { %v568_v39 = vmul.f32 %v1350_v38, %v1342_v14  ;;  %v562_v40 = vpop.xlane.xlu2 %561 }
 0x33e   : > { %1351 = vrcp.f32 %v562_v40  ;;  %v742_v41 = vpop.permute.xlu0 %741 }
 0x33f   : > { %v572_v42 = vpack.c.bf16 %v568_v39, %v568_v39  ;;  %1273 = vmatmul.msk.bf16.vlgmr.msra.gmra.mxu2 %vm202_vm0, %v719_v23 }
 0x341   : > { %1268 = vmatmul.msk.bf16.vlgmr.msrb.gmra.mxu1 %vm294_vm1, %v572_v42 }
 0x344   : > { %v1352_v43 = vpop.eup %1351 }
 0x345   : > { %v570_v44 = vmul.f32 %v1352_v43, %v1344_v16  ;;  %v744_v45 = vpop.permute.xlu2 %743 }
 0x346   : > { %v749_v47 = vsel %vm202_vm0, %v744_v45, 0  ;;  %v698_v48 = vpop.permute.xlu0 %697 }
 0x347   : > { %v574_v49 = vpack.c.bf16 %v570_v44, %v570_v44  ;;  %758 = vmatpush.bf16.xpose.msra.mxu3 %v749_v47  ;;  %v703_v50 = vsel %vm202_vm0, %v698_v48, 0 }
 0x348   : > { %712 = vmatpush.bf16.xpose.msra.mxu1 %v703_v50 }
 0x349   : > { %1270 = vmatmul.msk.bf16.vlgmr.msrb.gmra.mxu3 %vm294_vm1, %v574_v49 }
 0x34d   : > { %v673_v51 = vpop.permute.xlu2 %672 }
 0x34e   : > { %1271 = vmatmul.msk.bf16.vlgmr.msra.gmra.mxu0 %vm202_vm0, %v673_v51 }
 0x351   : > { %1272 = vmatmul.msk.bf16.vlgmr.msra.gmra.mxu1 %vm202_vm0, %v696_v52 }
 0x359   : > { %1274 = vmatmul.msk.bf16.vlgmr.msra.gmra.mxu3 %vm202_vm0, %v742_v41 }
 0x3b2   : > { %v1558_v53 = vpop.f32.mrf.mxu2 }
 0x3b6   : > { %v1560_v54 = vpop.f32.mrf.mxu0 }
 0x3ba   : > { %v630_v55 = vpop.f32.mrf.mxu2 }
 0x3be   : > { %v592_v56 = vpop.f32.mrf.mxu0  ;;  %v1562_v57 = vpop.f32.mrf.mxu1 }
 0x3c2   : > { %v737_v58 = vpop.f32.mrf.mxu2 }
 0x3c3   : > { %v770_v59 = vsel %vm294_vm1, %v737_v58, -inf }
 0x3c4   : > { %771 = vmax.xlane.f32.xlu0 %v770_v59 }
 0x3c6   : > { %v611_v60 = vpop.f32.mrf.mxu1 }
 0x3ca   : > { %v739_v61 = vpop.f32.mrf.mxu2 }
 0x3cb   : > { %v691_v62 = vpop.f32.mrf.mxu0 }
 0x3cc   : > { %v1565_v63 = vpop.f32.mrf.mxu3  ;;  %v764_v3 = vsel %vm294_vm1, %v691_v62, -inf }
 0x3cd   : > { %765 = vmax.xlane.f32.xlu1 %v764_v3 }
 0x3ce   : > { %v714_v4 = vpop.f32.mrf.mxu1 }
 0x3cf   : > { %v767_v12 = vsel %vm294_vm1, %v714_v4, -inf }
 0x3d3   : > { %v693_v7 = vpop.f32.mrf.mxu0 }
 0x3d4   : > { %v649_v8 = vpop.f32.mrf.mxu3 }
 0x3d6   : > { %v716_v9 = vpop.f32.mrf.mxu1 }
 0x3d8   : > { %812 = vrot.lane.b32.xlu0 %v1438_v0, %s1397_s24 }
 0x3dc   : > { %v760_v10 = vpop.f32.mrf.mxu3 }
 0x3dd   : > { %v773_v11 = vsel %vm294_vm1, %v760_v10, -inf }
 0x3de   : > { %774 = vmax.xlane.f32.xlu2 %v773_v11 }
 0x3e0   : > { %955 = vrot.lane.b32.xlu0 %v1471_v35, %s1398_s25 }
 0x3e4   : > { %v762_v13 = vpop.f32.mrf.mxu3 }
 0x3e6   : > { %768 = vmax.xlane.f32.xlu2 %v767_v12  ;;  %869 = vrot.lane.b32.xlu1 %v1442_v2, %s1397_s24 }
 0x3ee   : > { %957 = vrot.lane.b32.xlu1 %v1440_v1, %s1398_s25 }
 0x3f6   : > { %978 = vrot.lane.b32.xlu1 %v1475_v37, %s1398_s25 }
 0x3fe   : > { %850 = vrot.lane.b32.xlu2 %v1440_v1, %s1397_s24 }
 0x406   : > { %831 = vrot.lane.b32.xlu2 %v1444_v5, %s1397_s24 }
 0x40e   : > { %980 = vrot.lane.b32.xlu2 %v1442_v2, %s1398_s25 }
 0x416   : > { %911 = vrot.lane.b32.xlu2 %v1438_v0, %s1398_s25 }
 0x41e   : > { %932 = vrot.lane.b32.xlu2 %v1483_v46, %s1398_s25 }
 0x437   : > { %v772_v20 = vpop.xlane.xlu0 %771 }
 0x438   : > { %v778_v24 = vsub.f32 %v737_v58, %v772_v20 }
 0x43a   : > { %v784_v26 = vmul.f32 1.442695, %v778_v24 }
 0x440   : > { %v766_v35 = vpop.xlane.xlu1 %765 }
 0x441   : > { %v776_v14 = vsub.f32 %v691_v62, %v766_v35 }
 0x443   : > { %v780_v15 = vmul.f32 1.442695, %v776_v14 }
 0x445   : > { %1353 = vpow2.f32 %v780_v15 }
 0x44a   : > { %v813_v27 = vpop.permute.xlu0 %812 }
 0x44b   : > { %v1354_v16 = vpop.eup %1353  ;;  %825 = vmatpush.bf16.msrb.mxu0 %v813_v27 }
 0x44c   : > { %v788_v37 = vsel %vm294_vm1, %v1354_v16, 0.0 }
 0x44d   : > { %789 = vadd.xlane.f32.xlu0 %v788_v37 }
 0x451   : > { %v775_v17 = vpop.xlane.xlu2 %774 }
 0x452   : > { %v779_v18 = vsub.f32 %v760_v10, %v775_v17  ;;  %v956_v39 = vpop.permute.xlu0 %955 }
 0x454   : > { %v786_v19 = vmul.f32 1.442695, %v779_v18 }
 0x456   : > { %1355 = vpow2.f32 %v786_v19 }
 0x458   : > { %v870_v28 = vpop.permute.xlu1 %869 }
 0x459   : > { %v769_v21 = vpop.xlane.xlu2 %768  ;;  %882 = vmatpush.bf16.msrb.mxu3 %v870_v28 }
 0x45a   : > { %v777_v22 = vsub.f32 %v714_v4, %v769_v21 }
 0x45c   : > { %v1356_v23 = vpop.eup %1355  ;;  %v782_v25 = vmul.f32 1.442695, %v777_v22 }
 0x45d   : > { %v797_v46 = vsel %vm294_vm1, %v1356_v23, 0.0 }
 0x45e   : > { %1357 = vpow2.f32 %v782_v25  ;;  %798 = vadd.xlane.f32.xlu1 %v797_v46 }
 0x45f   : > { %1359 = vpow2.f32 %v784_v26 }
 0x460   : > { %v958_v33 = vpop.permute.xlu1 %957 }
 0x461   : > { %v963_v34 = vsel %vm202_vm0, %v958_v33, 0  ;;  %v851_v36 = vpop.permute.xlu2 %850 }
 0x462   : > { %863 = vmatpush.bf16.msrb.mxu2 %v851_v36 }
 0x464   : > { %v1358_v29 = vpop.eup %1357 }
 0x465   : > { %v791_v30 = vsel %vm294_vm1, %v1358_v29, 0.0  ;;  %v1360_v31 = vpop.eup %1359 }
 0x466   : > { %792 = vadd.xlane.f32.xlu0 %v791_v30  ;;  %v794_v32 = vsel %vm294_vm1, %v1360_v31, 0.0  ;;  %972 = vmatpush.bf16.xpose.msra.mxu2 %v963_v34 }
 0x468   : > { %v979_v45 = vpop.permute.xlu1 %978 }
 0x469   : > { %v832_v38 = vpop.permute.xlu2 %831 }
 0x46a   : > { %844 = vmatpush.bf16.msrb.mxu1 %v832_v38 }
 0x46e   : > { %795 = vadd.xlane.f32.xlu0 %v794_v32 }
 0x471   : > { %v981_v40 = vpop.permute.xlu2 %980 }
 0x472   : > { %v986_v41 = vsel %vm202_vm0, %v981_v40, 0 }
 0x473   : > { %995 = vmatpush.bf16.xpose.msra.mxu3 %v986_v41 }
 0x477   : > { %909 = vrot.lane.b32.xlu1 %v1493_v6, %s1398_s25 }
 0x479   : > { %v912_v43 = vpop.permute.xlu2 %911 }
 0x47a   : > { %v917_v6 = vsel %vm202_vm0, %v912_v43, 0 }
 0x47b   : > { %926 = vmatpush.bf16.xpose.msra.mxu0 %v917_v6 }
 0x481   : > { %v933_v9 = vpop.permute.xlu2 %932 }
 0x482   : > { %934 = vrot.lane.b32.xlu0 %v1444_v5, %s1398_s25 }
 0x4c0   : > { %v790_v42 = vpop.xlane.xlu0 %789 }
 0x4c1   : > { %1361 = vrcp.f32 %v790_v42 }
 0x4c7   : > { %v1362_v44 = vpop.eup %1361 }
 0x4c8   : > { %v804_v47 = vmul.f32 %v1362_v44, %v1354_v16 }
 0x4ca   : > { %v808_v48 = vpack.c.bf16 %v804_v47, %v804_v47 }
 0x4cc   : > { %1275 = vmatmul.msk.bf16.vlgmr.msrb.gmra.mxu0 %vm294_vm1, %v808_v48 }
 0x4d1   : > { %v799_v49 = vpop.xlane.xlu1 %798 }
 0x4d2   : > { %1363 = vrcp.f32 %v799_v49 }
 0x4d8   : > { %v1364_v50 = vpop.eup %1363 }
 0x4d9   : > { %v807_v51 = vmul.f32 %v1364_v50, %v1356_v23  ;;  %v793_v52 = vpop.xlane.xlu0 %792 }
 0x4da   : > { %1365 = vrcp.f32 %v793_v52 }
 0x4db   : > { %v811_v55 = vpack.c.bf16 %v807_v51, %v807_v51 }
 0x4dd   : > { %1278 = vmatmul.msk.bf16.vlgmr.msrb.gmra.mxu3 %vm294_vm1, %v811_v55 }
 0x4e0   : > { %v1366_v56 = vpop.eup %1365 }
 0x4e1   : > { %v805_v58 = vmul.f32 %v1366_v56, %v1358_v29  ;;  %v796_v59 = vpop.xlane.xlu0 %795 }
 0x4e2   : > { %1367 = vrcp.f32 %v796_v59 }
 0x4e3   : > { %v809_v60 = vpack.c.bf16 %v805_v58, %v805_v58 }
 0x4e5   : > { %1276 = vmatmul.msk.bf16.vlgmr.msrb.gmra.mxu1 %vm294_vm1, %v809_v60 }
 0x4e8   : > { %v1368_v61 = vpop.eup %1367 }
 0x4e9   : > { %v806_v62 = vmul.f32 %v1368_v61, %v1360_v31  ;;  %v910_v3 = vpop.permute.xlu1 %909 }
 0x4ea   : > { %1279 = vmatmul.msk.bf16.vlgmr.msra.gmra.mxu0 %vm202_vm0, %v910_v3 }
 0x4eb   : > { %v810_v4 = vpack.c.bf16 %v806_v62, %v806_v62 }
 0x4ed   : > { %1277 = vmatmul.msk.bf16.vlgmr.msrb.gmra.mxu2 %vm294_vm1, %v810_v4  ;;  %1282 = vmatmul.msk.bf16.vlgmr.msra.gmra.mxu3 %vm202_vm0, %v979_v45 }
 0x4f4   : > { %v935_v7 = vpop.permute.xlu0 %934 }
 0x4f5   : > { %v940_v8 = vsel %vm202_vm0, %v935_v7, 0 }
 0x4f6   : > { %949 = vmatpush.bf16.xpose.msra.mxu1 %v940_v8 }
 0x4fd   : > { %1281 = vmatmul.msk.bf16.vlgmr.msra.gmra.mxu2 %vm202_vm0, %v956_v39  ;;  %1280 = vmatmul.msk.bf16.vlgmr.msra.gmra.mxu1 %vm202_vm0, %v933_v9 }
 0x549   : > { %v1606_v10 = vpop.f32.mrf.mxu0 }
 0x551   : > { %v829_v11 = vpop.f32.mrf.mxu0 }
 0x560   : > { %v884_v12 = vpop.f32.mrf.mxu3 }
 0x562   : > { %v846_v13 = vpop.f32.mrf.mxu1 }
 0x567   : > { %v928_v35 = vpop.f32.mrf.mxu0 }
 0x568   : > { %v886_v14 = vpop.f32.mrf.mxu3  ;;  %v1001_v15 = vsel %vm294_vm1, %v928_v35, -inf }
 0x569   : > { %1002 = vmax.xlane.f32.xlu2 %v1001_v15 }
 0x56a   : > { %v848_v16 = vpop.f32.mrf.mxu1 }
 0x56f   : > { %v930_v37 = vpop.f32.mrf.mxu0 }
 0x570   : > { %v865_v17 = vpop.f32.mrf.mxu2  ;;  %v997_v18 = vpop.f32.mrf.mxu3 }
 0x571   : > { %v1010_v19 = vsel %vm294_vm1, %v997_v18, -inf }
 0x572   : > { %1011 = vmax.xlane.f32.xlu1 %v1010_v19 }
 0x578   : > { %v867_v20 = vpop.f32.mrf.mxu2  ;;  %v999_v21 = vpop.f32.mrf.mxu3 }
 0x57a   : > { %v951_v22 = vpop.f32.mrf.mxu1 }
 0x57b   : > { %v1004_v46 = vsel %vm294_vm1, %v951_v22, -inf }
 0x580   : > { %v974_v23 = vpop.f32.mrf.mxu2 }
 0x581   : > { %v1007_v24 = vsel %vm294_vm1, %v974_v23, -inf  ;;  %1087 = vrot.lane.b32.xlu2 %v1440_v1, %s1399_s26 }
 0x582   : > { %1008 = vmax.xlane.f32.xlu0 %v1007_v24  ;;  %v953_v25 = vpop.f32.mrf.mxu1 }
 0x588   : > { %v976_v26 = vpop.f32.mrf.mxu2 }
 0x58a   : > { %1005 = vmax.xlane.f32.xlu0 %v1004_v46 }
 0x5dc   : > { %v1003_v27 = vpop.xlane.xlu2 %1002 }
 0x5dd   : > { %v1013_v28 = vsub.f32 %v928_v35, %v1003_v27 }
 0x5df   : > { %v1017_v29 = vmul.f32 1.442695, %v1013_v28 }
 0x5e1   : > { %1369 = vpow2.f32 %v1017_v29 }
 0x5e4   : > { %v1088_v47 = vpop.permute.xlu2 %1087 }
 0x5e5   : > { %v1012_v30 = vpop.xlane.xlu1 %1011  ;;  %1100 = vmatpush.bf16.msrb.mxu2 %v1088_v47 }
 0x5e6   : > { %v1016_v31 = vsub.f32 %v997_v18, %v1012_v30 }
 0x5e7   : > { %v1614_v32 = vpop.eup %1369 }
 0x5e8   : > { %v1023_v33 = vmul.f32 1.442695, %v1016_v31  ;;  %v1025_v34 = vsel %vm294_vm1, %v1614_v32, 0.0 }
 0x5e9   : > { %1026 = vadd.xlane.f32.xlu0 %v1025_v34 }
 0x5ea   : > { %1371 = vpow2.f32 %v1023_v33 }
 0x5f0   : > { %v1372_v1 = vpop.eup %1371 }
 0x5f1   : > { %v1034_v36 = vsel %vm294_vm1, %v1372_v1, 0.0 }
 0x5f2   : > { %1035 = vadd.xlane.f32.xlu2 %v1034_v36 }
 0x5f5   : > { %v1009_v38 = vpop.xlane.xlu0 %1008 }
 0x5f6   : > { %v1015_v41 = vsub.f32 %v974_v23, %v1009_v38 }
 0x5f8   : > { %v1021_v43 = vmul.f32 1.442695, %v1015_v41 }
 0x5fd   : > { %v1006_v39 = vpop.xlane.xlu0 %1005  ;;  %1106 = vrot.lane.b32.xlu0 %v1442_v2, %s1399_s26 }
 0x5fe   : > { %v1014_v40 = vsub.f32 %v951_v22, %v1006_v39 }
 0x600   : > { %v1019_v42 = vmul.f32 1.442695, %v1014_v40 }
 0x602   : > { %1373 = vpow2.f32 %v1019_v42 }
 0x603   : > { %1375 = vpow2.f32 %v1021_v43 }
 0x605   : > { %655 = vrot.lane.b32.xlu0 %v1560_v54, %s1400_s27 }
 0x608   : > { %v1374_v6 = vpop.eup %1373 }
 0x609   : > { %v1028_v44 = vsel %vm294_vm1, %v1374_v6, 0.0  ;;  %v1376_v45 = vpop.eup %1375 }
 0x60a   : > { %1029 = vadd.xlane.f32.xlu1 %v1028_v44  ;;  %1068 = vrot.lane.b32.xlu2 %v1444_v5, %s1399_s26  ;;  %v1031_v2 = vsel %vm294_vm1, %v1376_v45, 0.0 }
 0x60d   : > { %659 = vrot.lane.b32.xlu0 %v1558_v53, %s1400_s27 }
 0x612   : > { %1032 = vadd.xlane.f32.xlu1 %v1031_v2  ;;  %657 = vrot.lane.b32.xlu2 %v1562_v57, %s1400_s27 }
 0x615   : > { %661 = vrot.lane.b32.xlu0 %v1565_v63, %s1400_s27 }
 0x61a   : > { %894 = vrot.lane.b32.xlu2 %v846_v13, %s1401_s28 }
 0x61d   : > { %898 = vrot.lane.b32.xlu0 %v884_v12, %s1401_s28 }
 0x622   : > { %896 = vrot.lane.b32.xlu2 %v865_v17, %s1401_s28 }
 0x62b   : > { %1049 = vrot.lane.b32.xlu1 %v1438_v0, %s1399_s26 }
 0x633   : > { %892 = vrot.lane.b32.xlu1 %v1606_v10, %s1401_s28 }
 0x65c   : > { %v1027_v53 = vpop.xlane.xlu0 %1026 }
 0x665   : > { %v1036_v5 = vpop.xlane.xlu2 %1035 }
 0x666   : > { %1377 = vrcp.f32 %v1036_v5 }
 0x66c   : > { %v1378_v54 = vpop.eup %1377 }
 0x66d   : > { %v1044_v48 = vmul.f32 %v1378_v54, %v1372_v1  ;;  %v1069_v49 = vpop.permute.xlu2 %1068 }
 0x66e   : > { %1081 = vmatpush.bf16.msrb.mxu1 %v1069_v49 }
 0x66f   : > { %v1107_v57 = vpop.permute.xlu0 %1106  ;;  %v1048_v50 = vpack.c.bf16 %v1044_v48, %v1044_v48 }
 0x670   : > { %1119 = vmatpush.bf16.msrb.mxu3 %v1107_v57 }
 0x673   : > { %1286 = vmatmul.msk.bf16.vlgmr.msrb.gmra.mxu3 %vm294_vm1, %v1048_v50 }
 0x675   : > { %v658_v63 = vpop.permute.xlu2 %657 }
 0x676   : > { %669 = vst.msk [vmem:[#allocation2 + $0x8] sm:$0xff] %vm667_vm2, %v658_v63 }
 0x677   : > { %v656_v51 = vpop.permute.xlu0 %655 }
 0x678   : > { %668 = vst.msk [vmem:[#allocation2] sm:$0xff] %vm667_vm2, %v656_v51 }
 0x67d   : > { %v1030_v0 = vpop.xlane.xlu1 %1029  ;;  %v895_v52 = vpop.permute.xlu2 %894 }
 0x67e   : > { %1379 = vrcp.f32 %v1030_v0  ;;  %906 = vst.msk [vmem:[#allocation2 + $0x8] sm:$0xff] %vm904_vm3, %v895_v52 }
 0x67f   : > { %v660_v55 = vpop.permute.xlu0 %659 }
 0x680   : > { %670 = vst.msk [vmem:[#allocation2 + $0x10] sm:$0xff] %vm667_vm2, %v660_v55 }
 0x684   : > { %v1380_v56 = vpop.eup %1379 }
 0x685   : > { %v1042_v58 = vmul.f32 %v1380_v56, %v1374_v6  ;;  %v1033_v59 = vpop.xlane.xlu1 %1032  ;;  %v897_v60 = vpop.permute.xlu2 %896 }
 0x686   : > { %1381 = vrcp.f32 %v1033_v59  ;;  %907 = vst.msk [vmem:[#allocation2 + $0x10] sm:$0xff] %vm904_vm3, %v897_v60 }
 0x687   : > { %v1046_v61 = vpack.c.bf16 %v1042_v58, %v1042_v58  ;;  %v662_v62 = vpop.permute.xlu0 %661  ;;  %1383 = vrcp.f32 %v1027_v53 }
 0x688   : > { %671 = vst.msk [vmem:[#allocation2 + $0x18] sm:$0xff] %vm667_vm2, %v662_v62 }
 0x689   : > { %1284 = vmatmul.msk.bf16.vlgmr.msrb.gmra.mxu1 %vm294_vm1, %v1046_v61 }
 0x68c   : > { %v1382_v3 = vpop.eup %1381 }
 0x68d   : > { %v1043_v4 = vmul.f32 %v1382_v3, %v1376_v45  ;;  %v1384_v9 = vpop.eup %1383 }
 0x68e   : > { %v1041_v10 = vmul.f32 %v1384_v9, %v1614_v32 }
 0x68f   : > { %v1047_v7 = vpack.c.bf16 %v1043_v4, %v1043_v4  ;;  %v899_v8 = vpop.permute.xlu0 %898 }
 0x690   : > { %908 = vst.msk [vmem:[#allocation2 + $0x18] sm:$0xff] %vm904_vm3, %v899_v8  ;;  %v1045_v12 = vpack.c.bf16 %v1041_v10, %v1041_v10 }
 0x691   : > { %1285 = vmatmul.msk.bf16.vlgmr.msrb.gmra.mxu2 %vm294_vm1, %v1047_v7 }
 0x69d   : > { %v1050_v11 = vpop.permute.xlu1 %1049 }
 0x69e   : > { %1062 = vmatpush.bf16.msrb.mxu0 %v1050_v11 }
 0x6a1   : > { %1283 = vmatmul.msk.bf16.vlgmr.msrb.gmra.mxu0 %vm294_vm1, %v1045_v12 }
 0x6a5   : > { %v893_v13 = vpop.permute.xlu1 %892 }
 0x6a6   : > { %905 = vst.msk [vmem:[#allocation2] sm:$0xff] %vm904_vm3, %v893_v13 }
 0x6f6   : > { %v1121_v35 = vpop.f32.mrf.mxu3 }
 0x6fe   : > { %v1123_v14 = vpop.f32.mrf.mxu3 }
 0x706   : > { %v1083_v15 = vpop.f32.mrf.mxu1 }
 0x70e   : > { %v1085_v16 = vpop.f32.mrf.mxu1 }
 0x714   : > { %v1102_v37 = vpop.f32.mrf.mxu2 }
 0x715   : > { %1133 = vrot.lane.b32.xlu2 %v1102_v37, %s1402_s29 }
 0x71c   : > { %v1104_v17 = vpop.f32.mrf.mxu2 }
 0x71e   : > { %v1064_v18 = vpop.f32.mrf.mxu0 }
 0x71f   : > { %1129 = vrot.lane.b32.xlu1 %v1064_v18, %s1402_s29 }
 0x726   : > { %v1066_v19 = vpop.f32.mrf.mxu0 }
 0x727   : > { %1131 = vrot.lane.b32.xlu1 %v1083_v15, %s1402_s29 }
 0x72f   : > { %1135 = vrot.lane.b32.xlu1 %v1121_v35, %s1402_s29 }
 0x76f   : > { %v1134_v20 = vpop.permute.xlu2 %1133 }
 0x770   : > { %1144 = vst.msk [vmem:[#allocation2 + $0x10] sm:$0xff] %vm1141_vm4, %v1134_v20 }
 0x777   : > { %v1148_v25 = vld [vmem:[#allocation2 + $0x10] sm:$0xff] }
 0x778   : > { %v1152_v28 = vpack.c.bf16 %v1148_v25, %v1148_v25 }
 0x77a   : > { %1157 = vst.msk [vmem:[%s170_s4 + $0x8] sm:$0xf] %vm1154_vm5, %v1152_v28 }
 0x791   : > { %v1130_v21 = vpop.permute.xlu1 %1129 }
 0x792   : > { %1142 = vst.msk [vmem:[#allocation2] sm:$0xff] %vm1141_vm4, %v1130_v21 }
 0x799   : > { %v1146_v22 = vld [vmem:[#allocation2] sm:$0xff]  ;;  %v1132_v23 = vpop.permute.xlu1 %1131 }
 0x79a   : > { %v1150_v24 = vpack.c.bf16 %v1146_v22, %v1146_v22  ;;  %1143 = vst.msk [vmem:[#allocation2 + $0x8] sm:$0xff] %vm1141_vm4, %v1132_v23 }
 0x79c   : > { %1155 = vst.msk [vmem:[%s170_s4] sm:$0xf] %vm1154_vm5, %v1150_v24 }
 0x7a1   : > { %v1147_v46 = vld [vmem:[#allocation2 + $0x8] sm:$0xff]  ;;  %v1136_v26 = vpop.permute.xlu1 %1135 }
 0x7a2   : > { %v1151_v27 = vpack.c.bf16 %v1147_v46, %v1147_v46  ;;  %1145 = vst.msk [vmem:[#allocation2 + $0x18] sm:$0xff] %vm1141_vm4, %v1136_v26 }
 0x7a4   : > { %1156 = vst.msk [vmem:[%s170_s4 + $0x4] sm:$0xf] %vm1154_vm5, %v1151_v27 }
 0x7a9   : > { %v1149_v29 = vld [vmem:[#allocation2 + $0x18] sm:$0xff] }
 0x7aa   : > { %v1153_v30 = vpack.c.bf16 %v1149_v29, %v1149_v29 }
 0x7ac   : > { %1158 = vst.msk [vmem:[%s170_s4 + $0xc] sm:$0xf] %vm1154_vm5, %v1153_v30 }
 0x7ad PF: > { %s12_s9 = sadd.s32 1, %s1391_s9  }
 0x7ae   : > { %p9_p4 = scmp.ge.s32.totalorder %s12_s9, 4  }
 0x7b0   :  { %11 = sbr.rel (!%p9_p4) target bundleno = 1 (0x1), region = 61 }

// kernel: videollama_forward.44
= control target key start
LH: loop header
LB: loop body
LE: loop exit
PB: predicated region body
PF: predicated region fallthrough
CT: control target
= control target key end

     0   :  { %8 = vsyncpa [#allocation3], 0  ;;  %s540_s12 = smov 0   ;;  %s542_s13 = smov 0   ;;  %s583_s0 = inlined_call_operand.vmem [shape: f32[64,32], index: 0, kind: input, shape index: {}]   ;;  %s584_s1 = inlined_call_operand.vmem [shape: bf16[32,96], index: 1, kind: input, shape index: {}]   ;;  %s585_s2 = inlined_call_operand.hbm [shape: f32[1,96], index: 2, kind: input, shape index: {}]   ;;  %s586_s3 = inlined_call_operand.vmem [shape: bf16[64,96], index: 3, kind: output, shape index: {}]  }
   0x1   :  { %s544_s14 = smov 0  }
   0x2 LB: > { %s397_s15 = sadd.s32 4294967295, %s517_s14   ;;  %s26_s16 = sadd.s32 1, %s513_s13  ;;  %s517_s14 = sphi %s544_s14, %s14_s14   ;;  %s513_s13 = sphi %s542_s13, %s588_s13   ;;  %s509_s12 = sphi %s540_s12, %s587_s12  }
   0x3   : > { %p28_p0 = scmp.ge.s32.totalorder %s26_s16, 2  ;;  %p399_p1 = scmp.ge.s32.totalorder %s517_s14, 1 }
   0x4   : > { %p137_p2 = scmp.lt.s32.totalorder %s517_s14, 3  ;;  %p433_p4 = scmp.eq.s32.totalorder %s397_s15, 0 }
   0x5   : > { %s590_s16 = smov (%p28_p0, %s26_s16), 0  ;;  %s157_s19 = sshll.u32 %s585_s2, 4  ;;  %s158_s19 = int_to_ptr.hbm [resolvable:$true] %s157_s19 }
   0x6   : > { %p138_p3 = pnand %p399_p1, %p137_p2  ;;  %s519_s20 = smov [#allocation2]  }
   0x7   : > { %s159_s21 = sshll.u32 %s519_s20, 4  ;;  %s160_s21 = int_to_ptr.vmem [resolvable:$true] %s159_s21 }
   0x8   : > { %p429_p5 = pneg %p138_p3  ;;  %181 = sbr.rel (%p138_p3) target bundleno = 163 (0xa3), region = 32 }
   0xa   : > { %p430_p6 = pnand %p433_p4, %p429_p5 }
   0xc   : > { %432 = dma.hbm_to_vmem [thread:$0]  (!%p430_p6), %s158_s19, 16, %s160_s21, [#allocation3]  }
   0xd   : > { %504 = dma.done.wait (%p433_p4), [#allocation3], 16  }
   0xe   : > { %506 = vsyncadd (%p433_p4), [#allocation3], 4294967280  ;;  %s405_s22 = sshll.u32 %s509_s12, 2  ;;  %v422_v0 = vld [vmem:[%s584_s1 + $0x8] sm:$0xff]  ;;  %v421_v1 = vld [vmem:[%s584_s1] sm:$0xff]  ;;  %vm259_vm0 = vcmask 261120  }
   0xf   : > { %p214_p7 = scmp.lt.s32.totalorder %s405_s22, 7  ;;  %272 = vmatpush.bf16.msra.mxu0 %v422_v0  ;;  %423 = vmatpush.bf16.msra.mxu1 %v422_v0  ;;  %v460_v8 = vld [vmem:[#allocation2] ss:$0 sm:$0xff]  ;;  %vm289_vm1 = vcmask 781312  }
  0x11   : > { %s592_s22 = smov (!%p214_p7, %s405_s22), 7 }
  0x12   : > { %s406_s23 = sshll.u32 %s592_s22, 3  ;;  %s408_s4 = sshll.u32 %s592_s22, 2 }
  0x13   : > { %s217_s26 = scalar_lea.vmem %s583_s0, %s406_s23  ;;  %273 = vmatpush.bf16.msra.mxu0 %v421_v1  ;;  %424 = vmatpush.bf16.msra.mxu1 %v421_v1  ;;  %s230_s7 = scalar_lea.vmem %s586_s3, %s408_s4 }
  0x14   : > { %v233_v2 = vld [vmem:[%s217_s26] sm:$0xff]  ;;  %v234_v3 = vld [vmem:[%s217_s26 + $0x8] sm:$0xff]  ;;  %v235_v4 = vld [vmem:[%s217_s26 + $0x10] sm:$0xff] }
  0x15   : > { %v236_v5 = vld [vmem:[%s217_s26 + $0x18] sm:$0xff]  ;;  %v237_v6 = vpack.c.bf16 %v234_v3, %v233_v2 }
  0x16   : > { %v238_v7 = vpack.c.bf16 %v236_v5, %v235_v4 }
  0x17   : > { %417 = vmatmul.msk.bf16.vlgmr.msra.gmra.mxu0 %vm259_vm0, %v237_v6 }
  0x18   : > { %418 = vmatmul.msk.bf16.vlgmr.msra.gmra.mxu1 %vm259_vm0, %v238_v7 }
  0x94   : > { %v275_v9 = vpop.f32.mrf.mxu0 }
  0x95   : > { %v280_v10 = vpop.f32.mrf.mxu1  ;;  %v276_v11 = vadd.f32 %v460_v8, %v275_v9 }
  0x96   : > { %v281_v13 = vadd.f32 %v460_v8, %v280_v10 }
  0x97   : > { %v285_v12 = vpack.c.bf16 %v276_v11, %v276_v11 }
  0x98   : > { %v287_v19 = vpack.c.bf16 %v281_v13, %v281_v13 }
  0x99   : > { %290 = vst.msk [vmem:[%s230_s7] sm:$0xf] %vm289_vm1, %v285_v12 }
  0x9a   : > { %292 = vst.msk [vmem:[%s230_s7 + $0x8] sm:$0xf] %vm289_vm1, %v287_v19 }
  0x9c   : > { %v277_v14 = vpop.f32.mrf.mxu0 }
  0x9d   : > { %v282_v15 = vpop.f32.mrf.mxu1  ;;  %v278_v16 = vadd.f32 %v460_v8, %v277_v14 }
  0x9e   : > { %v283_v17 = vadd.f32 %v460_v8, %v282_v15 }
  0x9f   : > { %v286_v18 = vpack.c.bf16 %v278_v16, %v278_v16 }
  0xa0   : > { %v288_v20 = vpack.c.bf16 %v283_v17, %v283_v17 }
  0xa1   : > { %291 = vst.msk [vmem:[%s230_s7 + $0x4] sm:$0xf] %vm289_vm1, %v286_v18 }
  0xa2   : > { %293 = vst.msk [vmem:[%s230_s7 + $0xc] sm:$0xf] %vm289_vm1, %v288_v20 }
  0xa3 PF: > { %s14_s14 = sadd.s32 1, %s517_s14   ;;  %s587_s12 = smov %s513_s13 }
  0xa4   : > { %p11_p8 = scmp.ge.s32.totalorder %s14_s14, 4   ;;  %s588_s13 = smov %s590_s16 }
  0xa6   :  { %13 = sbr.rel (!%p11_p8) target bundleno = 2 (0x2), region = 71 }
  0xab   :  { %322 = vsyncpa [#allocation3], 1 }
  0xac   :  { %324 = vsyncpa [#allocation3 + $0x1], 1 }

// kernel: videollama_forward.43
= control target key start
LH: loop header
LB: loop body
LE: loop exit
PB: predicated region body
PF: predicated region fallthrough
CT: control target
= control target key end

     0   :  { %12 = vsyncpa [#allocation3], 0  ;;  %s1235_s0 = inlined_call_operand.vmem [shape: f32[64,32], index: 0, kind: input, shape index: {}]   ;;  %s1236_s1 = inlined_call_operand.vmem [shape: bf16[32,128], index: 1, kind: input, shape index: {}]   ;;  %s1237_s2 = inlined_call_operand.hbm [shape: f32[1,128], index: 2, kind: input, shape index: {}]   ;;  %s1238_s3 = inlined_call_operand.vmem [shape: bf16[128,32], index: 3, kind: input, shape index: {}]   ;;  %s1239_s4 = inlined_call_operand.hbm [shape: f32[1,32], index: 4, kind: input, shape index: {}]   ;;  %s1240_s5 = inlined_call_operand.hbm [shape: f32[1,32], index: 5, kind: input, shape index: {}]   ;;  %s1241_s6 = inlined_call_operand.hbm [shape: f32[1,32], index: 6, kind: input, shape index: {}]   ;;  %s1242_s7 = inlined_call_operand.vmem [shape: f32[64,32], index: 7, kind: output, shape index: {}]  }
   0x1   :  { %13 = vsyncpa [#allocation5], 0 }
   0x2   :  { %14 = vsyncpa [#allocation8], 0  ;;  %s1071_s24 = smov 0  }
   0x3 LB: > { %s233_s27 = sshll.u32 %s1239_s4, 4  ;;  %s735_s28 = sadd.s32 4294967295, %s1024_s24   ;;  %s1024_s24 = sphi %s1071_s24, %s20_s24   ;;  %s234_s27 = int_to_ptr.hbm [resolvable:$true] %s233_s27 }
   0x4   : > { %p737_p0 = scmp.ge.s32.totalorder %s1024_s24, 1  ;;  %p203_p1 = scmp.lt.s32.totalorder %s1024_s24, 3 }
   0x5   : > { %p1084_p2 = scmp.eq.s32.totalorder %s735_s28, 0  ;;  %s1026_s8 = smov [#allocation4]  }
   0x6   : > { %p1088_p3 = pnand %p737_p0, %p203_p1  ;;  %s235_s9 = sshll.u32 %s1026_s8, 4  ;;  %s236_s9 = int_to_ptr.vmem [resolvable:$true] %s235_s9 }
   0x7   : > { %s218_s12 = sshll.u32 %s1237_s2, 4  ;;  %s245_s15 = sshll.u32 %s1240_s5, 4  ;;  %s219_s12 = int_to_ptr.hbm [resolvable:$true] %s218_s12  ;;  %s246_s15 = int_to_ptr.hbm [resolvable:$true] %s245_s15 }
   0x8   : > { %p830_p4 = pneg %p1088_p3  ;;  %s1027_s17 = smov [#allocation2]  }
   0x9   : > { %s220_s18 = sshll.u32 %s1027_s17, 4  ;;  %s1028_s19 = smov [#allocation6]   ;;  %s221_s18 = int_to_ptr.vmem [resolvable:$true] %s220_s18 }
   0xa   : > { %p1102_p5 = pnand %p1084_p2, %p830_p4  ;;  %s247_s20 = sshll.u32 %s1028_s19, 4  ;;  %s248_s20 = int_to_ptr.vmem [resolvable:$true] %s247_s20 }
   0xb   : > { %s257_s23 = sshll.u32 %s1241_s6, 4  ;;  %s1029_s25 = smov [#allocation7]   ;;  %s258_s23 = int_to_ptr.hbm [resolvable:$true] %s257_s23 }
   0xc   : > { %836 = dma.hbm_to_vmem [thread:$0]  (!%p1102_p5), %s234_s27, 16, %s236_s9, [#allocation5]  }
   0xd   : > { %833 = dma.hbm_to_vmem [thread:$0]  (!%p1102_p5), %s219_s12, 16, %s221_s18, [#allocation3]  }
   0xe   : > { %839 = dma.hbm_to_vmem [thread:$0]  (!%p1102_p5), %s246_s15, 16, %s248_s20, [#allocation5]  }
   0xf   : > { %s259_s26 = sshll.u32 %s1029_s25, 4  ;;  %281 = sbr.rel (%p1088_p3) target bundleno = 624 (0x270), region = 48  ;;  %s260_s26 = int_to_ptr.vmem [resolvable:$true] %s259_s26 }
  0x10   : > { %842 = dma.hbm_to_vmem [thread:$0]  (!%p1102_p5), %s258_s23, 16, %s260_s26, [#allocation8]  }
  0x14   : > { %1011 = dma.done.wait (%p1084_p2), [#allocation3], 16  }
  0x15   : > { %1013 = vsyncadd (%p1084_p2), [#allocation3], 4294967280 }
  0x16   : > { %1015 = dma.done.wait (%p1084_p2), [#allocation5], 32  }
  0x17   : > { %1017 = vsyncadd (%p1084_p2), [#allocation5], 4294967264 }
  0x18   : > { %1019 = dma.done.wait (%p1084_p2), [#allocation8], 16  }
  0x19   : > { %1021 = vsyncadd (%p1084_p2), [#allocation8], 4294967280  ;;  %s748_s27 = sshll.u32 %s735_s28, 2  ;;  %v797_v0 = vld [vmem:[%s1236_s1 + $0x8] sm:$0xff]  ;;  %v796_v1 = vld [vmem:[%s1236_s1] sm:$0xff]  ;;  %vm368_vm0 = vcmask 261120  }
  0x1a   : > { %p330_p6 = scmp.lt.s32.totalorder %s748_s27, 7  ;;  %381 = vmatpush.bf16.msra.mxu0 %v797_v0  ;;  %v805_v8 = vld [vmem:[%s1238_s3 + $0x38] sm:$0xff]  ;;  %v804_v9 = vld [vmem:[%s1238_s3 + $0x30] sm:$0xff]  ;;  %v803_v10 = vld [vmem:[%s1238_s3 + $0x28] sm:$0xff] }
  0x1b   : > { %500 = vmatpush.bf16.msra.mxu1 %v805_v8  ;;  %806 = vmatpush.bf16.msra.mxu2 %v805_v8  ;;  %v802_v11 = vld [vmem:[%s1238_s3 + $0x20] sm:$0xff]  ;;  %v801_v12 = vld [vmem:[%s1238_s3 + $0x18] sm:$0xff]  ;;  %v800_v13 = vld [vmem:[%s1238_s3 + $0x10] sm:$0xff] }
  0x1c   : > { %s1247_s27 = smov (!%p330_p6, %s748_s27), 7  ;;  %v799_v14 = vld [vmem:[%s1238_s3 + $0x8] sm:$0xff]  ;;  %v864_v15 = vld [vmem:[#allocation2] ss:$0 sm:$0xff]  ;;  %v865_v63 = vld [vmem:[#allocation4] ss:$0 sm:$0xff] }
  0x1d   : > { %s749_s30 = sshll.u32 %s1247_s27, 3  ;;  %v798_v16 = vld [vmem:[%s1238_s3] sm:$0xff] }
  0x1e   : > { %s333_s10 = scalar_lea.vmem %s1235_s0, %s749_s30  ;;  %382 = vmatpush.bf16.msra.mxu0 %v796_v1  ;;  %s1219_s29 = scalar_lea.vmem %s1242_s7, %s749_s30 }
  0x1f   : > { %v1147_v2 = vld [vmem:[%s333_s10] sm:$0xff]  ;;  %v1149_v3 = vld [vmem:[%s333_s10 + $0x8] sm:$0xff]  ;;  %v1154_v5 = vld [vmem:[%s333_s10 + $0x10] sm:$0xff]  ;;  %501 = vmatpush.bf16.msra.mxu1 %v804_v9  ;;  %807 = vmatpush.bf16.msra.mxu2 %v804_v9 }
  0x20   : > { %v346_v4 = vpack.c.bf16 %v1149_v3, %v1147_v2  ;;  %v1156_v6 = vld [vmem:[%s333_s10 + $0x18] sm:$0xff] }
  0x21   : > { %v347_v7 = vpack.c.bf16 %v1156_v6, %v1154_v5 }
  0x22   : > { %760 = vmatmul.msk.bf16.vlgmr.msra.gmra.mxu0 %vm368_vm0, %v346_v4 }
  0x23   : > { %502 = vmatpush.bf16.msra.mxu1 %v803_v10  ;;  %808 = vmatpush.bf16.msra.mxu2 %v803_v10 }
  0x27   : > { %503 = vmatpush.bf16.msra.mxu1 %v802_v11  ;;  %809 = vmatpush.bf16.msra.mxu2 %v802_v11 }
  0x2b   : > { %504 = vmatpush.bf16.msra.mxu1 %v801_v12  ;;  %810 = vmatpush.bf16.msra.mxu2 %v801_v12 }
  0x2f   : > { %505 = vmatpush.bf16.msra.mxu1 %v800_v13  ;;  %811 = vmatpush.bf16.msra.mxu2 %v800_v13 }
  0x32   : > { %761 = vmatmul.msk.bf16.gmra.mxu0 %vm368_vm0, %v347_v7 }
  0x33   : > { %506 = vmatpush.bf16.msra.mxu1 %v799_v14  ;;  %812 = vmatpush.bf16.msra.mxu2 %v799_v14 }
  0x37   : > { %507 = vmatpush.bf16.msra.mxu1 %v798_v16  ;;  %813 = vmatpush.bf16.msra.mxu2 %v798_v16 }
  0x9f   : > { %v384_v17 = vpop.f32.mrf.mxu0 }
  0xa0   : > { %v385_v18 = vadd.f32 %v864_v15, %v384_v17 }
  0xa2   : > { %v394_v19 = vmul.f32 %v385_v18, %v385_v18 }
  0xa4   : > { %v398_v20 = vmul.f32 %v394_v19, %v385_v18  ;;  %v1030_v19 = vmov 32.0  }
  0xa6   : > { %v402_v21 = vmul.f32 0.044715, %v398_v20 }
  0xa7   : > { %v386_v22 = vpop.f32.mrf.mxu0 }
  0xa8   : > { %v406_v23 = vadd.f32 %v402_v21, %v385_v18  ;;  %v387_v24 = vadd.f32 %v864_v15, %v386_v22 }
  0xaa   : > { %v395_v25 = vmul.f32 %v387_v24, %v387_v24  ;;  %v410_v26 = vmul.f32 0.7978846, %v406_v23 }
  0xac   : > { %v399_v27 = vmul.f32 %v395_v25, %v387_v24  ;;  %868 = vtanh.f32 %v410_v26 }
  0xae   : > { %v403_v28 = vmul.f32 0.044715, %v399_v27 }
  0xaf   : > { %v389_v29 = vpop.f32.mrf.mxu0 }
  0xb0   : > { %v407_v30 = vadd.f32 %v403_v28, %v387_v24  ;;  %v390_v31 = vadd.f32 %v864_v15, %v389_v29 }
  0xb2   : > { %v396_v32 = vmul.f32 %v390_v31, %v390_v31  ;;  %v411_v33 = vmul.f32 0.7978846, %v407_v30  ;;  %v869_v34 = vpop.eup %868 }
  0xb3   : > { %v418_v38 = vadd.f32 1.0, %v869_v34 }
  0xb4   : > { %v400_v35 = vmul.f32 %v396_v32, %v390_v31  ;;  %870 = vtanh.f32 %v411_v33 }
  0xb5   : > { %v422_v45 = vmul.f32 0.5, %v418_v38 }
  0xb6   : > { %v404_v36 = vmul.f32 0.044715, %v400_v35 }
  0xb7   : > { %v391_v37 = vpop.f32.mrf.mxu0  ;;  %v426_v49 = vmul.f32 %v422_v45, %v385_v18 }
  0xb8   : > { %v408_v39 = vadd.f32 %v404_v36, %v390_v31  ;;  %v392_v40 = vadd.f32 %v864_v15, %v391_v37 }
  0xba   : > { %v871_v41 = vpop.eup %870  ;;  %v397_v42 = vmul.f32 %v392_v40, %v392_v40  ;;  %v412_v43 = vmul.f32 0.7978846, %v408_v39 }
  0xbb   : > { %v419_v44 = vadd.f32 1.0, %v871_v41 }
  0xbc   : > { %v401_v46 = vmul.f32 %v397_v42, %v392_v40  ;;  %872 = vtanh.f32 %v412_v43 }
  0xbd   : > { %v423_v47 = vmul.f32 0.5, %v419_v44 }
  0xbe   : > { %v405_v48 = vmul.f32 0.044715, %v401_v46 }
  0xbf   : > { %v427_v50 = vmul.f32 %v423_v47, %v387_v24 }
  0xc0   : > { %v409_v51 = vadd.f32 %v405_v48, %v392_v40 }
  0xc1   : > { %v430_v52 = vpack.c.bf16 %v427_v50, %v426_v49 }
  0xc2   : > { %v413_v53 = vmul.f32 0.7978846, %v409_v51  ;;  %v873_v54 = vpop.eup %872 }
  0xc3   : > { %508 = vmatmul.bf16.vlgmr.msra.gmra.mxu1 %v430_v52  ;;  %v420_v55 = vadd.f32 1.0, %v873_v54 }
  0xc4   : > { %874 = vtanh.f32 %v413_v53 }
  0xc5   : > { %v424_v58 = vmul.f32 0.5, %v420_v55  ;;  %876 = vrcp.f32 %v1030_v19 }
  0xc7   : > { %v428_v60 = vmul.f32 %v424_v58, %v390_v31 }
  0xca   : > { %v875_v56 = vpop.eup %874 }
  0xcb   : > { %v421_v57 = vadd.f32 1.0, %v875_v56 }
  0xcd   : > { %v425_v59 = vmul.f32 0.5, %v421_v57  ;;  %v866_v57 = vld [vmem:[#allocation6] ss:$0 sm:$0xff] }
  0xcf   : > { %v429_v61 = vmul.f32 %v425_v59, %v392_v40 }
  0xd1   : > { %v431_v62 = vpack.c.bf16 %v429_v61, %v428_v60  ;;  %v867_v61 = vld [vmem:[#allocation7] ss:$0 sm:$0xff] }
  0xd3   : > { %513 = vmatmul.bf16.vlgmr.msra.gmra.mxu2 %v431_v62 }
 0x140   : > { %v509_v0 = vpop.f32.mrf.mxu1 }
 0x141   : > { %v510_v1 = vadd.f32 %v865_v63, %v509_v0 }
 0x143   : > { %v519_v4 = vadd.f32 %v510_v1, %v1147_v2 }
 0x145   : > { %v523_v7 = vsel %vm368_vm0, %v519_v4, 0.0 }
 0x146   : > { %524 = vadd.xlane.f32.xlu0 %v523_v7 }
 0x148   : > { %v511_v8 = vpop.f32.mrf.mxu1 }
 0x149   : > { %v512_v9 = vadd.f32 %v865_v63, %v511_v8 }
 0x14b   : > { %v520_v10 = vadd.f32 %v512_v9, %v1149_v3  ;;  %v877_v3 = vpop.eup %876 }
 0x14c   : > { %v536_v20 = vmul.f32 32.0, %v877_v3  ;;  %vm540_vm1 = vweird.f32 %v877_v3 }
 0x14d   : > { %v526_v11 = vsel %vm368_vm0, %v520_v10, 0.0 }
 0x14e   : > { %527 = vadd.xlane.f32.xlu0 %v526_v11  ;;  %v537_v21 = vsub.f32 1.0, %v536_v20 }
 0x150   : > { %v538_v22 = vmul.f32 %v877_v3, %v537_v21 }
 0x152   : > { %v539_v23 = vadd.f32 %v877_v3, %v538_v22 }
 0x154   : > { %v1193_v24 = vsel %vm540_vm1, %v877_v3, %v539_v23 }
 0x156   : > { %v514_v12 = vpop.f32.mrf.mxu2 }
 0x157   : > { %v515_v13 = vadd.f32 %v865_v63, %v514_v12 }
 0x159   : > { %v521_v14 = vadd.f32 %v515_v13, %v1154_v5 }
 0x15b   : > { %v529_v15 = vsel %vm368_vm0, %v521_v14, 0.0 }
 0x15c   : > { %530 = vadd.xlane.f32.xlu1 %v529_v15 }
 0x15e   : > { %v516_v16 = vpop.f32.mrf.mxu2 }
 0x15f   : > { %v517_v17 = vadd.f32 %v865_v63, %v516_v16 }
 0x161   : > { %v522_v2 = vadd.f32 %v517_v17, %v1156_v6 }
 0x163   : > { %v532_v18 = vsel %vm368_vm0, %v522_v2, 0.0 }
 0x164   : > { %533 = vadd.xlane.f32.xlu1 %v532_v18 }
 0x1b9   : > { %v525_v5 = vpop.xlane.xlu0 %524 }
 0x1ba   : > { %v542_v25 = vmul.f32 %v1193_v24, %v525_v5 }
 0x1bc   : > { %v546_v26 = vsub.f32 %v519_v4, %v542_v25 }
 0x1be   : > { %v550_v27 = vmul.f32 %v546_v26, %v546_v26 }
 0x1c0   : > { %v554_v6 = vsel %vm368_vm0, %v550_v27, 0.0 }
 0x1c1   : > { %555 = vadd.xlane.f32.xlu2 %v554_v6  ;;  %v528_v28 = vpop.xlane.xlu0 %527 }
 0x1c2   : > { %v543_v29 = vmul.f32 %v1193_v24, %v528_v28 }
 0x1c4   : > { %v547_v30 = vsub.f32 %v520_v10, %v543_v29 }
 0x1c6   : > { %v551_v31 = vmul.f32 %v547_v30, %v547_v30 }
 0x1c8   : > { %v557_v32 = vsel %vm368_vm0, %v551_v31, 0.0 }
 0x1c9   : > { %558 = vadd.xlane.f32.xlu2 %v557_v32 }
 0x1cf   : > { %v531_v33 = vpop.xlane.xlu1 %530 }
 0x1d0   : > { %v544_v34 = vmul.f32 %v1193_v24, %v531_v33 }
 0x1d2   : > { %v1200_v35 = vsub.f32 %v521_v14, %v544_v34 }
 0x1d4   : > { %v552_v36 = vmul.f32 %v1200_v35, %v1200_v35 }
 0x1d6   : > { %v560_v37 = vsel %vm368_vm0, %v552_v36, 0.0 }
 0x1d7   : > { %v534_v38 = vpop.xlane.xlu1 %533  ;;  %561 = vadd.xlane.f32.xlu0 %v560_v37 }
 0x1d8   : > { %v545_v39 = vmul.f32 %v1193_v24, %v534_v38 }
 0x1da   : > { %v1206_v40 = vsub.f32 %v522_v2, %v545_v39 }
 0x1dc   : > { %v553_v41 = vmul.f32 %v1206_v40, %v1206_v40 }
 0x1de   : > { %v563_v42 = vsel %vm368_vm0, %v553_v41, 0.0 }
 0x1df   : > { %564 = vadd.xlane.f32.xlu1 %v563_v42 }
 0x234   : > { %v556_v43 = vpop.xlane.xlu2 %555 }
 0x235   : > { %v566_v44 = vmul.f32 %v556_v43, %v1193_v24 }
 0x237   : > { %v570_v45 = vadd.f32 1e-12, %v566_v44 }
 0x239   : > { %878 = vrsqrt.f32 %v570_v45  ;;  %vm580_vm3 = vweird.f32 %v570_v45 }
 0x23c   : > { %v559_v46 = vpop.xlane.xlu2 %558 }
 0x23d   : > { %v567_v47 = vmul.f32 %v559_v46, %v1193_v24 }
 0x23f   : > { %v879_v48 = vpop.eup %878  ;;  %v571_v49 = vadd.f32 1e-12, %v567_v47 }
 0x240   : > { %v575_v50 = vmul.f32 %v879_v48, %v570_v45  ;;  %vm581_vm2 = vweird.f32 %v879_v48 }
 0x241   : > { %880 = vrsqrt.f32 %v571_v49  ;;  %vm582_vm4 = vmor %vm580_vm3, %vm581_vm2  ;;  %vm590_vm6 = vweird.f32 %v571_v49 }
 0x242   : > { %v576_v51 = vmul.f32 %v879_v48, %v575_v50 }
 0x244   : > { %v577_v52 = vmul.f32 0.5, %v576_v51 }
 0x246   : > { %v578_v53 = vsub.f32 1.5, %v577_v52 }
 0x247   : > { %v881_v54 = vpop.eup %880 }
 0x248   : > { %v579_v55 = vmul.f32 %v879_v48, %v578_v53  ;;  %v585_v56 = vmul.f32 %v881_v54, %v571_v49  ;;  %vm591_vm5 = vweird.f32 %v881_v54 }
 0x249   : > { %vm592_vm7 = vmor %vm590_vm6, %vm591_vm5 }
 0x24a   : > { %v583_v58 = vsel %vm582_vm4, %v879_v48, %v579_v55  ;;  %v586_v59 = vmul.f32 %v881_v54, %v585_v56  ;;  %v562_v60 = vpop.xlane.xlu0 %561 }
 0x24b   : > { %v614_v62 = vmul.f32 %v583_v58, %v546_v26  ;;  %v568_v63 = vmul.f32 %v562_v60, %v1193_v24 }
 0x24c   : > { %v587_v0 = vmul.f32 0.5, %v586_v59 }
 0x24d   : > { %v622_v1 = vmul.f32 %v866_v57, %v614_v62  ;;  %v572_v4 = vadd.f32 1e-12, %v568_v63 }
 0x24e   : > { %v588_v7 = vsub.f32 1.5, %v587_v0 }
 0x24f   : > { %v630_v8 = vadd.f32 %v867_v61, %v622_v1  ;;  %882 = vrsqrt.f32 %v572_v4  ;;  %vm600_vm9 = vweird.f32 %v572_v4 }
 0x250   : > { %v589_v9 = vmul.f32 %v881_v54, %v588_v7 }
 0x251   : > { %634 = vst.msk [vmem:[%s1219_s29] sm:$0xff] %vm368_vm0, %v630_v8 }
 0x252   : > { %v593_v10 = vsel %vm592_vm7, %v881_v54, %v589_v9  ;;  %v565_v11 = vpop.xlane.xlu1 %564 }
 0x253   : > { %v615_v12 = vmul.f32 %v593_v10, %v547_v30  ;;  %v569_v13 = vmul.f32 %v565_v11, %v1193_v24 }
 0x255   : > { %v883_v14 = vpop.eup %882  ;;  %v623_v15 = vmul.f32 %v866_v57, %v615_v12  ;;  %v573_v16 = vadd.f32 1e-12, %v569_v13 }
 0x256   : > { %v595_v17 = vmul.f32 %v883_v14, %v572_v4  ;;  %vm601_vm8 = vweird.f32 %v883_v14 }
 0x257   : > { %v631_v2 = vadd.f32 %v867_v61, %v623_v15  ;;  %884 = vrsqrt.f32 %v573_v16  ;;  %vm602_vm10 = vmor %vm600_vm9, %vm601_vm8  ;;  %vm610_vm12 = vweird.f32 %v573_v16 }
 0x258   : > { %v596_v18 = vmul.f32 %v883_v14, %v595_v17 }
 0x259   : > { %635 = vst.msk [vmem:[%s1219_s29 + $0x8] sm:$0xff] %vm368_vm0, %v631_v2 }
 0x25a   : > { %v597_v19 = vmul.f32 0.5, %v596_v18 }
 0x25c   : > { %v598_v3 = vsub.f32 1.5, %v597_v19 }
 0x25d   : > { %v885_v20 = vpop.eup %884 }
 0x25e   : > { %v599_v21 = vmul.f32 %v883_v14, %v598_v3  ;;  %v605_v22 = vmul.f32 %v885_v20, %v573_v16  ;;  %vm611_vm11 = vweird.f32 %v885_v20 }
 0x25f   : > { %vm612_vm13 = vmor %vm610_vm12, %vm611_vm11 }
 0x260   : > { %v603_v23 = vsel %vm602_vm10, %v883_v14, %v599_v21  ;;  %v606_v24 = vmul.f32 %v885_v20, %v605_v22 }
 0x261   : > { %v616_v5 = vmul.f32 %v603_v23, %v1200_v35 }
 0x262   : > { %v607_v25 = vmul.f32 0.5, %v606_v24 }
 0x263   : > { %v624_v26 = vmul.f32 %v866_v57, %v616_v5 }
 0x264   : > { %v608_v27 = vsub.f32 1.5, %v607_v25 }
 0x265   : > { %v632_v6 = vadd.f32 %v867_v61, %v624_v26 }
 0x266   : > { %v609_v28 = vmul.f32 %v885_v20, %v608_v27 }
 0x267   : > { %636 = vst.msk [vmem:[%s1219_s29 + $0x10] sm:$0xff] %vm368_vm0, %v632_v6 }
 0x268   : > { %v613_v29 = vsel %vm612_vm13, %v885_v20, %v609_v28 }
 0x269   : > { %v617_v30 = vmul.f32 %v613_v29, %v1206_v40 }
 0x26b   : > { %v625_v31 = vmul.f32 %v866_v57, %v617_v30 }
 0x26d   : > { %v633_v32 = vadd.f32 %v867_v61, %v625_v31 }
 0x26f   : > { %637 = vst.msk [vmem:[%s1219_s29 + $0x18] sm:$0xff] %vm368_vm0, %v633_v32 }
 0x270 PF: > { %s20_s24 = sadd.s32 1, %s1024_s24  }
 0x271   : > { %p17_p7 = scmp.ge.s32.totalorder %s20_s24, 4  }
 0x273   :  { %19 = sbr.rel (!%p17_p7) target bundleno = 3 (0x3), region = 95 }
 0x278   :  { %660 = vsyncpa [#allocation3], 1 }
 0x279   :  { %662 = vsyncpa [#allocation3 + $0x1], 1 }
 0x27a   :  { %663 = vsyncpa [#allocation5], 1 }
 0x27b   :  { %664 = vsyncpa [#allocation8], 1 }

// kernel: videollama_forward.46
= control target key start
LH: loop header
LB: loop body
LE: loop exit
PB: predicated region body
PF: predicated region fallthrough
CT: control target
= control target key end

     0   :  { %11 = vsyncpa [#allocation3], 0  ;;  %s939_s0 = inlined_call_operand.vmem [shape: bf16[64,32], index: 0, kind: input, shape index: {}]   ;;  %s940_s1 = inlined_call_operand.vmem [shape: bf16[32,32], index: 1, kind: input, shape index: {}]   ;;  %s941_s2 = inlined_call_operand.hbm [shape: f32[1,32], index: 2, kind: input, shape index: {}]   ;;  %s942_s3 = inlined_call_operand.vmem [shape: f32[64,32], index: 3, kind: input, shape index: {}]   ;;  %s943_s4 = inlined_call_operand.hbm [shape: f32[1,32], index: 4, kind: input, shape index: {}]   ;;  %s944_s5 = inlined_call_operand.hbm [shape: f32[1,32], index: 5, kind: input, shape index: {}]   ;;  %s945_s6 = inlined_call_operand.vmem [shape: f32[64,32], index: 6, kind: output, shape index: {}]  }
   0x1   :  { %12 = vsyncpa [#allocation5], 0  ;;  %s845_s21 = smov 0  }
   0x2 LB: > { %s212_s24 = sshll.u32 %s943_s4, 4  ;;  %s604_s25 = sadd.s32 4294967295, %s804_s21   ;;  %s804_s21 = sphi %s845_s21, %s18_s21   ;;  %s213_s24 = int_to_ptr.hbm [resolvable:$true] %s212_s24 }
   0x3   : > { %p606_p0 = scmp.ge.s32.totalorder %s804_s21, 1  ;;  %p185_p1 = scmp.lt.s32.totalorder %s804_s21, 3 }
   0x4   : > { %p856_p2 = scmp.eq.s32.totalorder %s604_s25, 0  ;;  %s806_s28 = smov [#allocation4]  }
   0x5   : > { %p860_p3 = pnand %p606_p0, %p185_p1  ;;  %s214_s29 = sshll.u32 %s806_s28, 4  ;;  %s215_s29 = int_to_ptr.vmem [resolvable:$true] %s214_s29 }
   0x6   : > { %s200_s8 = sshll.u32 %s941_s2, 4  ;;  %s224_s11 = sshll.u32 %s944_s5, 4  ;;  %s201_s8 = int_to_ptr.hbm [resolvable:$true] %s200_s8  ;;  %s225_s11 = int_to_ptr.hbm [resolvable:$true] %s224_s11 }
   0x7   : > { %p659_p4 = pneg %p860_p3  ;;  %s807_s12 = smov [#allocation2]  }
   0x8   : > { %s202_s13 = sshll.u32 %s807_s12, 4  ;;  %s808_s14 = smov [#allocation6]   ;;  %s203_s13 = int_to_ptr.vmem [resolvable:$true] %s202_s13 }
   0x9   : > { %p660_p5 = pnand %p856_p2, %p659_p4  ;;  %s226_s15 = sshll.u32 %s808_s14, 4  ;;  %s227_s15 = int_to_ptr.vmem [resolvable:$true] %s226_s15 }
   0xa   : > { %257 = sbr.rel (%p860_p3) target bundleno = 434 (0x1b2), region = 44 }
   0xb   : > { %665 = dma.hbm_to_vmem [thread:$0]  (!%p660_p5), %s213_s24, 16, %s215_s29, [#allocation5]  }
   0xc   : > { %662 = dma.hbm_to_vmem [thread:$0]  (!%p660_p5), %s201_s8, 16, %s203_s13, [#allocation3]  }
   0xd   : > { %668 = dma.hbm_to_vmem [thread:$0]  (!%p660_p5), %s225_s11, 16, %s227_s15, [#allocation5]  }
   0xf   : > { %795 = dma.done.wait (%p856_p2), [#allocation3], 16  }
  0x10   : > { %797 = vsyncadd (%p856_p2), [#allocation3], 4294967280 }
  0x11   : > { %799 = dma.done.wait (%p856_p2), [#allocation5], 32  }
  0x12   : > { %801 = vsyncadd (%p856_p2), [#allocation5], 4294967264  ;;  %s615_s16 = sshll.u32 %s604_s25, 2  ;;  %v644_v0 = vld [vmem:[%s940_s1 + $0x8] sm:$0xff]  ;;  %v643_v1 = vld [vmem:[%s940_s1] sm:$0xff]  ;;  %vm356_vm0 = vcmask 261120  }
  0x13   : > { %p304_p6 = scmp.lt.s32.totalorder %s615_s16, 7  ;;  %369 = vmatpush.bf16.msra.mxu0 %v644_v0  ;;  %645 = vmatpush.bf16.msra.mxu1 %v644_v0  ;;  %v687_v4 = vld [vmem:[#allocation2] ss:$0 sm:$0xff]  ;;  %v809_v25 = vmov 32.0  }
  0x14   : > { %690 = vrcp.f32 %v809_v25 }
  0x15   : > { %s949_s16 = smov (!%p304_p6, %s615_s16), 7 }
  0x16   : > { %s616_s17 = sshll.u32 %s949_s16, 2  ;;  %s618_s26 = sshll.u32 %s949_s16, 3 }
  0x17   : > { %s307_s25 = scalar_lea.vmem %s939_s0, %s616_s17  ;;  %370 = vmatpush.bf16.msra.mxu0 %v643_v1  ;;  %646 = vmatpush.bf16.msra.mxu1 %v643_v1  ;;  %s313_s29 = scalar_lea.vmem %s942_s3, %s618_s26 }
  0x18   : > { %v641_v2 = vld [vmem:[%s307_s25] sm:$0xff]  ;;  %v642_v3 = vld [vmem:[%s307_s25 + $0x8] sm:$0xff]  ;;  %v384_v7 = vld [vmem:[%s313_s29 + $0x10] sm:$0xff]  ;;  %s319_s8 = scalar_lea.vmem %s945_s6, %s618_s26 }
  0x19   : > { %v382_v8 = vld [vmem:[%s313_s29] sm:$0xff]  ;;  %v385_v17 = vld [vmem:[%s313_s29 + $0x18] sm:$0xff]  ;;  %v383_v18 = vld [vmem:[%s313_s29 + $0x8] sm:$0xff] }
  0x1a   : > { %637 = vmatmul.msk.bf16.vlgmr.msra.gmra.mxu0 %vm356_vm0, %v641_v2  ;;  %638 = vmatmul.msk.bf16.vlgmr.msra.gmra.mxu1 %vm356_vm0, %v642_v3  ;;  %v691_v26 = vpop.eup %690 }
  0x1b   : > { %v403_v27 = vmul.f32 32.0, %v691_v26  ;;  %vm407_vm1 = vweird.f32 %v691_v26 }
  0x1d   : > { %v404_v28 = vsub.f32 1.0, %v403_v27 }
  0x1f   : > { %v405_v29 = vmul.f32 %v691_v26, %v404_v28 }
  0x21   : > { %v406_v30 = vadd.f32 %v691_v26, %v405_v29 }
  0x23   : > { %v408_v31 = vsel %vm407_vm1, %v691_v26, %v406_v30 }
  0x97   : > { %v372_v5 = vpop.f32.mrf.mxu0  ;;  %v377_v6 = vpop.f32.mrf.mxu1 }
  0x98   : > { %v373_v9 = vadd.f32 %v687_v4, %v372_v5  ;;  %v378_v10 = vadd.f32 %v687_v4, %v377_v6 }
  0x9a   : > { %v388_v11 = vadd.f32 %v384_v7, %v378_v10  ;;  %v386_v12 = vadd.f32 %v382_v8, %v373_v9 }
  0x9c   : > { %v396_v13 = vsel %vm356_vm0, %v388_v11, 0.0  ;;  %v390_v14 = vsel %vm356_vm0, %v386_v12, 0.0 }
  0x9d   : > { %397 = vadd.xlane.f32.xlu1 %v396_v13  ;;  %391 = vadd.xlane.f32.xlu0 %v390_v14  ;;  %v688_v14 = vld [vmem:[#allocation4] ss:$0 sm:$0xff] }
  0x9f   : > { %v374_v15 = vpop.f32.mrf.mxu0  ;;  %v379_v16 = vpop.f32.mrf.mxu1 }
  0xa0   : > { %v375_v19 = vadd.f32 %v687_v4, %v374_v15  ;;  %v380_v20 = vadd.f32 %v687_v4, %v379_v16 }
  0xa2   : > { %v389_v21 = vadd.f32 %v385_v17, %v380_v20  ;;  %v387_v22 = vadd.f32 %v383_v18, %v375_v19  ;;  %v689_v19 = vld [vmem:[#allocation6] ss:$0 sm:$0xff] }
  0xa4   : > { %v399_v23 = vsel %vm356_vm0, %v389_v21, 0.0  ;;  %v393_v24 = vsel %vm356_vm0, %v387_v22, 0.0 }
  0xa5   : > { %400 = vadd.xlane.f32.xlu1 %v399_v23  ;;  %394 = vadd.xlane.f32.xlu0 %v393_v24 }
 0x110   : > { %v398_v32 = vpop.xlane.xlu1 %397  ;;  %v392_v33 = vpop.xlane.xlu0 %391 }
 0x111   : > { %v411_v34 = vmul.f32 %v408_v31, %v398_v32  ;;  %v409_v35 = vmul.f32 %v408_v31, %v392_v33 }
 0x113   : > { %v908_v36 = vsub.f32 %v388_v11, %v411_v34  ;;  %v413_v37 = vsub.f32 %v386_v12, %v409_v35 }
 0x115   : > { %v419_v38 = vmul.f32 %v908_v36, %v908_v36  ;;  %v417_v39 = vmul.f32 %v413_v37, %v413_v37 }
 0x117   : > { %v427_v40 = vsel %vm356_vm0, %v419_v38, 0.0  ;;  %v421_v41 = vsel %vm356_vm0, %v417_v39, 0.0 }
 0x118   : > { %v401_v42 = vpop.xlane.xlu1 %400  ;;  %428 = vadd.xlane.f32.xlu0 %v427_v40  ;;  %422 = vadd.xlane.f32.xlu2 %v421_v41  ;;  %v395_v43 = vpop.xlane.xlu0 %394 }
 0x119   : > { %v412_v44 = vmul.f32 %v408_v31, %v401_v42  ;;  %v410_v45 = vmul.f32 %v408_v31, %v395_v43 }
 0x11b   : > { %v914_v46 = vsub.f32 %v389_v21, %v412_v44  ;;  %v916_v47 = vsub.f32 %v387_v22, %v410_v45 }
 0x11d   : > { %v420_v48 = vmul.f32 %v914_v46, %v914_v46  ;;  %v418_v49 = vmul.f32 %v916_v47, %v916_v47 }
 0x11f   : > { %v430_v50 = vsel %vm356_vm0, %v420_v48, 0.0  ;;  %v424_v51 = vsel %vm356_vm0, %v418_v49, 0.0 }
 0x120   : > { %431 = vadd.xlane.f32.xlu1 %v430_v50  ;;  %425 = vadd.xlane.f32.xlu2 %v424_v51 }
 0x18b   : > { %v423_v52 = vpop.xlane.xlu2 %422  ;;  %v429_v53 = vpop.xlane.xlu0 %428 }
 0x18c   : > { %v433_v54 = vmul.f32 %v423_v52, %v408_v31  ;;  %v435_v55 = vmul.f32 %v429_v53, %v408_v31 }
 0x18e   : > { %v437_v56 = vadd.f32 1e-12, %v433_v54  ;;  %v439_v57 = vadd.f32 1e-12, %v435_v55 }
 0x190   : > { %692 = vrsqrt.f32 %v437_v56  ;;  %vm447_vm3 = vweird.f32 %v437_v56  ;;  %vm467_vm6 = vweird.f32 %v439_v57 }
 0x191   : > { %694 = vrsqrt.f32 %v439_v57 }
 0x193   : > { %v432_v58 = vpop.xlane.xlu1 %431  ;;  %v426_v59 = vpop.xlane.xlu2 %425 }
 0x194   : > { %v436_v60 = vmul.f32 %v432_v58, %v408_v31  ;;  %v434_v61 = vmul.f32 %v426_v59, %v408_v31 }
 0x196   : > { %v693_v62 = vpop.eup %692  ;;  %v440_v63 = vadd.f32 1e-12, %v436_v60  ;;  %v438_v0 = vadd.f32 1e-12, %v434_v61 }
 0x197   : > { %v695_v1 = vpop.eup %694  ;;  %v442_v2 = vmul.f32 %v693_v62, %v437_v56  ;;  %vm448_vm2 = vweird.f32 %v693_v62 }
 0x198   : > { %v462_v3 = vmul.f32 %v695_v1, %v439_v57  ;;  %696 = vrsqrt.f32 %v440_v63  ;;  %vm449_vm4 = vmor %vm447_vm3, %vm448_vm2  ;;  %vm468_vm5 = vweird.f32 %v695_v1  ;;  %vm477_vm10 = vweird.f32 %v440_v63 }
 0x199   : > { %v443_v4 = vmul.f32 %v693_v62, %v442_v2  ;;  %698 = vrsqrt.f32 %v438_v0  ;;  %vm469_vm7 = vmor %vm467_vm6, %vm468_vm5  ;;  %vm457_vm12 = vweird.f32 %v438_v0 }
 0x19a   : > { %v463_v5 = vmul.f32 %v695_v1, %v462_v3 }
 0x19b   : > { %v444_v6 = vmul.f32 0.5, %v443_v4 }
 0x19c   : > { %v464_v7 = vmul.f32 0.5, %v463_v5 }
 0x19d   : > { %v445_v8 = vsub.f32 1.5, %v444_v6 }
 0x19e   : > { %v697_v9 = vpop.eup %696  ;;  %v465_v10 = vsub.f32 1.5, %v464_v7 }
 0x19f   : > { %v699_v11 = vpop.eup %698  ;;  %v446_v12 = vmul.f32 %v693_v62, %v445_v8  ;;  %v472_v13 = vmul.f32 %v697_v9, %v440_v63  ;;  %vm478_vm8 = vweird.f32 %v697_v9 }
 0x1a0   : > { %v452_v15 = vmul.f32 %v699_v11, %v438_v0  ;;  %v466_v17 = vmul.f32 %v695_v1, %v465_v10  ;;  %vm458_vm9 = vweird.f32 %v699_v11  ;;  %vm479_vm11 = vmor %vm477_vm10, %vm478_vm8 }
 0x1a1   : > { %v450_v16 = vsel %vm449_vm4, %v693_v62, %v446_v12  ;;  %v473_v18 = vmul.f32 %v697_v9, %v472_v13  ;;  %vm459_vm13 = vmor %vm457_vm12, %vm458_vm9 }
 0x1a2   : > { %v481_v20 = vmul.f32 %v450_v16, %v413_v37  ;;  %v453_v21 = vmul.f32 %v699_v11, %v452_v15  ;;  %v470_v25 = vsel %vm469_vm7, %v695_v1, %v466_v17 }
 0x1a3   : > { %v474_v22 = vmul.f32 0.5, %v473_v18  ;;  %v483_v30 = vmul.f32 %v470_v25, %v908_v36 }
 0x1a4   : > { %v489_v23 = vmul.f32 %v688_v14, %v481_v20  ;;  %v454_v24 = vmul.f32 0.5, %v453_v21 }
 0x1a5   : > { %v475_v26 = vsub.f32 1.5, %v474_v22  ;;  %v491_v37 = vmul.f32 %v688_v14, %v483_v30 }
 0x1a6   : > { %v497_v27 = vadd.f32 %v689_v19, %v489_v23  ;;  %v455_v28 = vsub.f32 1.5, %v454_v24 }
 0x1a7   : > { %v476_v29 = vmul.f32 %v697_v9, %v475_v26  ;;  %v499_v41 = vadd.f32 %v689_v19, %v491_v37 }
 0x1a8   : > { %501 = vst.msk [vmem:[%s319_s8] sm:$0xff] %vm356_vm0, %v497_v27  ;;  %v456_v31 = vmul.f32 %v699_v11, %v455_v28 }
 0x1a9   : > { %v480_v32 = vsel %vm479_vm11, %v697_v9, %v476_v29  ;;  %503 = vst.msk [vmem:[%s319_s8 + $0x10] sm:$0xff] %vm356_vm0, %v499_v41 }
 0x1aa   : > { %v484_v33 = vmul.f32 %v480_v32, %v914_v46  ;;  %v460_v34 = vsel %vm459_vm13, %v699_v11, %v456_v31 }
 0x1ab   : > { %v482_v35 = vmul.f32 %v460_v34, %v916_v47 }
 0x1ac   : > { %v492_v38 = vmul.f32 %v688_v14, %v484_v33 }
 0x1ad   : > { %v490_v39 = vmul.f32 %v688_v14, %v482_v35 }
 0x1ae   : > { %v500_v42 = vadd.f32 %v689_v19, %v492_v38 }
 0x1af   : > { %v498_v40 = vadd.f32 %v689_v19, %v490_v39 }
 0x1b0   : > { %504 = vst.msk [vmem:[%s319_s8 + $0x18] sm:$0xff] %vm356_vm0, %v500_v42 }
 0x1b1   : > { %502 = vst.msk [vmem:[%s319_s8 + $0x8] sm:$0xff] %vm356_vm0, %v498_v40 }
 0x1b2 PF: > { %s18_s21 = sadd.s32 1, %s804_s21  }
 0x1b3   : > { %p15_p7 = scmp.ge.s32.totalorder %s18_s21, 4  }
 0x1b5   :  { %17 = sbr.rel (!%p15_p7) target bundleno = 2 (0x2), region = 90 }
 0x1ba   :  { %527 = vsyncpa [#allocation3], 1 }
 0x1bb   :  { %529 = vsyncpa [#allocation3 + $0x1], 1 }
 0x1bc   :  { %530 = vsyncpa [#allocation5], 1 }

// kernel: videollama_forward.47
= control target key start
LH: loop header
LB: loop body
LE: loop exit
PB: predicated region body
PF: predicated region fallthrough
CT: control target
= control target key end

     0   :  { %8 = vsyncpa [#allocation3], 0  ;;  %s540_s12 = smov 0   ;;  %s542_s13 = smov 0   ;;  %s583_s0 = inlined_call_operand.vmem [shape: f32[64,32], index: 0, kind: input, shape index: {}]   ;;  %s584_s1 = inlined_call_operand.vmem [shape: bf16[32,32], index: 1, kind: input, shape index: {}]   ;;  %s585_s2 = inlined_call_operand.hbm [shape: f32[1,32], index: 2, kind: input, shape index: {}]   ;;  %s586_s3 = inlined_call_operand.vmem [shape: bf16[64,32], index: 3, kind: output, shape index: {}]  }
   0x1   :  { %s544_s14 = smov 0  }
   0x2 LB: > { %s397_s15 = sadd.s32 4294967295, %s517_s14   ;;  %s26_s16 = sadd.s32 1, %s513_s13  ;;  %s517_s14 = sphi %s544_s14, %s14_s14   ;;  %s513_s13 = sphi %s542_s13, %s588_s13   ;;  %s509_s12 = sphi %s540_s12, %s587_s12  }
   0x3   : > { %p28_p0 = scmp.ge.s32.totalorder %s26_s16, 2  ;;  %p399_p1 = scmp.ge.s32.totalorder %s517_s14, 1 }
   0x4   : > { %p137_p2 = scmp.lt.s32.totalorder %s517_s14, 3  ;;  %p433_p4 = scmp.eq.s32.totalorder %s397_s15, 0 }
   0x5   : > { %s590_s16 = smov (%p28_p0, %s26_s16), 0  ;;  %s157_s19 = sshll.u32 %s585_s2, 4  ;;  %s158_s19 = int_to_ptr.hbm [resolvable:$true] %s157_s19 }
   0x6   : > { %p138_p3 = pnand %p399_p1, %p137_p2  ;;  %s519_s20 = smov [#allocation2]  }
   0x7   : > { %s159_s21 = sshll.u32 %s519_s20, 4  ;;  %s160_s21 = int_to_ptr.vmem [resolvable:$true] %s159_s21 }
   0x8   : > { %p429_p5 = pneg %p138_p3  ;;  %181 = sbr.rel (%p138_p3) target bundleno = 163 (0xa3), region = 32 }
   0xa   : > { %p430_p6 = pnand %p433_p4, %p429_p5 }
   0xc   : > { %432 = dma.hbm_to_vmem [thread:$0]  (!%p430_p6), %s158_s19, 16, %s160_s21, [#allocation3]  }
   0xd   : > { %504 = dma.done.wait (%p433_p4), [#allocation3], 16  }
   0xe   : > { %506 = vsyncadd (%p433_p4), [#allocation3], 4294967280  ;;  %s405_s22 = sshll.u32 %s509_s12, 2  ;;  %v422_v0 = vld [vmem:[%s584_s1 + $0x8] sm:$0xff]  ;;  %v421_v1 = vld [vmem:[%s584_s1] sm:$0xff]  ;;  %vm259_vm0 = vcmask 261120  }
   0xf   : > { %p214_p7 = scmp.lt.s32.totalorder %s405_s22, 7  ;;  %272 = vmatpush.bf16.msra.mxu0 %v422_v0  ;;  %423 = vmatpush.bf16.msra.mxu1 %v422_v0  ;;  %v460_v8 = vld [vmem:[#allocation2] ss:$0 sm:$0xff]  ;;  %vm289_vm1 = vcmask 257024  }
  0x11   : > { %s592_s22 = smov (!%p214_p7, %s405_s22), 7 }
  0x12   : > { %s406_s23 = sshll.u32 %s592_s22, 3  ;;  %s408_s4 = sshll.u32 %s592_s22, 2 }
  0x13   : > { %s217_s26 = scalar_lea.vmem %s583_s0, %s406_s23  ;;  %273 = vmatpush.bf16.msra.mxu0 %v421_v1  ;;  %424 = vmatpush.bf16.msra.mxu1 %v421_v1  ;;  %s230_s7 = scalar_lea.vmem %s586_s3, %s408_s4 }
  0x14   : > { %v233_v2 = vld [vmem:[%s217_s26] sm:$0xff]  ;;  %v234_v3 = vld [vmem:[%s217_s26 + $0x8] sm:$0xff]  ;;  %v235_v4 = vld [vmem:[%s217_s26 + $0x10] sm:$0xff] }
  0x15   : > { %v236_v5 = vld [vmem:[%s217_s26 + $0x18] sm:$0xff]  ;;  %v237_v6 = vpack.c.bf16 %v234_v3, %v233_v2 }
  0x16   : > { %v238_v7 = vpack.c.bf16 %v236_v5, %v235_v4 }
  0x17   : > { %417 = vmatmul.msk.bf16.vlgmr.msra.gmra.mxu0 %vm259_vm0, %v237_v6 }
  0x18   : > { %418 = vmatmul.msk.bf16.vlgmr.msra.gmra.mxu1 %vm259_vm0, %v238_v7 }
  0x94   : > { %v275_v9 = vpop.f32.mrf.mxu0 }
  0x95   : > { %v280_v10 = vpop.f32.mrf.mxu1  ;;  %v276_v11 = vadd.f32 %v460_v8, %v275_v9 }
  0x96   : > { %v281_v13 = vadd.f32 %v460_v8, %v280_v10 }
  0x97   : > { %v285_v12 = vpack.c.bf16 %v276_v11, %v276_v11 }
  0x98   : > { %v287_v19 = vpack.c.bf16 %v281_v13, %v281_v13 }
  0x99   : > { %290 = vst.msk [vmem:[%s230_s7] sm:$0xf] %vm289_vm1, %v285_v12 }
  0x9a   : > { %292 = vst.msk [vmem:[%s230_s7 + $0x8] sm:$0xf] %vm289_vm1, %v287_v19 }
  0x9c   : > { %v277_v14 = vpop.f32.mrf.mxu0 }
  0x9d   : > { %v282_v15 = vpop.f32.mrf.mxu1  ;;  %v278_v16 = vadd.f32 %v460_v8, %v277_v14 }
  0x9e   : > { %v283_v17 = vadd.f32 %v460_v8, %v282_v15 }
  0x9f   : > { %v286_v18 = vpack.c.bf16 %v278_v16, %v278_v16 }
  0xa0   : > { %v288_v20 = vpack.c.bf16 %v283_v17, %v283_v17 }
  0xa1   : > { %291 = vst.msk [vmem:[%s230_s7 + $0x4] sm:$0xf] %vm289_vm1, %v286_v18 }
  0xa2   : > { %293 = vst.msk [vmem:[%s230_s7 + $0xc] sm:$0xf] %vm289_vm1, %v288_v20 }
  0xa3 PF: > { %s14_s14 = sadd.s32 1, %s517_s14   ;;  %s587_s12 = smov %s513_s13 }
  0xa4   : > { %p11_p8 = scmp.ge.s32.totalorder %s14_s14, 4   ;;  %s588_s13 = smov %s590_s16 }
  0xa6   :  { %13 = sbr.rel (!%p11_p8) target bundleno = 2 (0x2), region = 71 }
  0xab   :  { %322 = vsyncpa [#allocation3], 1 }
  0xac   :  { %324 = vsyncpa [#allocation3 + $0x1], 1 }

// kernel: videollama_forward.48
= control target key start
LH: loop header
LB: loop body
LE: loop exit
PB: predicated region body
PF: predicated region fallthrough
CT: control target
= control target key end

     0   :  { %8 = vsyncpa [#allocation3], 0  ;;  %s608_s12 = smov 0   ;;  %s610_s13 = smov 0   ;;  %s669_s0 = inlined_call_operand.vmem [shape: f32[128,64], index: 0, kind: input, shape index: {}]   ;;  %s670_s1 = inlined_call_operand.vmem [shape: bf16[64,64], index: 1, kind: input, shape index: {}]   ;;  %s671_s2 = inlined_call_operand.hbm [shape: f32[1,64], index: 2, kind: input, shape index: {}]   ;;  %s672_s3 = inlined_call_operand.vmem [shape: bf16[128,64], index: 3, kind: output, shape index: {}]  }
   0x1   :  { %s612_s14 = smov 0  }
   0x2 LB: > { %s443_s15 = sadd.s32 4294967295, %s585_s14   ;;  %s26_s16 = sadd.s32 1, %s581_s13  ;;  %s585_s14 = sphi %s612_s14, %s14_s14   ;;  %s581_s13 = sphi %s610_s13, %s674_s13   ;;  %s577_s12 = sphi %s608_s12, %s673_s12  }
   0x3   : > { %p28_p0 = scmp.ge.s32.totalorder %s26_s16, 2  ;;  %p445_p1 = scmp.ge.s32.totalorder %s585_s14, 1 }
   0x4   : > { %p137_p2 = scmp.lt.s32.totalorder %s585_s14, 3  ;;  %p501_p4 = scmp.eq.s32.totalorder %s443_s15, 0 }
   0x5   : > { %s676_s16 = smov (%p28_p0, %s26_s16), 0  ;;  %s157_s19 = sshll.u32 %s671_s2, 4  ;;  %s158_s19 = int_to_ptr.hbm [resolvable:$true] %s157_s19 }
   0x6   : > { %p138_p3 = pnand %p445_p1, %p137_p2  ;;  %s587_s20 = smov [#allocation2]  }
   0x7   : > { %s159_s21 = sshll.u32 %s587_s20, 4  ;;  %s160_s21 = int_to_ptr.vmem [resolvable:$true] %s159_s21 }
   0x8   : > { %p497_p5 = pneg %p138_p3  ;;  %181 = sbr.rel (%p138_p3) target bundleno = 177 (0xb1), region = 32 }
   0xa   : > { %p498_p6 = pnand %p501_p4, %p497_p5 }
   0xc   : > { %500 = dma.hbm_to_vmem [thread:$0]  (!%p498_p6), %s158_s19, 16, %s160_s21, [#allocation3]  }
   0xd   : > { %572 = dma.done.wait (%p501_p4), [#allocation3], 16  }
   0xe   : > { %574 = vsyncadd (%p501_p4), [#allocation3], 4294967280  ;;  %s451_s22 = sshll.u32 %s577_s12, 3  ;;  %v480_v0 = vld [vmem:[%s670_s1 + $0x18] sm:$0xff]  ;;  %v479_v1 = vld [vmem:[%s670_s1 + $0x10] sm:$0xff]  ;;  %vm281_vm0 = vcmask 523264  }
   0xf   : > { %p214_p7 = scmp.lt.s32.totalorder %s451_s22, 15  ;;  %298 = vmatpush.bf16.msra.mxu0 %v480_v0  ;;  %481 = vmatpush.bf16.msra.mxu1 %v480_v0  ;;  %v478_v2 = vld [vmem:[%s670_s1 + $0x8] sm:$0xff]  ;;  %v477_v3 = vld [vmem:[%s670_s1] sm:$0xff]  ;;  %vm331_vm1 = vcmask 519168  }
  0x10   : > { %482 = vmatpush.bf16.msra.mxu2 %v480_v0  ;;  %483 = vmatpush.bf16.msra.mxu3 %v480_v0  ;;  %v528_v16 = vld [vmem:[#allocation2] ss:$0 sm:$0xff] }
  0x11   : > { %s678_s22 = smov (!%p214_p7, %s451_s22), 15 }
  0x12   : > { %s452_s27 = sshll.u32 %s678_s22, 3  ;;  %s454_s8 = sshll.u32 %s678_s22, 2 }
  0x13   : > { %299 = vmatpush.bf16.msra.mxu0 %v479_v1  ;;  %484 = vmatpush.bf16.msra.mxu1 %v479_v1  ;;  %s217_s5 = scalar_lea.vmem %s669_s0, %s452_s27  ;;  %s230_s11 = scalar_lea.vmem %s672_s3, %s454_s8 }
  0x14   : > { %485 = vmatpush.bf16.msra.mxu2 %v479_v1  ;;  %486 = vmatpush.bf16.msra.mxu3 %v479_v1  ;;  %v233_v4 = vld [vmem:[%s217_s5] sm:$0xff]  ;;  %v234_v5 = vld [vmem:[%s217_s5 + $0x8] sm:$0xff]  ;;  %v235_v6 = vld [vmem:[%s217_s5 + $0x10] sm:$0xff] }
  0x15   : > { %v236_v7 = vld [vmem:[%s217_s5 + $0x18] sm:$0xff]  ;;  %v237_v8 = vld [vmem:[%s217_s5 + $0x20] sm:$0xff]  ;;  %v238_v9 = vld [vmem:[%s217_s5 + $0x28] sm:$0xff]  ;;  %v241_v12 = vpack.c.bf16 %v234_v5, %v233_v4 }
  0x16   : > { %v239_v10 = vld [vmem:[%s217_s5 + $0x30] sm:$0xff]  ;;  %v240_v11 = vld [vmem:[%s217_s5 + $0x38] sm:$0xff]  ;;  %v242_v13 = vpack.c.bf16 %v236_v7, %v235_v6  ;;  %v243_v14 = vpack.c.bf16 %v238_v9, %v237_v8 }
  0x17   : > { %300 = vmatpush.bf16.msra.mxu0 %v478_v2  ;;  %487 = vmatpush.bf16.msra.mxu1 %v478_v2  ;;  %v244_v15 = vpack.c.bf16 %v240_v11, %v239_v10 }
  0x18   : > { %488 = vmatpush.bf16.msra.mxu2 %v478_v2  ;;  %489 = vmatpush.bf16.msra.mxu3 %v478_v2 }
  0x1b   : > { %301 = vmatpush.bf16.msra.mxu0 %v477_v3  ;;  %490 = vmatpush.bf16.msra.mxu1 %v477_v3 }
  0x1c   : > { %491 = vmatpush.bf16.msra.mxu2 %v477_v3  ;;  %492 = vmatpush.bf16.msra.mxu3 %v477_v3 }
  0x1e   : > { %471 = vmatmul.msk.bf16.vlgmr.msra.gmra.mxu0 %vm281_vm0, %v241_v12  ;;  %472 = vmatmul.msk.bf16.vlgmr.msra.gmra.mxu1 %vm281_vm0, %v242_v13 }
  0x1f   : > { %473 = vmatmul.msk.bf16.vlgmr.msra.gmra.mxu2 %vm281_vm0, %v243_v14  ;;  %474 = vmatmul.msk.bf16.vlgmr.msra.gmra.mxu3 %vm281_vm0, %v244_v15 }
  0x9b   : > { %v303_v17 = vpop.f32.mrf.mxu0  ;;  %v308_v18 = vpop.f32.mrf.mxu1 }
  0x9c   : > { %v304_v19 = vadd.f32 %v528_v16, %v303_v17  ;;  %v309_v20 = vadd.f32 %v528_v16, %v308_v18 }
  0x9e   : > { %v323_v21 = vpack.c.bf16 %v304_v19, %v304_v19  ;;  %v325_v22 = vpack.c.bf16 %v309_v20, %v309_v20 }
  0xa0   : > { %332 = vst.msk [vmem:[%s230_s11] sm:$0xf] %vm331_vm1, %v323_v21 }
  0xa1   : > { %334 = vst.msk [vmem:[%s230_s11 + $0x8] sm:$0xf] %vm331_vm1, %v325_v22 }
  0xa2   : > { %v313_v23 = vpop.f32.mrf.mxu2  ;;  %v318_v24 = vpop.f32.mrf.mxu3 }
  0xa3   : > { %v314_v25 = vadd.f32 %v528_v16, %v313_v23  ;;  %v319_v26 = vadd.f32 %v528_v16, %v318_v24  ;;  %v305_v27 = vpop.f32.mrf.mxu0  ;;  %v310_v28 = vpop.f32.mrf.mxu1 }
  0xa4   : > { %v306_v29 = vadd.f32 %v528_v16, %v305_v27  ;;  %v311_v30 = vadd.f32 %v528_v16, %v310_v28 }
  0xa5   : > { %v327_v31 = vpack.c.bf16 %v314_v25, %v314_v25  ;;  %v329_v32 = vpack.c.bf16 %v319_v26, %v319_v26 }
  0xa6   : > { %v324_v33 = vpack.c.bf16 %v306_v29, %v306_v29  ;;  %v326_v34 = vpack.c.bf16 %v311_v30, %v311_v30 }
  0xa7   : > { %336 = vst.msk [vmem:[%s230_s11 + $0x10] sm:$0xf] %vm331_vm1, %v327_v31 }
  0xa8   : > { %338 = vst.msk [vmem:[%s230_s11 + $0x18] sm:$0xf] %vm331_vm1, %v329_v32 }
  0xa9   : > { %333 = vst.msk [vmem:[%s230_s11 + $0x4] sm:$0xf] %vm331_vm1, %v324_v33 }
  0xaa   : > { %335 = vst.msk [vmem:[%s230_s11 + $0xc] sm:$0xf] %vm331_vm1, %v326_v34  ;;  %v315_v35 = vpop.f32.mrf.mxu2  ;;  %v320_v36 = vpop.f32.mrf.mxu3 }
  0xab   : > { %v316_v37 = vadd.f32 %v528_v16, %v315_v35  ;;  %v321_v38 = vadd.f32 %v528_v16, %v320_v36 }
  0xad   : > { %v328_v39 = vpack.c.bf16 %v316_v37, %v316_v37  ;;  %v330_v40 = vpack.c.bf16 %v321_v38, %v321_v38 }
  0xaf   : > { %337 = vst.msk [vmem:[%s230_s11 + $0x14] sm:$0xf] %vm331_vm1, %v328_v39 }
  0xb0   : > { %339 = vst.msk [vmem:[%s230_s11 + $0x1c] sm:$0xf] %vm331_vm1, %v330_v40 }
  0xb1 PF: > { %s14_s14 = sadd.s32 1, %s585_s14   ;;  %s673_s12 = smov %s581_s13 }
  0xb2   : > { %p11_p8 = scmp.ge.s32.totalorder %s14_s14, 4   ;;  %s674_s13 = smov %s676_s16 }
  0xb4   :  { %13 = sbr.rel (!%p11_p8) target bundleno = 2 (0x2), region = 71 }
  0xb9   :  { %368 = vsyncpa [#allocation3], 1 }
  0xba   :  { %370 = vsyncpa [#allocation3 + $0x1], 1 }

// kernel: videollama_forward.51
= control target key start
LH: loop header
LB: loop body
LE: loop exit
PB: predicated region body
PF: predicated region fallthrough
CT: control target
= control target key end

     0   :  { %s786_s24 = smov 0   ;;  %s908_s0 = inlined_call_operand.vmem [shape: f32[64,32], index: 0, kind: input, shape index: {}]   ;;  %s909_s1 = inlined_call_operand.vmem [shape: bf16[32,128], index: 1, kind: input, shape index: {}]   ;;  %s910_s2 = inlined_call_operand.vmem [shape: f32[1,128], index: 2, kind: input, shape index: {}]   ;;  %s911_s3 = inlined_call_operand.vmem [shape: bf16[128,32], index: 3, kind: input, shape index: {}]   ;;  %s912_s4 = inlined_call_operand.vmem [shape: f32[1,32], index: 4, kind: input, shape index: {}]   ;;  %s913_s5 = inlined_call_operand.vmem [shape: f32[1,32], index: 5, kind: input, shape index: {}]   ;;  %s914_s6 = inlined_call_operand.vmem [shape: f32[1,32], index: 6, kind: input, shape index: {}]   ;;  %s915_s7 = inlined_call_operand.vmem [shape: f32[64,32], index: 7, kind: output, shape index: {}]  }
   0x1 LB: > { %s635_s25 = sadd.s32 4294967295, %s743_s24   ;;  %p639_p0 = scmp.ge.s32.totalorder %s743_s24, 1  ;;  %s743_s24 = sphi %s786_s24, %s17_s24  }
   0x2   : > { %p238_p1 = scmp.lt.s32.totalorder %s743_s24, 3 }
   0x4   : > { %p239_p2 = pnand %p639_p0, %p238_p1 }
   0x5   : > { %s640_s28 = sshll.u32 (!%p239_p2), %s635_s25, 2 }
   0x6   : > { %242 = sbr.rel (%p239_p2) target bundleno = 609 (0x261), region = 48  ;;  %p271_p3 = scmp.lt.s32.totalorder (!%p239_p2), %s640_s28, 7 }
   0xb   : > { %v689_v0 = vld [vmem:[%s909_s1 + $0x8] sm:$0xff]  ;;  %v688_v1 = vld [vmem:[%s909_s1] sm:$0xff]  ;;  %s917_s28 = smov (!%p271_p3, %s640_s28), 7  ;;  %vm309_vm0 = vcmask 261120   ;;  %v697_v8 = vld [vmem:[%s911_s3 + $0x38] sm:$0xff] }
   0xc   : > { %322 = vmatpush.bf16.msra.mxu0 %v689_v0  ;;  %s641_s8 = sshll.u32 %s917_s28, 3  ;;  %441 = vmatpush.bf16.msra.mxu1 %v697_v8  ;;  %v696_v9 = vld [vmem:[%s911_s3 + $0x30] sm:$0xff]  ;;  %v695_v10 = vld [vmem:[%s911_s3 + $0x28] sm:$0xff]  ;;  %v694_v11 = vld [vmem:[%s911_s3 + $0x20] sm:$0xff] }
   0xd   : > { %s274_s11 = scalar_lea.vmem %s908_s0, %s641_s8  ;;  %698 = vmatpush.bf16.msra.mxu2 %v697_v8  ;;  %v693_v12 = vld [vmem:[%s911_s3 + $0x18] sm:$0xff]  ;;  %v692_v13 = vld [vmem:[%s911_s3 + $0x10] sm:$0xff]  ;;  %v691_v14 = vld [vmem:[%s911_s3 + $0x8] sm:$0xff]  ;;  %s892_s18 = scalar_lea.vmem %s915_s7, %s641_s8 }
   0xe   : > { %v808_v2 = vld [vmem:[%s274_s11] sm:$0xff]  ;;  %v810_v3 = vld [vmem:[%s274_s11 + $0x8] sm:$0xff]  ;;  %v815_v5 = vld [vmem:[%s274_s11 + $0x10] sm:$0xff] }
   0xf   : > { %v287_v4 = vpack.c.bf16 %v810_v3, %v808_v2  ;;  %v817_v6 = vld [vmem:[%s274_s11 + $0x18] sm:$0xff]  ;;  %v715_v15 = vld [vmem:[%s910_s2] ss:$0 sm:$0xff] }
  0x10   : > { %323 = vmatpush.bf16.msra.mxu0 %v688_v1  ;;  %v288_v7 = vpack.c.bf16 %v817_v6, %v815_v5  ;;  %442 = vmatpush.bf16.msra.mxu1 %v696_v9  ;;  %v690_v16 = vld [vmem:[%s911_s3] sm:$0xff] }
  0x11   : > { %699 = vmatpush.bf16.msra.mxu2 %v696_v9  ;;  %v716_v63 = vld [vmem:[%s912_s4] ss:$0 sm:$0xff] }
  0x13   : > { %652 = vmatmul.msk.bf16.vlgmr.msra.gmra.mxu0 %vm309_vm0, %v287_v4 }
  0x14   : > { %443 = vmatpush.bf16.msra.mxu1 %v695_v10 }
  0x15   : > { %700 = vmatpush.bf16.msra.mxu2 %v695_v10 }
  0x18   : > { %444 = vmatpush.bf16.msra.mxu1 %v694_v11 }
  0x19   : > { %701 = vmatpush.bf16.msra.mxu2 %v694_v11 }
  0x1c   : > { %445 = vmatpush.bf16.msra.mxu1 %v693_v12 }
  0x1d   : > { %702 = vmatpush.bf16.msra.mxu2 %v693_v12 }
  0x20   : > { %446 = vmatpush.bf16.msra.mxu1 %v692_v13 }
  0x21   : > { %703 = vmatpush.bf16.msra.mxu2 %v692_v13 }
  0x23   : > { %653 = vmatmul.msk.bf16.gmra.mxu0 %vm309_vm0, %v288_v7 }
  0x24   : > { %447 = vmatpush.bf16.msra.mxu1 %v691_v14 }
  0x25   : > { %704 = vmatpush.bf16.msra.mxu2 %v691_v14 }
  0x28   : > { %448 = vmatpush.bf16.msra.mxu1 %v690_v16 }
  0x29   : > { %705 = vmatpush.bf16.msra.mxu2 %v690_v16 }
  0x90   : > { %v325_v17 = vpop.f32.mrf.mxu0 }
  0x91   : > { %v326_v18 = vadd.f32 %v715_v15, %v325_v17 }
  0x93   : > { %v335_v19 = vmul.f32 %v326_v18, %v326_v18 }
  0x95   : > { %v339_v20 = vmul.f32 %v335_v19, %v326_v18  ;;  %v745_v19 = vmov 32.0  }
  0x97   : > { %v343_v21 = vmul.f32 0.044715, %v339_v20 }
  0x98   : > { %v327_v22 = vpop.f32.mrf.mxu0 }
  0x99   : > { %v347_v23 = vadd.f32 %v343_v21, %v326_v18  ;;  %v328_v24 = vadd.f32 %v715_v15, %v327_v22 }
  0x9b   : > { %v336_v25 = vmul.f32 %v328_v24, %v328_v24  ;;  %v351_v26 = vmul.f32 0.7978846, %v347_v23 }
  0x9d   : > { %v340_v27 = vmul.f32 %v336_v25, %v328_v24  ;;  %719 = vtanh.f32 %v351_v26 }
  0x9f   : > { %v344_v28 = vmul.f32 0.044715, %v340_v27 }
  0xa0   : > { %v330_v29 = vpop.f32.mrf.mxu0 }
  0xa1   : > { %v348_v30 = vadd.f32 %v344_v28, %v328_v24  ;;  %v331_v31 = vadd.f32 %v715_v15, %v330_v29 }
  0xa3   : > { %v337_v32 = vmul.f32 %v331_v31, %v331_v31  ;;  %v352_v33 = vmul.f32 0.7978846, %v348_v30  ;;  %v720_v34 = vpop.eup %719 }
  0xa4   : > { %v359_v38 = vadd.f32 1.0, %v720_v34 }
  0xa5   : > { %v341_v35 = vmul.f32 %v337_v32, %v331_v31  ;;  %721 = vtanh.f32 %v352_v33 }
  0xa6   : > { %v363_v45 = vmul.f32 0.5, %v359_v38 }
  0xa7   : > { %v345_v36 = vmul.f32 0.044715, %v341_v35 }
  0xa8   : > { %v332_v37 = vpop.f32.mrf.mxu0  ;;  %v367_v49 = vmul.f32 %v363_v45, %v326_v18 }
  0xa9   : > { %v349_v39 = vadd.f32 %v345_v36, %v331_v31  ;;  %v333_v40 = vadd.f32 %v715_v15, %v332_v37 }
  0xab   : > { %v722_v41 = vpop.eup %721  ;;  %v338_v42 = vmul.f32 %v333_v40, %v333_v40  ;;  %v353_v43 = vmul.f32 0.7978846, %v349_v39 }
  0xac   : > { %v360_v44 = vadd.f32 1.0, %v722_v41 }
  0xad   : > { %v342_v46 = vmul.f32 %v338_v42, %v333_v40  ;;  %723 = vtanh.f32 %v353_v43 }
  0xae   : > { %v364_v47 = vmul.f32 0.5, %v360_v44 }
  0xaf   : > { %v346_v48 = vmul.f32 0.044715, %v342_v46 }
  0xb0   : > { %v368_v50 = vmul.f32 %v364_v47, %v328_v24 }
  0xb1   : > { %v350_v51 = vadd.f32 %v346_v48, %v333_v40 }
  0xb2   : > { %v371_v52 = vpack.c.bf16 %v368_v50, %v367_v49 }
  0xb3   : > { %v354_v53 = vmul.f32 0.7978846, %v350_v51  ;;  %v724_v54 = vpop.eup %723 }
  0xb4   : > { %449 = vmatmul.bf16.vlgmr.msra.gmra.mxu1 %v371_v52  ;;  %v361_v55 = vadd.f32 1.0, %v724_v54 }
  0xb5   : > { %725 = vtanh.f32 %v354_v53 }
  0xb6   : > { %v365_v58 = vmul.f32 0.5, %v361_v55  ;;  %727 = vrcp.f32 %v745_v19 }
  0xb8   : > { %v369_v60 = vmul.f32 %v365_v58, %v331_v31 }
  0xbb   : > { %v726_v56 = vpop.eup %725 }
  0xbc   : > { %v362_v57 = vadd.f32 1.0, %v726_v56 }
  0xbe   : > { %v366_v59 = vmul.f32 0.5, %v362_v57  ;;  %v717_v57 = vld [vmem:[%s913_s5] ss:$0 sm:$0xff] }
  0xc0   : > { %v370_v61 = vmul.f32 %v366_v59, %v333_v40 }
  0xc2   : > { %v372_v62 = vpack.c.bf16 %v370_v61, %v369_v60  ;;  %v718_v61 = vld [vmem:[%s914_s6] ss:$0 sm:$0xff] }
  0xc4   : > { %454 = vmatmul.bf16.vlgmr.msra.gmra.mxu2 %v372_v62 }
 0x131   : > { %v450_v0 = vpop.f32.mrf.mxu1 }
 0x132   : > { %v451_v1 = vadd.f32 %v716_v63, %v450_v0 }
 0x134   : > { %v460_v4 = vadd.f32 %v451_v1, %v808_v2 }
 0x136   : > { %v464_v7 = vsel %vm309_vm0, %v460_v4, 0.0 }
 0x137   : > { %465 = vadd.xlane.f32.xlu0 %v464_v7 }
 0x139   : > { %v452_v8 = vpop.f32.mrf.mxu1 }
 0x13a   : > { %v453_v9 = vadd.f32 %v716_v63, %v452_v8 }
 0x13c   : > { %v461_v10 = vadd.f32 %v453_v9, %v810_v3  ;;  %v728_v3 = vpop.eup %727 }
 0x13d   : > { %v477_v20 = vmul.f32 32.0, %v728_v3  ;;  %vm481_vm1 = vweird.f32 %v728_v3 }
 0x13e   : > { %v467_v11 = vsel %vm309_vm0, %v461_v10, 0.0 }
 0x13f   : > { %468 = vadd.xlane.f32.xlu0 %v467_v11  ;;  %v478_v21 = vsub.f32 1.0, %v477_v20 }
 0x141   : > { %v479_v22 = vmul.f32 %v728_v3, %v478_v21 }
 0x143   : > { %v480_v23 = vadd.f32 %v728_v3, %v479_v22 }
 0x145   : > { %v860_v24 = vsel %vm481_vm1, %v728_v3, %v480_v23 }
 0x147   : > { %v455_v12 = vpop.f32.mrf.mxu2 }
 0x148   : > { %v456_v13 = vadd.f32 %v716_v63, %v455_v12 }
 0x14a   : > { %v462_v14 = vadd.f32 %v456_v13, %v815_v5 }
 0x14c   : > { %v470_v15 = vsel %vm309_vm0, %v462_v14, 0.0 }
 0x14d   : > { %471 = vadd.xlane.f32.xlu1 %v470_v15 }
 0x14f   : > { %v457_v16 = vpop.f32.mrf.mxu2 }
 0x150   : > { %v458_v17 = vadd.f32 %v716_v63, %v457_v16 }
 0x152   : > { %v463_v2 = vadd.f32 %v458_v17, %v817_v6 }
 0x154   : > { %v473_v18 = vsel %vm309_vm0, %v463_v2, 0.0 }
 0x155   : > { %474 = vadd.xlane.f32.xlu1 %v473_v18 }
 0x1aa   : > { %v466_v5 = vpop.xlane.xlu0 %465 }
 0x1ab   : > { %v483_v25 = vmul.f32 %v860_v24, %v466_v5 }
 0x1ad   : > { %v487_v26 = vsub.f32 %v460_v4, %v483_v25 }
 0x1af   : > { %v491_v27 = vmul.f32 %v487_v26, %v487_v26 }
 0x1b1   : > { %v495_v6 = vsel %vm309_vm0, %v491_v27, 0.0 }
 0x1b2   : > { %496 = vadd.xlane.f32.xlu2 %v495_v6  ;;  %v469_v28 = vpop.xlane.xlu0 %468 }
 0x1b3   : > { %v484_v29 = vmul.f32 %v860_v24, %v469_v28 }
 0x1b5   : > { %v488_v30 = vsub.f32 %v461_v10, %v484_v29 }
 0x1b7   : > { %v492_v31 = vmul.f32 %v488_v30, %v488_v30 }
 0x1b9   : > { %v498_v32 = vsel %vm309_vm0, %v492_v31, 0.0 }
 0x1ba   : > { %499 = vadd.xlane.f32.xlu2 %v498_v32 }
 0x1c0   : > { %v472_v33 = vpop.xlane.xlu1 %471 }
 0x1c1   : > { %v485_v34 = vmul.f32 %v860_v24, %v472_v33 }
 0x1c3   : > { %v867_v35 = vsub.f32 %v462_v14, %v485_v34 }
 0x1c5   : > { %v493_v36 = vmul.f32 %v867_v35, %v867_v35 }
 0x1c7   : > { %v501_v37 = vsel %vm309_vm0, %v493_v36, 0.0 }
 0x1c8   : > { %v475_v38 = vpop.xlane.xlu1 %474  ;;  %502 = vadd.xlane.f32.xlu0 %v501_v37 }
 0x1c9   : > { %v486_v39 = vmul.f32 %v860_v24, %v475_v38 }
 0x1cb   : > { %v873_v40 = vsub.f32 %v463_v2, %v486_v39 }
 0x1cd   : > { %v494_v41 = vmul.f32 %v873_v40, %v873_v40 }
 0x1cf   : > { %v504_v42 = vsel %vm309_vm0, %v494_v41, 0.0 }
 0x1d0   : > { %505 = vadd.xlane.f32.xlu1 %v504_v42 }
 0x225   : > { %v497_v43 = vpop.xlane.xlu2 %496 }
 0x226   : > { %v507_v44 = vmul.f32 %v497_v43, %v860_v24 }
 0x228   : > { %v511_v45 = vadd.f32 1e-12, %v507_v44 }
 0x22a   : > { %729 = vrsqrt.f32 %v511_v45  ;;  %vm521_vm3 = vweird.f32 %v511_v45 }
 0x22d   : > { %v500_v46 = vpop.xlane.xlu2 %499 }
 0x22e   : > { %v508_v47 = vmul.f32 %v500_v46, %v860_v24 }
 0x230   : > { %v730_v48 = vpop.eup %729  ;;  %v512_v49 = vadd.f32 1e-12, %v508_v47 }
 0x231   : > { %v516_v50 = vmul.f32 %v730_v48, %v511_v45  ;;  %vm522_vm2 = vweird.f32 %v730_v48 }
 0x232   : > { %731 = vrsqrt.f32 %v512_v49  ;;  %vm523_vm4 = vmor %vm521_vm3, %vm522_vm2  ;;  %vm531_vm6 = vweird.f32 %v512_v49 }
 0x233   : > { %v517_v51 = vmul.f32 %v730_v48, %v516_v50 }
 0x235   : > { %v518_v52 = vmul.f32 0.5, %v517_v51 }
 0x237   : > { %v519_v53 = vsub.f32 1.5, %v518_v52 }
 0x238   : > { %v732_v54 = vpop.eup %731 }
 0x239   : > { %v520_v55 = vmul.f32 %v730_v48, %v519_v53  ;;  %v526_v56 = vmul.f32 %v732_v54, %v512_v49  ;;  %vm532_vm5 = vweird.f32 %v732_v54 }
 0x23a   : > { %vm533_vm7 = vmor %vm531_vm6, %vm532_vm5 }
 0x23b   : > { %v524_v58 = vsel %vm523_vm4, %v730_v48, %v520_v55  ;;  %v527_v59 = vmul.f32 %v732_v54, %v526_v56  ;;  %v503_v60 = vpop.xlane.xlu0 %502 }
 0x23c   : > { %v555_v62 = vmul.f32 %v524_v58, %v487_v26  ;;  %v509_v63 = vmul.f32 %v503_v60, %v860_v24 }
 0x23d   : > { %v528_v0 = vmul.f32 0.5, %v527_v59 }
 0x23e   : > { %v563_v1 = vmul.f32 %v717_v57, %v555_v62  ;;  %v513_v4 = vadd.f32 1e-12, %v509_v63 }
 0x23f   : > { %v529_v7 = vsub.f32 1.5, %v528_v0 }
 0x240   : > { %v571_v8 = vadd.f32 %v718_v61, %v563_v1  ;;  %733 = vrsqrt.f32 %v513_v4  ;;  %vm541_vm9 = vweird.f32 %v513_v4 }
 0x241   : > { %v530_v9 = vmul.f32 %v732_v54, %v529_v7 }
 0x242   : > { %575 = vst.msk [vmem:[%s892_s18] sm:$0xff] %vm309_vm0, %v571_v8 }
 0x243   : > { %v534_v10 = vsel %vm533_vm7, %v732_v54, %v530_v9  ;;  %v506_v11 = vpop.xlane.xlu1 %505 }
 0x244   : > { %v556_v12 = vmul.f32 %v534_v10, %v488_v30  ;;  %v510_v13 = vmul.f32 %v506_v11, %v860_v24 }
 0x246   : > { %v734_v14 = vpop.eup %733  ;;  %v564_v15 = vmul.f32 %v717_v57, %v556_v12  ;;  %v514_v16 = vadd.f32 1e-12, %v510_v13 }
 0x247   : > { %v536_v17 = vmul.f32 %v734_v14, %v513_v4  ;;  %vm542_vm8 = vweird.f32 %v734_v14 }
 0x248   : > { %v572_v2 = vadd.f32 %v718_v61, %v564_v15  ;;  %735 = vrsqrt.f32 %v514_v16  ;;  %vm543_vm10 = vmor %vm541_vm9, %vm542_vm8  ;;  %vm551_vm12 = vweird.f32 %v514_v16 }
 0x249   : > { %v537_v18 = vmul.f32 %v734_v14, %v536_v17 }
 0x24a   : > { %576 = vst.msk [vmem:[%s892_s18 + $0x8] sm:$0xff] %vm309_vm0, %v572_v2 }
 0x24b   : > { %v538_v19 = vmul.f32 0.5, %v537_v18 }
 0x24d   : > { %v539_v3 = vsub.f32 1.5, %v538_v19 }
 0x24e   : > { %v736_v20 = vpop.eup %735 }
 0x24f   : > { %v540_v21 = vmul.f32 %v734_v14, %v539_v3  ;;  %v546_v22 = vmul.f32 %v736_v20, %v514_v16  ;;  %vm552_vm11 = vweird.f32 %v736_v20 }
 0x250   : > { %vm553_vm13 = vmor %vm551_vm12, %vm552_vm11 }
 0x251   : > { %v544_v23 = vsel %vm543_vm10, %v734_v14, %v540_v21  ;;  %v547_v24 = vmul.f32 %v736_v20, %v546_v22 }
 0x252   : > { %v557_v5 = vmul.f32 %v544_v23, %v867_v35 }
 0x253   : > { %v548_v25 = vmul.f32 0.5, %v547_v24 }
 0x254   : > { %v565_v26 = vmul.f32 %v717_v57, %v557_v5 }
 0x255   : > { %v549_v27 = vsub.f32 1.5, %v548_v25 }
 0x256   : > { %v573_v6 = vadd.f32 %v718_v61, %v565_v26 }
 0x257   : > { %v550_v28 = vmul.f32 %v736_v20, %v549_v27 }
 0x258   : > { %577 = vst.msk [vmem:[%s892_s18 + $0x10] sm:$0xff] %vm309_vm0, %v573_v6 }
 0x259   : > { %v554_v29 = vsel %vm553_vm13, %v736_v20, %v550_v28 }
 0x25a   : > { %v558_v30 = vmul.f32 %v554_v29, %v873_v40 }
 0x25c   : > { %v566_v31 = vmul.f32 %v717_v57, %v558_v30 }
 0x25e   : > { %v574_v32 = vadd.f32 %v718_v61, %v566_v31 }
 0x260   : > { %578 = vst.msk [vmem:[%s892_s18 + $0x18] sm:$0xff] %vm309_vm0, %v574_v32 }
 0x261 PF: > { %s17_s24 = sadd.s32 1, %s743_s24  }
 0x262   : > { %p14_p4 = scmp.ge.s32.totalorder %s17_s24, 4  }
 0x264   :  { %16 = sbr.rel (!%p14_p4) target bundleno = 1 (0x1), region = 78 }

// kernel: videollama_forward.57
= control target key start
LH: loop header
LB: loop body
LE: loop exit
PB: predicated region body
PF: predicated region fallthrough
CT: control target
= control target key end

     0   :  { %s485_s12 = smov 0   ;;  %s487_s13 = smov 0   ;;  %s527_s0 = inlined_call_operand.vmem [shape: f32[64,32], index: 0, kind: input, shape index: {}]   ;;  %s528_s1 = inlined_call_operand.vmem [shape: bf16[32,64], index: 1, kind: input, shape index: {}]   ;;  %s529_s2 = inlined_call_operand.vmem [shape: f32[1,64], index: 2, kind: input, shape index: {}]   ;;  %s530_s3 = inlined_call_operand.vmem [shape: bf16[64,64], index: 3, kind: output, shape index: {}]  }
   0x1   :  { %s489_s14 = smov 0  }
   0x2 LB: > { %s25_s15 = sadd.s32 1, %s459_s13  ;;  %p395_p0 = scmp.ge.s32.totalorder %s463_s14, 1  ;;  %s463_s14 = sphi %s489_s14, %s13_s14   ;;  %s459_s13 = sphi %s487_s13, %s532_s13   ;;  %s455_s12 = sphi %s485_s12, %s531_s12  }
   0x3   : > { %p27_p1 = scmp.ge.s32.totalorder %s25_s15, 2  ;;  %p169_p2 = scmp.lt.s32.totalorder %s463_s14, 3 }
   0x5   : > { %s534_s15 = smov (%p27_p1, %s25_s15), 0  ;;  %p170_p3 = pnand %p395_p0, %p169_p2 }
   0x6   : > { %s396_s18 = sshll.u32 (!%p170_p3), %s455_s12, 2 }
   0x7   : > { %173 = sbr.rel (%p170_p3) target bundleno = 160 (0xa0), region = 32  ;;  %p204_p4 = scmp.lt.s32.totalorder (!%p170_p3), %s396_s18, 7 }
   0xc   : > { %v413_v0 = vld [vmem:[%s528_s1 + $0x8] sm:$0xff]  ;;  %v412_v1 = vld [vmem:[%s528_s1] sm:$0xff]  ;;  %s536_s18 = smov (!%p204_p4, %s396_s18), 7  ;;  %vm252_vm0 = vcmask 261120   ;;  %vm282_vm1 = vcmask 519168  }
   0xd   : > { %265 = vmatpush.bf16.msra.mxu0 %v413_v0  ;;  %414 = vmatpush.bf16.msra.mxu1 %v413_v0  ;;  %s397_s21 = sshll.u32 %s536_s18, 3  ;;  %v440_v8 = vld [vmem:[%s529_s2] ss:$0 sm:$0xff]  ;;  %s399_s27 = sshll.u32 %s536_s18, 2 }
   0xe   : > { %s207_s24 = scalar_lea.vmem %s527_s0, %s397_s21  ;;  %s223_s30 = scalar_lea.vmem %s530_s3, %s399_s27 }
   0xf   : > { %v226_v2 = vld [vmem:[%s207_s24] sm:$0xff]  ;;  %v227_v3 = vld [vmem:[%s207_s24 + $0x8] sm:$0xff]  ;;  %v228_v4 = vld [vmem:[%s207_s24 + $0x10] sm:$0xff] }
  0x10   : > { %v230_v5 = vpack.c.bf16 %v227_v3, %v226_v2  ;;  %v229_v6 = vld [vmem:[%s207_s24 + $0x18] sm:$0xff] }
  0x11   : > { %266 = vmatpush.bf16.msra.mxu0 %v412_v1  ;;  %415 = vmatpush.bf16.msra.mxu1 %v412_v1  ;;  %v231_v7 = vpack.c.bf16 %v229_v6, %v228_v4 }
  0x14   : > { %408 = vmatmul.msk.bf16.vlgmr.msra.gmra.mxu0 %vm252_vm0, %v230_v5  ;;  %409 = vmatmul.msk.bf16.vlgmr.msra.gmra.mxu1 %vm252_vm0, %v231_v7 }
  0x91   : > { %v268_v9 = vpop.f32.mrf.mxu0  ;;  %v273_v11 = vpop.f32.mrf.mxu1 }
  0x92   : > { %v269_v10 = vadd.f32 %v440_v8, %v268_v9  ;;  %v274_v13 = vadd.f32 %v440_v8, %v273_v11 }
  0x94   : > { %v278_v12 = vpack.c.bf16 %v269_v10, %v269_v10  ;;  %v280_v19 = vpack.c.bf16 %v274_v13, %v274_v13 }
  0x96   : > { %283 = vst.msk [vmem:[%s223_s30] sm:$0xf] %vm282_vm1, %v278_v12 }
  0x97   : > { %285 = vst.msk [vmem:[%s223_s30 + $0x8] sm:$0xf] %vm282_vm1, %v280_v19 }
  0x99   : > { %v270_v14 = vpop.f32.mrf.mxu0  ;;  %v275_v16 = vpop.f32.mrf.mxu1 }
  0x9a   : > { %v271_v15 = vadd.f32 %v440_v8, %v270_v14  ;;  %v276_v17 = vadd.f32 %v440_v8, %v275_v16 }
  0x9c   : > { %v279_v18 = vpack.c.bf16 %v271_v15, %v271_v15  ;;  %v281_v20 = vpack.c.bf16 %v276_v17, %v276_v17 }
  0x9e   : > { %284 = vst.msk [vmem:[%s223_s30 + $0x4] sm:$0xf] %vm282_vm1, %v279_v18 }
  0x9f   : > { %286 = vst.msk [vmem:[%s223_s30 + $0xc] sm:$0xf] %vm282_vm1, %v281_v20 }
  0xa0 PF: > { %s13_s14 = sadd.s32 1, %s463_s14   ;;  %s531_s12 = smov %s459_s13 }
  0xa1   : > { %p10_p5 = scmp.ge.s32.totalorder %s13_s14, 4   ;;  %s532_s13 = smov %s534_s15 }
  0xa3   :  { %12 = sbr.rel (!%p10_p5) target bundleno = 2 (0x2), region = 68 }

// kernel: videollama_forward.52
= control target key start
LH: loop header
LB: loop body
LE: loop exit
PB: predicated region body
PF: predicated region fallthrough
CT: control target
= control target key end

     0   :  { %s314_s12 = smov 0   ;;  %s347_s0 = inlined_call_operand.vmem [shape: f32[16,32], index: 0, kind: input, shape index: {}]   ;;  %s348_s1 = inlined_call_operand.vmem [shape: f32[1,32], index: 1, kind: input, shape index: {}]   ;;  %s349_s2 = inlined_call_operand.vmem [shape: f32[1,32], index: 2, kind: input, shape index: {}]   ;;  %s350_s3 = inlined_call_operand.vmem [shape: f32[16,32], index: 3, kind: output, shape index: {}]  }
   0x1 LB: > { %s261_s13 = sadd.s32 4294967295, %s291_s12   ;;  %p265_p0 = scmp.ge.s32.totalorder %s291_s12, 1  ;;  %s291_s12 = sphi %s314_s12, %s13_s12  }
   0x2   : > { %p136_p1 = scmp.lt.s32.totalorder %s291_s12, 3 }
   0x4   : > { %p137_p2 = pnand %p265_p0, %p136_p1 }
   0x5   : > { %p158_p3 = scmp.lt.s32.totalorder (!%p137_p2), %s261_s13, 1 }
   0x6   : > { %140 = sbr.rel (%p137_p2) target bundleno = 284 (0x11c), region = 32 }
   0xb   : > { %s352_s13 = smov (!%p158_p3, %s261_s13), 1  ;;  %vm167_vm0 = vcmask 261120   ;;  %v293_v2 = vmov 32.0   ;;  %v279_v23 = vld [vmem:[%s348_s1] ss:$0 sm:$0xff] }
   0xc   : > { %s266_s14 = sshll.u32 %s352_s13, 3  ;;  %281 = vrcp.f32 %v293_v2  ;;  %v280_v25 = vld [vmem:[%s349_s2] ss:$0 sm:$0xff] }
   0xd   : > { %s161_s17 = scalar_lea.vmem %s347_s0, %s266_s14  ;;  %s165_s24 = scalar_lea.vmem %s350_s3, %s266_s14 }
   0xe   : > { %v166_v0 = vld [vmem:[%s161_s17] sm:$0xff] }
   0xf   : > { %v168_v1 = vsel %vm167_vm0, %v166_v0, 0.0 }
  0x10   : > { %169 = vadd.xlane.f32.xlu0 %v168_v1 }
  0x12   : > { %v282_v3 = vpop.eup %281 }
  0x13   : > { %v172_v4 = vmul.f32 32.0, %v282_v3  ;;  %vm176_vm1 = vweird.f32 %v282_v3 }
  0x15   : > { %v173_v5 = vsub.f32 1.0, %v172_v4 }
  0x17   : > { %v174_v6 = vmul.f32 %v282_v3, %v173_v5 }
  0x19   : > { %v175_v7 = vadd.f32 %v282_v3, %v174_v6 }
  0x1b   : > { %v177_v8 = vsel %vm176_vm1, %v282_v3, %v175_v7 }
  0x83   : > { %v170_v9 = vpop.xlane.xlu0 %169 }
  0x84   : > { %v178_v10 = vmul.f32 %v177_v8, %v170_v9 }
  0x86   : > { %v179_v11 = vsub.f32 %v166_v0, %v178_v10 }
  0x88   : > { %v180_v12 = vmul.f32 %v179_v11, %v179_v11 }
  0x8a   : > { %v181_v13 = vsel %vm167_vm0, %v180_v12, 0.0 }
  0x8b   : > { %182 = vadd.xlane.f32.xlu0 %v181_v13 }
  0xfe   : > { %v183_v14 = vpop.xlane.xlu0 %182 }
  0xff   : > { %v184_v15 = vmul.f32 %v183_v14, %v177_v8 }
 0x101   : > { %v185_v16 = vadd.f32 1e-12, %v184_v15 }
 0x103   : > { %283 = vrsqrt.f32 %v185_v16  ;;  %vm192_vm3 = vweird.f32 %v185_v16 }
 0x109   : > { %v284_v17 = vpop.eup %283 }
 0x10a   : > { %v187_v18 = vmul.f32 %v284_v17, %v185_v16  ;;  %vm193_vm2 = vweird.f32 %v284_v17 }
 0x10b   : > { %vm194_vm4 = vmor %vm192_vm3, %vm193_vm2 }
 0x10c   : > { %v188_v19 = vmul.f32 %v284_v17, %v187_v18 }
 0x10e   : > { %v189_v20 = vmul.f32 0.5, %v188_v19 }
 0x110   : > { %v190_v21 = vsub.f32 1.5, %v189_v20 }
 0x112   : > { %v191_v22 = vmul.f32 %v284_v17, %v190_v21 }
 0x114   : > { %v195_v24 = vsel %vm194_vm4, %v284_v17, %v191_v22 }
 0x115   : > { %v196_v26 = vmul.f32 %v195_v24, %v179_v11 }
 0x117   : > { %v201_v27 = vmul.f32 %v279_v23, %v196_v26 }
 0x119   : > { %v206_v28 = vadd.f32 %v280_v25, %v201_v27 }
 0x11b   : > { %207 = vst.msk [vmem:[%s165_s24] sm:$0xff] %vm167_vm0, %v206_v28 }
 0x11c PF: > { %s13_s12 = sadd.s32 1, %s291_s12  }
 0x11d   : > { %p10_p4 = scmp.ge.s32.totalorder %s13_s12, 4  }
 0x11f   :  { %12 = sbr.rel (!%p10_p4) target bundleno = 1 (0x1), region = 62 }

// kernel: videollama_forward.53
= control target key start
LH: loop header
LB: loop body
LE: loop exit
PB: predicated region body
PF: predicated region fallthrough
CT: control target
= control target key end

     0   :  { %s450_s12 = smov 0   ;;  %s452_s13 = smov 0   ;;  %s489_s0 = inlined_call_operand.vmem [shape: f32[16,32], index: 0, kind: input, shape index: {}]   ;;  %s490_s1 = inlined_call_operand.vmem [shape: bf16[32,96], index: 1, kind: input, shape index: {}]   ;;  %s491_s2 = inlined_call_operand.vmem [shape: f32[1,96], index: 2, kind: input, shape index: {}]   ;;  %s492_s3 = inlined_call_operand.vmem [shape: bf16[16,96], index: 3, kind: output, shape index: {}]  }
   0x1   :  { %s454_s14 = smov 0  }
   0x2 LB: > { %s25_s15 = sadd.s32 1, %s424_s13  ;;  %p365_p0 = scmp.ge.s32.totalorder %s428_s14, 1  ;;  %s428_s14 = sphi %s454_s14, %s13_s14   ;;  %s424_s13 = sphi %s452_s13, %s494_s13   ;;  %s420_s12 = sphi %s450_s12, %s493_s12  }
   0x3   : > { %p27_p1 = scmp.ge.s32.totalorder %s25_s15, 2  ;;  %p167_p2 = scmp.lt.s32.totalorder %s428_s14, 3 }
   0x5   : > { %s496_s15 = smov (%p27_p1, %s25_s15), 0  ;;  %p168_p3 = pnand %p365_p0, %p167_p2 }
   0x6   : > { %p199_p4 = scmp.lt.s32.totalorder (!%p168_p3), %s420_s12, 1 }
   0x7   : > { %171 = sbr.rel (%p168_p3) target bundleno = 154 (0x9a), region = 32 }
   0xc   : > { %v380_v0 = vld [vmem:[%s490_s1 + $0x8] sm:$0xff]  ;;  %v379_v1 = vld [vmem:[%s490_s1] sm:$0xff]  ;;  %s498_s12 = smov (!%p199_p4, %s420_s12), 1  ;;  %vm240_vm0 = vcmask 261120   ;;  %vm258_vm1 = vcmask 781312  }
   0xd   : > { %250 = vmatpush.bf16.msra.mxu0 %v380_v0  ;;  %s366_s20 = sshll.u32 %s498_s12, 3  ;;  %v405_v4 = vld [vmem:[%s491_s2] ss:$0 sm:$0xff]  ;;  %s367_s26 = sshll.u32 %s498_s12, 2 }
   0xe   : > { %s202_s23 = scalar_lea.vmem %s489_s0, %s366_s20  ;;  %s216_s29 = scalar_lea.vmem %s492_s3, %s367_s26 }
   0xf   : > { %v218_v2 = vld [vmem:[%s202_s23] sm:$0xff] }
  0x10   : > { %v219_v3 = vpack.c.bf16 %v218_v2, %v218_v2 }
  0x11   : > { %251 = vmatpush.bf16.msra.mxu0 %v379_v1 }
  0x14   : > { %376 = vmatmul.msk.bf16.vlgmr.msra.gmra.mxu0 %vm240_vm0, %v219_v3 }
  0x91   : > { %v253_v5 = vpop.f32.mrf.mxu0 }
  0x92   : > { %v254_v6 = vadd.f32 %v405_v4, %v253_v5 }
  0x94   : > { %v257_v7 = vpack.c.bf16 %v254_v6, %v254_v6 }
  0x96   : > { %259 = vst.msk [vmem:[%s216_s29] sm:$0xf] %vm258_vm1, %v257_v7 }
  0x99   : > { %v255_v8 = vpop.f32.mrf.mxu0 }
  0x9a PF: > { %s13_s14 = sadd.s32 1, %s428_s14   ;;  %s493_s12 = smov %s424_s13 }
  0x9b   : > { %p10_p5 = scmp.ge.s32.totalorder %s13_s14, 4   ;;  %s494_s13 = smov %s496_s15 }
  0x9d   :  { %12 = sbr.rel (!%p10_p5) target bundleno = 2 (0x2), region = 68 }

// kernel: videollama_forward.55
= control target key start
LH: loop header
LB: loop body
LE: loop exit
PB: predicated region body
PF: predicated region fallthrough
CT: control target
= control target key end

     0   :  { %s491_s21 = smov 0   ;;  %s538_s0 = inlined_call_operand.vmem [shape: bf16[16,32], index: 0, kind: input, shape index: {}]   ;;  %s539_s1 = inlined_call_operand.vmem [shape: bf16[32,32], index: 1, kind: input, shape index: {}]   ;;  %s540_s2 = inlined_call_operand.vmem [shape: f32[1,32], index: 2, kind: input, shape index: {}]   ;;  %s541_s3 = inlined_call_operand.vmem [shape: f32[16,32], index: 3, kind: input, shape index: {}]   ;;  %s542_s4 = inlined_call_operand.vmem [shape: f32[1,32], index: 4, kind: input, shape index: {}]   ;;  %s543_s5 = inlined_call_operand.vmem [shape: f32[1,32], index: 5, kind: input, shape index: {}]   ;;  %s544_s6 = inlined_call_operand.vmem [shape: f32[16,32], index: 6, kind: output, shape index: {}]  }
   0x1 LB: > { %s410_s22 = sadd.s32 4294967295, %s453_s21   ;;  %p414_p0 = scmp.ge.s32.totalorder %s453_s21, 1  ;;  %s453_s21 = sphi %s491_s21, %s16_s21  }
   0x2   : > { %p220_p1 = scmp.lt.s32.totalorder %s453_s21, 3 }
   0x4   : > { %p221_p2 = pnand %p414_p0, %p220_p1 }
   0x5   : > { %p252_p3 = scmp.lt.s32.totalorder (!%p221_p2), %s410_s22, 1 }
   0x6   : > { %224 = sbr.rel (%p221_p2) target bundleno = 418 (0x1a2), region = 44 }
   0xb   : > { %v430_v0 = vld [vmem:[%s539_s1 + $0x8] sm:$0xff]  ;;  %v429_v1 = vld [vmem:[%s539_s1] sm:$0xff]  ;;  %s546_s22 = smov (!%p252_p3, %s410_s22), 1  ;;  %vm286_vm0 = vcmask 261120   ;;  %v455_v10 = vmov 32.0  }
   0xc   : > { %296 = vmatpush.bf16.msra.mxu0 %v430_v0  ;;  %s415_s27 = sshll.u32 %s546_s22, 2  ;;  %s416_s7 = sshll.u32 %s546_s22, 3  ;;  %v440_v3 = vld [vmem:[%s540_s2] ss:$0 sm:$0xff]  ;;  %443 = vrcp.f32 %v455_v10 }
   0xd   : > { %s255_s30 = scalar_lea.vmem %s538_s0, %s415_s27  ;;  %s259_s12 = scalar_lea.vmem %s541_s3, %s416_s7  ;;  %v441_v31 = vld [vmem:[%s542_s4] ss:$0 sm:$0xff] }
   0xe   : > { %v265_v2 = vld [vmem:[%s255_s30] sm:$0xf]  ;;  %s263_s19 = scalar_lea.vmem %s544_s6, %s416_s7 }
   0xf   : > { %v303_v5 = vld [vmem:[%s259_s12] sm:$0xff] }
  0x10   : > { %297 = vmatpush.bf16.msra.mxu0 %v429_v1  ;;  %v442_v33 = vld [vmem:[%s543_s5] ss:$0 sm:$0xff] }
  0x12   : > { %v444_v11 = vpop.eup %443 }
  0x13   : > { %426 = vmatmul.msk.bf16.vlgmr.msra.gmra.mxu0 %vm286_vm0, %v265_v2  ;;  %v309_v12 = vmul.f32 32.0, %v444_v11  ;;  %vm313_vm1 = vweird.f32 %v444_v11 }
  0x15   : > { %v310_v13 = vsub.f32 1.0, %v309_v12 }
  0x17   : > { %v311_v14 = vmul.f32 %v444_v11, %v310_v13 }
  0x19   : > { %v312_v15 = vadd.f32 %v444_v11, %v311_v14 }
  0x1b   : > { %v314_v16 = vsel %vm313_vm1, %v444_v11, %v312_v15 }
  0x90   : > { %v299_v4 = vpop.f32.mrf.mxu0 }
  0x91   : > { %v300_v6 = vadd.f32 %v440_v3, %v299_v4 }
  0x93   : > { %v304_v7 = vadd.f32 %v303_v5, %v300_v6 }
  0x95   : > { %v305_v8 = vsel %vm286_vm0, %v304_v7, 0.0 }
  0x96   : > { %306 = vadd.xlane.f32.xlu0 %v305_v8 }
  0x98   : > { %v301_v9 = vpop.f32.mrf.mxu0 }
 0x109   : > { %v307_v17 = vpop.xlane.xlu0 %306 }
 0x10a   : > { %v315_v18 = vmul.f32 %v314_v16, %v307_v17 }
 0x10c   : > { %v316_v19 = vsub.f32 %v304_v7, %v315_v18 }
 0x10e   : > { %v317_v20 = vmul.f32 %v316_v19, %v316_v19 }
 0x110   : > { %v318_v21 = vsel %vm286_vm0, %v317_v20, 0.0 }
 0x111   : > { %319 = vadd.xlane.f32.xlu0 %v318_v21 }
 0x184   : > { %v320_v22 = vpop.xlane.xlu0 %319 }
 0x185   : > { %v321_v23 = vmul.f32 %v320_v22, %v314_v16 }
 0x187   : > { %v322_v24 = vadd.f32 1e-12, %v321_v23 }
 0x189   : > { %445 = vrsqrt.f32 %v322_v24  ;;  %vm329_vm3 = vweird.f32 %v322_v24 }
 0x18f   : > { %v446_v25 = vpop.eup %445 }
 0x190   : > { %v324_v26 = vmul.f32 %v446_v25, %v322_v24  ;;  %vm330_vm2 = vweird.f32 %v446_v25 }
 0x191   : > { %vm331_vm4 = vmor %vm329_vm3, %vm330_vm2 }
 0x192   : > { %v325_v27 = vmul.f32 %v446_v25, %v324_v26 }
 0x194   : > { %v326_v28 = vmul.f32 0.5, %v325_v27 }
 0x196   : > { %v327_v29 = vsub.f32 1.5, %v326_v28 }
 0x198   : > { %v328_v30 = vmul.f32 %v446_v25, %v327_v29 }
 0x19a   : > { %v332_v32 = vsel %vm331_vm4, %v446_v25, %v328_v30 }
 0x19b   : > { %v333_v34 = vmul.f32 %v332_v32, %v316_v19 }
 0x19d   : > { %v338_v35 = vmul.f32 %v441_v31, %v333_v34 }
 0x19f   : > { %v343_v36 = vadd.f32 %v442_v33, %v338_v35 }
 0x1a1   : > { %344 = vst.msk [vmem:[%s263_s19] sm:$0xff] %vm286_vm0, %v343_v36 }
 0x1a2 PF: > { %s16_s21 = sadd.s32 1, %s453_s21  }
 0x1a3   : > { %p13_p4 = scmp.ge.s32.totalorder %s16_s21, 4  }
 0x1a5   :  { %15 = sbr.rel (!%p13_p4) target bundleno = 1 (0x1), region = 77 }

// kernel: videollama_forward.56
= control target key start
LH: loop header
LB: loop body
LE: loop exit
PB: predicated region body
PF: predicated region fallthrough
CT: control target
= control target key end

     0   :  { %s450_s12 = smov 0   ;;  %s452_s13 = smov 0   ;;  %s489_s0 = inlined_call_operand.vmem [shape: f32[16,32], index: 0, kind: input, shape index: {}]   ;;  %s490_s1 = inlined_call_operand.vmem [shape: bf16[32,32], index: 1, kind: input, shape index: {}]   ;;  %s491_s2 = inlined_call_operand.vmem [shape: f32[1,32], index: 2, kind: input, shape index: {}]   ;;  %s492_s3 = inlined_call_operand.vmem [shape: bf16[16,32], index: 3, kind: output, shape index: {}]  }
   0x1   :  { %s454_s14 = smov 0  }
   0x2 LB: > { %s25_s15 = sadd.s32 1, %s424_s13  ;;  %p365_p0 = scmp.ge.s32.totalorder %s428_s14, 1  ;;  %s428_s14 = sphi %s454_s14, %s13_s14   ;;  %s424_s13 = sphi %s452_s13, %s494_s13   ;;  %s420_s12 = sphi %s450_s12, %s493_s12  }
   0x3   : > { %p27_p1 = scmp.ge.s32.totalorder %s25_s15, 2  ;;  %p167_p2 = scmp.lt.s32.totalorder %s428_s14, 3 }
   0x5   : > { %s496_s15 = smov (%p27_p1, %s25_s15), 0  ;;  %p168_p3 = pnand %p365_p0, %p167_p2 }
   0x6   : > { %p199_p4 = scmp.lt.s32.totalorder (!%p168_p3), %s420_s12, 1 }
   0x7   : > { %171 = sbr.rel (%p168_p3) target bundleno = 154 (0x9a), region = 32 }
   0xc   : > { %v380_v0 = vld [vmem:[%s490_s1 + $0x8] sm:$0xff]  ;;  %v379_v1 = vld [vmem:[%s490_s1] sm:$0xff]  ;;  %s498_s12 = smov (!%p199_p4, %s420_s12), 1  ;;  %vm240_vm0 = vcmask 261120   ;;  %vm258_vm1 = vcmask 257024  }
   0xd   : > { %250 = vmatpush.bf16.msra.mxu0 %v380_v0  ;;  %s366_s20 = sshll.u32 %s498_s12, 3  ;;  %v405_v4 = vld [vmem:[%s491_s2] ss:$0 sm:$0xff]  ;;  %s367_s26 = sshll.u32 %s498_s12, 2 }
   0xe   : > { %s202_s23 = scalar_lea.vmem %s489_s0, %s366_s20  ;;  %s216_s29 = scalar_lea.vmem %s492_s3, %s367_s26 }
   0xf   : > { %v218_v2 = vld [vmem:[%s202_s23] sm:$0xff] }
  0x10   : > { %v219_v3 = vpack.c.bf16 %v218_v2, %v218_v2 }
  0x11   : > { %251 = vmatpush.bf16.msra.mxu0 %v379_v1 }
  0x14   : > { %376 = vmatmul.msk.bf16.vlgmr.msra.gmra.mxu0 %vm240_vm0, %v219_v3 }
  0x91   : > { %v253_v5 = vpop.f32.mrf.mxu0 }
  0x92   : > { %v254_v6 = vadd.f32 %v405_v4, %v253_v5 }
  0x94   : > { %v257_v7 = vpack.c.bf16 %v254_v6, %v254_v6 }
  0x96   : > { %259 = vst.msk [vmem:[%s216_s29] sm:$0xf] %vm258_vm1, %v257_v7 }
  0x99   : > { %v255_v8 = vpop.f32.mrf.mxu0 }
  0x9a PF: > { %s13_s14 = sadd.s32 1, %s428_s14   ;;  %s493_s12 = smov %s424_s13 }
  0x9b   : > { %p10_p5 = scmp.ge.s32.totalorder %s13_s14, 4   ;;  %s494_s13 = smov %s496_s15 }
  0x9d   :  { %12 = sbr.rel (!%p10_p5) target bundleno = 2 (0x2), region = 68 }

// kernel: videollama_forward.54
= control target key start
LH: loop header
LB: loop body
LE: loop exit
PB: predicated region body
PF: predicated region fallthrough
CT: control target
= control target key end

     0   :  { %s583_s10 = smov 96   ;;  %vm22_vm0 = vcmask 64512   ;;  %s585_s11 = smov 88   ;;  %vm95_vm1 = vcmask 1043456   ;;  %vm261_vm2 = vcmask 130112   ;;  %vm384_vm3 = vcmask 195712   ;;  %s695_s0 = inlined_call_operand.vmem [shape: bf16[2,8,96], index: 0, kind: input, shape index: {}]   ;;  %s696_s1 = inlined_call_operand.vmem [shape: bf16[2,8,32], index: 1, kind: output, shape index: {}]  }
   0x1   :  { %v9_v0 = vld [vmem:[%s695_s0] sm:$0xf]  ;;  %v10_v2 = vld [vmem:[%s695_s0 + $0x4] sm:$0xf]  ;;  %s584_s0 = smov 64   ;;  %s586_s12 = smov 80  }
   0x2   :  { %v18_v1 = vunpack.c.l.b16 %v9_v0  ;;  %v43_v4 = vunpack.c.l.b16 %v10_v2  ;;  %v11_v6 = vunpack.c.l.bf16 %v9_v0  ;;  %v12_v11 = vunpack.c.l.bf16 %v10_v2  ;;  %s587_s13 = smov 72   ;;  %s588_s14 = smov 120  }
   0x3   :  { %s589_s15 = smov 104   ;;  %s590_s16 = smov 112   ;;  %vm507_vm4 = vcmask 261312   ;;  %vm514_vm5 = vcmask 257024  }
   0x4   :  { %v613_v3 = vpack.c.b16 %v18_v1, %v18_v1  ;;  %v616_v5 = vpack.c.b16 %v43_v4, %v43_v4  ;;  %v13_v9 = vmul.f32 0.35355338, %v11_v6  ;;  %v14_v14 = vmul.f32 0.35355338, %v12_v11  ;;  %s591_s17 = smov 56   ;;  %s592_s18 = smov 48  }
   0x5   :  { %s593_s19 = smov 40   ;;  %s594_s20 = smov 8  }
   0x6   :  { %20 = vrot.lane.b32.xlu0 %v613_v3, %s583_s10  ;;  %v15_v10 = vpack.c.bf16 %v13_v9, %v13_v9  ;;  %v16_v15 = vpack.c.bf16 %v14_v14, %v14_v14  ;;  %140 = vrot.lane.b32.xlu2 %v613_v3, %s585_s11  ;;  %s595_s21 = smov 16   ;;  %s596_s22 = smov 24  }
   0x8   :  { %v136_v22 = vunpack.c.l.b16 %v15_v10  ;;  %v162_v23 = vunpack.c.l.b16 %v16_v15 }
   0xa   :  { %v137_v28 = vpack.c.b16 %v136_v22, %v136_v22  ;;  %v163_v29 = vpack.c.b16 %v162_v23, %v162_v23 }
   0xe   :  { %45 = vrot.lane.b32.xlu0 %v616_v5, %s583_s10 }
  0x16   :  { %90 = vrot.lane.b32.xlu0 %v613_v3, %s584_s0 }
  0x1e   :  { %166 = vrot.lane.b32.xlu0 %v616_v5, %s585_s11 }
  0x26   :  { %138 = vrot.lane.b32.xlu0 %v137_v28, %s588_s14 }
  0x2e   :  { %164 = vrot.lane.b32.xlu0 %v163_v29, %s588_s14 }
  0x36   :  { %264 = vrot.lane.b32.xlu0 %v137_v28, %s590_s16 }
  0x3e   :  { %412 = vrot.lane.b32.xlu0 %v616_v5, %s587_s13 }
  0x60   :  { %v141_v25 = vpop.permute.xlu2 %140 }
  0x61   :  { %v146_v27 = vsel %vm22_vm0, %v141_v25, 0 }
  0x78   :  { %v21_v7 = vpop.permute.xlu0 %20 }
  0x79   :  { %v27_v8 = vsel %vm22_vm0, %v21_v7, 0 }
  0x7a   :  { %36 = vmatpush.bf16.xpose.msra.mxu0 %v27_v8 }
  0x80   :  { %v46_v12 = vpop.permute.xlu0 %45 }
  0x81   :  { %521 = vmatmul.msk.bf16.vlgmr.msra.gmra.mxu0 %vm22_vm0, %v15_v10  ;;  %v51_v13 = vsel %vm22_vm0, %v46_v12, 0 }
  0x82   :  { %60 = vmatpush.bf16.xpose.msra.mxu1 %v51_v13 }
  0x88   :  { %v91_v24 = vpop.permute.xlu0 %90 }
  0x89   :  { %522 = vmatmul.msk.bf16.vlgmr.msra.gmra.mxu1 %vm22_vm0, %v16_v15  ;;  %v97_v26 = vsel %vm95_vm1, %v91_v24, 0 }
  0x8a   :  { %106 = vmatpush.bf16.msra.mxu2 %v97_v26 }
  0x8e   :  { %155 = vmatpush.bf16.xpose.msrb.mxu2 %v146_v27 }
  0x90   :  { %v167_v42 = vpop.permute.xlu0 %166 }
  0x91   :  { %v172_v43 = vsel %vm22_vm0, %v167_v42, 0 }
  0x98   :  { %v139_v45 = vpop.permute.xlu0 %138 }
  0xa0   :  { %v165_v50 = vpop.permute.xlu0 %164 }
  0xa8   :  { %v265_v58 = vpop.permute.xlu0 %264 }
  0xb0   :  { %v413_v61 = vpop.permute.xlu0 %412 }
  0xb1   :  { %v418_v62 = vsel %vm22_vm0, %v413_v61, 0 }
  0xfe   :  { %v38_v16 = vpop.f32.mrf.mxu0 }
  0xff   :  { %v66_v17 = vsel %vm22_vm0, %v38_v16, -inf }
 0x100   :  { %67 = vmax.xlane.f32.xlu1 %v66_v17 }
 0x106   :  { %v40_v18 = vpop.f32.mrf.mxu0  ;;  %v62_v19 = vpop.f32.mrf.mxu1 }
 0x107   :  { %v69_v20 = vsel %vm22_vm0, %v62_v19, -inf }
 0x108   :  { %70 = vmax.xlane.f32.xlu1 %v69_v20 }
 0x10e   :  { %v64_v21 = vpop.f32.mrf.mxu1 }
 0x121   :  { %112 = vrot.lane.b32.xlu1 %v616_v5, %s584_s0 }
 0x129   :  { %289 = vrot.lane.b32.xlu1 %v616_v5, %s586_s12 }
 0x131   :  { %389 = vrot.lane.b32.xlu1 %v613_v3, %s587_s13 }
 0x139   :  { %410 = vrot.lane.b32.xlu1 %v163_v29, %s589_s15 }
 0x141   :  { %211 = vrot.lane.b32.xlu1 %v613_v3, %s591_s17 }
 0x173   :  { %v68_v30 = vpop.xlane.xlu1 %67 }
 0x174   :  { %v72_v31 = vsub.f32 %v38_v16, %v68_v30 }
 0x176   :  { %v74_v32 = vmul.f32 1.442695, %v72_v31 }
 0x178   :  { %551 = vpow2.f32 %v74_v32 }
 0x17b   :  { %v71_v33 = vpop.xlane.xlu1 %70 }
 0x17c   :  { %v73_v34 = vsub.f32 %v62_v19, %v71_v33 }
 0x17e   :  { %v552_v35 = vpop.eup %551  ;;  %v76_v36 = vmul.f32 1.442695, %v73_v34 }
 0x17f   :  { %v78_v37 = vsel %vm22_vm0, %v552_v35, 0.0 }
 0x180   :  { %553 = vpow2.f32 %v76_v36  ;;  %79 = vadd.xlane.f32.xlu2 %v78_v37 }
 0x186   :  { %v554_v38 = vpop.eup %553 }
 0x187   :  { %v81_v39 = vsel %vm22_vm0, %v554_v38, 0.0 }
 0x188   :  { %82 = vadd.xlane.f32.xlu2 %v81_v39 }
 0x193   :  { %v113_v40 = vpop.permute.xlu1 %112 }
 0x194   :  { %v118_v41 = vsel %vm95_vm1, %v113_v40, 0 }
 0x195   :  { %127 = vmatpush.bf16.msra.mxu3 %v118_v41 }
 0x199   :  { %181 = vmatpush.bf16.xpose.msrb.mxu3 %v172_v43 }
 0x19b   :  { %v290_v51 = vpop.permute.xlu1 %289 }
 0x19c   :  { %v295_v57 = vsel %vm22_vm0, %v290_v51, 0 }
 0x1a0   :  { %266 = vrot.lane.b32.xlu2 %v613_v3, %s586_s12 }
 0x1a3   :  { %v390_v59 = vpop.permute.xlu1 %389 }
 0x1a4   :  { %v395_v60 = vsel %vm22_vm0, %v390_v59, 0 }
 0x1a8   :  { %287 = vrot.lane.b32.xlu2 %v163_v29, %s590_s16 }
 0x1ab   :  { %v411_v1 = vpop.permute.xlu1 %410 }
 0x1b0   :  { %387 = vrot.lane.b32.xlu2 %v137_v28, %s589_s15 }
 0x1b3   :  { %v212_v16 = vpop.permute.xlu1 %211 }
 0x1b4   :  { %v217_v17 = vsel %vm95_vm1, %v212_v16, 0 }
 0x1b5   :  { %226 = vmatpush.bf16.msrb.mxu0 %v217_v17 }
 0x1f3   :  { %v80_v44 = vpop.xlane.xlu2 %79 }
 0x1f4   :  { %555 = vrcp.f32 %v80_v44 }
 0x1fa   :  { %v556_v46 = vpop.eup %555 }
 0x1fb   :  { %v83_v47 = vpop.xlane.xlu2 %82  ;;  %v86_v48 = vmul.f32 %v556_v46, %v552_v35 }
 0x1fc   :  { %557 = vrcp.f32 %v83_v47 }
 0x1fd   :  { %v88_v49 = vpack.c.bf16 %v86_v48, %v86_v48 }
 0x1ff   :  { %523 = vmatmul.msk.bf16.vlgmr.msra.gmra.mxu2 %vm22_vm0, %v88_v49 }
 0x202   :  { %v558_v52 = vpop.eup %557 }
 0x203   :  { %v87_v53 = vmul.f32 %v558_v52, %v554_v38  ;;  %v267_v54 = vpop.permute.xlu2 %266 }
 0x204   :  { %v272_v55 = vsel %vm22_vm0, %v267_v54, 0 }
 0x205   :  { %v89_v56 = vpack.c.bf16 %v87_v53, %v87_v53  ;;  %281 = vmatpush.bf16.xpose.msra.mxu2 %v272_v55 }
 0x207   :  { %524 = vmatmul.msk.bf16.vlgmr.msra.gmra.mxu3 %vm22_vm0, %v89_v56 }
 0x208   :  { %304 = vmatpush.bf16.xpose.msra.mxu3 %v295_v57 }
 0x20b   :  { %v288_v63 = vpop.permute.xlu2 %287 }
 0x20f   :  { %525 = vmatmul.msk.bf16.vlgmr.msrb.gmra.mxu2 %vm22_vm0, %v139_v45 }
 0x210   :  { %404 = vmatpush.bf16.xpose.msrb.mxu2 %v395_v60 }
 0x213   :  { %v388_v0 = vpop.permute.xlu2 %387 }
 0x217   :  { %526 = vmatmul.msk.bf16.vlgmr.msrb.gmra.mxu3 %vm22_vm0, %v165_v50 }
 0x218   :  { %427 = vmatpush.bf16.xpose.msrb.mxu3 %v418_v62 }
 0x21f   :  { %529 = vmatmul.msk.bf16.vlgmr.msra.gmra.mxu2 %vm22_vm0, %v265_v58 }
 0x227   :  { %530 = vmatmul.msk.bf16.vlgmr.msra.gmra.mxu3 %vm22_vm0, %v288_v63 }
 0x22f   :  { %533 = vmatmul.msk.bf16.vlgmr.msrb.gmra.mxu2 %vm22_vm0, %v388_v0 }
 0x237   :  { %534 = vmatmul.msk.bf16.vlgmr.msrb.gmra.mxu3 %vm22_vm0, %v411_v1 }
 0x282   :  { %v108_v2 = vpop.f32.mrf.mxu2 }
 0x283   :  { %133 = vst.msk [vmem:[#allocation2] sm:$0xff] %vm22_vm0, %v108_v2 }
 0x28a   :  { %v110_v4 = vpop.f32.mrf.mxu2  ;;  %v129_v6 = vpop.f32.mrf.mxu3 }
 0x28b   :  { %134 = vst.msk [vmem:[#allocation2 + $0x8] sm:$0xff] %vm22_vm0, %v129_v6 }
 0x292   :  { %v131_v7 = vpop.f32.mrf.mxu3  ;;  %v157_v8 = vpop.f32.mrf.mxu2 }
 0x293   :  { %v187_v9 = vsel %vm22_vm0, %v157_v8, -inf }
 0x294   :  { %188 = vmax.xlane.f32.xlu0 %v187_v9 }
 0x29a   :  { %v159_v10 = vpop.f32.mrf.mxu2  ;;  %v183_v11 = vpop.f32.mrf.mxu3 }
 0x29b   :  { %v190_v12 = vsel %vm22_vm0, %v183_v11, -inf }
 0x29c   :  { %191 = vmax.xlane.f32.xlu2 %v190_v12 }
 0x2a2   :  { %v185_v13 = vpop.f32.mrf.mxu3  ;;  %v283_v14 = vpop.f32.mrf.mxu2 }
 0x2a3   :  { %v310_v15 = vsel %vm22_vm0, %v283_v14, -inf }
 0x2a4   :  { %311 = vmax.xlane.f32.xlu1 %v310_v15 }
 0x2aa   :  { %v285_v18 = vpop.f32.mrf.mxu2  ;;  %v306_v19 = vpop.f32.mrf.mxu3 }
 0x2ab   :  { %v313_v20 = vsel %vm22_vm0, %v306_v19, -inf }
 0x2ac   :  { %314 = vmax.xlane.f32.xlu2 %v313_v20 }
 0x2b2   :  { %v308_v21 = vpop.f32.mrf.mxu3  ;;  %v406_v22 = vpop.f32.mrf.mxu2 }
 0x2b3   :  { %v433_v23 = vsel %vm22_vm0, %v406_v22, -inf }
 0x2b4   :  { %434 = vmax.xlane.f32.xlu0 %v433_v23 }
 0x2ba   :  { %v429_v24 = vpop.f32.mrf.mxu3  ;;  %v408_v25 = vpop.f32.mrf.mxu2 }
 0x2bb   :  { %v436_v26 = vsel %vm22_vm0, %v429_v24, -inf }
 0x2bc   :  { %437 = vmax.xlane.f32.xlu1 %v436_v26 }
 0x2c2   :  { %v431_v27 = vpop.f32.mrf.mxu3 }
 0x2c8   :  { %334 = vrot.lane.b32.xlu0 %v613_v3, %s592_s18 }
 0x2d5   :  { %355 = vrot.lane.b32.xlu1 %v616_v5, %s592_s18 }
 0x307   :  { %v189_v28 = vpop.xlane.xlu0 %188 }
 0x308   :  { %v193_v29 = vsub.f32 %v157_v8, %v189_v28 }
 0x30a   :  { %v195_v30 = vmul.f32 1.442695, %v193_v29 }
 0x30c   :  { %559 = vpow2.f32 %v195_v30 }
 0x30f   :  { %v192_v31 = vpop.xlane.xlu2 %191 }
 0x310   :  { %v194_v32 = vsub.f32 %v183_v11, %v192_v31 }
 0x312   :  { %v560_v33 = vpop.eup %559  ;;  %v197_v34 = vmul.f32 1.442695, %v194_v32 }
 0x313   :  { %v199_v35 = vsel %vm22_vm0, %v560_v33, 0.0 }
 0x314   :  { %561 = vpow2.f32 %v197_v34  ;;  %200 = vadd.xlane.f32.xlu2 %v199_v35 }
 0x317   :  { %v312_v36 = vpop.xlane.xlu1 %311 }
 0x318   :  { %v316_v37 = vsub.f32 %v283_v14, %v312_v36 }
 0x31a   :  { %v562_v38 = vpop.eup %561  ;;  %v318_v39 = vmul.f32 1.442695, %v316_v37 }
 0x31b   :  { %v202_v40 = vsel %vm22_vm0, %v562_v38, 0.0 }
 0x31c   :  { %563 = vpow2.f32 %v318_v39  ;;  %203 = vadd.xlane.f32.xlu0 %v202_v40 }
 0x31f   :  { %v315_v41 = vpop.xlane.xlu2 %314 }
 0x320   :  { %v317_v42 = vsub.f32 %v306_v19, %v315_v41 }
 0x322   :  { %v564_v43 = vpop.eup %563  ;;  %v320_v44 = vmul.f32 1.442695, %v317_v42 }
 0x323   :  { %v322_v45 = vsel %vm22_vm0, %v564_v43, 0.0 }
 0x324   :  { %565 = vpow2.f32 %v320_v44  ;;  %323 = vadd.xlane.f32.xlu0 %v322_v45 }
 0x327   :  { %v435_v50 = vpop.xlane.xlu0 %434 }
 0x328   :  { %v439_v56 = vsub.f32 %v406_v22, %v435_v50 }
 0x32a   :  { %v566_v46 = vpop.eup %565  ;;  %v441_v57 = vmul.f32 1.442695, %v439_v56 }
 0x32b   :  { %v325_v47 = vsel %vm22_vm0, %v566_v46, 0.0 }
 0x32c   :  { %232 = vrot.lane.b32.xlu2 %v616_v5, %s591_s17  ;;  %326 = vadd.xlane.f32.xlu0 %v325_v47 }
 0x32f   :  { %v438_v48 = vpop.xlane.xlu1 %437 }
 0x330   :  { %v440_v49 = vsub.f32 %v429_v24, %v438_v48 }
 0x332   :  { %v443_v51 = vmul.f32 1.442695, %v440_v49 }
 0x334   :  { %567 = vpow2.f32 %v443_v51 }
 0x335   :  { %569 = vpow2.f32 %v441_v57 }
 0x33a   :  { %v568_v52 = vpop.eup %567  ;;  %v335_v53 = vpop.permute.xlu0 %334 }
 0x33b   :  { %v448_v54 = vsel %vm22_vm0, %v568_v52, 0.0  ;;  %v340_v55 = vsel %vm95_vm1, %v335_v53, 0  ;;  %v570_v58 = vpop.eup %569 }
 0x33c   :  { %449 = vadd.xlane.f32.xlu1 %v448_v54  ;;  %349 = vmatpush.bf16.msra.mxu0 %v340_v55  ;;  %v445_v59 = vsel %vm22_vm0, %v570_v58, 0.0 }
 0x340   :  { %457 = vrot.lane.b32.xlu0 %v613_v3, %s593_s19 }
 0x347   :  { %v356_v61 = vpop.permute.xlu1 %355 }
 0x348   :  { %478 = vrot.lane.b32.xlu0 %v616_v5, %s593_s19  ;;  %v361_v2 = vsel %vm95_vm1, %v356_v61, 0 }
 0x355   :  { %446 = vadd.xlane.f32.xlu2 %v445_v59 }
 0x387   :  { %v201_v60 = vpop.xlane.xlu2 %200 }
 0x388   :  { %571 = vrcp.f32 %v201_v60 }
 0x38e   :  { %v572_v62 = vpop.eup %571 }
 0x38f   :  { %v207_v63 = vmul.f32 %v572_v62, %v560_v33  ;;  %v233_v0 = vpop.permute.xlu2 %232  ;;  %v204_v1 = vpop.xlane.xlu0 %203 }
 0x390   :  { %573 = vrcp.f32 %v204_v1  ;;  %v238_v3 = vsel %vm95_vm1, %v233_v0, 0 }
 0x391   :  { %247 = vmatpush.bf16.msrb.mxu1 %v238_v3  ;;  %v209_v4 = vpack.c.bf16 %v207_v63, %v207_v63 }
 0x393   :  { %527 = vmatmul.msk.bf16.vlgmr.msrb.gmra.mxu0 %vm22_vm0, %v209_v4 }
 0x395   :  { %370 = vmatpush.bf16.msra.mxu1 %v361_v2 }
 0x396   :  { %v574_v5 = vpop.eup %573 }
 0x397   :  { %v208_v6 = vmul.f32 %v574_v5, %v562_v38  ;;  %v324_v7 = vpop.xlane.xlu0 %323 }
 0x398   :  { %575 = vrcp.f32 %v324_v7 }
 0x399   :  { %v210_v8 = vpack.c.bf16 %v208_v6, %v208_v6 }
 0x39b   :  { %528 = vmatmul.msk.bf16.vlgmr.msrb.gmra.mxu1 %vm22_vm0, %v210_v8 }
 0x39e   :  { %v576_v9 = vpop.eup %575 }
 0x39f   :  { %v330_v10 = vmul.f32 %v576_v9, %v564_v43  ;;  %v327_v11 = vpop.xlane.xlu0 %326 }
 0x3a0   :  { %577 = vrcp.f32 %v327_v11 }
 0x3a1   :  { %v332_v12 = vpack.c.bf16 %v330_v10, %v330_v10 }
 0x3a3   :  { %531 = vmatmul.msk.bf16.vlgmr.msra.gmra.mxu0 %vm22_vm0, %v332_v12 }
 0x3a6   :  { %v578_v13 = vpop.eup %577 }
 0x3a7   :  { %v331_v14 = vmul.f32 %v578_v13, %v566_v46 }
 0x3a9   :  { %v333_v15 = vpack.c.bf16 %v331_v14, %v331_v14 }
 0x3ab   :  { %532 = vmatmul.msk.bf16.vlgmr.msra.gmra.mxu1 %vm22_vm0, %v333_v15 }
 0x3af   :  { %v450_v16 = vpop.xlane.xlu1 %449 }
 0x3b0   :  { %579 = vrcp.f32 %v450_v16 }
 0x3b2   :  { %v458_v17 = vpop.permute.xlu0 %457 }
 0x3b3   :  { %v463_v18 = vsel %vm95_vm1, %v458_v17, 0 }
 0x3b4   :  { %472 = vmatpush.bf16.msrb.mxu0 %v463_v18 }
 0x3b6   :  { %v580_v19 = vpop.eup %579 }
 0x3b7   :  { %v454_v20 = vmul.f32 %v580_v19, %v568_v52 }
 0x3b9   :  { %v456_v23 = vpack.c.bf16 %v454_v20, %v454_v20 }
 0x3ba   :  { %v479_v21 = vpop.permute.xlu0 %478 }
 0x3bb   :  { %v484_v22 = vsel %vm95_vm1, %v479_v21, 0 }
 0x3bc   :  { %493 = vmatpush.bf16.msrb.mxu1 %v484_v22 }
 0x3bf   :  { %536 = vmatmul.msk.bf16.vlgmr.msrb.gmra.mxu1 %vm22_vm0, %v456_v23 }
 0x3c8   :  { %v447_v24 = vpop.xlane.xlu2 %446 }
 0x3c9   :  { %581 = vrcp.f32 %v447_v24 }
 0x3cf   :  { %v582_v25 = vpop.eup %581 }
 0x3d0   :  { %v453_v26 = vmul.f32 %v582_v25, %v570_v58 }
 0x3d2   :  { %v455_v27 = vpack.c.bf16 %v453_v26, %v453_v26 }
 0x3d4   :  { %535 = vmatmul.msk.bf16.vlgmr.msrb.gmra.mxu0 %vm22_vm0, %v455_v27 }
 0x410   :  { %v228_v28 = vpop.f32.mrf.mxu0 }
 0x411   :  { %255 = vrot.lane.b32.xlu0 %v228_v28, %s594_s20 }
 0x418   :  { %v230_v29 = vpop.f32.mrf.mxu0  ;;  %v249_v30 = vpop.f32.mrf.mxu1 }
 0x419   :  { %257 = vrot.lane.b32.xlu0 %v249_v30, %s594_s20 }
 0x420   :  { %v251_v31 = vpop.f32.mrf.mxu1  ;;  %v351_v32 = vpop.f32.mrf.mxu0 }
 0x421   :  { %378 = vrot.lane.b32.xlu2 %v351_v32, %s595_s21 }
 0x428   :  { %v353_v33 = vpop.f32.mrf.mxu0  ;;  %v372_v34 = vpop.f32.mrf.mxu1 }
 0x429   :  { %380 = vrot.lane.b32.xlu0 %v372_v34, %s595_s21 }
 0x430   :  { %v374_v35 = vpop.f32.mrf.mxu1 }
 0x43c   :  { %v495_v36 = vpop.f32.mrf.mxu1 }
 0x43d   :  { %503 = vrot.lane.b32.xlu0 %v495_v36, %s596_s22 }
 0x444   :  { %v497_v37 = vpop.f32.mrf.mxu1 }
 0x451   :  { %v474_v38 = vpop.f32.mrf.mxu0 }
 0x452   :  { %501 = vrot.lane.b32.xlu1 %v474_v38, %s596_s22 }
 0x459   :  { %v476_v39 = vpop.f32.mrf.mxu0 }
 0x47b   :  { %v379_v41 = vpop.permute.xlu2 %378 }
 0x483   :  { %v256_v40 = vpop.permute.xlu0 %255 }
 0x484   :  { %262 = vst.msk [vmem:[#allocation2] sm:$0xff] %vm261_vm2, %v256_v40 }
 0x485   :  { %385 = vst.msk [vmem:[#allocation2] sm:$0xff] %vm384_vm3, %v379_v41 }
 0x48b   :  { %v258_v42 = vpop.permute.xlu0 %257 }
 0x48c   :  { %263 = vst.msk [vmem:[#allocation2 + $0x8] sm:$0xff] %vm261_vm2, %v258_v42 }
 0x49b   :  { %v381_v43 = vpop.permute.xlu0 %380 }
 0x49c   :  { %386 = vst.msk [vmem:[#allocation2 + $0x8] sm:$0xff] %vm384_vm3, %v381_v43 }
 0x4af   :  { %v504_v44 = vpop.permute.xlu0 %503 }
 0x4b0   :  { %509 = vst.msk [vmem:[#allocation2 + $0x8] sm:$0xff] %vm507_vm4, %v504_v44 }
 0x4b7   :  { %v511_v45 = vld [vmem:[#allocation2 + $0x8] sm:$0xff] }
 0x4b8   :  { %v513_v46 = vpack.c.bf16 %v511_v45, %v511_v45 }
 0x4ba   :  { %516 = vst.msk [vmem:[%s696_s1 + $0x4] sm:$0xf] %vm514_vm5, %v513_v46 }
 0x4c4   :  { %v502_v47 = vpop.permute.xlu1 %501 }
 0x4c5   :  { %508 = vst.msk [vmem:[#allocation2] sm:$0xff] %vm507_vm4, %v502_v47 }
 0x4cc   :  { %v510_v48 = vld [vmem:[#allocation2] sm:$0xff] }
 0x4cd   :  { %v512_v49 = vpack.c.bf16 %v510_v48, %v510_v48 }
 0x4cf   :  { %515 = vst.msk [vmem:[%s696_s1] sm:$0xf] %vm514_vm5, %v512_v49 }

// kernel: videollama_forward.69
= control target key start
LH: loop header
LB: loop body
LE: loop exit
PB: predicated region body
PF: predicated region fallthrough
CT: control target
= control target key end

     0   :  { %8 = vsyncpa [#allocation3], 0  ;;  %s651_s0 = inlined_call_operand.vmem [shape: f32[16,32], index: 0, kind: input, shape index: {}]   ;;  %s652_s1 = inlined_call_operand.vmem [shape: bf16[32,64], index: 1, kind: input, shape index: {}]   ;;  %s653_s2 = inlined_call_operand.vmem [shape: f32[1,64], index: 2, kind: input, shape index: {}]   ;;  %s654_s3 = inlined_call_operand.hbm [shape: f32[16,64], index: 3, kind: output, shape index: {}]  }
   0x1   :  { %10 = vsyncpa [#allocation3 + $0x1], 0  ;;  %s545_s12 = smov 0   ;;  %s547_s13 = smov 0  }
   0x2   :  { %s549_s14 = smov 0   ;;  %s551_s15 = smov 0  }
   0x3   :  { %s553_s16 = smov 0   ;;  %s555_s17 = smov 0  }
   0x4 LB: > { %s365_s18 = sadd.s32 4294967295, %s523_s17   ;;  %s366_s19 = sadd.s32 4294967294, %s523_s17   ;;  %s523_s17 = sphi %s555_s17, %s16_s17   ;;  %s519_s16 = sphi %s553_s16, %s661_s16   ;;  %s515_s15 = sphi %s551_s15, %s660_s15   ;;  %s511_s14 = sphi %s549_s14, %s659_s14   ;;  %s507_s13 = sphi %s547_s13, %s658_s13   ;;  %s503_s12 = sphi %s545_s12, %s657_s12  }
   0x5   : > { %s28_s20 = sadd.s32 1, %s519_s16  ;;  %s115_s21 = sadd.s32 1, %s511_s14 }
   0x6   : > { %p30_p0 = scmp.ge.s32.totalorder %s28_s20, 2  ;;  %p125_p1 = scmp.ne.s32.totalorder %s511_s14, %s507_s13 }
   0x7   : > { %p126_p2 = scmp.eq.s32.totalorder %s365_s18, 1  ;;  %p131_p3 = scmp.ne.s32.totalorder %s507_s13, %s503_s12 }
   0x8   : > { %s663_s20 = smov (%p30_p0, %s28_s20), 0  ;;  %p132_p5 = scmp.eq.s32.totalorder %s366_s19, 1 }
   0x9   : > { %p585_p4 = por %p126_p2, %p125_p1  ;;  %s110_s23 = ssub.s32 %s519_s16, %s663_s20 }
   0xa   : > { %p371_p6 = scmp.ge.s32.totalorder %s523_s17, 1  ;;  %p113_p7 = scmp.eq.s32.totalorder %s110_s23, 0 }
   0xb   : > { %p592_p8 = por %p132_p5, %p131_p3  ;;  %p170_p9 = scmp.lt.s32.totalorder %s523_s17, 3 }
   0xc   : > { %s598_s25 = scalar_select %p113_p7, %s511_s14, %s115_s21  }
   0xd   : > { %p171_p10 = pnand %p371_p6, %p170_p9 }
   0xe   : > { %p200_p11 = scmp.lt.s32.totalorder (!%p171_p10), %s515_s15, 1  ;;  %s197_s8 = sand.u32 (!%p171_p10), 1, %s507_s13  }
   0xf   : > { %174 = sbr.rel (%p171_p10) target bundleno = 162 (0xa2), region = 32  ;;  %s384_s9 = sshll.u32 (!%p171_p10), %s515_s15, 3 }
  0x10   : > { %s372_s10 = sshll.u32 (!%p171_p10), %s197_s8, 3  ;;  %s265_s19 = scalar_lea.hbm (!%p171_p10), %s654_s3, %s384_s9 }
  0x11   : > { %s199_s26 = scalar_lea.vmem (!%p171_p10), [#allocation2], %s372_s10  ;;  %s269_s28 = sshll.u32 (!%p171_p10), %s265_s19, 4  ;;  %s270_s28 = int_to_ptr.hbm [resolvable:$true] %s269_s28 }
  0x12   : > { %s267_s27 = sshll.u32 (!%p171_p10), %s199_s26, 4  ;;  %s459_s29 = sshra.s32 (!%p171_p10), %s270_s28, 4  ;;  %s268_s27 = int_to_ptr.vmem [resolvable:$true] %s267_s27  ;;  %s460_s29 = int_to_ptr.hbm [resolvable:$true] %s459_s29 }
  0x13   : > { %s465_s6 = scalar_lea.hbm (!%p171_p10), %s654_s3, 16  ;;  %p466_p1 = scmp.lt.s32.totalorder (!%p171_p10), %s460_s29, %s654_s3 }
  0x14   : > { %v388_v0 = vld [vmem:[%s652_s1 + $0x8] sm:$0xff]  ;;  %v387_v1 = vld [vmem:[%s652_s1] sm:$0xff]  ;;  %s201_s30 = scalar_select %p200_p11, %s515_s15, 1  ;;  %vm234_vm0 = vcmask 261120   ;;  %vm251_vm1 = vcmask 523264  }
  0x15   : > { %244 = vmatpush.bf16.msra.mxu0 %v388_v0  ;;  %v444_v4 = vld [vmem:[%s653_s2] ss:$0 sm:$0xff]  ;;  %s254_s15 = scalar_lea.sflag [#allocation3], %s197_s8 }
  0x16   : > { %s373_s4 = sshll.u32 %s201_s30, 3  ;;  %s461_s30 = scalar_lea.hbm %s460_s29, 8 }
  0x17   : > { %s203_s7 = scalar_lea.vmem %s651_s0, %s373_s4  ;;  %p462_p12 = scmp.ne.s32.totalorder %s460_s29, %s461_s30 }
  0x18   : > { %v212_v2 = vld [vmem:[%s203_s7] sm:$0xff]  ;;  %p467_p2 = scmp.lt.s32.totalorder %s465_s6, %s461_s30 }
  0x19   : > { %245 = vmatpush.bf16.msra.mxu0 %v387_v1  ;;  %v213_v3 = vpack.c.bf16 %v212_v2, %v212_v2  ;;  %p463_p13 = pnand %p462_p12, %p585_p4 }
  0x1a   : > { %p468_p3 = por %p467_p2, %p466_p1 }
  0x1b   : > { %p464_p0 = pneg %p463_p13 }
  0x1c   : > { %382 = vmatmul.msk.bf16.vlgmr.msra.gmra.mxu0 %vm234_vm0, %v213_v3 }
  0x1d   : > { %p469_p5 = pnand %p468_p3, %p464_p0 }
  0x99   : > { %v247_v5 = vpop.f32.mrf.mxu0 }
  0x9a   : > { %v248_v6 = vadd.f32 %v444_v4, %v247_v5 }
  0x9c   : > { %252 = vst.msk [vmem:[%s199_s26] sm:$0xff] %vm251_vm1, %v248_v6 }
  0x9d   : > { %472 = shalt.err (!%p469_p5)
}
  0x9e   : > { %389 = dma.vmem_to_hbm [thread:$0]  (%p585_p4), %s268_s27, 128, %s270_s28, %s254_s15  }
  0xa1   : > { %v249_v7 = vpop.f32.mrf.mxu0 }
  0xa2 PF: > { %p395_p6 = scmp.ge.s32.totalorder %s523_s17, 2  ;;  %s281_s8 = sand.u32 1, %s503_s12  }
  0xa3   : > { %s282_s10 = scalar_lea.sflag [#allocation3], %s281_s8 }
  0xa4   : > { %p392_p7 = pnand %p395_p6, %p592_p8 }
  0xa6   : > { %p393_p9 = pneg %p392_p7 }
  0xa8   : > { %498 = dma.done.wait (%p393_p9), %s282_s10, 128  }
  0xa9   : > { %500 = vsyncadd (%p393_p9), %s282_s10, 4294967168  ;;  %s16_s17 = sadd.s32 1, %s523_s17   ;;  %s657_s12 = smov %s507_s13 }
  0xaa   : > { %p13_p10 = scmp.ge.s32.totalorder %s16_s17, 4   ;;  %s658_s13 = smov %s511_s14 }
  0xab   : > { %s659_s14 = smov %s598_s25  ;;  %s660_s15 = smov %s519_s16 }
  0xac   : > { %s661_s16 = smov %s663_s20  ;;  %15 = sbr.rel (!%p13_p10) target bundleno = 4 (0x4), region = 73 }
  0xb1   :  { %288 = vsyncpa [#allocation3], 1 }
  0xb2   :  { %290 = vsyncpa [#allocation3 + $0x1], 1 }

// kernel: videollama_forward.60
= control target key start
LH: loop header
LB: loop body
LE: loop exit
PB: predicated region body
PF: predicated region fallthrough
CT: control target
= control target key end

     0   :  { %s627_s24 = smov 0   ;;  %s697_s0 = inlined_call_operand.vmem [shape: f32[16,32], index: 0, kind: input, shape index: {}]   ;;  %s698_s1 = inlined_call_operand.vmem [shape: bf16[32,128], index: 1, kind: input, shape index: {}]   ;;  %s699_s2 = inlined_call_operand.vmem [shape: f32[1,128], index: 2, kind: input, shape index: {}]   ;;  %s700_s3 = inlined_call_operand.vmem [shape: bf16[128,32], index: 3, kind: input, shape index: {}]   ;;  %s701_s4 = inlined_call_operand.vmem [shape: f32[1,32], index: 4, kind: input, shape index: {}]   ;;  %s702_s5 = inlined_call_operand.vmem [shape: f32[1,32], index: 5, kind: input, shape index: {}]   ;;  %s703_s6 = inlined_call_operand.vmem [shape: f32[1,32], index: 6, kind: input, shape index: {}]   ;;  %s704_s7 = inlined_call_operand.vmem [shape: f32[16,32], index: 7, kind: output, shape index: {}]  }
   0x1 LB: > { %s499_s25 = sadd.s32 4294967295, %s584_s24   ;;  %p503_p0 = scmp.ge.s32.totalorder %s584_s24, 1  ;;  %s584_s24 = sphi %s627_s24, %s17_s24  }
   0x2   : > { %p236_p1 = scmp.lt.s32.totalorder %s584_s24, 3 }
   0x4   : > { %p237_p2 = pnand %p503_p0, %p236_p1 }
   0x5   : > { %p266_p3 = scmp.lt.s32.totalorder (!%p237_p2), %s499_s25, 1 }
   0x6   : > { %240 = sbr.rel (%p237_p2) target bundleno = 571 (0x23b), region = 48 }
   0xb   : > { %v550_v0 = vld [vmem:[%s698_s1 + $0x8] sm:$0xff]  ;;  %v558_v1 = vld [vmem:[%s700_s3 + $0x38] sm:$0xff]  ;;  %v549_v2 = vld [vmem:[%s698_s1] sm:$0xff]  ;;  %s706_s25 = smov (!%p266_p3, %s499_s25), 1  ;;  %vm297_vm0 = vcmask 261120   ;;  %v586_v32 = vmov 32.0  }
   0xc   : > { %307 = vmatpush.bf16.msra.mxu0 %v550_v0  ;;  %392 = vmatpush.bf16.msra.mxu1 %v558_v1  ;;  %s504_s9 = sshll.u32 %s706_s25, 3  ;;  %v557_v5 = vld [vmem:[%s700_s3 + $0x30] sm:$0xff]  ;;  %v556_v6 = vld [vmem:[%s700_s3 + $0x28] sm:$0xff]  ;;  %v555_v7 = vld [vmem:[%s700_s3 + $0x20] sm:$0xff] }
   0xd   : > { %s269_s12 = scalar_lea.vmem %s697_s0, %s504_s9  ;;  %v554_v8 = vld [vmem:[%s700_s3 + $0x18] sm:$0xff]  ;;  %v553_v9 = vld [vmem:[%s700_s3 + $0x10] sm:$0xff]  ;;  %v552_v10 = vld [vmem:[%s700_s3 + $0x8] sm:$0xff]  ;;  %s273_s17 = scalar_lea.vmem %s704_s7, %s504_s9 }
   0xe   : > { %v275_v3 = vld [vmem:[%s269_s12] sm:$0xff] }
   0xf   : > { %v276_v4 = vpack.c.bf16 %v275_v3, %v275_v3  ;;  %v551_v11 = vld [vmem:[%s700_s3] sm:$0xff] }
  0x10   : > { %308 = vmatpush.bf16.msra.mxu0 %v549_v2  ;;  %393 = vmatpush.bf16.msra.mxu1 %v557_v5  ;;  %v568_v12 = vld [vmem:[%s699_s2] ss:$0 sm:$0xff] }
  0x11   : > { %v569_v26 = vld [vmem:[%s701_s4] ss:$0 sm:$0xff] }
  0x12   : > { %v570_v53 = vld [vmem:[%s702_s5] ss:$0 sm:$0xff] }
  0x13   : > { %514 = vmatmul.msk.bf16.vlgmr.msra.gmra.mxu0 %vm297_vm0, %v276_v4  ;;  %v571_v55 = vld [vmem:[%s703_s6] ss:$0 sm:$0xff] }
  0x14   : > { %394 = vmatpush.bf16.msra.mxu1 %v556_v6 }
  0x18   : > { %395 = vmatpush.bf16.msra.mxu1 %v555_v7 }
  0x1c   : > { %396 = vmatpush.bf16.msra.mxu1 %v554_v8 }
  0x20   : > { %397 = vmatpush.bf16.msra.mxu1 %v553_v9 }
  0x24   : > { %398 = vmatpush.bf16.msra.mxu1 %v552_v10 }
  0x28   : > { %399 = vmatpush.bf16.msra.mxu1 %v551_v11 }
  0x90   : > { %v310_v13 = vpop.f32.mrf.mxu0 }
  0x91   : > { %v311_v14 = vadd.f32 %v568_v12, %v310_v13 }
  0x93   : > { %v314_v15 = vmul.f32 %v311_v14, %v311_v14 }
  0x95   : > { %v315_v16 = vmul.f32 %v314_v15, %v311_v14 }
  0x97   : > { %v316_v17 = vmul.f32 0.044715, %v315_v16 }
  0x98   : > { %v312_v18 = vpop.f32.mrf.mxu0 }
  0x99   : > { %v317_v19 = vadd.f32 %v316_v17, %v311_v14 }
  0x9b   : > { %v318_v20 = vmul.f32 0.7978846, %v317_v19 }
  0x9d   : > { %572 = vtanh.f32 %v318_v20 }
  0x9e   : > { %574 = vrcp.f32 %v586_v32 }
  0xa3   : > { %v573_v21 = vpop.eup %572 }
  0xa4   : > { %v320_v22 = vadd.f32 1.0, %v573_v21  ;;  %v575_v33 = vpop.eup %574 }
  0xa5   : > { %v410_v34 = vmul.f32 32.0, %v575_v33  ;;  %vm414_vm1 = vweird.f32 %v575_v33 }
  0xa6   : > { %v321_v23 = vmul.f32 0.5, %v320_v22 }
  0xa7   : > { %v411_v35 = vsub.f32 1.0, %v410_v34 }
  0xa8   : > { %v322_v24 = vmul.f32 %v321_v23, %v311_v14 }
  0xa9   : > { %v412_v36 = vmul.f32 %v575_v33, %v411_v35 }
  0xaa   : > { %v323_v25 = vpack.c.bf16 %v322_v24, %v322_v24 }
  0xab   : > { %v413_v37 = vadd.f32 %v575_v33, %v412_v36 }
  0xac   : > { %400 = vmatmul.bf16.vlgmr.msra.gmra.mxu1 %v323_v25 }
  0xad   : > { %v415_v38 = vsel %vm414_vm1, %v575_v33, %v413_v37 }
 0x129   : > { %v401_v27 = vpop.f32.mrf.mxu1 }
 0x12a   : > { %v402_v28 = vadd.f32 %v569_v26, %v401_v27 }
 0x12c   : > { %v405_v29 = vadd.f32 %v402_v28, %v275_v3 }
 0x12e   : > { %v406_v30 = vsel %vm297_vm0, %v405_v29, 0.0 }
 0x12f   : > { %407 = vadd.xlane.f32.xlu0 %v406_v30 }
 0x131   : > { %v403_v31 = vpop.f32.mrf.mxu1 }
 0x1a2   : > { %v408_v39 = vpop.xlane.xlu0 %407 }
 0x1a3   : > { %v416_v40 = vmul.f32 %v415_v38, %v408_v39 }
 0x1a5   : > { %v417_v41 = vsub.f32 %v405_v29, %v416_v40 }
 0x1a7   : > { %v418_v42 = vmul.f32 %v417_v41, %v417_v41 }
 0x1a9   : > { %v419_v43 = vsel %vm297_vm0, %v418_v42, 0.0 }
 0x1aa   : > { %420 = vadd.xlane.f32.xlu0 %v419_v43 }
 0x21d   : > { %v421_v44 = vpop.xlane.xlu0 %420 }
 0x21e   : > { %v422_v45 = vmul.f32 %v421_v44, %v415_v38 }
 0x220   : > { %v423_v46 = vadd.f32 1e-12, %v422_v45 }
 0x222   : > { %576 = vrsqrt.f32 %v423_v46  ;;  %vm430_vm3 = vweird.f32 %v423_v46 }
 0x228   : > { %v577_v47 = vpop.eup %576 }
 0x229   : > { %v425_v48 = vmul.f32 %v577_v47, %v423_v46  ;;  %vm431_vm2 = vweird.f32 %v577_v47 }
 0x22a   : > { %vm432_vm4 = vmor %vm430_vm3, %vm431_vm2 }
 0x22b   : > { %v426_v49 = vmul.f32 %v577_v47, %v425_v48 }
 0x22d   : > { %v427_v50 = vmul.f32 0.5, %v426_v49 }
 0x22f   : > { %v428_v51 = vsub.f32 1.5, %v427_v50 }
 0x231   : > { %v429_v52 = vmul.f32 %v577_v47, %v428_v51 }
 0x233   : > { %v433_v54 = vsel %vm432_vm4, %v577_v47, %v429_v52 }
 0x234   : > { %v434_v56 = vmul.f32 %v433_v54, %v417_v41 }
 0x236   : > { %v439_v57 = vmul.f32 %v570_v53, %v434_v56 }
 0x238   : > { %v444_v58 = vadd.f32 %v571_v55, %v439_v57 }
 0x23a   : > { %445 = vst.msk [vmem:[%s273_s17] sm:$0xff] %vm297_vm0, %v444_v58 }
 0x23b PF: > { %s17_s24 = sadd.s32 1, %s584_s24  }
 0x23c   : > { %p14_p4 = scmp.ge.s32.totalorder %s17_s24, 4  }
 0x23e   :  { %16 = sbr.rel (!%p14_p4) target bundleno = 1 (0x1), region = 78 }

// kernel: videollama_forward.58
= control target key start
LH: loop header
LB: loop body
LE: loop exit
PB: predicated region body
PF: predicated region fallthrough
CT: control target
= control target key end

     0   :  { %vm38_vm0 = vcmask 64512   ;;  %vm93_vm1 = vcmask 261120   ;;  %s670_s19 = smov 112   ;;  %s671_s20 = smov 104   ;;  %vm302_vm2 = vcmask 130112   ;;  %vm437_vm3 = vcmask 195712   ;;  %s834_s1 = inlined_call_operand.vmem [shape: bf16[2,32,64], index: 1, kind: input, shape index: {}]   ;;  %s835_s0 = inlined_call_operand.vmem [shape: bf16[2,8,32], index: 0, kind: input, shape index: {}]   ;;  %s836_s2 = inlined_call_operand.vmem [shape: bf16[2,8,32], index: 2, kind: output, shape index: {}]  }
   0x1   :  { %v696_v0 = vld [vmem:[%s834_s1 + $0x8] sm:$0xff]  ;;  %v701_v1 = vld [vmem:[%s834_s1 + $0x18] sm:$0xff]  ;;  %v623_v4 = vld [vmem:[%s835_s0] sm:$0xff]   ;;  %s668_s0 = smov 96   ;;  %s672_s21 = smov 88   ;;  %vm572_vm4 = vcmask 261312  }
   0x2   :  { %v46_v2 = vsel %vm38_vm0, %v696_v0, 0  ;;  %v78_v3 = vsel %vm38_vm0, %v701_v1, 0  ;;  %v713_v5 = vld [vmem:[%s834_s1] sm:$0xff]  ;;  %v718_v6 = vld [vmem:[%s834_s1 + $0x10] sm:$0xff]  ;;  %v624_v7 = vunpack.c.l.bf16 %v623_v4  ;;  %v625_v8 = vunpack.c.h.bf16 %v623_v4  ;;  %120 = vrot.lane.b32.xlu2 %v696_v0, %s668_s0  ;;  %s669_s1 = smov 120   ;;  %s673_s22 = smov 80  }
   0x3   :  { %54 = vmatpush.bf16.xpose.msra.mxu0 %v46_v2  ;;  %86 = vmatpush.bf16.xpose.msra.mxu1 %v78_v3  ;;  %v43_v9 = vsel %vm38_vm0, %v713_v5, 0  ;;  %v75_v10 = vsel %vm38_vm0, %v718_v6, 0  ;;  %s674_s23 = smov 72   ;;  %s675_s24 = smov 8   ;;  %vm579_vm5 = vcmask 257024  }
   0x4   :  { %v24_v11 = vmul.f32 0.35355338, %v624_v7  ;;  %v25_v12 = vmul.f32 0.35355338, %v625_v8  ;;  %140 = vrot.lane.b32.xlu1 %v718_v6, %s668_s0  ;;  %s676_s25 = smov 16   ;;  %s677_s26 = smov 24  }
   0x6   :  { %v26_v13 = vpack.c.bf16 %v24_v11, %v24_v11  ;;  %v27_v14 = vpack.c.bf16 %v25_v12, %v25_v12 }
   0x8   :  { %v196_v15 = vunpack.c.l.b16 %v27_v14  ;;  %v165_v32 = vunpack.c.l.b16 %v26_v13 }
   0xa   :  { %142 = vrot.lane.b32.xlu2 %v701_v1, %s668_s0  ;;  %v197_v16 = vpack.c.b16 %v196_v15, %v196_v15  ;;  %v166_v33 = vpack.c.b16 %v165_v32, %v165_v32 }
   0xb   :  { %55 = vmatpush.bf16.xpose.msra.mxu0 %v43_v9  ;;  %87 = vmatpush.bf16.xpose.msra.mxu1 %v75_v10 }
   0xc   :  { %198 = vrot.lane.b32.xlu1 %v197_v16, %s669_s1 }
  0x12   :  { %594 = vmatmul.msk.bf16.vlgmr.msra.gmra.mxu0 %vm38_vm0, %v26_v13  ;;  %603 = vmatmul.msk.bf16.vlgmr.msra.gmra.mxu1 %vm38_vm0, %v27_v14 }
  0x13   :  { %171 = vrot.lane.b32.xlu2 %v696_v0, %s669_s1 }
  0x1b   :  { %202 = vrot.lane.b32.xlu2 %v701_v1, %s669_s1 }
  0x23   :  { %169 = vrot.lane.b32.xlu2 %v713_v5, %s669_s1 }
  0x2b   :  { %167 = vrot.lane.b32.xlu2 %v166_v33, %s669_s1 }
  0x33   :  { %337 = vrot.lane.b32.xlu2 %v701_v1, %s670_s19 }
  0x3b   :  { %305 = vrot.lane.b32.xlu2 %v166_v33, %s670_s19 }
  0x43   :  { %472 = vrot.lane.b32.xlu2 %v701_v1, %s671_s20 }
  0x4b   :  { %440 = vrot.lane.b32.xlu2 %v166_v33, %s671_s20 }
  0x5c   :  { %v121_v31 = vpop.permute.xlu2 %120 }
  0x5d   :  { %133 = vmatpush.bf16.msra.mxu2 %v121_v31 }
  0x64   :  { %v143_v36 = vpop.permute.xlu2 %142 }
  0x65   :  { %155 = vmatpush.bf16.msra.mxu3 %v143_v36 }
  0x6d   :  { %v172_v38 = vpop.permute.xlu2 %171 }
  0x6e   :  { %v180_v40 = vsel %vm38_vm0, %v172_v38, 0 }
  0x75   :  { %v203_v41 = vpop.permute.xlu2 %202 }
  0x76   :  { %v141_v37 = vpop.permute.xlu1 %140  ;;  %v211_v42 = vsel %vm38_vm0, %v203_v41, 0 }
  0x77   :  { %156 = vmatpush.bf16.msra.mxu3 %v141_v37 }
  0x7b   :  { %219 = vmatpush.bf16.xpose.msrb.mxu3 %v211_v42 }
  0x7d   :  { %v170_v43 = vpop.permute.xlu2 %169 }
  0x7e   :  { %v177_v44 = vsel %vm38_vm0, %v170_v43, 0  ;;  %v199_v45 = vpop.permute.xlu1 %198 }
  0x85   :  { %v168_v49 = vpop.permute.xlu2 %167 }
  0x8d   :  { %v338_v56 = vpop.permute.xlu2 %337 }
  0x8e   :  { %v346_v60 = vsel %vm38_vm0, %v338_v56, 0 }
  0x8f   :  { %v57_v17 = vpop.f32.mrf.mxu0  ;;  %v89_v18 = vpop.f32.mrf.mxu1 }
  0x90   :  { %v94_v19 = vsel %vm93_vm1, %v57_v17, -inf  ;;  %v97_v20 = vsel %vm93_vm1, %v89_v18, -inf }
  0x91   :  { %95 = vmax.xlane.f32.xlu0 %v94_v19 }
  0x95   :  { %v306_v62 = vpop.permute.xlu2 %305 }
  0x97   :  { %v59_v21 = vpop.f32.mrf.mxu0  ;;  %v91_v22 = vpop.f32.mrf.mxu1 }
  0x99   :  { %98 = vmax.xlane.f32.xlu0 %v97_v20 }
  0x9d   :  { %v473_v3 = vpop.permute.xlu2 %472 }
  0x9e   :  { %v481_v9 = vsel %vm38_vm0, %v473_v3, 0 }
  0xa5   :  { %v441_v15 = vpop.permute.xlu2 %440 }
  0xad   :  { %118 = vrot.lane.b32.xlu0 %v713_v5, %s668_s0 }
  0xb5   :  { %200 = vrot.lane.b32.xlu0 %v718_v6, %s669_s1 }
  0xbd   :  { %309 = vrot.lane.b32.xlu0 %v696_v0, %s670_s19 }
  0xc5   :  { %335 = vrot.lane.b32.xlu0 %v718_v6, %s670_s19 }
  0xcd   :  { %444 = vrot.lane.b32.xlu0 %v696_v0, %s671_s20 }
  0xd5   :  { %470 = vrot.lane.b32.xlu0 %v718_v6, %s671_s20 }
  0xdd   :  { %274 = vrot.lane.b32.xlu0 %v701_v1, %s672_s21 }
 0x104   :  { %v96_v23 = vpop.xlane.xlu0 %95 }
 0x105   :  { %v100_v24 = vsub.f32 %v57_v17, %v96_v23 }
 0x107   :  { %v102_v25 = vmul.f32 1.442695, %v100_v24 }
 0x109   :  { %636 = vpow2.f32 %v102_v25 }
 0x10c   :  { %v99_v26 = vpop.xlane.xlu0 %98 }
 0x10d   :  { %v101_v27 = vsub.f32 %v89_v18, %v99_v26 }
 0x10f   :  { %v637_v28 = vpop.eup %636  ;;  %v104_v29 = vmul.f32 1.442695, %v101_v27 }
 0x110   :  { %v106_v30 = vsel %vm93_vm1, %v637_v28, 0.0 }
 0x111   :  { %638 = vpow2.f32 %v104_v29  ;;  %107 = vadd.xlane.f32.xlu1 %v106_v30 }
 0x117   :  { %v639_v34 = vpop.eup %638 }
 0x118   :  { %v109_v35 = vsel %vm93_vm1, %v639_v34, 0.0 }
 0x119   :  { %110 = vadd.xlane.f32.xlu1 %v109_v35 }
 0x11f   :  { %v119_v39 = vpop.permute.xlu0 %118 }
 0x120   :  { %134 = vmatpush.bf16.msra.mxu2 %v119_v39 }
 0x124   :  { %188 = vmatpush.bf16.xpose.msrb.mxu2 %v180_v40 }
 0x127   :  { %v201_v46 = vpop.permute.xlu0 %200 }
 0x128   :  { %v208_v47 = vsel %vm38_vm0, %v201_v46, 0 }
 0x129   :  { %220 = vmatpush.bf16.xpose.msrb.mxu3 %v208_v47 }
 0x12c   :  { %189 = vmatpush.bf16.xpose.msrb.mxu2 %v177_v44 }
 0x12f   :  { %v310_v51 = vpop.permute.xlu0 %309 }
 0x130   :  { %v318_v55 = vsel %vm38_vm0, %v310_v51, 0 }
 0x132   :  { %307 = vrot.lane.b32.xlu1 %v713_v5, %s670_s19 }
 0x137   :  { %v336_v61 = vpop.permute.xlu0 %335 }
 0x138   :  { %v343_v63 = vsel %vm38_vm0, %v336_v61, 0 }
 0x13a   :  { %333 = vrot.lane.b32.xlu1 %v197_v16, %s670_s19 }
 0x13f   :  { %v445_v2 = vpop.permute.xlu0 %444 }
 0x140   :  { %v453_v7 = vsel %vm38_vm0, %v445_v2, 0 }
 0x142   :  { %442 = vrot.lane.b32.xlu1 %v713_v5, %s671_s20 }
 0x147   :  { %v471_v10 = vpop.permute.xlu0 %470 }
 0x148   :  { %v478_v12 = vsel %vm38_vm0, %v471_v10, 0 }
 0x14a   :  { %468 = vrot.lane.b32.xlu1 %v197_v16, %s671_s20 }
 0x14f   :  { %v275_v26 = vpop.permute.xlu0 %274 }
 0x150   :  { %287 = vmatpush.bf16.msrb.mxu1 %v275_v26 }
 0x152   :  { %252 = vrot.lane.b32.xlu1 %v696_v0, %s672_s21 }
 0x184   :  { %v108_v48 = vpop.xlane.xlu1 %107 }
 0x185   :  { %640 = vrcp.f32 %v108_v48 }
 0x18b   :  { %v641_v50 = vpop.eup %640 }
 0x18c   :  { %v111_v52 = vpop.xlane.xlu1 %110  ;;  %v114_v53 = vmul.f32 %v641_v50, %v637_v28 }
 0x18d   :  { %642 = vrcp.f32 %v111_v52 }
 0x18e   :  { %v116_v54 = vpack.c.bf16 %v114_v53, %v114_v53 }
 0x190   :  { %604 = vmatmul.msk.bf16.vlgmr.msra.gmra.mxu2 %vm93_vm1, %v116_v54 }
 0x191   :  { %326 = vmatpush.bf16.xpose.msra.mxu2 %v318_v55 }
 0x193   :  { %v643_v57 = vpop.eup %642 }
 0x194   :  { %v115_v58 = vmul.f32 %v643_v57, %v639_v34 }
 0x196   :  { %v117_v59 = vpack.c.bf16 %v115_v58, %v115_v58 }
 0x198   :  { %605 = vmatmul.msk.bf16.vlgmr.msra.gmra.mxu3 %vm93_vm1, %v117_v59 }
 0x199   :  { %354 = vmatpush.bf16.xpose.msra.mxu3 %v346_v60 }
 0x1a0   :  { %606 = vmatmul.msk.bf16.vlgmr.msrb.gmra.mxu2 %vm38_vm0, %v168_v49 }
 0x1a1   :  { %355 = vmatpush.bf16.xpose.msra.mxu3 %v343_v63 }
 0x1a4   :  { %v308_v4 = vpop.permute.xlu1 %307 }
 0x1a5   :  { %v315_v8 = vsel %vm38_vm0, %v308_v4, 0 }
 0x1a6   :  { %327 = vmatpush.bf16.xpose.msra.mxu2 %v315_v8 }
 0x1a8   :  { %607 = vmatmul.msk.bf16.vlgmr.msrb.gmra.mxu3 %vm38_vm0, %v199_v45 }
 0x1a9   :  { %489 = vmatpush.bf16.xpose.msrb.mxu3 %v481_v9 }
 0x1ac   :  { %v334_v11 = vpop.permute.xlu1 %333 }
 0x1ae   :  { %461 = vmatpush.bf16.xpose.msrb.mxu2 %v453_v7 }
 0x1b0   :  { %610 = vmatmul.msk.bf16.vlgmr.msra.gmra.mxu2 %vm38_vm0, %v306_v62 }
 0x1b1   :  { %490 = vmatpush.bf16.xpose.msrb.mxu3 %v478_v12 }
 0x1b4   :  { %v443_v13 = vpop.permute.xlu1 %442 }
 0x1b5   :  { %v450_v14 = vsel %vm38_vm0, %v443_v13, 0 }
 0x1b6   :  { %462 = vmatpush.bf16.xpose.msrb.mxu2 %v450_v14 }
 0x1b8   :  { %611 = vmatmul.msk.bf16.vlgmr.msra.gmra.mxu3 %vm38_vm0, %v334_v11 }
 0x1bc   :  { %v469_v16 = vpop.permute.xlu1 %468 }
 0x1c0   :  { %614 = vmatmul.msk.bf16.vlgmr.msrb.gmra.mxu2 %vm38_vm0, %v441_v15 }
 0x1c4   :  { %v253_v38 = vpop.permute.xlu1 %252 }
 0x1c5   :  { %265 = vmatpush.bf16.msrb.mxu0 %v253_v38 }
 0x1c8   :  { %615 = vmatmul.msk.bf16.vlgmr.msrb.gmra.mxu3 %vm38_vm0, %v469_v16 }
 0x213   :  { %v136_v17 = vpop.f32.mrf.mxu2 }
 0x214   :  { %162 = vst.msk [vmem:[#allocation2] sm:$0xff] %vm38_vm0, %v136_v17 }
 0x21b   :  { %v138_v18 = vpop.f32.mrf.mxu2  ;;  %v158_v19 = vpop.f32.mrf.mxu3 }
 0x21c   :  { %163 = vst.msk [vmem:[#allocation2 + $0x8] sm:$0xff] %vm38_vm0, %v158_v19 }
 0x223   :  { %v160_v20 = vpop.f32.mrf.mxu3  ;;  %v191_v21 = vpop.f32.mrf.mxu2 }
 0x224   :  { %v226_v22 = vsel %vm93_vm1, %v191_v21, -inf }
 0x225   :  { %227 = vmax.xlane.f32.xlu0 %v226_v22 }
 0x22b   :  { %v193_v23 = vpop.f32.mrf.mxu2  ;;  %v222_v24 = vpop.f32.mrf.mxu3 }
 0x22c   :  { %v229_v25 = vsel %vm93_vm1, %v222_v24, -inf }
 0x22d   :  { %230 = vmax.xlane.f32.xlu2 %v229_v25 }
 0x233   :  { %v224_v27 = vpop.f32.mrf.mxu3  ;;  %v329_v28 = vpop.f32.mrf.mxu2 }
 0x234   :  { %v361_v29 = vsel %vm93_vm1, %v329_v28, -inf }
 0x235   :  { %362 = vmax.xlane.f32.xlu1 %v361_v29 }
 0x239   :  { %272 = vrot.lane.b32.xlu0 %v718_v6, %s672_s21 }
 0x23b   :  { %v795_v30 = vpop.f32.mrf.mxu3  ;;  %v331_v31 = vpop.f32.mrf.mxu2 }
 0x23c   :  { %v364_v40 = vsel %vm93_vm1, %v795_v30, -inf }
 0x241   :  { %387 = vrot.lane.b32.xlu0 %v696_v0, %s673_s22 }
 0x243   :  { %v359_v32 = vpop.f32.mrf.mxu3  ;;  %v464_v33 = vpop.f32.mrf.mxu2 }
 0x244   :  { %v496_v39 = vsel %vm93_vm1, %v464_v33, -inf }
 0x245   :  { %250 = vrot.lane.b32.xlu2 %v713_v5, %s672_s21 }
 0x249   :  { %409 = vrot.lane.b32.xlu0 %v701_v1, %s673_s22 }
 0x24b   :  { %v492_v34 = vpop.f32.mrf.mxu3  ;;  %v466_v35 = vpop.f32.mrf.mxu2 }
 0x24c   :  { %v499_v36 = vsel %vm93_vm1, %v492_v34, -inf }
 0x24d   :  { %500 = vmax.xlane.f32.xlu1 %v499_v36 }
 0x251   :  { %385 = vrot.lane.b32.xlu0 %v713_v5, %s673_s22 }
 0x253   :  { %v494_v37 = vpop.f32.mrf.mxu3 }
 0x26e   :  { %497 = vmax.xlane.f32.xlu2 %v496_v39 }
 0x27b   :  { %365 = vmax.xlane.f32.xlu0 %v364_v40 }
 0x298   :  { %v228_v41 = vpop.xlane.xlu0 %227 }
 0x299   :  { %v232_v42 = vsub.f32 %v191_v21, %v228_v41 }
 0x29b   :  { %v234_v43 = vmul.f32 1.442695, %v232_v42 }
 0x29d   :  { %644 = vpow2.f32 %v234_v43 }
 0x2a0   :  { %v231_v44 = vpop.xlane.xlu2 %230 }
 0x2a1   :  { %v233_v45 = vsub.f32 %v222_v24, %v231_v44 }
 0x2a3   :  { %v645_v46 = vpop.eup %644  ;;  %v236_v47 = vmul.f32 1.442695, %v233_v45 }
 0x2a4   :  { %v238_v48 = vsel %vm93_vm1, %v645_v46, 0.0 }
 0x2a5   :  { %646 = vpow2.f32 %v236_v47  ;;  %239 = vadd.xlane.f32.xlu0 %v238_v48 }
 0x2a8   :  { %v363_v49 = vpop.xlane.xlu1 %362  ;;  %v251_v50 = vpop.permute.xlu2 %250 }
 0x2a9   :  { %v367_v51 = vsub.f32 %v329_v28, %v363_v49  ;;  %266 = vmatpush.bf16.msrb.mxu0 %v251_v50 }
 0x2ab   :  { %v647_v52 = vpop.eup %646  ;;  %v369_v53 = vmul.f32 1.442695, %v367_v51  ;;  %v273_v54 = vpop.permute.xlu0 %272 }
 0x2ac   :  { %288 = vmatpush.bf16.msrb.mxu1 %v273_v54  ;;  %v241_v55 = vsel %vm93_vm1, %v647_v52, 0.0 }
 0x2ad   :  { %648 = vpow2.f32 %v369_v53  ;;  %242 = vadd.xlane.f32.xlu2 %v241_v55 }
 0x2b3   :  { %v649_v56 = vpop.eup %648  ;;  %v388_v57 = vpop.permute.xlu0 %387 }
 0x2b4   :  { %400 = vmatpush.bf16.msra.mxu0 %v388_v57  ;;  %v373_v58 = vsel %vm93_vm1, %v649_v56, 0.0 }
 0x2b5   :  { %374 = vadd.xlane.f32.xlu1 %v373_v58 }
 0x2b9   :  { %407 = vrot.lane.b32.xlu0 %v718_v6, %s673_s22 }
 0x2bb   :  { %v410_v59 = vpop.permute.xlu0 %409 }
 0x2bc   :  { %422 = vmatpush.bf16.msra.mxu1 %v410_v59 }
 0x2c0   :  { %v501_v63 = vpop.xlane.xlu1 %500 }
 0x2c1   :  { %v503_v3 = vsub.f32 %v492_v34, %v501_v63 }
 0x2c3   :  { %v386_v60 = vpop.permute.xlu0 %385  ;;  %v506_v4 = vmul.f32 1.442695, %v503_v3 }
 0x2c4   :  { %401 = vmatpush.bf16.msra.mxu0 %v386_v60 }
 0x2ce   :  { %544 = vrot.lane.b32.xlu1 %v701_v1, %s674_s23 }
 0x2e1   :  { %v498_v61 = vpop.xlane.xlu2 %497 }
 0x2e2   :  { %v502_v62 = vsub.f32 %v464_v33, %v498_v61 }
 0x2e4   :  { %v504_v2 = vmul.f32 1.442695, %v502_v62 }
 0x2e6   :  { %650 = vpow2.f32 %v504_v2 }
 0x2e7   :  { %652 = vpow2.f32 %v506_v4 }
 0x2ec   :  { %v651_v7 = vpop.eup %650 }
 0x2ed   :  { %v508_v8 = vsel %vm93_vm1, %v651_v7, 0.0  ;;  %v653_v12 = vpop.eup %652 }
 0x2ee   :  { %509 = vadd.xlane.f32.xlu0 %v508_v8  ;;  %v366_v9 = vpop.xlane.xlu0 %365  ;;  %v511_v1 = vsel %vm93_vm1, %v653_v12, 0.0 }
 0x2ef   :  { %v368_v10 = vsub.f32 %v795_v30, %v366_v9 }
 0x2f1   :  { %v371_v11 = vmul.f32 1.442695, %v368_v10 }
 0x2f3   :  { %654 = vpow2.f32 %v371_v11 }
 0x2f8   :  { %512 = vadd.xlane.f32.xlu1 %v511_v1 }
 0x2f9   :  { %v655_v13 = vpop.eup %654 }
 0x2fa   :  { %v376_v14 = vsel %vm93_vm1, %v655_v13, 0.0 }
 0x2fb   :  { %377 = vadd.xlane.f32.xlu2 %v376_v14 }
 0x311   :  { %542 = vrot.lane.b32.xlu1 %v718_v6, %s674_s23 }
 0x313   :  { %522 = vrot.lane.b32.xlu2 %v696_v0, %s674_s23 }
 0x318   :  { %v240_v15 = vpop.xlane.xlu0 %239 }
 0x319   :  { %656 = vrcp.f32 %v240_v15 }
 0x31b   :  { %520 = vrot.lane.b32.xlu2 %v713_v5, %s674_s23 }
 0x31f   :  { %v657_v16 = vpop.eup %656 }
 0x320   :  { %v246_v17 = vmul.f32 %v657_v16, %v645_v46  ;;  %v243_v18 = vpop.xlane.xlu2 %242 }
 0x321   :  { %658 = vrcp.f32 %v243_v18 }
 0x322   :  { %v248_v19 = vpack.c.bf16 %v246_v17, %v246_v17 }
 0x324   :  { %608 = vmatmul.msk.bf16.vlgmr.msrb.gmra.mxu0 %vm93_vm1, %v248_v19 }
 0x327   :  { %v659_v20 = vpop.eup %658 }
 0x328   :  { %v247_v21 = vmul.f32 %v659_v20, %v647_v52  ;;  %v375_v22 = vpop.xlane.xlu1 %374 }
 0x329   :  { %660 = vrcp.f32 %v375_v22 }
 0x32a   :  { %v249_v23 = vpack.c.bf16 %v247_v21, %v247_v21 }
 0x32b   :  { %v408_v24 = vpop.permute.xlu0 %407 }
 0x32c   :  { %609 = vmatmul.msk.bf16.vlgmr.msrb.gmra.mxu1 %vm93_vm1, %v249_v23 }
 0x32d   :  { %423 = vmatpush.bf16.msra.mxu1 %v408_v24 }
 0x32f   :  { %v661_v0 = vpop.eup %660 }
 0x330   :  { %v381_v6 = vmul.f32 %v661_v0, %v649_v56 }
 0x332   :  { %v383_v25 = vpack.c.bf16 %v381_v6, %v381_v6 }
 0x334   :  { %612 = vmatmul.msk.bf16.vlgmr.msra.gmra.mxu0 %vm93_vm1, %v383_v25 }
 0x340   :  { %v545_v5 = vpop.permute.xlu1 %544 }
 0x341   :  { %557 = vmatpush.bf16.msrb.mxu1 %v545_v5 }
 0x361   :  { %v510_v27 = vpop.xlane.xlu0 %509 }
 0x36b   :  { %v513_v31 = vpop.xlane.xlu1 %512 }
 0x36e   :  { %v378_v26 = vpop.xlane.xlu2 %377 }
 0x36f   :  { %662 = vrcp.f32 %v378_v26 }
 0x370   :  { %664 = vrcp.f32 %v510_v27 }
 0x371   :  { %666 = vrcp.f32 %v513_v31 }
 0x375   :  { %v663_v28 = vpop.eup %662 }
 0x376   :  { %v382_v29 = vmul.f32 %v663_v28, %v655_v13  ;;  %v523_v30 = vpop.permute.xlu2 %522  ;;  %v665_v33 = vpop.eup %664 }
 0x377   :  { %535 = vmatpush.bf16.msrb.mxu0 %v523_v30  ;;  %v516_v34 = vmul.f32 %v665_v33, %v651_v7  ;;  %v667_v37 = vpop.eup %666 }
 0x378   :  { %v384_v32 = vpack.c.bf16 %v382_v29, %v382_v29  ;;  %v517_v39 = vmul.f32 %v667_v37, %v653_v12 }
 0x379   :  { %v518_v36 = vpack.c.bf16 %v516_v34, %v516_v34 }
 0x37a   :  { %613 = vmatmul.msk.bf16.vlgmr.msra.gmra.mxu1 %vm93_vm1, %v384_v32  ;;  %v519_v40 = vpack.c.bf16 %v517_v39, %v517_v39 }
 0x37e   :  { %v521_v35 = vpop.permute.xlu2 %520 }
 0x37f   :  { %536 = vmatpush.bf16.msrb.mxu0 %v521_v35 }
 0x382   :  { %616 = vmatmul.msk.bf16.vlgmr.msrb.gmra.mxu0 %vm93_vm1, %v518_v36 }
 0x383   :  { %v543_v38 = vpop.permute.xlu1 %542 }
 0x384   :  { %558 = vmatpush.bf16.msrb.mxu1 %v543_v38 }
 0x38a   :  { %617 = vmatmul.msk.bf16.vlgmr.msrb.gmra.mxu1 %vm93_vm1, %v519_v40 }
 0x3a1   :  { %v268_v41 = vpop.f32.mrf.mxu0 }
 0x3a2   :  { %296 = vrot.lane.b32.xlu2 %v268_v41, %s675_s24 }
 0x3a9   :  { %v270_v42 = vpop.f32.mrf.mxu0  ;;  %v290_v43 = vpop.f32.mrf.mxu1 }
 0x3aa   :  { %298 = vrot.lane.b32.xlu0 %v290_v43, %s675_s24 }
 0x3b1   :  { %v292_v44 = vpop.f32.mrf.mxu1  ;;  %v403_v45 = vpop.f32.mrf.mxu0 }
 0x3b2   :  { %431 = vrot.lane.b32.xlu1 %v403_v45, %s676_s25 }
 0x3b9   :  { %v405_v46 = vpop.f32.mrf.mxu0 }
 0x3f7   :  { %v425_v47 = vpop.f32.mrf.mxu1 }
 0x3f8   :  { %433 = vrot.lane.b32.xlu2 %v425_v47, %s676_s25 }
 0x3fc   :  { %v297_v48 = vpop.permute.xlu2 %296 }
 0x3fd   :  { %303 = vst.msk [vmem:[#allocation2] sm:$0xff] %vm302_vm2, %v297_v48 }
 0x3ff   :  { %v427_v49 = vpop.f32.mrf.mxu1  ;;  %v538_v50 = vpop.f32.mrf.mxu0 }
 0x400   :  { %566 = vrot.lane.b32.xlu1 %v538_v50, %s677_s26 }
 0x407   :  { %v540_v51 = vpop.f32.mrf.mxu0  ;;  %v560_v52 = vpop.f32.mrf.mxu1 }
 0x408   :  { %568 = vrot.lane.b32.xlu2 %v560_v52, %s677_s26 }
 0x40f   :  { %v562_v53 = vpop.f32.mrf.mxu1 }
 0x41c   :  { %v299_v54 = vpop.permute.xlu0 %298 }
 0x41d   :  { %304 = vst.msk [vmem:[#allocation2 + $0x8] sm:$0xff] %vm302_vm2, %v299_v54 }
 0x424   :  { %v432_v55 = vpop.permute.xlu1 %431 }
 0x425   :  { %438 = vst.msk [vmem:[#allocation2] sm:$0xff] %vm437_vm3, %v432_v55 }
 0x452   :  { %v434_v56 = vpop.permute.xlu2 %433 }
 0x453   :  { %439 = vst.msk [vmem:[#allocation2 + $0x8] sm:$0xff] %vm437_vm3, %v434_v56 }
 0x462   :  { %v569_v57 = vpop.permute.xlu2 %568 }
 0x463   :  { %574 = vst.msk [vmem:[#allocation2 + $0x8] sm:$0xff] %vm572_vm4, %v569_v57 }
 0x46a   :  { %v576_v58 = vld [vmem:[#allocation2 + $0x8] sm:$0xff] }
 0x46b   :  { %v578_v59 = vpack.c.bf16 %v576_v58, %v576_v58 }
 0x46d   :  { %581 = vst.msk [vmem:[%s836_s2 + $0x4] sm:$0xf] %vm579_vm5, %v578_v59 }
 0x472   :  { %v567_v60 = vpop.permute.xlu1 %566 }
 0x473   :  { %573 = vst.msk [vmem:[#allocation2] sm:$0xff] %vm572_vm4, %v567_v60 }
 0x47a   :  { %v575_v61 = vld [vmem:[#allocation2] sm:$0xff] }
 0x47b   :  { %v577_v62 = vpack.c.bf16 %v575_v61, %v575_v61 }
 0x47d   :  { %580 = vst.msk [vmem:[%s836_s2] sm:$0xf] %vm579_vm5, %v577_v62 }

</bundles_post_ra>
